<compile_context>
chip_gen: v7x
topology: tpu7x:2x2x1
jax: 0.10.0
libtpu: 0.0.40
codegen_flags: <defaults>
</compile_context>

<pallas_src>
import functools

import numpy as np

import jax
import jax.numpy as jnp
from jax.experimental import pallas as pl
from jax.experimental.pallas import tpu as pltpu

_EPS = 1e-5


# ----------------------------------------------------------------------------
# In-kernel building blocks (each operates on one sample: x is (H*W, C))
# ----------------------------------------------------------------------------
def _shift_rows(x, off):
    """result[r] = x[r + off], zero-filled where r + off is out of range."""
    hw, c = x.shape
    if off == 0:
        return x
    if off > 0:
        return jnp.concatenate([x[off:, :], jnp.zeros((off, c), x.dtype)],
                               axis=0)
    return jnp.concatenate([jnp.zeros((-off, c), x.dtype), x[:hw + off, :]],
                           axis=0)


def _conv3x3_bn_relu(x, wf_ref, shift_ref, mask_ref, width):
    """3x3/stride1/pad1 conv + folded BN + ReLU on a (H*W, Cin) image matrix.

    wf_ref:    (9*Cin, Cout)  tap-major folded weights (BN scale folded in)
    shift_ref: (1, Cout)      folded conv-bias + BN shift
    mask_ref:  (H*W, 9)       1.0 where tap (dy, dx) lands inside the image
    """
    hw, cin = x.shape
    cout = wf_ref.shape[1]
    masks = mask_ref[...]
    acc = jnp.zeros((hw, cout), jnp.float32)
    for k in range(9):
        dy, dx = divmod(k, 3)
        off = (dy - 1) * width + (dx - 1)
        tap = masks[:, k:k + 1] * _shift_rows(x, off)         # (H*W, Cin)
        acc = acc + jnp.dot(tap, wf_ref[k * cin:(k + 1) * cin, :],
                            preferred_element_type=jnp.float32)
    return jnp.maximum(acc + shift_ref[...], 0.0)


def _maxpool2x2(y, sel_ref, width):
    """2x2/stride2 max-pool on a (H*W, C) image matrix -> (H*W/4, C)."""
    m = jnp.maximum(y, _shift_rows(y, 1))          # max over the w-pair
    m = jnp.maximum(m, _shift_rows(m, width))      # max over the h-pair
    # 0/1 selection matmul picks the top-left row of every 2x2 window.
    return jnp.dot(sel_ref[...], m, preferred_element_type=jnp.float32)


def _general_cnns_kernel(x_ref, feat_ref,
                         w1, s1, m1, w2, s2, m2, w3, s3, m3,
                         w4, s4, m4, w5, s5, m5,
                         p1, p2, p3,
                         a1, sh1, a2, sh2,
                         o_ref, *, widths):
    wd1, wd2, wd3, wd4, wd5 = widths

    x = x_ref[0]                                             # (H*W, Cin)
    # cnn_part1: three Conv+BN+ReLU+MaxPool blocks (Dropout = identity, eval)
    x = _conv3x3_bn_relu(x, w1, s1, m1, wd1)
    x = _maxpool2x2(x, p1, wd1)
    x = _conv3x3_bn_relu(x, w2, s2, m2, wd2)
    x = _maxpool2x2(x, p2, wd2)
    x = _conv3x3_bn_relu(x, w3, s3, m3, wd3)
    x = _maxpool2x2(x, p3, wd3)
    # cnn_part2: two Conv+BN+ReLU blocks (no pooling)
    x = _conv3x3_bn_relu(x, w4, s4, m4, wd4)
    x = _conv3x3_bn_relu(x, w5, s5, m5, wd5)                 # (Hf*Wf, C5)

    # linear_part on [flatten(cnn), feature]; the PyTorch NCHW flatten order is
    # folded into the (row-permuted) a1 on the host, so contract row by row.
    n_sp, c5 = x.shape
    feat = feat_ref[0]                                       # (1, F)
    acc = jnp.dot(feat, a1[n_sp * c5:, :],
                  preferred_element_type=jnp.float32)
    for r in range(n_sp):
        acc = acc + jnp.dot(x[r:r + 1, :], a1[r * c5:(r + 1) * c5, :],
                            preferred_element_type=jnp.float32)
    h = jnp.maximum(acc + sh1[...], 0.0)
    o_ref[0] = jnp.dot(h, a2[...], preferred_element_type=jnp.float32) + sh2[...]


# ----------------------------------------------------------------------------
# Host-side (trace-time) operand preparation: BN folding, masks, selectors
# ----------------------------------------------------------------------------
def _make_masks(h, w):
    hh, ww = np.meshgrid(np.arange(h), np.arange(w), indexing="ij")
    hh = hh.reshape(-1)
    ww = ww.reshape(-1)
    cols = []
    for k in range(9):
        dy, dx = divmod(k, 3)
        valid = ((hh + dy - 1 >= 0) & (hh + dy - 1 < h) &
                 (ww + dx - 1 >= 0) & (ww + dx - 1 < w))
        cols.append(valid.astype(np.float32))
    return jnp.asarray(np.stack(cols, axis=1))               # (h*w, 9)


def _make_pool_sel(h, w):
    h2, w2 = h // 2, w // 2
    sel = np.zeros((h2 * w2, h * w), np.float32)
    for i in range(h2):
        for j in range(w2):
            sel[i * w2 + j, (2 * i) * w + (2 * j)] = 1.0
    return jnp.asarray(sel)


def _fold_conv(p, eps=_EPS):
    w = p["w"].astype(jnp.float32)                           # (Cout, Cin, 3, 3)
    cout, cin = w.shape[0], w.shape[1]
    scale = p["gamma"] / jnp.sqrt(p["var"] + eps)
    # rows ordered (dy, dx, ci): Wf[(dy*3+dx)*Cin + ci, co] = w[co, ci, dy, dx]
    wf = jnp.transpose(w, (2, 3, 1, 0)).reshape(9 * cin, cout) * scale[None, :]
    shift = p["b"] * scale + p["beta"] - p["mean"] * scale
    return wf, shift.reshape(1, cout)


def _fold_linear(p, eps=_EPS):
    scale = p["gamma"] / jnp.sqrt(p["var"] + eps)
    a = p["w"].astype(jnp.float32).T * scale[None, :]        # (In, Out)
    shift = p["b"] * scale + p["beta"] - p["mean"] * scale
    return a, shift.reshape(1, -1)


# ----------------------------------------------------------------------------
# Forward pass (network_branch=2, conv_type='Conv', eval mode)
# ----------------------------------------------------------------------------
def general_cnns_forward(params, data, feature):
    b, cin, h, w = data.shape
    n_out = params["linear2"]["w"].shape[0]

    # Per-layer spatial sizes (MaxPool2x2 after conv1..conv3 only).
    dims = []
    hh, ww = h, w
    for i in range(5):
        dims.append((hh, ww))
        if i < 3:
            hh, ww = hh // 2, ww // 2
    widths = tuple(d[1] for d in dims)

    # One NCHW -> channel-last conversion on the host; (H*W, Cin) per image.
    x = jnp.transpose(data, (0, 2, 3, 1)).reshape(b, h * w, cin)
    x = x.astype(jnp.float32)
    feat = feature.reshape(b, 1, -1).astype(jnp.float32)
    feat_dim = feat.shape[-1]

    # Fold BN(eval)+bias into weights/shifts; build tap masks & pool selectors.
    ops = []
    for i, name in enumerate(("conv1", "conv2", "conv3", "conv4", "conv5")):
        wf, sh = _fold_conv(params[name])
        ops += [wf, sh, _make_masks(*dims[i])]
    ops += [_make_pool_sel(*dims[i]) for i in range(3)]

    a1, sh1 = _fold_linear(params["linear1"])
    a2, sh2 = _fold_linear(params["linear2"])
    # Fold the PyTorch NCHW flatten order (c*Hf*Wf + h*Wf + w) into a1's rows so
    # the kernel can contract the channel-last conv output (row r, channel c).
    n_sp = dims[4][0] * dims[4][1]
    c5 = params["conv5"]["w"].shape[0]
    assert a1.shape[0] == n_sp * c5 + feat_dim
    perm = np.array([[c * n_sp + r for c in range(c5)] for r in range(n_sp)],
                    dtype=np.int32).reshape(-1)
    idx = np.concatenate(
        [perm, np.arange(n_sp * c5, a1.shape[0], dtype=np.int32)])
    a1 = a1[idx]
    ops += [a1, sh1, a2, sh2]

    kernel = functools.partial(_general_cnns_kernel, widths=widths)
    out = pl.pallas_call(
        kernel,
        out_shape=jax.ShapeDtypeStruct((b, 1, n_out), jnp.float32),
        grid=(b,),
        in_specs=(
            [pl.BlockSpec((1, h * w, cin), lambda i: (i, 0, 0)),
             pl.BlockSpec((1, 1, feat_dim), lambda i: (i, 0, 0))] +
            [pl.BlockSpec(o.shape, lambda i: (0, 0)) for o in ops]),
        out_specs=pl.BlockSpec((1, 1, n_out), lambda i: (i, 0, 0)),
        compiler_params=pltpu.CompilerParams(
            dimension_semantics=("parallel",)),
    )(x, feat, *ops)
    return out.reshape(b, n_out)


# ----------------------------------------------------------------------------
# Plain-JAX (XLA) reference with identical eval-mode semantics
# ----------------------------------------------------------------------------
def reference_forward(params, data, feature, eps=_EPS):
    def conv_bn_relu(x, p):
        scale = p["gamma"] / jnp.sqrt(p["var"] + eps)
        y = jax.lax.conv_general_dilated(
            x, p["w"], window_strides=(1, 1), padding=((1, 1), (1, 1)),
            dimension_numbers=("NCHW", "OIHW", "NCHW"),
            precision=jax.lax.Precision.HIGHEST)
        y = (y + p["b"][None, :, None, None]) * scale[None, :, None, None]
        y = y + (p["beta"] - p["mean"] * scale)[None, :, None, None]
        return jnp.maximum(y, 0.0)

    def pool(x):
        return jax.lax.reduce_window(x, -jnp.inf, jax.lax.max,
                                     (1, 1, 2, 2), (1, 1, 2, 2), "VALID")

    def linear_bn(x, p, relu):
        scale = p["gamma"] / jnp.sqrt(p["var"] + eps)
        z = jnp.dot(x, p["w"].T, precision=jax.lax.Precision.HIGHEST) + p["b"]
        z = z * scale + (p["beta"] - p["mean"] * scale)
        return jnp.maximum(z, 0.0) if relu else z

    x = pool(conv_bn_relu(data, params["conv1"]))
    x = pool(conv_bn_relu(x, params["conv2"]))
    x = pool(conv_bn_relu(x, params["conv3"]))
    x = conv_bn_relu(x, params["conv4"])
    x = conv_bn_relu(x, params["conv5"])
    b = data.shape[0]
    y = jnp.concatenate([x.reshape(b, -1), feature.reshape(b, -1)], axis=1)
    hidden = linear_bn(y, params["linear1"], relu=True)
    return linear_bn(hidden, params["linear2"], relu=False)


# ----------------------------------------------------------------------------
# Deterministic parameter construction (mirrors GeneralCNNs.init_params)
# ----------------------------------------------------------------------------
def make_params(key):
    def conv_block(k, cin, cout):
        std = jnp.sqrt(2.0 / (cin * 3 * 3))                  # kaiming, fan_in
        return dict(
            w=jax.random.normal(k, (cout, cin, 3, 3), jnp.float32) * std,
            b=jnp.zeros((cout,), jnp.float32),
            gamma=jnp.ones((cout,), jnp.float32),
            beta=jnp.zeros((cout,), jnp.float32),
            mean=jnp.zeros((cout,), jnp.float32),
            var=jnp.ones((cout,), jnp.float32))

    def linear_block(k, fin, fout):
        return dict(
            w=jax.random.normal(k, (fout, fin), jnp.float32) * 0.001,
            b=jnp.zeros((fout,), jnp.float32),
            gamma=jnp.ones((fout,), jnp.float32),
            beta=jnp.zeros((fout,), jnp.float32),
            mean=jnp.zeros((fout,), jnp.float32),
            var=jnp.ones((fout,), jnp.float32))

    keys = jax.random.split(key, 7)
    return dict(
        conv1=conv_block(keys[0], 4, 8),
        conv2=conv_block(keys[1], 8, 16),
        conv3=conv_block(keys[2], 16, 16),
        conv4=conv_block(keys[3], 16, 32),
        conv5=conv_block(keys[4], 32, 32),
        linear1=linear_block(keys[5], 32 * 2 * 2 + 8, 64),
        linear2=linear_block(keys[6], 64, 10),
    )


if __name__ == "__main__":
    key = jax.random.PRNGKey(0)
    k_data, k_feat, k_params = jax.random.split(key, 3)

    data = jax.random.normal(k_data, (2, 4, 16, 16), jnp.float32)    # NCHW
    feature = jax.random.normal(k_feat, (2, 8), jnp.float32)
    params = make_params(k_params)

    fwd = jax.jit(general_cnns_forward)
    out = jax.block_until_ready(fwd(params, data, feature))
    assert out.shape == (2, 10), out.shape

    # Numerical check against a plain-JAX reference of the same model.
    ref = jax.block_until_ready(reference_forward(params, data, feature))
    err = float(jnp.max(jnp.abs(out - ref)))
    scale = float(jnp.max(jnp.abs(ref))) + 1e-12
    assert err <= 2e-2 * scale + 1e-6, ("mismatch", err, scale)

    print("KERNEL_OK")
</pallas_src>

<mosaic_0001>
module attributes {stable_mosaic.version = 11 : i64} {
  func.func @_general_cnns_kernel(%arg0: i32, %arg1: memref<1x256x4xf32, #tpu.memory_space<vmem>>, %arg2: memref<1x1x8xf32, #tpu.memory_space<vmem>>, %arg3: memref<36x8xf32, #tpu.memory_space<vmem>>, %arg4: memref<1x8xf32, #tpu.memory_space<vmem>>, %arg5: memref<256x9xf32, #tpu.memory_space<vmem>>, %arg6: memref<72x16xf32, #tpu.memory_space<vmem>>, %arg7: memref<1x16xf32, #tpu.memory_space<vmem>>, %arg8: memref<64x9xf32, #tpu.memory_space<vmem>>, %arg9: memref<144x16xf32, #tpu.memory_space<vmem>>, %arg10: memref<1x16xf32, #tpu.memory_space<vmem>>, %arg11: memref<16x9xf32, #tpu.memory_space<vmem>>, %arg12: memref<144x32xf32, #tpu.memory_space<vmem>>, %arg13: memref<1x32xf32, #tpu.memory_space<vmem>>, %arg14: memref<4x9xf32, #tpu.memory_space<vmem>>, %arg15: memref<288x32xf32, #tpu.memory_space<vmem>>, %arg16: memref<1x32xf32, #tpu.memory_space<vmem>>, %arg17: memref<4x9xf32, #tpu.memory_space<vmem>>, %arg18: memref<64x256xf32, #tpu.memory_space<vmem>>, %arg19: memref<16x64xf32, #tpu.memory_space<vmem>>, %arg20: memref<4x16xf32, #tpu.memory_space<vmem>>, %arg21: memref<136x64xf32, #tpu.memory_space<vmem>>, %arg22: memref<1x64xf32, #tpu.memory_space<vmem>>, %arg23: memref<64x10xf32, #tpu.memory_space<vmem>>, %arg24: memref<1x10xf32, #tpu.memory_space<vmem>>, %arg25: memref<1x1x10xf32, #tpu.memory_space<vmem>>) attributes {dimension_semantics = [#tpu.dimension_semantics<parallel>], iteration_bounds = array<i64: 2>, scalar_prefetch = 0 : i64, scratch_operands = 0 : i64, tpu.core_type = #tpu.core_type<tc>, window_params = [{transform_indices = @transform_0, window_bounds = array<i64: 1, 256, 4>}, {transform_indices = @transform_1, window_bounds = array<i64: 1, 1, 8>}, {pipeline_mode = #tpu.pipeline_mode<synchronous>, transform_indices = @transform_2, window_bounds = array<i64: 36, 8>}, {pipeline_mode = #tpu.pipeline_mode<synchronous>, transform_indices = @transform_3, window_bounds = array<i64: 1, 8>}, {pipeline_mode = #tpu.pipeline_mode<synchronous>, transform_indices = @transform_4, window_bounds = array<i64: 256, 9>}, {pipeline_mode = #tpu.pipeline_mode<synchronous>, transform_indices = @transform_5, window_bounds = array<i64: 72, 16>}, {pipeline_mode = #tpu.pipeline_mode<synchronous>, transform_indices = @transform_6, window_bounds = array<i64: 1, 16>}, {pipeline_mode = #tpu.pipeline_mode<synchronous>, transform_indices = @transform_7, window_bounds = array<i64: 64, 9>}, {pipeline_mode = #tpu.pipeline_mode<synchronous>, transform_indices = @transform_8, window_bounds = array<i64: 144, 16>}, {pipeline_mode = #tpu.pipeline_mode<synchronous>, transform_indices = @transform_9, window_bounds = array<i64: 1, 16>}, {pipeline_mode = #tpu.pipeline_mode<synchronous>, transform_indices = @transform_10, window_bounds = array<i64: 16, 9>}, {pipeline_mode = #tpu.pipeline_mode<synchronous>, transform_indices = @transform_11, window_bounds = array<i64: 144, 32>}, {pipeline_mode = #tpu.pipeline_mode<synchronous>, transform_indices = @transform_12, window_bounds = array<i64: 1, 32>}, {pipeline_mode = #tpu.pipeline_mode<synchronous>, transform_indices = @transform_13, window_bounds = array<i64: 4, 9>}, {pipeline_mode = #tpu.pipeline_mode<synchronous>, transform_indices = @transform_14, window_bounds = array<i64: 288, 32>}, {pipeline_mode = #tpu.pipeline_mode<synchronous>, transform_indices = @transform_15, window_bounds = array<i64: 1, 32>}, {pipeline_mode = #tpu.pipeline_mode<synchronous>, transform_indices = @transform_16, window_bounds = array<i64: 4, 9>}, {pipeline_mode = #tpu.pipeline_mode<synchronous>, transform_indices = @transform_17, window_bounds = array<i64: 64, 256>}, {pipeline_mode = #tpu.pipeline_mode<synchronous>, transform_indices = @transform_18, window_bounds = array<i64: 16, 64>}, {pipeline_mode = #tpu.pipeline_mode<synchronous>, transform_indices = @transform_19, window_bounds = array<i64: 4, 16>}, {pipeline_mode = #tpu.pipeline_mode<synchronous>, transform_indices = @transform_20, window_bounds = array<i64: 136, 64>}, {pipeline_mode = #tpu.pipeline_mode<synchronous>, transform_indices = @transform_21, window_bounds = array<i64: 1, 64>}, {pipeline_mode = #tpu.pipeline_mode<synchronous>, transform_indices = @transform_22, window_bounds = array<i64: 64, 10>}, {pipeline_mode = #tpu.pipeline_mode<synchronous>, transform_indices = @transform_23, window_bounds = array<i64: 1, 10>}, {transform_indices = @transform_24, window_bounds = array<i64: 1, 1, 10>}]} {
    %c0 = arith.constant 0 : index
    %c0_0 = arith.constant 0 : index
    %c0_1 = arith.constant 0 : index
    %0 = vector.load %arg1[%c0, %c0_0, %c0_1] : memref<1x256x4xf32, #tpu.memory_space<vmem>>, vector<1x256x4xf32>
    %1 = vector.shape_cast %0 : vector<1x256x4xf32> to vector<256x4xf32>
    %c0_2 = arith.constant 0 : index
    %c0_3 = arith.constant 0 : index
    %2 = vector.load %arg5[%c0_2, %c0_3] : memref<256x9xf32, #tpu.memory_space<vmem>>, vector<256x9xf32>
    %cst = arith.constant 0.000000e+00 : f32
    %3 = vector.broadcast %cst : f32 to vector<256x8xf32>
    %4 = vector.extract_strided_slice %2 {offsets = [0, 0], sizes = [256, 1], strides = [1, 1]} : vector<256x9xf32> to vector<256x1xf32>
    %cst_4 = arith.constant 0.000000e+00 : f32
    %5 = vector.broadcast %cst_4 : f32 to vector<17x4xf32>
    %6 = vector.extract_strided_slice %1 {offsets = [0, 0], sizes = [239, 4], strides = [1, 1]} : vector<256x4xf32> to vector<239x4xf32>
    %7 = tpu.concatenate %5, %6 in 0 : vector<17x4xf32>, vector<239x4xf32> -> vector<256x4xf32>
    %8 = vector.broadcast %4 : vector<256x1xf32> to vector<256x4xf32>
    %9 = arith.mulf %8, %7 : vector<256x4xf32>
    %c0_5 = arith.constant 0 : index
    %c0_6 = arith.constant 0 : index
    %10 = vector.load %arg3[%c0_5, %c0_6] : memref<36x8xf32, #tpu.memory_space<vmem>>, vector<4x8xf32>
    %cst_7 = arith.constant dense<0.000000e+00> : vector<256x8xf32>
    %11 = tpu.matmul %9, %10, %cst_7 {dimension_numbers = #tpu.dot_dimension_numbers<[1], [0], [0], [1], [0, 0, 1, 1], [], []>} : vector<256x4xf32>, vector<4x8xf32>, vector<256x8xf32> -> vector<256x8xf32>
    %12 = arith.addf %3, %11 : vector<256x8xf32>
    %13 = vector.extract_strided_slice %2 {offsets = [0, 1], sizes = [256, 1], strides = [1, 1]} : vector<256x9xf32> to vector<256x1xf32>
    %cst_8 = arith.constant 0.000000e+00 : f32
    %14 = vector.broadcast %cst_8 : f32 to vector<16x4xf32>
    %15 = vector.extract_strided_slice %1 {offsets = [0, 0], sizes = [240, 4], strides = [1, 1]} : vector<256x4xf32> to vector<240x4xf32>
    %16 = tpu.concatenate %14, %15 in 0 : vector<16x4xf32>, vector<240x4xf32> -> vector<256x4xf32>
    %17 = vector.broadcast %13 : vector<256x1xf32> to vector<256x4xf32>
    %18 = arith.mulf %17, %16 : vector<256x4xf32>
    %c4 = arith.constant 4 : index
    %c0_9 = arith.constant 0 : index
    %19 = vector.load %arg3[%c4, %c0_9] : memref<36x8xf32, #tpu.memory_space<vmem>>, vector<4x8xf32>
    %cst_10 = arith.constant dense<0.000000e+00> : vector<256x8xf32>
    %20 = tpu.matmul %18, %19, %cst_10 {dimension_numbers = #tpu.dot_dimension_numbers<[1], [0], [0], [1], [0, 0, 1, 1], [], []>} : vector<256x4xf32>, vector<4x8xf32>, vector<256x8xf32> -> vector<256x8xf32>
    %21 = arith.addf %12, %20 : vector<256x8xf32>
    %22 = vector.extract_strided_slice %2 {offsets = [0, 2], sizes = [256, 1], strides = [1, 1]} : vector<256x9xf32> to vector<256x1xf32>
    %cst_11 = arith.constant 0.000000e+00 : f32
    %23 = vector.broadcast %cst_11 : f32 to vector<15x4xf32>
    %24 = vector.extract_strided_slice %1 {offsets = [0, 0], sizes = [241, 4], strides = [1, 1]} : vector<256x4xf32> to vector<241x4xf32>
    %25 = tpu.concatenate %23, %24 in 0 : vector<15x4xf32>, vector<241x4xf32> -> vector<256x4xf32>
    %26 = vector.broadcast %22 : vector<256x1xf32> to vector<256x4xf32>
    %27 = arith.mulf %26, %25 : vector<256x4xf32>
    %c8 = arith.constant 8 : index
    %c0_12 = arith.constant 0 : index
    %28 = vector.load %arg3[%c8, %c0_12] : memref<36x8xf32, #tpu.memory_space<vmem>>, vector<4x8xf32>
    %cst_13 = arith.constant dense<0.000000e+00> : vector<256x8xf32>
    %29 = tpu.matmul %27, %28, %cst_13 {dimension_numbers = #tpu.dot_dimension_numbers<[1], [0], [0], [1], [0, 0, 1, 1], [], []>} : vector<256x4xf32>, vector<4x8xf32>, vector<256x8xf32> -> vector<256x8xf32>
    %30 = arith.addf %21, %29 : vector<256x8xf32>
    %31 = vector.extract_strided_slice %2 {offsets = [0, 3], sizes = [256, 1], strides = [1, 1]} : vector<256x9xf32> to vector<256x1xf32>
    %cst_14 = arith.constant 0.000000e+00 : f32
    %32 = vector.broadcast %cst_14 : f32 to vector<1x4xf32>
    %33 = vector.extract_strided_slice %1 {offsets = [0, 0], sizes = [255, 4], strides = [1, 1]} : vector<256x4xf32> to vector<255x4xf32>
    %34 = tpu.concatenate %32, %33 in 0 : vector<1x4xf32>, vector<255x4xf32> -> vector<256x4xf32>
    %35 = vector.broadcast %31 : vector<256x1xf32> to vector<256x4xf32>
    %36 = arith.mulf %35, %34 : vector<256x4xf32>
    %c12 = arith.constant 12 : index
    %c0_15 = arith.constant 0 : index
    %37 = vector.load %arg3[%c12, %c0_15] : memref<36x8xf32, #tpu.memory_space<vmem>>, vector<4x8xf32>
    %cst_16 = arith.constant dense<0.000000e+00> : vector<256x8xf32>
    %38 = tpu.matmul %36, %37, %cst_16 {dimension_numbers = #tpu.dot_dimension_numbers<[1], [0], [0], [1], [0, 0, 1, 1], [], []>} : vector<256x4xf32>, vector<4x8xf32>, vector<256x8xf32> -> vector<256x8xf32>
    %39 = arith.addf %30, %38 : vector<256x8xf32>
    %40 = vector.extract_strided_slice %2 {offsets = [0, 4], sizes = [256, 1], strides = [1, 1]} : vector<256x9xf32> to vector<256x1xf32>
    %41 = vector.broadcast %40 : vector<256x1xf32> to vector<256x4xf32>
    %42 = arith.mulf %41, %1 : vector<256x4xf32>
    %c16 = arith.constant 16 : index
    %c0_17 = arith.constant 0 : index
    %43 = vector.load %arg3[%c16, %c0_17] : memref<36x8xf32, #tpu.memory_space<vmem>>, vector<4x8xf32>
    %cst_18 = arith.constant dense<0.000000e+00> : vector<256x8xf32>
    %44 = tpu.matmul %42, %43, %cst_18 {dimension_numbers = #tpu.dot_dimension_numbers<[1], [0], [0], [1], [0, 0, 1, 1], [], []>} : vector<256x4xf32>, vector<4x8xf32>, vector<256x8xf32> -> vector<256x8xf32>
    %45 = arith.addf %39, %44 : vector<256x8xf32>
    %46 = vector.extract_strided_slice %2 {offsets = [0, 5], sizes = [256, 1], strides = [1, 1]} : vector<256x9xf32> to vector<256x1xf32>
    %47 = vector.extract_strided_slice %1 {offsets = [1, 0], sizes = [255, 4], strides = [1, 1]} : vector<256x4xf32> to vector<255x4xf32>
    %cst_19 = arith.constant 0.000000e+00 : f32
    %48 = vector.broadcast %cst_19 : f32 to vector<1x4xf32>
    %49 = tpu.concatenate %47, %48 in 0 : vector<255x4xf32>, vector<1x4xf32> -> vector<256x4xf32>
    %50 = vector.broadcast %46 : vector<256x1xf32> to vector<256x4xf32>
    %51 = arith.mulf %50, %49 : vector<256x4xf32>
    %c20 = arith.constant 20 : index
    %c0_20 = arith.constant 0 : index
    %52 = vector.load %arg3[%c20, %c0_20] : memref<36x8xf32, #tpu.memory_space<vmem>>, vector<4x8xf32>
    %cst_21 = arith.constant dense<0.000000e+00> : vector<256x8xf32>
    %53 = tpu.matmul %51, %52, %cst_21 {dimension_numbers = #tpu.dot_dimension_numbers<[1], [0], [0], [1], [0, 0, 1, 1], [], []>} : vector<256x4xf32>, vector<4x8xf32>, vector<256x8xf32> -> vector<256x8xf32>
    %54 = arith.addf %45, %53 : vector<256x8xf32>
    %55 = vector.extract_strided_slice %2 {offsets = [0, 6], sizes = [256, 1], strides = [1, 1]} : vector<256x9xf32> to vector<256x1xf32>
    %56 = vector.extract_strided_slice %1 {offsets = [15, 0], sizes = [241, 4], strides = [1, 1]} : vector<256x4xf32> to vector<241x4xf32>
    %cst_22 = arith.constant 0.000000e+00 : f32
    %57 = vector.broadcast %cst_22 : f32 to vector<15x4xf32>
    %58 = tpu.concatenate %56, %57 in 0 : vector<241x4xf32>, vector<15x4xf32> -> vector<256x4xf32>
    %59 = vector.broadcast %55 : vector<256x1xf32> to vector<256x4xf32>
    %60 = arith.mulf %59, %58 : vector<256x4xf32>
    %c24 = arith.constant 24 : index
    %c0_23 = arith.constant 0 : index
    %61 = vector.load %arg3[%c24, %c0_23] : memref<36x8xf32, #tpu.memory_space<vmem>>, vector<4x8xf32>
    %cst_24 = arith.constant dense<0.000000e+00> : vector<256x8xf32>
    %62 = tpu.matmul %60, %61, %cst_24 {dimension_numbers = #tpu.dot_dimension_numbers<[1], [0], [0], [1], [0, 0, 1, 1], [], []>} : vector<256x4xf32>, vector<4x8xf32>, vector<256x8xf32> -> vector<256x8xf32>
    %63 = arith.addf %54, %62 : vector<256x8xf32>
    %64 = vector.extract_strided_slice %2 {offsets = [0, 7], sizes = [256, 1], strides = [1, 1]} : vector<256x9xf32> to vector<256x1xf32>
    %65 = vector.extract_strided_slice %1 {offsets = [16, 0], sizes = [240, 4], strides = [1, 1]} : vector<256x4xf32> to vector<240x4xf32>
    %cst_25 = arith.constant 0.000000e+00 : f32
    %66 = vector.broadcast %cst_25 : f32 to vector<16x4xf32>
    %67 = tpu.concatenate %65, %66 in 0 : vector<240x4xf32>, vector<16x4xf32> -> vector<256x4xf32>
    %68 = vector.broadcast %64 : vector<256x1xf32> to vector<256x4xf32>
    %69 = arith.mulf %68, %67 : vector<256x4xf32>
    %c28 = arith.constant 28 : index
    %c0_26 = arith.constant 0 : index
    %70 = vector.load %arg3[%c28, %c0_26] : memref<36x8xf32, #tpu.memory_space<vmem>>, vector<4x8xf32>
    %cst_27 = arith.constant dense<0.000000e+00> : vector<256x8xf32>
    %71 = tpu.matmul %69, %70, %cst_27 {dimension_numbers = #tpu.dot_dimension_numbers<[1], [0], [0], [1], [0, 0, 1, 1], [], []>} : vector<256x4xf32>, vector<4x8xf32>, vector<256x8xf32> -> vector<256x8xf32>
    %72 = arith.addf %63, %71 : vector<256x8xf32>
    %73 = vector.extract_strided_slice %2 {offsets = [0, 8], sizes = [256, 1], strides = [1, 1]} : vector<256x9xf32> to vector<256x1xf32>
    %74 = vector.extract_strided_slice %1 {offsets = [17, 0], sizes = [239, 4], strides = [1, 1]} : vector<256x4xf32> to vector<239x4xf32>
    %cst_28 = arith.constant 0.000000e+00 : f32
    %75 = vector.broadcast %cst_28 : f32 to vector<17x4xf32>
    %76 = tpu.concatenate %74, %75 in 0 : vector<239x4xf32>, vector<17x4xf32> -> vector<256x4xf32>
    %77 = vector.broadcast %73 : vector<256x1xf32> to vector<256x4xf32>
    %78 = arith.mulf %77, %76 : vector<256x4xf32>
    %c32 = arith.constant 32 : index
    %c0_29 = arith.constant 0 : index
    %79 = vector.load %arg3[%c32, %c0_29] : memref<36x8xf32, #tpu.memory_space<vmem>>, vector<4x8xf32>
    %cst_30 = arith.constant dense<0.000000e+00> : vector<256x8xf32>
    %80 = tpu.matmul %78, %79, %cst_30 {dimension_numbers = #tpu.dot_dimension_numbers<[1], [0], [0], [1], [0, 0, 1, 1], [], []>} : vector<256x4xf32>, vector<4x8xf32>, vector<256x8xf32> -> vector<256x8xf32>
    %81 = arith.addf %72, %80 : vector<256x8xf32>
    %c0_31 = arith.constant 0 : index
    %c0_32 = arith.constant 0 : index
    %82 = vector.load %arg4[%c0_31, %c0_32] : memref<1x8xf32, #tpu.memory_space<vmem>>, vector<1x8xf32>
    %83 = vector.broadcast %82 : vector<1x8xf32> to vector<256x8xf32>
    %84 = arith.addf %81, %83 : vector<256x8xf32>
    %cst_33 = arith.constant 0.000000e+00 : f32
    %85 = vector.broadcast %cst_33 : f32 to vector<256x8xf32>
    %86 = arith.maximumf %84, %85 : vector<256x8xf32>
    %87 = vector.extract_strided_slice %86 {offsets = [1, 0], sizes = [255, 8], strides = [1, 1]} : vector<256x8xf32> to vector<255x8xf32>
    %cst_34 = arith.constant 0.000000e+00 : f32
    %88 = vector.broadcast %cst_34 : f32 to vector<1x8xf32>
    %89 = tpu.concatenate %87, %88 in 0 : vector<255x8xf32>, vector<1x8xf32> -> vector<256x8xf32>
    %90 = arith.maximumf %86, %89 : vector<256x8xf32>
    %91 = vector.extract_strided_slice %90 {offsets = [16, 0], sizes = [240, 8], strides = [1, 1]} : vector<256x8xf32> to vector<240x8xf32>
    %cst_35 = arith.constant 0.000000e+00 : f32
    %92 = vector.broadcast %cst_35 : f32 to vector<16x8xf32>
    %93 = tpu.concatenate %91, %92 in 0 : vector<240x8xf32>, vector<16x8xf32> -> vector<256x8xf32>
    %94 = arith.maximumf %90, %93 : vector<256x8xf32>
    %c0_36 = arith.constant 0 : index
    %c0_37 = arith.constant 0 : index
    %95 = vector.load %arg18[%c0_36, %c0_37] : memref<64x256xf32, #tpu.memory_space<vmem>>, vector<64x256xf32>
    %cst_38 = arith.constant dense<0.000000e+00> : vector<64x8xf32>
    %96 = tpu.matmul %95, %94, %cst_38 {dimension_numbers = #tpu.dot_dimension_numbers<[1], [0], [0], [1], [0, 0, 1, 1], [], []>} : vector<64x256xf32>, vector<256x8xf32>, vector<64x8xf32> -> vector<64x8xf32>
    %c0_39 = arith.constant 0 : index
    %c0_40 = arith.constant 0 : index
    %97 = vector.load %arg8[%c0_39, %c0_40] : memref<64x9xf32, #tpu.memory_space<vmem>>, vector<64x9xf32>
    %cst_41 = arith.constant 0.000000e+00 : f32
    %98 = vector.broadcast %cst_41 : f32 to vector<64x16xf32>
    %99 = vector.extract_strided_slice %97 {offsets = [0, 0], sizes = [64, 1], strides = [1, 1]} : vector<64x9xf32> to vector<64x1xf32>
    %cst_42 = arith.constant 0.000000e+00 : f32
    %100 = vector.broadcast %cst_42 : f32 to vector<9x8xf32>
    %101 = vector.extract_strided_slice %96 {offsets = [0, 0], sizes = [55, 8], strides = [1, 1]} : vector<64x8xf32> to vector<55x8xf32>
    %102 = tpu.concatenate %100, %101 in 0 : vector<9x8xf32>, vector<55x8xf32> -> vector<64x8xf32>
    %103 = vector.broadcast %99 : vector<64x1xf32> to vector<64x8xf32>
    %104 = arith.mulf %103, %102 : vector<64x8xf32>
    %c0_43 = arith.constant 0 : index
    %c0_44 = arith.constant 0 : index
    %105 = vector.load %arg6[%c0_43, %c0_44] : memref<72x16xf32, #tpu.memory_space<vmem>>, vector<8x16xf32>
    %cst_45 = arith.constant dense<0.000000e+00> : vector<64x16xf32>
    %106 = tpu.matmul %104, %105, %cst_45 {dimension_numbers = #tpu.dot_dimension_numbers<[1], [0], [0], [1], [0, 0, 1, 1], [], []>} : vector<64x8xf32>, vector<8x16xf32>, vector<64x16xf32> -> vector<64x16xf32>
    %107 = arith.addf %98, %106 : vector<64x16xf32>
    %108 = vector.extract_strided_slice %97 {offsets = [0, 1], sizes = [64, 1], strides = [1, 1]} : vector<64x9xf32> to vector<64x1xf32>
    %cst_46 = arith.constant 0.000000e+00 : f32
    %109 = vector.broadcast %cst_46 : f32 to vector<8x8xf32>
    %110 = vector.extract_strided_slice %96 {offsets = [0, 0], sizes = [56, 8], strides = [1, 1]} : vector<64x8xf32> to vector<56x8xf32>
    %111 = tpu.concatenate %109, %110 in 0 : vector<8x8xf32>, vector<56x8xf32> -> vector<64x8xf32>
    %112 = vector.broadcast %108 : vector<64x1xf32> to vector<64x8xf32>
    %113 = arith.mulf %112, %111 : vector<64x8xf32>
    %c8_47 = arith.constant 8 : index
    %c0_48 = arith.constant 0 : index
    %114 = vector.load %arg6[%c8_47, %c0_48] : memref<72x16xf32, #tpu.memory_space<vmem>>, vector<8x16xf32>
    %cst_49 = arith.constant dense<0.000000e+00> : vector<64x16xf32>
    %115 = tpu.matmul %113, %114, %cst_49 {dimension_numbers = #tpu.dot_dimension_numbers<[1], [0], [0], [1], [0, 0, 1, 1], [], []>} : vector<64x8xf32>, vector<8x16xf32>, vector<64x16xf32> -> vector<64x16xf32>
    %116 = arith.addf %107, %115 : vector<64x16xf32>
    %117 = vector.extract_strided_slice %97 {offsets = [0, 2], sizes = [64, 1], strides = [1, 1]} : vector<64x9xf32> to vector<64x1xf32>
    %cst_50 = arith.constant 0.000000e+00 : f32
    %118 = vector.broadcast %cst_50 : f32 to vector<7x8xf32>
    %119 = vector.extract_strided_slice %96 {offsets = [0, 0], sizes = [57, 8], strides = [1, 1]} : vector<64x8xf32> to vector<57x8xf32>
    %120 = tpu.concatenate %118, %119 in 0 : vector<7x8xf32>, vector<57x8xf32> -> vector<64x8xf32>
    %121 = vector.broadcast %117 : vector<64x1xf32> to vector<64x8xf32>
    %122 = arith.mulf %121, %120 : vector<64x8xf32>
    %c16_51 = arith.constant 16 : index
    %c0_52 = arith.constant 0 : index
    %123 = vector.load %arg6[%c16_51, %c0_52] : memref<72x16xf32, #tpu.memory_space<vmem>>, vector<8x16xf32>
    %cst_53 = arith.constant dense<0.000000e+00> : vector<64x16xf32>
    %124 = tpu.matmul %122, %123, %cst_53 {dimension_numbers = #tpu.dot_dimension_numbers<[1], [0], [0], [1], [0, 0, 1, 1], [], []>} : vector<64x8xf32>, vector<8x16xf32>, vector<64x16xf32> -> vector<64x16xf32>
    %125 = arith.addf %116, %124 : vector<64x16xf32>
    %126 = vector.extract_strided_slice %97 {offsets = [0, 3], sizes = [64, 1], strides = [1, 1]} : vector<64x9xf32> to vector<64x1xf32>
    %cst_54 = arith.constant 0.000000e+00 : f32
    %127 = vector.broadcast %cst_54 : f32 to vector<1x8xf32>
    %128 = vector.extract_strided_slice %96 {offsets = [0, 0], sizes = [63, 8], strides = [1, 1]} : vector<64x8xf32> to vector<63x8xf32>
    %129 = tpu.concatenate %127, %128 in 0 : vector<1x8xf32>, vector<63x8xf32> -> vector<64x8xf32>
    %130 = vector.broadcast %126 : vector<64x1xf32> to vector<64x8xf32>
    %131 = arith.mulf %130, %129 : vector<64x8xf32>
    %c24_55 = arith.constant 24 : index
    %c0_56 = arith.constant 0 : index
    %132 = vector.load %arg6[%c24_55, %c0_56] : memref<72x16xf32, #tpu.memory_space<vmem>>, vector<8x16xf32>
    %cst_57 = arith.constant dense<0.000000e+00> : vector<64x16xf32>
    %133 = tpu.matmul %131, %132, %cst_57 {dimension_numbers = #tpu.dot_dimension_numbers<[1], [0], [0], [1], [0, 0, 1, 1], [], []>} : vector<64x8xf32>, vector<8x16xf32>, vector<64x16xf32> -> vector<64x16xf32>
    %134 = arith.addf %125, %133 : vector<64x16xf32>
    %135 = vector.extract_strided_slice %97 {offsets = [0, 4], sizes = [64, 1], strides = [1, 1]} : vector<64x9xf32> to vector<64x1xf32>
    %136 = vector.broadcast %135 : vector<64x1xf32> to vector<64x8xf32>
    %137 = arith.mulf %136, %96 : vector<64x8xf32>
    %c32_58 = arith.constant 32 : index
    %c0_59 = arith.constant 0 : index
    %138 = vector.load %arg6[%c32_58, %c0_59] : memref<72x16xf32, #tpu.memory_space<vmem>>, vector<8x16xf32>
    %cst_60 = arith.constant dense<0.000000e+00> : vector<64x16xf32>
    %139 = tpu.matmul %137, %138, %cst_60 {dimension_numbers = #tpu.dot_dimension_numbers<[1], [0], [0], [1], [0, 0, 1, 1], [], []>} : vector<64x8xf32>, vector<8x16xf32>, vector<64x16xf32> -> vector<64x16xf32>
    %140 = arith.addf %134, %139 : vector<64x16xf32>
    %141 = vector.extract_strided_slice %97 {offsets = [0, 5], sizes = [64, 1], strides = [1, 1]} : vector<64x9xf32> to vector<64x1xf32>
    %142 = vector.extract_strided_slice %96 {offsets = [1, 0], sizes = [63, 8], strides = [1, 1]} : vector<64x8xf32> to vector<63x8xf32>
    %cst_61 = arith.constant 0.000000e+00 : f32
    %143 = vector.broadcast %cst_61 : f32 to vector<1x8xf32>
    %144 = tpu.concatenate %142, %143 in 0 : vector<63x8xf32>, vector<1x8xf32> -> vector<64x8xf32>
    %145 = vector.broadcast %141 : vector<64x1xf32> to vector<64x8xf32>
    %146 = arith.mulf %145, %144 : vector<64x8xf32>
    %c40 = arith.constant 40 : index
    %c0_62 = arith.constant 0 : index
    %147 = vector.load %arg6[%c40, %c0_62] : memref<72x16xf32, #tpu.memory_space<vmem>>, vector<8x16xf32>
    %cst_63 = arith.constant dense<0.000000e+00> : vector<64x16xf32>
    %148 = tpu.matmul %146, %147, %cst_63 {dimension_numbers = #tpu.dot_dimension_numbers<[1], [0], [0], [1], [0, 0, 1, 1], [], []>} : vector<64x8xf32>, vector<8x16xf32>, vector<64x16xf32> -> vector<64x16xf32>
    %149 = arith.addf %140, %148 : vector<64x16xf32>
    %150 = vector.extract_strided_slice %97 {offsets = [0, 6], sizes = [64, 1], strides = [1, 1]} : vector<64x9xf32> to vector<64x1xf32>
    %151 = vector.extract_strided_slice %96 {offsets = [7, 0], sizes = [57, 8], strides = [1, 1]} : vector<64x8xf32> to vector<57x8xf32>
    %cst_64 = arith.constant 0.000000e+00 : f32
    %152 = vector.broadcast %cst_64 : f32 to vector<7x8xf32>
    %153 = tpu.concatenate %151, %152 in 0 : vector<57x8xf32>, vector<7x8xf32> -> vector<64x8xf32>
    %154 = vector.broadcast %150 : vector<64x1xf32> to vector<64x8xf32>
    %155 = arith.mulf %154, %153 : vector<64x8xf32>
    %c48 = arith.constant 48 : index
    %c0_65 = arith.constant 0 : index
    %156 = vector.load %arg6[%c48, %c0_65] : memref<72x16xf32, #tpu.memory_space<vmem>>, vector<8x16xf32>
    %cst_66 = arith.constant dense<0.000000e+00> : vector<64x16xf32>
    %157 = tpu.matmul %155, %156, %cst_66 {dimension_numbers = #tpu.dot_dimension_numbers<[1], [0], [0], [1], [0, 0, 1, 1], [], []>} : vector<64x8xf32>, vector<8x16xf32>, vector<64x16xf32> -> vector<64x16xf32>
    %158 = arith.addf %149, %157 : vector<64x16xf32>
    %159 = vector.extract_strided_slice %97 {offsets = [0, 7], sizes = [64, 1], strides = [1, 1]} : vector<64x9xf32> to vector<64x1xf32>
    %160 = vector.extract_strided_slice %96 {offsets = [8, 0], sizes = [56, 8], strides = [1, 1]} : vector<64x8xf32> to vector<56x8xf32>
    %cst_67 = arith.constant 0.000000e+00 : f32
    %161 = vector.broadcast %cst_67 : f32 to vector<8x8xf32>
    %162 = tpu.concatenate %160, %161 in 0 : vector<56x8xf32>, vector<8x8xf32> -> vector<64x8xf32>
    %163 = vector.broadcast %159 : vector<64x1xf32> to vector<64x8xf32>
    %164 = arith.mulf %163, %162 : vector<64x8xf32>
    %c56 = arith.constant 56 : index
    %c0_68 = arith.constant 0 : index
    %165 = vector.load %arg6[%c56, %c0_68] : memref<72x16xf32, #tpu.memory_space<vmem>>, vector<8x16xf32>
    %cst_69 = arith.constant dense<0.000000e+00> : vector<64x16xf32>
    %166 = tpu.matmul %164, %165, %cst_69 {dimension_numbers = #tpu.dot_dimension_numbers<[1], [0], [0], [1], [0, 0, 1, 1], [], []>} : vector<64x8xf32>, vector<8x16xf32>, vector<64x16xf32> -> vector<64x16xf32>
    %167 = arith.addf %158, %166 : vector<64x16xf32>
    %168 = vector.extract_strided_slice %97 {offsets = [0, 8], sizes = [64, 1], strides = [1, 1]} : vector<64x9xf32> to vector<64x1xf32>
    %169 = vector.extract_strided_slice %96 {offsets = [9, 0], sizes = [55, 8], strides = [1, 1]} : vector<64x8xf32> to vector<55x8xf32>
    %cst_70 = arith.constant 0.000000e+00 : f32
    %170 = vector.broadcast %cst_70 : f32 to vector<9x8xf32>
    %171 = tpu.concatenate %169, %170 in 0 : vector<55x8xf32>, vector<9x8xf32> -> vector<64x8xf32>
    %172 = vector.broadcast %168 : vector<64x1xf32> to vector<64x8xf32>
    %173 = arith.mulf %172, %171 : vector<64x8xf32>
    %c64 = arith.constant 64 : index
    %c0_71 = arith.constant 0 : index
    %174 = vector.load %arg6[%c64, %c0_71] : memref<72x16xf32, #tpu.memory_space<vmem>>, vector<8x16xf32>
    %cst_72 = arith.constant dense<0.000000e+00> : vector<64x16xf32>
    %175 = tpu.matmul %173, %174, %cst_72 {dimension_numbers = #tpu.dot_dimension_numbers<[1], [0], [0], [1], [0, 0, 1, 1], [], []>} : vector<64x8xf32>, vector<8x16xf32>, vector<64x16xf32> -> vector<64x16xf32>
    %176 = arith.addf %167, %175 : vector<64x16xf32>
    %c0_73 = arith.constant 0 : index
    %c0_74 = arith.constant 0 : index
    %177 = vector.load %arg7[%c0_73, %c0_74] : memref<1x16xf32, #tpu.memory_space<vmem>>, vector<1x16xf32>
    %178 = vector.broadcast %177 : vector<1x16xf32> to vector<64x16xf32>
    %179 = arith.addf %176, %178 : vector<64x16xf32>
    %cst_75 = arith.constant 0.000000e+00 : f32
    %180 = vector.broadcast %cst_75 : f32 to vector<64x16xf32>
    %181 = arith.maximumf %179, %180 : vector<64x16xf32>
    %182 = vector.extract_strided_slice %181 {offsets = [1, 0], sizes = [63, 16], strides = [1, 1]} : vector<64x16xf32> to vector<63x16xf32>
    %cst_76 = arith.constant 0.000000e+00 : f32
    %183 = vector.broadcast %cst_76 : f32 to vector<1x16xf32>
    %184 = tpu.concatenate %182, %183 in 0 : vector<63x16xf32>, vector<1x16xf32> -> vector<64x16xf32>
    %185 = arith.maximumf %181, %184 : vector<64x16xf32>
    %186 = vector.extract_strided_slice %185 {offsets = [8, 0], sizes = [56, 16], strides = [1, 1]} : vector<64x16xf32> to vector<56x16xf32>
    %cst_77 = arith.constant 0.000000e+00 : f32
    %187 = vector.broadcast %cst_77 : f32 to vector<8x16xf32>
    %188 = tpu.concatenate %186, %187 in 0 : vector<56x16xf32>, vector<8x16xf32> -> vector<64x16xf32>
    %189 = arith.maximumf %185, %188 : vector<64x16xf32>
    %c0_78 = arith.constant 0 : index
    %c0_79 = arith.constant 0 : index
    %190 = vector.load %arg19[%c0_78, %c0_79] : memref<16x64xf32, #tpu.memory_space<vmem>>, vector<16x64xf32>
    %cst_80 = arith.constant dense<0.000000e+00> : vector<16x16xf32>
    %191 = tpu.matmul %190, %189, %cst_80 {dimension_numbers = #tpu.dot_dimension_numbers<[1], [0], [0], [1], [0, 0, 1, 1], [], []>} : vector<16x64xf32>, vector<64x16xf32>, vector<16x16xf32> -> vector<16x16xf32>
    %c0_81 = arith.constant 0 : index
    %c0_82 = arith.constant 0 : index
    %192 = vector.load %arg11[%c0_81, %c0_82] : memref<16x9xf32, #tpu.memory_space<vmem>>, vector<16x9xf32>
    %cst_83 = arith.constant 0.000000e+00 : f32
    %193 = vector.broadcast %cst_83 : f32 to vector<16x16xf32>
    %194 = vector.extract_strided_slice %192 {offsets = [0, 0], sizes = [16, 1], strides = [1, 1]} : vector<16x9xf32> to vector<16x1xf32>
    %cst_84 = arith.constant 0.000000e+00 : f32
    %195 = vector.broadcast %cst_84 : f32 to vector<5x16xf32>
    %196 = vector.extract_strided_slice %191 {offsets = [0, 0], sizes = [11, 16], strides = [1, 1]} : vector<16x16xf32> to vector<11x16xf32>
    %197 = tpu.concatenate %195, %196 in 0 : vector<5x16xf32>, vector<11x16xf32> -> vector<16x16xf32>
    %198 = vector.broadcast %194 : vector<16x1xf32> to vector<16x16xf32>
    %199 = arith.mulf %198, %197 : vector<16x16xf32>
    %c0_85 = arith.constant 0 : index
    %c0_86 = arith.constant 0 : index
    %200 = vector.load %arg9[%c0_85, %c0_86] : memref<144x16xf32, #tpu.memory_space<vmem>>, vector<16x16xf32>
    %cst_87 = arith.constant dense<0.000000e+00> : vector<16x16xf32>
    %201 = tpu.matmul %199, %200, %cst_87 {dimension_numbers = #tpu.dot_dimension_numbers<[1], [0], [0], [1], [0, 0, 1, 1], [], []>} : vector<16x16xf32>, vector<16x16xf32>, vector<16x16xf32> -> vector<16x16xf32>
    %202 = arith.addf %193, %201 : vector<16x16xf32>
    %203 = vector.extract_strided_slice %192 {offsets = [0, 1], sizes = [16, 1], strides = [1, 1]} : vector<16x9xf32> to vector<16x1xf32>
    %cst_88 = arith.constant 0.000000e+00 : f32
    %204 = vector.broadcast %cst_88 : f32 to vector<4x16xf32>
    %205 = vector.extract_strided_slice %191 {offsets = [0, 0], sizes = [12, 16], strides = [1, 1]} : vector<16x16xf32> to vector<12x16xf32>
    %206 = tpu.concatenate %204, %205 in 0 : vector<4x16xf32>, vector<12x16xf32> -> vector<16x16xf32>
    %207 = vector.broadcast %203 : vector<16x1xf32> to vector<16x16xf32>
    %208 = arith.mulf %207, %206 : vector<16x16xf32>
    %c16_89 = arith.constant 16 : index
    %c0_90 = arith.constant 0 : index
    %209 = vector.load %arg9[%c16_89, %c0_90] : memref<144x16xf32, #tpu.memory_space<vmem>>, vector<16x16xf32>
    %cst_91 = arith.constant dense<0.000000e+00> : vector<16x16xf32>
    %210 = tpu.matmul %208, %209, %cst_91 {dimension_numbers = #tpu.dot_dimension_numbers<[1], [0], [0], [1], [0, 0, 1, 1], [], []>} : vector<16x16xf32>, vector<16x16xf32>, vector<16x16xf32> -> vector<16x16xf32>
    %211 = arith.addf %202, %210 : vector<16x16xf32>
    %212 = vector.extract_strided_slice %192 {offsets = [0, 2], sizes = [16, 1], strides = [1, 1]} : vector<16x9xf32> to vector<16x1xf32>
    %cst_92 = arith.constant 0.000000e+00 : f32
    %213 = vector.broadcast %cst_92 : f32 to vector<3x16xf32>
    %214 = vector.extract_strided_slice %191 {offsets = [0, 0], sizes = [13, 16], strides = [1, 1]} : vector<16x16xf32> to vector<13x16xf32>
    %215 = tpu.concatenate %213, %214 in 0 : vector<3x16xf32>, vector<13x16xf32> -> vector<16x16xf32>
    %216 = vector.broadcast %212 : vector<16x1xf32> to vector<16x16xf32>
    %217 = arith.mulf %216, %215 : vector<16x16xf32>
    %c32_93 = arith.constant 32 : index
    %c0_94 = arith.constant 0 : index
    %218 = vector.load %arg9[%c32_93, %c0_94] : memref<144x16xf32, #tpu.memory_space<vmem>>, vector<16x16xf32>
    %cst_95 = arith.constant dense<0.000000e+00> : vector<16x16xf32>
    %219 = tpu.matmul %217, %218, %cst_95 {dimension_numbers = #tpu.dot_dimension_numbers<[1], [0], [0], [1], [0, 0, 1, 1], [], []>} : vector<16x16xf32>, vector<16x16xf32>, vector<16x16xf32> -> vector<16x16xf32>
    %220 = arith.addf %211, %219 : vector<16x16xf32>
    %221 = vector.extract_strided_slice %192 {offsets = [0, 3], sizes = [16, 1], strides = [1, 1]} : vector<16x9xf32> to vector<16x1xf32>
    %cst_96 = arith.constant 0.000000e+00 : f32
    %222 = vector.broadcast %cst_96 : f32 to vector<1x16xf32>
    %223 = vector.extract_strided_slice %191 {offsets = [0, 0], sizes = [15, 16], strides = [1, 1]} : vector<16x16xf32> to vector<15x16xf32>
    %224 = tpu.concatenate %222, %223 in 0 : vector<1x16xf32>, vector<15x16xf32> -> vector<16x16xf32>
    %225 = vector.broadcast %221 : vector<16x1xf32> to vector<16x16xf32>
    %226 = arith.mulf %225, %224 : vector<16x16xf32>
    %c48_97 = arith.constant 48 : index
    %c0_98 = arith.constant 0 : index
    %227 = vector.load %arg9[%c48_97, %c0_98] : memref<144x16xf32, #tpu.memory_space<vmem>>, vector<16x16xf32>
    %cst_99 = arith.constant dense<0.000000e+00> : vector<16x16xf32>
    %228 = tpu.matmul %226, %227, %cst_99 {dimension_numbers = #tpu.dot_dimension_numbers<[1], [0], [0], [1], [0, 0, 1, 1], [], []>} : vector<16x16xf32>, vector<16x16xf32>, vector<16x16xf32> -> vector<16x16xf32>
    %229 = arith.addf %220, %228 : vector<16x16xf32>
    %230 = vector.extract_strided_slice %192 {offsets = [0, 4], sizes = [16, 1], strides = [1, 1]} : vector<16x9xf32> to vector<16x1xf32>
    %231 = vector.broadcast %230 : vector<16x1xf32> to vector<16x16xf32>
    %232 = arith.mulf %231, %191 : vector<16x16xf32>
    %c64_100 = arith.constant 64 : index
    %c0_101 = arith.constant 0 : index
    %233 = vector.load %arg9[%c64_100, %c0_101] : memref<144x16xf32, #tpu.memory_space<vmem>>, vector<16x16xf32>
    %cst_102 = arith.constant dense<0.000000e+00> : vector<16x16xf32>
    %234 = tpu.matmul %232, %233, %cst_102 {dimension_numbers = #tpu.dot_dimension_numbers<[1], [0], [0], [1], [0, 0, 1, 1], [], []>} : vector<16x16xf32>, vector<16x16xf32>, vector<16x16xf32> -> vector<16x16xf32>
    %235 = arith.addf %229, %234 : vector<16x16xf32>
    %236 = vector.extract_strided_slice %192 {offsets = [0, 5], sizes = [16, 1], strides = [1, 1]} : vector<16x9xf32> to vector<16x1xf32>
    %237 = vector.extract_strided_slice %191 {offsets = [1, 0], sizes = [15, 16], strides = [1, 1]} : vector<16x16xf32> to vector<15x16xf32>
    %cst_103 = arith.constant 0.000000e+00 : f32
    %238 = vector.broadcast %cst_103 : f32 to vector<1x16xf32>
    %239 = tpu.concatenate %237, %238 in 0 : vector<15x16xf32>, vector<1x16xf32> -> vector<16x16xf32>
    %240 = vector.broadcast %236 : vector<16x1xf32> to vector<16x16xf32>
    %241 = arith.mulf %240, %239 : vector<16x16xf32>
    %c80 = arith.constant 80 : index
    %c0_104 = arith.constant 0 : index
    %242 = vector.load %arg9[%c80, %c0_104] : memref<144x16xf32, #tpu.memory_space<vmem>>, vector<16x16xf32>
    %cst_105 = arith.constant dense<0.000000e+00> : vector<16x16xf32>
    %243 = tpu.matmul %241, %242, %cst_105 {dimension_numbers = #tpu.dot_dimension_numbers<[1], [0], [0], [1], [0, 0, 1, 1], [], []>} : vector<16x16xf32>, vector<16x16xf32>, vector<16x16xf32> -> vector<16x16xf32>
    %244 = arith.addf %235, %243 : vector<16x16xf32>
    %245 = vector.extract_strided_slice %192 {offsets = [0, 6], sizes = [16, 1], strides = [1, 1]} : vector<16x9xf32> to vector<16x1xf32>
    %246 = vector.extract_strided_slice %191 {offsets = [3, 0], sizes = [13, 16], strides = [1, 1]} : vector<16x16xf32> to vector<13x16xf32>
    %cst_106 = arith.constant 0.000000e+00 : f32
    %247 = vector.broadcast %cst_106 : f32 to vector<3x16xf32>
    %248 = tpu.concatenate %246, %247 in 0 : vector<13x16xf32>, vector<3x16xf32> -> vector<16x16xf32>
    %249 = vector.broadcast %245 : vector<16x1xf32> to vector<16x16xf32>
    %250 = arith.mulf %249, %248 : vector<16x16xf32>
    %c96 = arith.constant 96 : index
    %c0_107 = arith.constant 0 : index
    %251 = vector.load %arg9[%c96, %c0_107] : memref<144x16xf32, #tpu.memory_space<vmem>>, vector<16x16xf32>
    %cst_108 = arith.constant dense<0.000000e+00> : vector<16x16xf32>
    %252 = tpu.matmul %250, %251, %cst_108 {dimension_numbers = #tpu.dot_dimension_numbers<[1], [0], [0], [1], [0, 0, 1, 1], [], []>} : vector<16x16xf32>, vector<16x16xf32>, vector<16x16xf32> -> vector<16x16xf32>
    %253 = arith.addf %244, %252 : vector<16x16xf32>
    %254 = vector.extract_strided_slice %192 {offsets = [0, 7], sizes = [16, 1], strides = [1, 1]} : vector<16x9xf32> to vector<16x1xf32>
    %255 = vector.extract_strided_slice %191 {offsets = [4, 0], sizes = [12, 16], strides = [1, 1]} : vector<16x16xf32> to vector<12x16xf32>
    %cst_109 = arith.constant 0.000000e+00 : f32
    %256 = vector.broadcast %cst_109 : f32 to vector<4x16xf32>
    %257 = tpu.concatenate %255, %256 in 0 : vector<12x16xf32>, vector<4x16xf32> -> vector<16x16xf32>
    %258 = vector.broadcast %254 : vector<16x1xf32> to vector<16x16xf32>
    %259 = arith.mulf %258, %257 : vector<16x16xf32>
    %c112 = arith.constant 112 : index
    %c0_110 = arith.constant 0 : index
    %260 = vector.load %arg9[%c112, %c0_110] : memref<144x16xf32, #tpu.memory_space<vmem>>, vector<16x16xf32>
    %cst_111 = arith.constant dense<0.000000e+00> : vector<16x16xf32>
    %261 = tpu.matmul %259, %260, %cst_111 {dimension_numbers = #tpu.dot_dimension_numbers<[1], [0], [0], [1], [0, 0, 1, 1], [], []>} : vector<16x16xf32>, vector<16x16xf32>, vector<16x16xf32> -> vector<16x16xf32>
    %262 = arith.addf %253, %261 : vector<16x16xf32>
    %263 = vector.extract_strided_slice %192 {offsets = [0, 8], sizes = [16, 1], strides = [1, 1]} : vector<16x9xf32> to vector<16x1xf32>
    %264 = vector.extract_strided_slice %191 {offsets = [5, 0], sizes = [11, 16], strides = [1, 1]} : vector<16x16xf32> to vector<11x16xf32>
    %cst_112 = arith.constant 0.000000e+00 : f32
    %265 = vector.broadcast %cst_112 : f32 to vector<5x16xf32>
    %266 = tpu.concatenate %264, %265 in 0 : vector<11x16xf32>, vector<5x16xf32> -> vector<16x16xf32>
    %267 = vector.broadcast %263 : vector<16x1xf32> to vector<16x16xf32>
    %268 = arith.mulf %267, %266 : vector<16x16xf32>
    %c128 = arith.constant 128 : index
    %c0_113 = arith.constant 0 : index
    %269 = vector.load %arg9[%c128, %c0_113] : memref<144x16xf32, #tpu.memory_space<vmem>>, vector<16x16xf32>
    %cst_114 = arith.constant dense<0.000000e+00> : vector<16x16xf32>
    %270 = tpu.matmul %268, %269, %cst_114 {dimension_numbers = #tpu.dot_dimension_numbers<[1], [0], [0], [1], [0, 0, 1, 1], [], []>} : vector<16x16xf32>, vector<16x16xf32>, vector<16x16xf32> -> vector<16x16xf32>
    %271 = arith.addf %262, %270 : vector<16x16xf32>
    %c0_115 = arith.constant 0 : index
    %c0_116 = arith.constant 0 : index
    %272 = vector.load %arg10[%c0_115, %c0_116] : memref<1x16xf32, #tpu.memory_space<vmem>>, vector<1x16xf32>
    %273 = vector.broadcast %272 : vector<1x16xf32> to vector<16x16xf32>
    %274 = arith.addf %271, %273 : vector<16x16xf32>
    %cst_117 = arith.constant 0.000000e+00 : f32
    %275 = vector.broadcast %cst_117 : f32 to vector<16x16xf32>
    %276 = arith.maximumf %274, %275 : vector<16x16xf32>
    %277 = vector.extract_strided_slice %276 {offsets = [1, 0], sizes = [15, 16], strides = [1, 1]} : vector<16x16xf32> to vector<15x16xf32>
    %cst_118 = arith.constant 0.000000e+00 : f32
    %278 = vector.broadcast %cst_118 : f32 to vector<1x16xf32>
    %279 = tpu.concatenate %277, %278 in 0 : vector<15x16xf32>, vector<1x16xf32> -> vector<16x16xf32>
    %280 = arith.maximumf %276, %279 : vector<16x16xf32>
    %281 = vector.extract_strided_slice %280 {offsets = [4, 0], sizes = [12, 16], strides = [1, 1]} : vector<16x16xf32> to vector<12x16xf32>
    %cst_119 = arith.constant 0.000000e+00 : f32
    %282 = vector.broadcast %cst_119 : f32 to vector<4x16xf32>
    %283 = tpu.concatenate %281, %282 in 0 : vector<12x16xf32>, vector<4x16xf32> -> vector<16x16xf32>
    %284 = arith.maximumf %280, %283 : vector<16x16xf32>
    %c0_120 = arith.constant 0 : index
    %c0_121 = arith.constant 0 : index
    %285 = vector.load %arg20[%c0_120, %c0_121] : memref<4x16xf32, #tpu.memory_space<vmem>>, vector<4x16xf32>
    %cst_122 = arith.constant dense<0.000000e+00> : vector<4x16xf32>
    %286 = tpu.matmul %285, %284, %cst_122 {dimension_numbers = #tpu.dot_dimension_numbers<[1], [0], [0], [1], [0, 0, 1, 1], [], []>} : vector<4x16xf32>, vector<16x16xf32>, vector<4x16xf32> -> vector<4x16xf32>
    %c0_123 = arith.constant 0 : index
    %c0_124 = arith.constant 0 : index
    %287 = vector.load %arg14[%c0_123, %c0_124] : memref<4x9xf32, #tpu.memory_space<vmem>>, vector<4x9xf32>
    %cst_125 = arith.constant 0.000000e+00 : f32
    %288 = vector.broadcast %cst_125 : f32 to vector<4x32xf32>
    %289 = vector.extract_strided_slice %287 {offsets = [0, 0], sizes = [4, 1], strides = [1, 1]} : vector<4x9xf32> to vector<4x1xf32>
    %cst_126 = arith.constant 0.000000e+00 : f32
    %290 = vector.broadcast %cst_126 : f32 to vector<3x16xf32>
    %291 = vector.extract_strided_slice %286 {offsets = [0, 0], sizes = [1, 16], strides = [1, 1]} : vector<4x16xf32> to vector<1x16xf32>
    %292 = tpu.concatenate %290, %291 in 0 : vector<3x16xf32>, vector<1x16xf32> -> vector<4x16xf32>
    %293 = vector.broadcast %289 : vector<4x1xf32> to vector<4x16xf32>
    %294 = arith.mulf %293, %292 : vector<4x16xf32>
    %c0_127 = arith.constant 0 : index
    %c0_128 = arith.constant 0 : index
    %295 = vector.load %arg12[%c0_127, %c0_128] : memref<144x32xf32, #tpu.memory_space<vmem>>, vector<16x32xf32>
    %cst_129 = arith.constant dense<0.000000e+00> : vector<4x32xf32>
    %296 = tpu.matmul %294, %295, %cst_129 {dimension_numbers = #tpu.dot_dimension_numbers<[1], [0], [0], [1], [0, 0, 1, 1], [], []>} : vector<4x16xf32>, vector<16x32xf32>, vector<4x32xf32> -> vector<4x32xf32>
    %297 = arith.addf %288, %296 : vector<4x32xf32>
    %298 = vector.extract_strided_slice %287 {offsets = [0, 1], sizes = [4, 1], strides = [1, 1]} : vector<4x9xf32> to vector<4x1xf32>
    %cst_130 = arith.constant 0.000000e+00 : f32
    %299 = vector.broadcast %cst_130 : f32 to vector<2x16xf32>
    %300 = vector.extract_strided_slice %286 {offsets = [0, 0], sizes = [2, 16], strides = [1, 1]} : vector<4x16xf32> to vector<2x16xf32>
    %301 = tpu.concatenate %299, %300 in 0 : vector<2x16xf32>, vector<2x16xf32> -> vector<4x16xf32>
    %302 = vector.broadcast %298 : vector<4x1xf32> to vector<4x16xf32>
    %303 = arith.mulf %302, %301 : vector<4x16xf32>
    %c16_131 = arith.constant 16 : index
    %c0_132 = arith.constant 0 : index
    %304 = vector.load %arg12[%c16_131, %c0_132] : memref<144x32xf32, #tpu.memory_space<vmem>>, vector<16x32xf32>
    %cst_133 = arith.constant dense<0.000000e+00> : vector<4x32xf32>
    %305 = tpu.matmul %303, %304, %cst_133 {dimension_numbers = #tpu.dot_dimension_numbers<[1], [0], [0], [1], [0, 0, 1, 1], [], []>} : vector<4x16xf32>, vector<16x32xf32>, vector<4x32xf32> -> vector<4x32xf32>
    %306 = arith.addf %297, %305 : vector<4x32xf32>
    %307 = vector.extract_strided_slice %287 {offsets = [0, 2], sizes = [4, 1], strides = [1, 1]} : vector<4x9xf32> to vector<4x1xf32>
    %cst_134 = arith.constant 0.000000e+00 : f32
    %308 = vector.broadcast %cst_134 : f32 to vector<1x16xf32>
    %309 = vector.extract_strided_slice %286 {offsets = [0, 0], sizes = [3, 16], strides = [1, 1]} : vector<4x16xf32> to vector<3x16xf32>
    %310 = tpu.concatenate %308, %309 in 0 : vector<1x16xf32>, vector<3x16xf32> -> vector<4x16xf32>
    %311 = vector.broadcast %307 : vector<4x1xf32> to vector<4x16xf32>
    %312 = arith.mulf %311, %310 : vector<4x16xf32>
    %c32_135 = arith.constant 32 : index
    %c0_136 = arith.constant 0 : index
    %313 = vector.load %arg12[%c32_135, %c0_136] : memref<144x32xf32, #tpu.memory_space<vmem>>, vector<16x32xf32>
    %cst_137 = arith.constant dense<0.000000e+00> : vector<4x32xf32>
    %314 = tpu.matmul %312, %313, %cst_137 {dimension_numbers = #tpu.dot_dimension_numbers<[1], [0], [0], [1], [0, 0, 1, 1], [], []>} : vector<4x16xf32>, vector<16x32xf32>, vector<4x32xf32> -> vector<4x32xf32>
    %315 = arith.addf %306, %314 : vector<4x32xf32>
    %316 = vector.extract_strided_slice %287 {offsets = [0, 3], sizes = [4, 1], strides = [1, 1]} : vector<4x9xf32> to vector<4x1xf32>
    %cst_138 = arith.constant 0.000000e+00 : f32
    %317 = vector.broadcast %cst_138 : f32 to vector<1x16xf32>
    %318 = vector.extract_strided_slice %286 {offsets = [0, 0], sizes = [3, 16], strides = [1, 1]} : vector<4x16xf32> to vector<3x16xf32>
    %319 = tpu.concatenate %317, %318 in 0 : vector<1x16xf32>, vector<3x16xf32> -> vector<4x16xf32>
    %320 = vector.broadcast %316 : vector<4x1xf32> to vector<4x16xf32>
    %321 = arith.mulf %320, %319 : vector<4x16xf32>
    %c48_139 = arith.constant 48 : index
    %c0_140 = arith.constant 0 : index
    %322 = vector.load %arg12[%c48_139, %c0_140] : memref<144x32xf32, #tpu.memory_space<vmem>>, vector<16x32xf32>
    %cst_141 = arith.constant dense<0.000000e+00> : vector<4x32xf32>
    %323 = tpu.matmul %321, %322, %cst_141 {dimension_numbers = #tpu.dot_dimension_numbers<[1], [0], [0], [1], [0, 0, 1, 1], [], []>} : vector<4x16xf32>, vector<16x32xf32>, vector<4x32xf32> -> vector<4x32xf32>
    %324 = arith.addf %315, %323 : vector<4x32xf32>
    %325 = vector.extract_strided_slice %287 {offsets = [0, 4], sizes = [4, 1], strides = [1, 1]} : vector<4x9xf32> to vector<4x1xf32>
    %326 = vector.broadcast %325 : vector<4x1xf32> to vector<4x16xf32>
    %327 = arith.mulf %326, %286 : vector<4x16xf32>
    %c64_142 = arith.constant 64 : index
    %c0_143 = arith.constant 0 : index
    %328 = vector.load %arg12[%c64_142, %c0_143] : memref<144x32xf32, #tpu.memory_space<vmem>>, vector<16x32xf32>
    %cst_144 = arith.constant dense<0.000000e+00> : vector<4x32xf32>
    %329 = tpu.matmul %327, %328, %cst_144 {dimension_numbers = #tpu.dot_dimension_numbers<[1], [0], [0], [1], [0, 0, 1, 1], [], []>} : vector<4x16xf32>, vector<16x32xf32>, vector<4x32xf32> -> vector<4x32xf32>
    %330 = arith.addf %324, %329 : vector<4x32xf32>
    %331 = vector.extract_strided_slice %287 {offsets = [0, 5], sizes = [4, 1], strides = [1, 1]} : vector<4x9xf32> to vector<4x1xf32>
    %332 = vector.extract_strided_slice %286 {offsets = [1, 0], sizes = [3, 16], strides = [1, 1]} : vector<4x16xf32> to vector<3x16xf32>
    %cst_145 = arith.constant 0.000000e+00 : f32
    %333 = vector.broadcast %cst_145 : f32 to vector<1x16xf32>
    %334 = tpu.concatenate %332, %333 in 0 : vector<3x16xf32>, vector<1x16xf32> -> vector<4x16xf32>
    %335 = vector.broadcast %331 : vector<4x1xf32> to vector<4x16xf32>
    %336 = arith.mulf %335, %334 : vector<4x16xf32>
    %c80_146 = arith.constant 80 : index
    %c0_147 = arith.constant 0 : index
    %337 = vector.load %arg12[%c80_146, %c0_147] : memref<144x32xf32, #tpu.memory_space<vmem>>, vector<16x32xf32>
    %cst_148 = arith.constant dense<0.000000e+00> : vector<4x32xf32>
    %338 = tpu.matmul %336, %337, %cst_148 {dimension_numbers = #tpu.dot_dimension_numbers<[1], [0], [0], [1], [0, 0, 1, 1], [], []>} : vector<4x16xf32>, vector<16x32xf32>, vector<4x32xf32> -> vector<4x32xf32>
    %339 = arith.addf %330, %338 : vector<4x32xf32>
    %340 = vector.extract_strided_slice %287 {offsets = [0, 6], sizes = [4, 1], strides = [1, 1]} : vector<4x9xf32> to vector<4x1xf32>
    %341 = vector.extract_strided_slice %286 {offsets = [1, 0], sizes = [3, 16], strides = [1, 1]} : vector<4x16xf32> to vector<3x16xf32>
    %cst_149 = arith.constant 0.000000e+00 : f32
    %342 = vector.broadcast %cst_149 : f32 to vector<1x16xf32>
    %343 = tpu.concatenate %341, %342 in 0 : vector<3x16xf32>, vector<1x16xf32> -> vector<4x16xf32>
    %344 = vector.broadcast %340 : vector<4x1xf32> to vector<4x16xf32>
    %345 = arith.mulf %344, %343 : vector<4x16xf32>
    %c96_150 = arith.constant 96 : index
    %c0_151 = arith.constant 0 : index
    %346 = vector.load %arg12[%c96_150, %c0_151] : memref<144x32xf32, #tpu.memory_space<vmem>>, vector<16x32xf32>
    %cst_152 = arith.constant dense<0.000000e+00> : vector<4x32xf32>
    %347 = tpu.matmul %345, %346, %cst_152 {dimension_numbers = #tpu.dot_dimension_numbers<[1], [0], [0], [1], [0, 0, 1, 1], [], []>} : vector<4x16xf32>, vector<16x32xf32>, vector<4x32xf32> -> vector<4x32xf32>
    %348 = arith.addf %339, %347 : vector<4x32xf32>
    %349 = vector.extract_strided_slice %287 {offsets = [0, 7], sizes = [4, 1], strides = [1, 1]} : vector<4x9xf32> to vector<4x1xf32>
    %350 = vector.extract_strided_slice %286 {offsets = [2, 0], sizes = [2, 16], strides = [1, 1]} : vector<4x16xf32> to vector<2x16xf32>
    %cst_153 = arith.constant 0.000000e+00 : f32
    %351 = vector.broadcast %cst_153 : f32 to vector<2x16xf32>
    %352 = tpu.concatenate %350, %351 in 0 : vector<2x16xf32>, vector<2x16xf32> -> vector<4x16xf32>
    %353 = vector.broadcast %349 : vector<4x1xf32> to vector<4x16xf32>
    %354 = arith.mulf %353, %352 : vector<4x16xf32>
    %c112_154 = arith.constant 112 : index
    %c0_155 = arith.constant 0 : index
    %355 = vector.load %arg12[%c112_154, %c0_155] : memref<144x32xf32, #tpu.memory_space<vmem>>, vector<16x32xf32>
    %cst_156 = arith.constant dense<0.000000e+00> : vector<4x32xf32>
    %356 = tpu.matmul %354, %355, %cst_156 {dimension_numbers = #tpu.dot_dimension_numbers<[1], [0], [0], [1], [0, 0, 1, 1], [], []>} : vector<4x16xf32>, vector<16x32xf32>, vector<4x32xf32> -> vector<4x32xf32>
    %357 = arith.addf %348, %356 : vector<4x32xf32>
    %358 = vector.extract_strided_slice %287 {offsets = [0, 8], sizes = [4, 1], strides = [1, 1]} : vector<4x9xf32> to vector<4x1xf32>
    %359 = vector.extract_strided_slice %286 {offsets = [3, 0], sizes = [1, 16], strides = [1, 1]} : vector<4x16xf32> to vector<1x16xf32>
    %cst_157 = arith.constant 0.000000e+00 : f32
    %360 = vector.broadcast %cst_157 : f32 to vector<3x16xf32>
    %361 = tpu.concatenate %359, %360 in 0 : vector<1x16xf32>, vector<3x16xf32> -> vector<4x16xf32>
    %362 = vector.broadcast %358 : vector<4x1xf32> to vector<4x16xf32>
    %363 = arith.mulf %362, %361 : vector<4x16xf32>
    %c128_158 = arith.constant 128 : index
    %c0_159 = arith.constant 0 : index
    %364 = vector.load %arg12[%c128_158, %c0_159] : memref<144x32xf32, #tpu.memory_space<vmem>>, vector<16x32xf32>
    %cst_160 = arith.constant dense<0.000000e+00> : vector<4x32xf32>
    %365 = tpu.matmul %363, %364, %cst_160 {dimension_numbers = #tpu.dot_dimension_numbers<[1], [0], [0], [1], [0, 0, 1, 1], [], []>} : vector<4x16xf32>, vector<16x32xf32>, vector<4x32xf32> -> vector<4x32xf32>
    %366 = arith.addf %357, %365 : vector<4x32xf32>
    %c0_161 = arith.constant 0 : index
    %c0_162 = arith.constant 0 : index
    %367 = vector.load %arg13[%c0_161, %c0_162] : memref<1x32xf32, #tpu.memory_space<vmem>>, vector<1x32xf32>
    %368 = vector.broadcast %367 : vector<1x32xf32> to vector<4x32xf32>
    %369 = arith.addf %366, %368 : vector<4x32xf32>
    %cst_163 = arith.constant 0.000000e+00 : f32
    %370 = vector.broadcast %cst_163 : f32 to vector<4x32xf32>
    %371 = arith.maximumf %369, %370 : vector<4x32xf32>
    %c0_164 = arith.constant 0 : index
    %c0_165 = arith.constant 0 : index
    %372 = vector.load %arg17[%c0_164, %c0_165] : memref<4x9xf32, #tpu.memory_space<vmem>>, vector<4x9xf32>
    %cst_166 = arith.constant 0.000000e+00 : f32
    %373 = vector.broadcast %cst_166 : f32 to vector<4x32xf32>
    %374 = vector.extract_strided_slice %372 {offsets = [0, 0], sizes = [4, 1], strides = [1, 1]} : vector<4x9xf32> to vector<4x1xf32>
    %cst_167 = arith.constant 0.000000e+00 : f32
    %375 = vector.broadcast %cst_167 : f32 to vector<3x32xf32>
    %376 = vector.extract_strided_slice %371 {offsets = [0, 0], sizes = [1, 32], strides = [1, 1]} : vector<4x32xf32> to vector<1x32xf32>
    %377 = tpu.concatenate %375, %376 in 0 : vector<3x32xf32>, vector<1x32xf32> -> vector<4x32xf32>
    %378 = vector.broadcast %374 : vector<4x1xf32> to vector<4x32xf32>
    %379 = arith.mulf %378, %377 : vector<4x32xf32>
    %c0_168 = arith.constant 0 : index
    %c0_169 = arith.constant 0 : index
    %380 = vector.load %arg15[%c0_168, %c0_169] : memref<288x32xf32, #tpu.memory_space<vmem>>, vector<32x32xf32>
    %cst_170 = arith.constant dense<0.000000e+00> : vector<4x32xf32>
    %381 = tpu.matmul %379, %380, %cst_170 {dimension_numbers = #tpu.dot_dimension_numbers<[1], [0], [0], [1], [0, 0, 1, 1], [], []>} : vector<4x32xf32>, vector<32x32xf32>, vector<4x32xf32> -> vector<4x32xf32>
    %382 = arith.addf %373, %381 : vector<4x32xf32>
    %383 = vector.extract_strided_slice %372 {offsets = [0, 1], sizes = [4, 1], strides = [1, 1]} : vector<4x9xf32> to vector<4x1xf32>
    %cst_171 = arith.constant 0.000000e+00 : f32
    %384 = vector.broadcast %cst_171 : f32 to vector<2x32xf32>
    %385 = vector.extract_strided_slice %371 {offsets = [0, 0], sizes = [2, 32], strides = [1, 1]} : vector<4x32xf32> to vector<2x32xf32>
    %386 = tpu.concatenate %384, %385 in 0 : vector<2x32xf32>, vector<2x32xf32> -> vector<4x32xf32>
    %387 = vector.broadcast %383 : vector<4x1xf32> to vector<4x32xf32>
    %388 = arith.mulf %387, %386 : vector<4x32xf32>
    %c32_172 = arith.constant 32 : index
    %c0_173 = arith.constant 0 : index
    %389 = vector.load %arg15[%c32_172, %c0_173] : memref<288x32xf32, #tpu.memory_space<vmem>>, vector<32x32xf32>
    %cst_174 = arith.constant dense<0.000000e+00> : vector<4x32xf32>
    %390 = tpu.matmul %388, %389, %cst_174 {dimension_numbers = #tpu.dot_dimension_numbers<[1], [0], [0], [1], [0, 0, 1, 1], [], []>} : vector<4x32xf32>, vector<32x32xf32>, vector<4x32xf32> -> vector<4x32xf32>
    %391 = arith.addf %382, %390 : vector<4x32xf32>
    %392 = vector.extract_strided_slice %372 {offsets = [0, 2], sizes = [4, 1], strides = [1, 1]} : vector<4x9xf32> to vector<4x1xf32>
    %cst_175 = arith.constant 0.000000e+00 : f32
    %393 = vector.broadcast %cst_175 : f32 to vector<1x32xf32>
    %394 = vector.extract_strided_slice %371 {offsets = [0, 0], sizes = [3, 32], strides = [1, 1]} : vector<4x32xf32> to vector<3x32xf32>
    %395 = tpu.concatenate %393, %394 in 0 : vector<1x32xf32>, vector<3x32xf32> -> vector<4x32xf32>
    %396 = vector.broadcast %392 : vector<4x1xf32> to vector<4x32xf32>
    %397 = arith.mulf %396, %395 : vector<4x32xf32>
    %c64_176 = arith.constant 64 : index
    %c0_177 = arith.constant 0 : index
    %398 = vector.load %arg15[%c64_176, %c0_177] : memref<288x32xf32, #tpu.memory_space<vmem>>, vector<32x32xf32>
    %cst_178 = arith.constant dense<0.000000e+00> : vector<4x32xf32>
    %399 = tpu.matmul %397, %398, %cst_178 {dimension_numbers = #tpu.dot_dimension_numbers<[1], [0], [0], [1], [0, 0, 1, 1], [], []>} : vector<4x32xf32>, vector<32x32xf32>, vector<4x32xf32> -> vector<4x32xf32>
    %400 = arith.addf %391, %399 : vector<4x32xf32>
    %401 = vector.extract_strided_slice %372 {offsets = [0, 3], sizes = [4, 1], strides = [1, 1]} : vector<4x9xf32> to vector<4x1xf32>
    %cst_179 = arith.constant 0.000000e+00 : f32
    %402 = vector.broadcast %cst_179 : f32 to vector<1x32xf32>
    %403 = vector.extract_strided_slice %371 {offsets = [0, 0], sizes = [3, 32], strides = [1, 1]} : vector<4x32xf32> to vector<3x32xf32>
    %404 = tpu.concatenate %402, %403 in 0 : vector<1x32xf32>, vector<3x32xf32> -> vector<4x32xf32>
    %405 = vector.broadcast %401 : vector<4x1xf32> to vector<4x32xf32>
    %406 = arith.mulf %405, %404 : vector<4x32xf32>
    %c96_180 = arith.constant 96 : index
    %c0_181 = arith.constant 0 : index
    %407 = vector.load %arg15[%c96_180, %c0_181] : memref<288x32xf32, #tpu.memory_space<vmem>>, vector<32x32xf32>
    %cst_182 = arith.constant dense<0.000000e+00> : vector<4x32xf32>
    %408 = tpu.matmul %406, %407, %cst_182 {dimension_numbers = #tpu.dot_dimension_numbers<[1], [0], [0], [1], [0, 0, 1, 1], [], []>} : vector<4x32xf32>, vector<32x32xf32>, vector<4x32xf32> -> vector<4x32xf32>
    %409 = arith.addf %400, %408 : vector<4x32xf32>
    %410 = vector.extract_strided_slice %372 {offsets = [0, 4], sizes = [4, 1], strides = [1, 1]} : vector<4x9xf32> to vector<4x1xf32>
    %411 = vector.broadcast %410 : vector<4x1xf32> to vector<4x32xf32>
    %412 = arith.mulf %411, %371 : vector<4x32xf32>
    %c128_183 = arith.constant 128 : index
    %c0_184 = arith.constant 0 : index
    %413 = vector.load %arg15[%c128_183, %c0_184] : memref<288x32xf32, #tpu.memory_space<vmem>>, vector<32x32xf32>
    %cst_185 = arith.constant dense<0.000000e+00> : vector<4x32xf32>
    %414 = tpu.matmul %412, %413, %cst_185 {dimension_numbers = #tpu.dot_dimension_numbers<[1], [0], [0], [1], [0, 0, 1, 1], [], []>} : vector<4x32xf32>, vector<32x32xf32>, vector<4x32xf32> -> vector<4x32xf32>
    %415 = arith.addf %409, %414 : vector<4x32xf32>
    %416 = vector.extract_strided_slice %372 {offsets = [0, 5], sizes = [4, 1], strides = [1, 1]} : vector<4x9xf32> to vector<4x1xf32>
    %417 = vector.extract_strided_slice %371 {offsets = [1, 0], sizes = [3, 32], strides = [1, 1]} : vector<4x32xf32> to vector<3x32xf32>
    %cst_186 = arith.constant 0.000000e+00 : f32
    %418 = vector.broadcast %cst_186 : f32 to vector<1x32xf32>
    %419 = tpu.concatenate %417, %418 in 0 : vector<3x32xf32>, vector<1x32xf32> -> vector<4x32xf32>
    %420 = vector.broadcast %416 : vector<4x1xf32> to vector<4x32xf32>
    %421 = arith.mulf %420, %419 : vector<4x32xf32>
    %c160 = arith.constant 160 : index
    %c0_187 = arith.constant 0 : index
    %422 = vector.load %arg15[%c160, %c0_187] : memref<288x32xf32, #tpu.memory_space<vmem>>, vector<32x32xf32>
    %cst_188 = arith.constant dense<0.000000e+00> : vector<4x32xf32>
    %423 = tpu.matmul %421, %422, %cst_188 {dimension_numbers = #tpu.dot_dimension_numbers<[1], [0], [0], [1], [0, 0, 1, 1], [], []>} : vector<4x32xf32>, vector<32x32xf32>, vector<4x32xf32> -> vector<4x32xf32>
    %424 = arith.addf %415, %423 : vector<4x32xf32>
    %425 = vector.extract_strided_slice %372 {offsets = [0, 6], sizes = [4, 1], strides = [1, 1]} : vector<4x9xf32> to vector<4x1xf32>
    %426 = vector.extract_strided_slice %371 {offsets = [1, 0], sizes = [3, 32], strides = [1, 1]} : vector<4x32xf32> to vector<3x32xf32>
    %cst_189 = arith.constant 0.000000e+00 : f32
    %427 = vector.broadcast %cst_189 : f32 to vector<1x32xf32>
    %428 = tpu.concatenate %426, %427 in 0 : vector<3x32xf32>, vector<1x32xf32> -> vector<4x32xf32>
    %429 = vector.broadcast %425 : vector<4x1xf32> to vector<4x32xf32>
    %430 = arith.mulf %429, %428 : vector<4x32xf32>
    %c192 = arith.constant 192 : index
    %c0_190 = arith.constant 0 : index
    %431 = vector.load %arg15[%c192, %c0_190] : memref<288x32xf32, #tpu.memory_space<vmem>>, vector<32x32xf32>
    %cst_191 = arith.constant dense<0.000000e+00> : vector<4x32xf32>
    %432 = tpu.matmul %430, %431, %cst_191 {dimension_numbers = #tpu.dot_dimension_numbers<[1], [0], [0], [1], [0, 0, 1, 1], [], []>} : vector<4x32xf32>, vector<32x32xf32>, vector<4x32xf32> -> vector<4x32xf32>
    %433 = arith.addf %424, %432 : vector<4x32xf32>
    %434 = vector.extract_strided_slice %372 {offsets = [0, 7], sizes = [4, 1], strides = [1, 1]} : vector<4x9xf32> to vector<4x1xf32>
    %435 = vector.extract_strided_slice %371 {offsets = [2, 0], sizes = [2, 32], strides = [1, 1]} : vector<4x32xf32> to vector<2x32xf32>
    %cst_192 = arith.constant 0.000000e+00 : f32
    %436 = vector.broadcast %cst_192 : f32 to vector<2x32xf32>
    %437 = tpu.concatenate %435, %436 in 0 : vector<2x32xf32>, vector<2x32xf32> -> vector<4x32xf32>
    %438 = vector.broadcast %434 : vector<4x1xf32> to vector<4x32xf32>
    %439 = arith.mulf %438, %437 : vector<4x32xf32>
    %c224 = arith.constant 224 : index
    %c0_193 = arith.constant 0 : index
    %440 = vector.load %arg15[%c224, %c0_193] : memref<288x32xf32, #tpu.memory_space<vmem>>, vector<32x32xf32>
    %cst_194 = arith.constant dense<0.000000e+00> : vector<4x32xf32>
    %441 = tpu.matmul %439, %440, %cst_194 {dimension_numbers = #tpu.dot_dimension_numbers<[1], [0], [0], [1], [0, 0, 1, 1], [], []>} : vector<4x32xf32>, vector<32x32xf32>, vector<4x32xf32> -> vector<4x32xf32>
    %442 = arith.addf %433, %441 : vector<4x32xf32>
    %443 = vector.extract_strided_slice %372 {offsets = [0, 8], sizes = [4, 1], strides = [1, 1]} : vector<4x9xf32> to vector<4x1xf32>
    %444 = vector.extract_strided_slice %371 {offsets = [3, 0], sizes = [1, 32], strides = [1, 1]} : vector<4x32xf32> to vector<1x32xf32>
    %cst_195 = arith.constant 0.000000e+00 : f32
    %445 = vector.broadcast %cst_195 : f32 to vector<3x32xf32>
    %446 = tpu.concatenate %444, %445 in 0 : vector<1x32xf32>, vector<3x32xf32> -> vector<4x32xf32>
    %447 = vector.broadcast %443 : vector<4x1xf32> to vector<4x32xf32>
    %448 = arith.mulf %447, %446 : vector<4x32xf32>
    %c256 = arith.constant 256 : index
    %c0_196 = arith.constant 0 : index
    %449 = vector.load %arg15[%c256, %c0_196] : memref<288x32xf32, #tpu.memory_space<vmem>>, vector<32x32xf32>
    %cst_197 = arith.constant dense<0.000000e+00> : vector<4x32xf32>
    %450 = tpu.matmul %448, %449, %cst_197 {dimension_numbers = #tpu.dot_dimension_numbers<[1], [0], [0], [1], [0, 0, 1, 1], [], []>} : vector<4x32xf32>, vector<32x32xf32>, vector<4x32xf32> -> vector<4x32xf32>
    %451 = arith.addf %442, %450 : vector<4x32xf32>
    %c0_198 = arith.constant 0 : index
    %c0_199 = arith.constant 0 : index
    %452 = vector.load %arg16[%c0_198, %c0_199] : memref<1x32xf32, #tpu.memory_space<vmem>>, vector<1x32xf32>
    %453 = vector.broadcast %452 : vector<1x32xf32> to vector<4x32xf32>
    %454 = arith.addf %451, %453 : vector<4x32xf32>
    %cst_200 = arith.constant 0.000000e+00 : f32
    %455 = vector.broadcast %cst_200 : f32 to vector<4x32xf32>
    %456 = arith.maximumf %454, %455 : vector<4x32xf32>
    %c0_201 = arith.constant 0 : index
    %c0_202 = arith.constant 0 : index
    %c0_203 = arith.constant 0 : index
    %457 = vector.load %arg2[%c0_201, %c0_202, %c0_203] : memref<1x1x8xf32, #tpu.memory_space<vmem>>, vector<1x1x8xf32>
    %458 = vector.shape_cast %457 : vector<1x1x8xf32> to vector<1x8xf32>
    %c128_204 = arith.constant 128 : index
    %c0_205 = arith.constant 0 : index
    %459 = vector.load %arg21[%c128_204, %c0_205] : memref<136x64xf32, #tpu.memory_space<vmem>>, vector<8x64xf32>
    %cst_206 = arith.constant dense<0.000000e+00> : vector<1x64xf32>
    %460 = tpu.matmul %458, %459, %cst_206 {dimension_numbers = #tpu.dot_dimension_numbers<[1], [0], [0], [1], [0, 0, 1, 1], [], []>} : vector<1x8xf32>, vector<8x64xf32>, vector<1x64xf32> -> vector<1x64xf32>
    %461 = vector.extract_strided_slice %456 {offsets = [0, 0], sizes = [1, 32], strides = [1, 1]} : vector<4x32xf32> to vector<1x32xf32>
    %c0_207 = arith.constant 0 : index
    %c0_208 = arith.constant 0 : index
    %462 = vector.load %arg21[%c0_207, %c0_208] : memref<136x64xf32, #tpu.memory_space<vmem>>, vector<32x64xf32>
    %cst_209 = arith.constant dense<0.000000e+00> : vector<1x64xf32>
    %463 = tpu.matmul %461, %462, %cst_209 {dimension_numbers = #tpu.dot_dimension_numbers<[1], [0], [0], [1], [0, 0, 1, 1], [], []>} : vector<1x32xf32>, vector<32x64xf32>, vector<1x64xf32> -> vector<1x64xf32>
    %464 = arith.addf %460, %463 : vector<1x64xf32>
    %465 = vector.extract_strided_slice %456 {offsets = [1, 0], sizes = [1, 32], strides = [1, 1]} : vector<4x32xf32> to vector<1x32xf32>
    %c32_210 = arith.constant 32 : index
    %c0_211 = arith.constant 0 : index
    %466 = vector.load %arg21[%c32_210, %c0_211] : memref<136x64xf32, #tpu.memory_space<vmem>>, vector<32x64xf32>
    %cst_212 = arith.constant dense<0.000000e+00> : vector<1x64xf32>
    %467 = tpu.matmul %465, %466, %cst_212 {dimension_numbers = #tpu.dot_dimension_numbers<[1], [0], [0], [1], [0, 0, 1, 1], [], []>} : vector<1x32xf32>, vector<32x64xf32>, vector<1x64xf32> -> vector<1x64xf32>
    %468 = arith.addf %464, %467 : vector<1x64xf32>
    %469 = vector.extract_strided_slice %456 {offsets = [2, 0], sizes = [1, 32], strides = [1, 1]} : vector<4x32xf32> to vector<1x32xf32>
    %c64_213 = arith.constant 64 : index
    %c0_214 = arith.constant 0 : index
    %470 = vector.load %arg21[%c64_213, %c0_214] : memref<136x64xf32, #tpu.memory_space<vmem>>, vector<32x64xf32>
    %cst_215 = arith.constant dense<0.000000e+00> : vector<1x64xf32>
    %471 = tpu.matmul %469, %470, %cst_215 {dimension_numbers = #tpu.dot_dimension_numbers<[1], [0], [0], [1], [0, 0, 1, 1], [], []>} : vector<1x32xf32>, vector<32x64xf32>, vector<1x64xf32> -> vector<1x64xf32>
    %472 = arith.addf %468, %471 : vector<1x64xf32>
    %473 = vector.extract_strided_slice %456 {offsets = [3, 0], sizes = [1, 32], strides = [1, 1]} : vector<4x32xf32> to vector<1x32xf32>
    %c96_216 = arith.constant 96 : index
    %c0_217 = arith.constant 0 : index
    %474 = vector.load %arg21[%c96_216, %c0_217] : memref<136x64xf32, #tpu.memory_space<vmem>>, vector<32x64xf32>
    %cst_218 = arith.constant dense<0.000000e+00> : vector<1x64xf32>
    %475 = tpu.matmul %473, %474, %cst_218 {dimension_numbers = #tpu.dot_dimension_numbers<[1], [0], [0], [1], [0, 0, 1, 1], [], []>} : vector<1x32xf32>, vector<32x64xf32>, vector<1x64xf32> -> vector<1x64xf32>
    %476 = arith.addf %472, %475 : vector<1x64xf32>
    %c0_219 = arith.constant 0 : index
    %c0_220 = arith.constant 0 : index
    %477 = vector.load %arg22[%c0_219, %c0_220] : memref<1x64xf32, #tpu.memory_space<vmem>>, vector<1x64xf32>
    %478 = arith.addf %476, %477 : vector<1x64xf32>
    %cst_221 = arith.constant 0.000000e+00 : f32
    %479 = vector.broadcast %cst_221 : f32 to vector<1x64xf32>
    %480 = arith.maximumf %478, %479 : vector<1x64xf32>
    %c0_222 = arith.constant 0 : index
    %c0_223 = arith.constant 0 : index
    %481 = vector.load %arg23[%c0_222, %c0_223] : memref<64x10xf32, #tpu.memory_space<vmem>>, vector<64x10xf32>
    %cst_224 = arith.constant dense<0.000000e+00> : vector<1x10xf32>
    %482 = tpu.matmul %480, %481, %cst_224 {dimension_numbers = #tpu.dot_dimension_numbers<[1], [0], [0], [1], [0, 0, 1, 1], [], []>} : vector<1x64xf32>, vector<64x10xf32>, vector<1x10xf32> -> vector<1x10xf32>
    %c0_225 = arith.constant 0 : index
    %c0_226 = arith.constant 0 : index
    %483 = vector.load %arg24[%c0_225, %c0_226] : memref<1x10xf32, #tpu.memory_space<vmem>>, vector<1x10xf32>
    %484 = arith.addf %482, %483 : vector<1x10xf32>
    %c0_227 = arith.constant 0 : index
    %c0_228 = arith.constant 0 : index
    %c0_229 = arith.constant 0 : index
    %485 = vector.load %arg25[%c0_227, %c0_228, %c0_229] : memref<1x1x10xf32, #tpu.memory_space<vmem>>, vector<1x1x10xf32>
    %486 = vector.shape_cast %485 : vector<1x1x10xf32> to vector<1x10xf32>
    %487 = vector.shape_cast %484 : vector<1x10xf32> to vector<1x1x10xf32>
    tpu.vector_store %arg25[%c0_227, %c0_228, %c0_229], %487 {strides = array<i32>} : memref<1x1x10xf32, #tpu.memory_space<vmem>>, vector<1x1x10xf32>,
    return
  }
  func.func @transform_0(%arg0: i32) -> (i32, i32, i32) {
    %c0_i32 = arith.constant 0 : i32
    %c0_i32_0 = arith.constant 0 : i32
    %c0_i32_1 = arith.constant 0 : i32
    return %arg0, %c0_i32, %c0_i32_0 : i32, i32, i32
  }
  func.func @transform_1(%arg0: i32) -> (i32, i32, i32) {
    %c0_i32 = arith.constant 0 : i32
    %c0_i32_0 = arith.constant 0 : i32
    %c0_i32_1 = arith.constant 0 : i32
    return %arg0, %c0_i32, %c0_i32_0 : i32, i32, i32
  }
  func.func @transform_2(%arg0: i32) -> (i32, i32) {
    %c0_i32 = arith.constant 0 : i32
    %c0_i32_0 = arith.constant 0 : i32
    %c0_i32_1 = arith.constant 0 : i32
    return %c0_i32, %c0_i32_0 : i32, i32
  }
  func.func @transform_3(%arg0: i32) -> (i32, i32) {
    %c0_i32 = arith.constant 0 : i32
    %c0_i32_0 = arith.constant 0 : i32
    %c0_i32_1 = arith.constant 0 : i32
    return %c0_i32, %c0_i32_0 : i32, i32
  }
  func.func @transform_4(%arg0: i32) -> (i32, i32) {
    %c0_i32 = arith.constant 0 : i32
    %c0_i32_0 = arith.constant 0 : i32
    %c0_i32_1 = arith.constant 0 : i32
    return %c0_i32, %c0_i32_0 : i32, i32
  }
  func.func @transform_5(%arg0: i32) -> (i32, i32) {
    %c0_i32 = arith.constant 0 : i32
    %c0_i32_0 = arith.constant 0 : i32
    %c0_i32_1 = arith.constant 0 : i32
    return %c0_i32, %c0_i32_0 : i32, i32
  }
  func.func @transform_6(%arg0: i32) -> (i32, i32) {
    %c0_i32 = arith.constant 0 : i32
    %c0_i32_0 = arith.constant 0 : i32
    %c0_i32_1 = arith.constant 0 : i32
    return %c0_i32, %c0_i32_0 : i32, i32
  }
  func.func @transform_7(%arg0: i32) -> (i32, i32) {
    %c0_i32 = arith.constant 0 : i32
    %c0_i32_0 = arith.constant 0 : i32
    %c0_i32_1 = arith.constant 0 : i32
    return %c0_i32, %c0_i32_0 : i32, i32
  }
  func.func @transform_8(%arg0: i32) -> (i32, i32) {
    %c0_i32 = arith.constant 0 : i32
    %c0_i32_0 = arith.constant 0 : i32
    %c0_i32_1 = arith.constant 0 : i32
    return %c0_i32, %c0_i32_0 : i32, i32
  }
  func.func @transform_9(%arg0: i32) -> (i32, i32) {
    %c0_i32 = arith.constant 0 : i32
    %c0_i32_0 = arith.constant 0 : i32
    %c0_i32_1 = arith.constant 0 : i32
    return %c0_i32, %c0_i32_0 : i32, i32
  }
  func.func @transform_10(%arg0: i32) -> (i32, i32) {
    %c0_i32 = arith.constant 0 : i32
    %c0_i32_0 = arith.constant 0 : i32
    %c0_i32_1 = arith.constant 0 : i32
    return %c0_i32, %c0_i32_0 : i32, i32
  }
  func.func @transform_11(%arg0: i32) -> (i32, i32) {
    %c0_i32 = arith.constant 0 : i32
    %c0_i32_0 = arith.constant 0 : i32
    %c0_i32_1 = arith.constant 0 : i32
    return %c0_i32, %c0_i32_0 : i32, i32
  }
  func.func @transform_12(%arg0: i32) -> (i32, i32) {
    %c0_i32 = arith.constant 0 : i32
    %c0_i32_0 = arith.constant 0 : i32
    %c0_i32_1 = arith.constant 0 : i32
    return %c0_i32, %c0_i32_0 : i32, i32
  }
  func.func @transform_13(%arg0: i32) -> (i32, i32) {
    %c0_i32 = arith.constant 0 : i32
    %c0_i32_0 = arith.constant 0 : i32
    %c0_i32_1 = arith.constant 0 : i32
    return %c0_i32, %c0_i32_0 : i32, i32
  }
  func.func @transform_14(%arg0: i32) -> (i32, i32) {
    %c0_i32 = arith.constant 0 : i32
    %c0_i32_0 = arith.constant 0 : i32
    %c0_i32_1 = arith.constant 0 : i32
    return %c0_i32, %c0_i32_0 : i32, i32
  }
  func.func @transform_15(%arg0: i32) -> (i32, i32) {
    %c0_i32 = arith.constant 0 : i32
    %c0_i32_0 = arith.constant 0 : i32
    %c0_i32_1 = arith.constant 0 : i32
    return %c0_i32, %c0_i32_0 : i32, i32
  }
  func.func @transform_16(%arg0: i32) -> (i32, i32) {
    %c0_i32 = arith.constant 0 : i32
    %c0_i32_0 = arith.constant 0 : i32
    %c0_i32_1 = arith.constant 0 : i32
    return %c0_i32, %c0_i32_0 : i32, i32
  }
  func.func @transform_17(%arg0: i32) -> (i32, i32) {
    %c0_i32 = arith.constant 0 : i32
    %c0_i32_0 = arith.constant 0 : i32
    %c0_i32_1 = arith.constant 0 : i32
    return %c0_i32, %c0_i32_0 : i32, i32
  }
  func.func @transform_18(%arg0: i32) -> (i32, i32) {
    %c0_i32 = arith.constant 0 : i32
    %c0_i32_0 = arith.constant 0 : i32
    %c0_i32_1 = arith.constant 0 : i32
    return %c0_i32, %c0_i32_0 : i32, i32
  }
  func.func @transform_19(%arg0: i32) -> (i32, i32) {
    %c0_i32 = arith.constant 0 : i32
    %c0_i32_0 = arith.constant 0 : i32
    %c0_i32_1 = arith.constant 0 : i32
    return %c0_i32, %c0_i32_0 : i32, i32
  }
  func.func @transform_20(%arg0: i32) -> (i32, i32) {
    %c0_i32 = arith.constant 0 : i32
    %c0_i32_0 = arith.constant 0 : i32
    %c0_i32_1 = arith.constant 0 : i32
    return %c0_i32, %c0_i32_0 : i32, i32
  }
  func.func @transform_21(%arg0: i32) -> (i32, i32) {
    %c0_i32 = arith.constant 0 : i32
    %c0_i32_0 = arith.constant 0 : i32
    %c0_i32_1 = arith.constant 0 : i32
    return %c0_i32, %c0_i32_0 : i32, i32
  }
  func.func @transform_22(%arg0: i32) -> (i32, i32) {
    %c0_i32 = arith.constant 0 : i32
    %c0_i32_0 = arith.constant 0 : i32
    %c0_i32_1 = arith.constant 0 : i32
    return %c0_i32, %c0_i32_0 : i32, i32
  }
  func.func @transform_23(%arg0: i32) -> (i32, i32) {
    %c0_i32 = arith.constant 0 : i32
    %c0_i32_0 = arith.constant 0 : i32
    %c0_i32_1 = arith.constant 0 : i32
    return %c0_i32, %c0_i32_0 : i32, i32
  }
  func.func @transform_24(%arg0: i32) -> (i32, i32, i32) {
    %c0_i32 = arith.constant 0 : i32
    %c0_i32_0 = arith.constant 0 : i32
    %c0_i32_1 = arith.constant 0 : i32
    return %arg0, %c0_i32, %c0_i32_0 : i32, i32, i32
  }
}

</mosaic_0001>

<bundles_post_ra>
// kernel: general_cnns_forward.1
= control target key start
LH: loop header
LB: loop body
LE: loop exit
PB: predicated region body
PF: predicated region fallthrough
CT: control target
= control target key end

     0   :  { %s17036_s0 = inlined_call_operand.vmem [shape: f32[2,256,4], index: 0, kind: input, shape index: {}]   ;;  %s17037_s1 = inlined_call_operand.vmem [shape: f32[2,1,8], index: 1, kind: input, shape index: {}]   ;;  %s17038_s2 = inlined_call_operand.vmem [shape: f32[36,8], index: 2, kind: input, shape index: {}]   ;;  %s17039_s3 = inlined_call_operand.vmem [shape: f32[1,8], index: 3, kind: input, shape index: {}]   ;;  %s17040_s4 = inlined_call_operand.vmem [shape: f32[256,9], index: 4, kind: input, shape index: {}]   ;;  %s17041_s5 = inlined_call_operand.vmem [shape: f32[72,16], index: 5, kind: input, shape index: {}]   ;;  %s17042_s6 = inlined_call_operand.vmem [shape: f32[1,16], index: 6, kind: input, shape index: {}]   ;;  %s17043_s7 = inlined_call_operand.vmem [shape: f32[64,9], index: 7, kind: input, shape index: {}]   ;;  %s17044_s8 = inlined_call_operand.vmem [shape: f32[144,16], index: 8, kind: input, shape index: {}]   ;;  %s17045_s9 = inlined_call_operand.vmem [shape: f32[1,16], index: 9, kind: input, shape index: {}]   ;;  %s17046_s10 = inlined_call_operand.vmem [shape: f32[16,9], index: 10, kind: input, shape index: {}]   ;;  %s17047_s11 = inlined_call_operand.vmem [shape: f32[144,32], index: 11, kind: input, shape index: {}]   ;;  %s17048_s12 = inlined_call_operand.vmem [shape: f32[1,32], index: 12, kind: input, shape index: {}]   ;;  %s17049_s13 = inlined_call_operand.vmem [shape: f32[4,9], index: 13, kind: input, shape index: {}, may-alias: {13,16}]   ;;  %s17050_s14 = inlined_call_operand.vmem [shape: f32[288,32], index: 14, kind: input, shape index: {}]   ;;  %s17051_s15 = inlined_call_operand.vmem [shape: f32[1,32], index: 15, kind: input, shape index: {}]   ;;  %s17052_s16 = inlined_call_operand.vmem [shape: f32[4,9], index: 16, kind: input, shape index: {}, may-alias: {13,16}]   ;;  %s17053_s17 = inlined_call_operand.vmem [shape: f32[64,256], index: 17, kind: input, shape index: {}]   ;;  %s17054_s18 = inlined_call_operand.vmem [shape: f32[16,64], index: 18, kind: input, shape index: {}]   ;;  %s17055_s19 = inlined_call_operand.vmem [shape: f32[4,16], index: 19, kind: input, shape index: {}]   ;;  %s17056_s20 = inlined_call_operand.vmem [shape: f32[136,64], index: 20, kind: input, shape index: {}]   ;;  %s17057_s21 = inlined_call_operand.vmem [shape: f32[1,64], index: 21, kind: input, shape index: {}]   ;;  %s17058_s22 = inlined_call_operand.vmem [shape: f32[64,10], index: 22, kind: input, shape index: {}]   ;;  %s17059_s23 = inlined_call_operand.vmem [shape: f32[1,10], index: 23, kind: input, shape index: {}]   ;;  %s17060_s24 = inlined_call_operand.hbm [shape: f32[2,1,10], index: 24, kind: output, shape index: {}]  }
   0x1   :  { %17222 = sst [smem:[#allocation70_spill]] %s17036_s0 }
   0x2   :  { %17223 = sst [smem:[#allocation71_spill]] %s17037_s1 }
   0x3   :  { %17224 = sst [smem:[#allocation72_spill]] %s17038_s2 }
   0x4   :  { %17225 = sst [smem:[#allocation73_spill]] %s17039_s3 }
   0x5   :  { %17226 = sst [smem:[#allocation74_spill]] %s17040_s4 }
   0x6   :  { %17227 = sst [smem:[#allocation75_spill]] %s17041_s5 }
   0x7   :  { %17228 = sst [smem:[#allocation76_spill]] %s17042_s6 }
   0x8   :  { %17229 = sst [smem:[#allocation77_spill]] %s17043_s7 }
   0x9   :  { %17230 = sst [smem:[#allocation78_spill]] %s17044_s8 }
   0xa   :  { %17231 = sst [smem:[#allocation79_spill]] %s17045_s9 }
   0xb   :  { %17232 = sst [smem:[#allocation80_spill]] %s17046_s10 }
   0xc   :  { %29 = vsyncpa [#allocation3], 0 }
   0xd   :  { %31 = vsyncpa [#allocation3 + $0x1], 0  ;;  %s13842_s5 = smov 0   ;;  %s13844_s26 = smov 0  }
   0xe   :  { %s13846_s27 = smov 0   ;;  %s13848_s28 = smov 0  }
   0xf LB: > { %17233 = sst [smem:[#allocation5_spill]] %s13690_s5  ;;  %s13863_s6 = sadd.s32 4294967295, %s13702_s28   ;;  %s13702_s28 = sphi %s13848_s28, %s17446_s28   ;;  %s13698_s27 = sphi %s13846_s27, %s17448_s27   ;;  %s13694_s26 = sphi %s13844_s26, %s17450_s26   ;;  %s13690_s5 = sphi %s13842_s5, %s17449_s5  }
  0x10   : > { %17234 = sst [smem:[#allocation6_spill]] %s13698_s27  ;;  %s10953_s2 = sadd.s32 4294967294, %s13702_s28  }
  0x11   : > { %17235 = sst [smem:[#allocation7_spill]] %s13702_s28  ;;  %s13867_s29 = sadd.s32 1, %s13702_s28  }
  0x12   : > { %17236 = sst [smem:[#allocation8_spill]] %s13867_s29  ;;  %s558_s0 = sadd.s32 1, %s13698_s27 }
  0x13   : > { %s555_s7 = ssub.s32 %s13702_s28, %s13867_s29  ;;  %p568_p0 = scmp.ne.s32.totalorder %s13698_s27, %s13694_s26 }
  0x14   : > { %p556_p1 = scmp.eq.s32.totalorder %s555_s7, 0  ;;  %p569_p2 = scmp.eq.s32.totalorder %s13863_s6, 1 }
  0x15   : > { %p574_p3 = scmp.ne.s32.totalorder %s13694_s26, %s13690_s5  ;;  %p575_p4 = scmp.eq.s32.totalorder %s10953_s2, 1 }
  0x16   : > { %s13878_s30 = scalar_select %p556_p1, %s13698_s27, %s558_s0  }
  0x17   : > { %p13880_p5 = por %p569_p2, %p568_p0  ;;  %p13884_p6 = por %p575_p4, %p574_p3 }
  0x18   : > { %17237 = sst [smem:[#allocation9_spill]] %s13878_s30  ;;  %p10956_p7 = scmp.ge.s32.totalorder %s13702_s28, 1 }
  0x19   : > { %s17239_s25 = scalar_select %p13884_p6, 1, 0 }
  0x1a   : > { %p673_p8 = scmp.lt.s32.totalorder %s13702_s28, 3 }
  0x1b   : > { %17240 = sst [smem:[#allocation10_spill]] %s17239_s25 }
  0x1c   : > { %p674_p9 = pnand %p10956_p7, %p673_p8 }
  0x1e   : > { %677 = sbr.rel (%p674_p9) target bundleno = 3447 (0xd77), region = 116 }
  0x25   : > { %s17241_s1 = sld [smem:[#allocation74_spill]]  ;;  %v17074_v2 = vmov 0   ;;  %vm1385_vm0 = vcmask 1043456   ;;  %s17242_s27 = sld [smem:[#allocation72_spill]]  ;;  %v17072_v18 = vmov 2   ;;  %v17070_v36 = vmov 3  }
  0x26   : > { %13457 = vset.pattern.permute.xlu1 %v17074_v2  ;;  %13456 = vset.pattern.permute.xlu0 %v17074_v2  ;;  %p741_p10 = scmp.lt.s32.totalorder %s13863_s6, 1  ;;  %s17247_s0 = sld [smem:[#allocation70_spill]]  ;;  %vm843_vm1 = vcmask 1040384   ;;  %vm1288_vm2 = vcmask 31744   ;;  %vm1939_vm3 = vcmask 1046528   ;;  %vm6176_vm4 = vcmask 64512  }
  0x27   : > { %s17430_s25 = sld [smem:[#allocation77_spill]]  ;;  %s17437_s2 = sld [smem:[#allocation75_spill]]  ;;  %vm7786_vm5 = vcmask 523264   ;;  %vm8074_vm6 = vcmask 1042432   ;;  %vm7872_vm7 = vcmask 1044480   ;;  %vm7911_vm8 = vcmask 130048  }
  0x28   : > { %s14126_s8 = scalar_select %p741_p10, %s13863_s6, 1  ;;  %vm13714_vm9 = vmmov 0   ;;  %vm8884_vm10 = vcmask 1041408   ;;  %vm9654_vm11 = vcmask 261120   ;;  %vm10874_vm12 = vcmask 73728  }
  0x29   : > { %s17438_s10 = sld [smem:[#allocation80_spill]]  ;;  %s17439_s28 = sld [smem:[#allocation76_spill]] }
  0x2a   : > { %s11381_s4 = sshll.u32 %s14126_s8, 8  ;;  %s17440_s30 = sld [smem:[#allocation78_spill]] }
  0x2b   : > { %v13893_v0 = vld [vmem:[%s17241_s1 + $0x10] sm:$0xff]  ;;  %v13898_v1 = vld [vmem:[%s17241_s1] sm:$0xff]  ;;  %v13907_v3 = vld [vmem:[%s17241_s1 + $0x18] sm:$0xff]  ;;  %s17243_s29 = smov %s17242_s27  ;;  %s17441_s9 = sld [smem:[#allocation79_spill]] }
  0x2c   : > { %946 = vperm.xlu1 %13457, %v13893_v0   ;;  %936 = vperm.xlu0 %13456, %v13898_v1   ;;  %v13912_v4 = vld [vmem:[%s17241_s1 + $0x8] sm:$0xff]  ;;  %v13924_v6 = vld [vmem:[%s17241_s1 + $0x20] sm:$0xff]  ;;  %v13931_v7 = vld [vmem:[%s17241_s1 + $0x38] sm:$0xff]  ;;  %s739_s7 = sand.u32 1, %s13694_s26  }
  0x2d   : > { %v13919_v5 = vld [vmem:[%s17241_s1 + $0x28] sm:$0xff]  ;;  %v13936_v8 = vld [vmem:[%s17241_s1 + $0x30] sm:$0xff]  ;;  %v1126_v9 = vld [vmem:[%s17242_s27] sm:$0xf]  ;;  %s14136_s27 = scalar_lea.vmem %s17247_s0, %s11381_s4  ;;  %s740_s0 = scalar_lea.vmem [#allocation2], %s739_s7 }
  0x2e   : > { %12018 = vmatprep.subr.msk.mxu0 %vm1385_vm0, %v1126_v9  ;;  %v13948_v10 = vld [vmem:[%s17241_s1 + $0x48] sm:$0xff]  ;;  %v13953_v11 = vld [vmem:[%s17241_s1 + $0x40] sm:$0xff]  ;;  %v13960_v12 = vld [vmem:[%s17241_s1 + $0x58] sm:$0xff]  ;;  %s10877_s5 = scalar_lea.sflag [#allocation3], %s739_s7 }
  0x2f   : > { %12019 = vmatpush3.msk.msra.mxu0 %vm1385_vm0, %v1126_v9  ;;  %v13965_v13 = vld [vmem:[%s17241_s1 + $0x50] sm:$0xff]  ;;  %v13972_v14 = vld [vmem:[%s17241_s1 + $0x68] sm:$0xff]  ;;  %v13977_v15 = vld [vmem:[%s17241_s1 + $0x60] sm:$0xff] }
  0x30   : > { %951 = vperm.xlu1 %13457, %v13907_v3   ;;  %941 = vperm.xlu0 %13456, %v13912_v4   ;;  %v13984_v16 = vld [vmem:[%s17241_s1 + $0x78] sm:$0xff]  ;;  %v13989_v17 = vld [vmem:[%s17241_s1 + $0x70] sm:$0xff]  ;;  %v14000_v19 = vld [vmem:[%s17243_s29 + $0x8] sm:$0xf] }
  0x31   : > { %12068 = vmatprep.subr.msk.mxu0 %vm1385_vm0, %v14000_v19  ;;  %v14021_v20 = vld [vmem:[%s17241_s1 + $0x80] sm:$0xff]  ;;  %v14026_v21 = vld [vmem:[%s17241_s1 + $0x88] sm:$0xff]  ;;  %v14033_v22 = vld [vmem:[%s17241_s1 + $0x90] sm:$0xff] }
  0x32   : > { %v14038_v23 = vld [vmem:[%s17241_s1 + $0x98] sm:$0xff]  ;;  %v14045_v24 = vld [vmem:[%s17241_s1 + $0xa0] sm:$0xff]  ;;  %v14050_v25 = vld [vmem:[%s17241_s1 + $0xa8] sm:$0xff] }
  0x33   : > { %17244 = vst [vmem:[#allocation11_spill] sm:$0xff] %v14038_v23  ;;  %17245 = vst [vmem:[#allocation12_spill] sm:$0xff] %v14050_v25  ;;  %v14057_v26 = vld [vmem:[%s17241_s1 + $0xb0] sm:$0xff]  ;;  %v14062_v27 = vld [vmem:[%s17241_s1 + $0xb8] sm:$0xff] }
  0x34   : > { %961 = vperm.xlu1 %13457, %v13919_v5   ;;  %956 = vperm.xlu0 %13456, %v13924_v6   ;;  %17246 = vst [vmem:[#allocation13_spill] sm:$0xff] %v14062_v27  ;;  %v14069_v28 = vld [vmem:[%s17241_s1 + $0xc0] sm:$0xff]  ;;  %v14074_v29 = vld [vmem:[%s17241_s1 + $0xc8] sm:$0xff]  ;;  %v14081_v30 = vld [vmem:[%s17241_s1 + $0xd0] sm:$0xff] }
  0x35   : > { %v14086_v31 = vld [vmem:[%s17241_s1 + $0xd8] sm:$0xff]  ;;  %v14093_v32 = vld [vmem:[%s17241_s1 + $0xe0] sm:$0xff]  ;;  %v14098_v33 = vld [vmem:[%s17241_s1 + $0xe8] sm:$0xff] }
  0x36   : > { %v14105_v34 = vld [vmem:[%s17241_s1 + $0xf0] sm:$0xff]  ;;  %v14110_v35 = vld [vmem:[%s17241_s1 + $0xf8] sm:$0xff]  ;;  %v14141_v37 = vld [vmem:[%s14136_s27] sm:$0xff] }
  0x37   : > { %17248 = vst [vmem:[#allocation14_spill] sm:$0xff] %v14141_v37  ;;  %v844_v38 = vrot.slane %v14141_v37, 7  ;;  %v14146_v39 = vld [vmem:[%s14136_s27 + $0x8] sm:$0xff]  ;;  %v14150_v43 = vld [vmem:[%s14136_s27 + $0x10] sm:$0xff]  ;;  %v14159_v46 = vld [vmem:[%s14136_s27 + $0x18] sm:$0xff] }
  0x38   : > { %971 = vperm.xlu1 %13457, %v13931_v7   ;;  %966 = vperm.xlu0 %13456, %v13936_v8   ;;  %17249 = vst [vmem:[#allocation15_spill] sm:$0xff] %v14146_v39  ;;  %17250 = vst [vmem:[#allocation16_spill] sm:$0xff] %v14150_v43  ;;  %v845_v44 = vrot.slane %v14146_v39, 7  ;;  %v847_v49 = vrot.slane %v14150_v43, 7  ;;  %v14164_v51 = vld [vmem:[%s14136_s27 + $0x20] sm:$0xff]  ;;  %v849_v54 = vrot.slane %v14159_v46, 7 }
  0x39   : > { %v14154_v45 = vsel %vm843_vm1, 0.0, %v844_v38  ;;  %17251 = vst [vmem:[#allocation17_spill] sm:$0xff] %v14159_v46  ;;  %17252 = vst [vmem:[#allocation18_spill] sm:$0xff] %v14164_v51  ;;  %v14177_v56 = vld [vmem:[%s14136_s27 + $0x28] sm:$0xff]  ;;  %v851_v60 = vrot.slane %v14164_v51, 7  ;;  %v14190_v63 = vld [vmem:[%s14136_s27 + $0x30] sm:$0xff] }
  0x3a   : > { %v14168_v53 = vsel %vm843_vm1, %v844_v38, %v845_v44  ;;  %v14172_v55 = vsel %vm843_vm1, %v845_v44, %v847_v49  ;;  %17254 = vst [vmem:[#allocation20_spill] sm:$0xff] %v14177_v56  ;;  %v14182_v57 = vld [vmem:[%s17243_s29 + $0xc] sm:$0xf]  ;;  %17255 = vst [vmem:[#allocation21_spill] sm:$0xff] %v14190_v63  ;;  %v14195_v9 = vsel %vm843_vm1, %v847_v49, %v849_v54  ;;  %v853_v38 = vrot.slane %v14177_v56, 7  ;;  %v14214_v49 = vld [vmem:[%s14136_s27 + $0x40] sm:$0xff] }
  0x3b   : > { %17253 = vst [vmem:[#allocation19_spill] sm:$0xff] %v14172_v55  ;;  %17256 = vst [vmem:[#allocation22_spill] sm:$0xff] %v14195_v9  ;;  %v855_v44 = vrot.slane %v14190_v63, 7 }
  0x3c   : > { %981 = vperm.xlu1 %13457, %v13948_v10   ;;  %976 = vperm.xlu0 %13456, %v13953_v11   ;;  %17259 = vst [vmem:[#allocation25_spill] sm:$0xff] %v14214_v49 }
  0x40   : > { %991 = vperm.xlu1 %13457, %v13960_v12   ;;  %986 = vperm.xlu0 %13456, %v13965_v13  }
  0x44   : > { %1001 = vperm.xlu1 %13457, %v13972_v14   ;;  %996 = vperm.xlu0 %13456, %v13977_v15  }
  0x48   : > { %1011 = vperm.xlu1 %13457, %v13984_v16   ;;  %1006 = vperm.xlu0 %13456, %v13989_v17  }
  0x4c   : > { %13459 = vset.pattern.permute.xlu1 %v17072_v18  ;;  %13458 = vset.pattern.permute.xlu0 %v17072_v18 }
  0x4d   : > { %2038 = vperm.xlu1 %13459, %v13912_v4   ;;  %2034 = vperm.xlu0 %13458, %v13898_v1  }
  0x51   : > { %2042 = vperm.xlu1 %13459, %v13893_v0   ;;  %2046 = vperm.xlu0 %13458, %v13907_v3  }
  0x55   : > { %2050 = vperm.xlu1 %13459, %v13924_v6   ;;  %2054 = vperm.xlu0 %13458, %v13919_v5  }
  0x59   : > { %2058 = vperm.xlu1 %13459, %v13936_v8   ;;  %2062 = vperm.xlu0 %13458, %v13931_v7  }
  0x5d   : > { %2066 = vperm.xlu1 %13459, %v13953_v11   ;;  %2070 = vperm.xlu0 %13458, %v13948_v10  }
  0x61   : > { %2074 = vperm.xlu1 %13459, %v13965_v13   ;;  %2078 = vperm.xlu0 %13458, %v13960_v12  }
  0x65   : > { %2082 = vperm.xlu1 %13459, %v13977_v15   ;;  %2086 = vperm.xlu0 %13458, %v13972_v14  }
  0x69   : > { %2090 = vperm.xlu1 %13459, %v13989_v17   ;;  %2094 = vperm.xlu0 %13458, %v13984_v16  }
  0x6d   : > { %2098 = vperm.xlu1 %13459, %v14021_v20   ;;  %2102 = vperm.xlu0 %13458, %v14026_v21  }
  0x71   : > { %2106 = vperm.xlu1 %13459, %v14033_v22   ;;  %2110 = vperm.xlu0 %13458, %v14038_v23  }
  0x75   : > { %2114 = vperm.xlu1 %13459, %v14045_v24   ;;  %2118 = vperm.xlu0 %13458, %v14050_v25  }
  0x79   : > { %2122 = vperm.xlu1 %13459, %v14057_v26   ;;  %2126 = vperm.xlu0 %13458, %v14062_v27  }
  0x7d   : > { %2130 = vperm.xlu1 %13459, %v14069_v28   ;;  %2134 = vperm.xlu0 %13458, %v14074_v29  }
  0x81   : > { %2138 = vperm.xlu1 %13459, %v14081_v30   ;;  %2142 = vperm.xlu0 %13458, %v14086_v31  }
  0x85   : > { %2146 = vperm.xlu1 %13459, %v14093_v32   ;;  %2150 = vperm.xlu0 %13458, %v14098_v33  }
  0x89   : > { %2154 = vperm.xlu1 %13459, %v14105_v34   ;;  %2158 = vperm.xlu0 %13458, %v14110_v35  }
  0x8d   : > { %13460 = vset.pattern.permute.xlu1 %v17070_v36  ;;  %13461 = vset.pattern.permute.xlu0 %v17070_v36 }
  0x8e   : > { %2558 = vperm.xlu1 %13460, %v13898_v1   ;;  %2562 = vperm.xlu0 %13461, %v13912_v4  }
  0x92   : > { %2566 = vperm.xlu1 %13460, %v13893_v0   ;;  %2574 = vperm.xlu0 %13461, %v13924_v6  }
  0x96   : > { %2570 = vperm.xlu1 %13460, %v13907_v3   ;;  %2582 = vperm.xlu0 %13461, %v13936_v8  }
  0x9a   : > { %2578 = vperm.xlu1 %13460, %v13919_v5   ;;  %2590 = vperm.xlu0 %13461, %v13953_v11  }
  0x9e   : > { %2586 = vperm.xlu1 %13460, %v13931_v7   ;;  %2598 = vperm.xlu0 %13461, %v13965_v13  }
  0xa2   : > { %2594 = vperm.xlu1 %13460, %v13948_v10   ;;  %2606 = vperm.xlu0 %13461, %v13977_v15  }
  0xa6   : > { %2602 = vperm.xlu1 %13460, %v13960_v12   ;;  %2614 = vperm.xlu0 %13461, %v13989_v17  }
  0xaa   : > { %2610 = vperm.xlu1 %13460, %v13972_v14   ;;  %2622 = vperm.xlu0 %13461, %v14021_v20  }
  0xab   : > { %v947_v40 = vpop.permute.xlu1 %946  ;;  %v937_v41 = vpop.permute.xlu0 %936 }
  0xac   : > { %v1094_v42 = vmul.f32 0.0, %v937_v41  ;;  %v1096_v52 = vmul.f32 %v947_v40, %v14154_v45  ;;  %v14199_v40 = vsel %vm843_vm1, %v849_v54, %v851_v60  ;;  %v14206_v41 = vld [vmem:[%s14136_s27 + $0x38] sm:$0xff]  ;;  %v14221_v54 = vsel %vm843_vm1, %v853_v38, %v855_v44 }
  0xad   : > { %17257 = vst [vmem:[#allocation23_spill] sm:$0xff] %v14199_v40  ;;  %17258 = vst [vmem:[#allocation24_spill] sm:$0xff] %v14206_v41 }
  0xae   : > { %2618 = vperm.xlu1 %13460, %v13984_v16   ;;  %12020 = vmatprep.mubr.msk.f32.mxu0 %vm1288_vm2, %v1094_v42  ;;  %17261 = vst [vmem:[#allocation27_spill] sm:$0xff] %v14221_v54 }
  0xaf   : > { %v952_v47 = vpop.permute.xlu1 %951  ;;  %v942_v48 = vpop.permute.xlu0 %941  ;;  %2630 = vperm.xlu0 %13461, %v14033_v22  }
  0xb0   : > { %v1095_v50 = vmul.f32 0.0, %v942_v48  ;;  %v1097_v61 = vmul.f32 %v952_v47, %v14168_v53 }
  0xb2   : > { %2626 = vperm.xlu1 %13460, %v14026_v21   ;;  %12021 = vmatmul.mubr.msk.f32.vlgmr.msra.gmra.mrb[0].mxu0 %vm1288_vm2, %v1095_v50  ;;  %v14217_v50 = vsel %vm843_vm1, %v851_v60, %v853_v38 }
  0xb3   : > { %v962_v58 = vpop.permute.xlu1 %961  ;;  %12023 = vmatprep.mubr.msk.f32.mxu0 %vm1288_vm2, %v1096_v52  ;;  %v957_v59 = vpop.permute.xlu0 %956  ;;  %2638 = vperm.xlu0 %13461, %v14045_v24   ;;  %17260 = vst [vmem:[#allocation26_spill] sm:$0xff] %v14217_v50  ;;  %v857_v52 = vrot.slane %v14206_v41, 7 }
  0xb4   : > { %v1098_v62 = vmul.f32 %v957_v59, %v14172_v55  ;;  %12069 = vmatpush3.msk.msra.mxu0 %vm1385_vm0, %v14000_v19  ;;  %v1099_v47 = vmul.f32 %v962_v58, %v14195_v9  ;;  %v14226_v59 = vld [vmem:[%s14136_s27 + $0x48] sm:$0xff] }
  0xb5   : > { %12118 = vmatprep.subr.msk.mxu0 %vm1385_vm0, %v14182_v57  ;;  %17262 = vst [vmem:[#allocation28_spill] sm:$0xff] %v14226_v59  ;;  %v14237_v36 = vsel %vm843_vm1, %v855_v44, %v857_v52 }
  0xb6   : > { %2634 = vperm.xlu1 %13460, %v14038_v23   ;;  %12024 = vmatmul.mubr.msk.f32.gmra.mrb[2].mxu0 %vm1288_vm2, %v1097_v61  ;;  %17264 = vst [vmem:[#allocation30_spill] sm:$0xff] %v14237_v36 }
  0xb7   : > { %v972_v42 = vpop.permute.xlu1 %971  ;;  %12026 = vmatprep.mubr.msk.f32.mxu0 %vm1288_vm2, %v1098_v62  ;;  %v967_v19 = vpop.permute.xlu0 %966  ;;  %2646 = vperm.xlu0 %13461, %v14057_v26   ;;  %v859_v62 = vrot.slane %v14214_v49, 7 }
  0xb8   : > { %v1100_v48 = vmul.f32 %v967_v19, %v14199_v40  ;;  %v1101_v60 = vmul.f32 %v972_v42, %v14217_v50  ;;  %v14234_v19 = vld [vmem:[%s14136_s27 + $0x50] sm:$0xff]  ;;  %v14254_v50 = vld [vmem:[%s14136_s27 + $0x60] sm:$0xff] }
  0xb9   : > { %17263 = vst [vmem:[#allocation29_spill] sm:$0xff] %v14234_v19  ;;  %v14241_v18 = vsel %vm843_vm1, %v857_v52, %v859_v62  ;;  %v863_v2 = vrot.slane %v14234_v19, 7  ;;  %17267 = vst [vmem:[#allocation33_spill] sm:$0xff] %v14254_v50 }
  0xba   : > { %2642 = vperm.xlu1 %13460, %v14050_v25   ;;  %12027 = vmatmul.mubr.msk.f32.gmra.mrb[4].mxu0 %vm1288_vm2, %v1099_v47  ;;  %v861_v47 = vrot.slane %v14226_v59, 7  ;;  %17265 = vst [vmem:[#allocation31_spill] sm:$0xff] %v14241_v18 }
  0xbb   : > { %v982_v58 = vpop.permute.xlu1 %981  ;;  %12029 = vmatprep.mubr.msk.f32.mxu0 %vm1288_vm2, %v1100_v48  ;;  %v977_v61 = vpop.permute.xlu0 %976  ;;  %2654 = vperm.xlu0 %13461, %v14069_v28   ;;  %v14246_v48 = vld [vmem:[%s14136_s27 + $0x58] sm:$0xff] }
  0xbc   : > { %v1102_v38 = vmul.f32 %v977_v61, %v14221_v54  ;;  %17266 = vst [vmem:[#allocation32_spill] sm:$0xff] %v14246_v48  ;;  %v1103_v44 = vmul.f32 %v982_v58, %v14237_v36  ;;  %v14257_v54 = vsel %vm843_vm1, %v859_v62, %v861_v47  ;;  %v14261_v9 = vsel %vm843_vm1, %v861_v47, %v863_v2 }
  0xbe   : > { %2650 = vperm.xlu1 %13460, %v14062_v27   ;;  %12030 = vmatmul.mubr.msk.f32.gmra.mrb[6].mxu0 %vm1288_vm2, %v1101_v60  ;;  %v865_v60 = vrot.slane %v14246_v48, 7 }
  0xbf   : > { %v992_v42 = vpop.permute.xlu1 %991  ;;  %12032 = vmatprep.mubr.msk.f32.mxu0 %vm1288_vm2, %v1102_v38  ;;  %v987_v61 = vpop.permute.xlu0 %986  ;;  %2662 = vperm.xlu0 %13461, %v14081_v30   ;;  %v14266_v38 = vld [vmem:[%s14136_s27 + $0x68] sm:$0xff] }
  0xc0   : > { %v1104_v52 = vmul.f32 %v987_v61, %v14241_v18  ;;  %v867_v61 = vrot.slane %v14254_v50, 7  ;;  %v1105_v62 = vmul.f32 %v992_v42, %v14257_v54  ;;  %v14274_v47 = vsel %vm843_vm1, %v863_v2, %v865_v60 }
  0xc1   : > { %17268 = vst [vmem:[#allocation34_spill] sm:$0xff] %v14274_v47  ;;  %v17090_v18 = vrot.slane %v14266_v38, 7 }
  0xc2   : > { %2658 = vperm.xlu1 %13460, %v14074_v29   ;;  %12033 = vmatmul.mubr.msk.f32.gmra.mrb[8].mxu0 %vm1288_vm2, %v1103_v44  ;;  %v14278_v44 = vsel %vm843_vm1, %v865_v60, %v867_v61  ;;  %v1940_v60 = vrot.slane %v14141_v37, 1 }
  0xc3   : > { %v1002_v40 = vpop.permute.xlu1 %1001  ;;  %12035 = vmatprep.mubr.msk.f32.mxu0 %vm1288_vm2, %v1104_v52  ;;  %v997_v58 = vpop.permute.xlu0 %996  ;;  %2670 = vperm.xlu0 %13461, %v14093_v32   ;;  %17269 = vst [vmem:[#allocation35_spill] sm:$0xff] %v14278_v44 }
  0xc4   : > { %v1106_v36 = vmul.f32 %v997_v58, %v14261_v9  ;;  %v1107_v42 = vmul.f32 %v1002_v40, %v14274_v47  ;;  %v14289_v58 = vsel %vm843_vm1, %v867_v61, %v17090_v18  ;;  %v2032_v37 = vsel %vm1939_vm3, 0.0, %v1940_v60 }
  0xc5   : > { %17270 = vst [vmem:[#allocation36_spill] sm:$0xff] %v14289_v58 }
  0xc6   : > { %2666 = vperm.xlu1 %13460, %v14086_v31   ;;  %12036 = vmatmul.mubr.msk.f32.gmra.mrb[10].mxu0 %vm1288_vm2, %v1105_v62  ;;  %v17094_v62 = vmov 4  }
  0xc7   : > { %v1012_v52 = vpop.permute.xlu1 %1011  ;;  %12038 = vmatprep.mubr.msk.f32.mxu0 %vm1288_vm2, %v1106_v36  ;;  %v1007_v55 = vpop.permute.xlu0 %1006  ;;  %2678 = vperm.xlu0 %13461, %v14105_v34   ;;  %v1941_v36 = vrot.slane %v14146_v39, 1 }
  0xc8   : > { %v1108_v2 = vmul.f32 %v1007_v55, %v14278_v44  ;;  %v1943_v55 = vrot.slane %v14150_v43, 1  ;;  %v1109_v40 = vmul.f32 %v1012_v52, %v14289_v58 }
  0xca   : > { %2674 = vperm.xlu1 %13460, %v14098_v33   ;;  %12039 = vmatmul.mubr.msk.f32.gmra.mrb[12].mxu0 %vm1288_vm2, %v1107_v42  ;;  %v14304_v42 = vsel %vm1939_vm3, %v1940_v60, %v1941_v36  ;;  %v14309_v52 = vsel %vm1939_vm3, %v1941_v36, %v1943_v55  ;;  %v1949_v36 = vrot.slane %v14177_v56, 1 }
  0xcb   : > { %12041 = vmatprep.mubr.msk.f32.mxu0 %vm1288_vm2, %v1108_v2  ;;  %13462 = vset.pattern.permute.xlu0 %v17094_v62  ;;  %17271 = vst [vmem:[#allocation37_spill] sm:$0xff] %v14304_v42  ;;  %v1945_v2 = vrot.slane %v14159_v46, 1  ;;  %17272 = vst [vmem:[#allocation38_spill] sm:$0xff] %v14309_v52  ;;  %v1947_v62 = vrot.slane %v14164_v51, 1 }
  0xcc   : > { %v2039_v61 = vpop.permute.xlu1 %2038  ;;  %v2035_v18 = vpop.permute.xlu0 %2034  ;;  %3075 = vperm.xlu0 %13462, %v13898_v1  }
  0xcd   : > { %v2161_v47 = vmul.f32 0.0, %v2035_v18  ;;  %v2162_v43 = vmul.f32 %v2039_v61, %v2032_v37  ;;  %v14324_v37 = vld [vmem:[%s17243_s29 + $0x10] sm:$0xf] }
  0xce   : > { %2682 = vperm.xlu1 %13460, %v14110_v35   ;;  %12042 = vmatmul.mubr.msk.f32.gmra.mrb[14].mxu0 %vm1288_vm2, %v1109_v40  ;;  %v17273_v40 = vmov 4  }
  0xcf   : > { %12070 = vmatprep.mubr.msk.f32.mxu0 %vm1288_vm2, %v2161_v47  ;;  %v14318_v47 = vsel %vm1939_vm3, %v1943_v55, %v1945_v2 }
  0xd0   : > { %v2043_v39 = vpop.permute.xlu1 %2042  ;;  %v2047_v58 = vpop.permute.xlu0 %2046  ;;  %3087 = vperm.xlu0 %13462, %v13907_v3   ;;  %17274 = vst [vmem:[#allocation39_spill] sm:$0xff] %v14318_v47 }
  0xd1   : > { %v2163_v18 = vmul.f32 %v2043_v39, %v14304_v42  ;;  %v2164_v60 = vmul.f32 %v2047_v58, %v14309_v52  ;;  %v14329_v39 = vsel %vm1939_vm3, %v1945_v2, %v1947_v62  ;;  %v14341_v2 = vsel %vm1939_vm3, %v1947_v62, %v1949_v36 }
  0xd2   : > { %13463 = vset.pattern.permute.xlu1 %v17273_v40  ;;  %12071 = vmatmul.mubr.msk.f32.vlgmr.msra.gmra.mrb[0].mxu0 %vm1288_vm2, %v2162_v43  ;;  %17275 = vst [vmem:[#allocation40_spill] sm:$0xff] %v14329_v39  ;;  %v1951_v43 = vrot.slane %v14190_v63, 1  ;;  %17276 = vst [vmem:[#allocation41_spill] sm:$0xff] %v14341_v2  ;;  %v1953_v40 = vrot.slane %v14206_v41, 1 }
  0xd3   : > { %3079 = vperm.xlu1 %13463, %v13912_v4   ;;  %12073 = vmatprep.mubr.msk.f32.mxu0 %vm1288_vm2, %v2163_v18 }
  0xd4   : > { %v2051_v58 = vpop.permute.xlu1 %2050  ;;  %v2055_v61 = vpop.permute.xlu0 %2054  ;;  %3095 = vperm.xlu0 %13462, %v13919_v5   ;;  %12119 = vmatpush3.msk.msra.mxu0 %vm1385_vm0, %v14182_v57  ;;  %v14347_v57 = vsel %vm1939_vm3, %v1949_v36, %v1951_v43 }
  0xd5   : > { %v2165_v55 = vmul.f32 %v2051_v58, %v14318_v47  ;;  %12168 = vmatprep.subr.msk.mxu0 %vm1385_vm0, %v14324_v37  ;;  %v2166_v18 = vmul.f32 %v2055_v61, %v14329_v39  ;;  %17277 = vst [vmem:[#allocation42_spill] sm:$0xff] %v14347_v57  ;;  %v1955_v58 = vrot.slane %v14214_v49, 1  ;;  %v14355_v61 = vsel %vm1939_vm3, %v1951_v43, %v1953_v40 }
  0xd6   : > { %12074 = vmatmul.mubr.msk.f32.gmra.mrb[2].mxu0 %vm1288_vm2, %v2164_v60  ;;  %17278 = vst [vmem:[#allocation43_spill] sm:$0xff] %v14355_v61  ;;  %v1959_v39 = vrot.slane %v14234_v19, 1 }
  0xd7   : > { %3083 = vperm.xlu1 %13463, %v13893_v0   ;;  %12076 = vmatprep.mubr.msk.f32.mxu0 %vm1288_vm2, %v2165_v55  ;;  %v1957_v55 = vrot.slane %v14226_v59, 1  ;;  %v14361_v36 = vsel %vm1939_vm3, %v1953_v40, %v1955_v58 }
  0xd8   : > { %v2059_v47 = vpop.permute.xlu1 %2058  ;;  %v2063_v42 = vpop.permute.xlu0 %2062  ;;  %3103 = vperm.xlu0 %13462, %v13931_v7   ;;  %17279 = vst [vmem:[#allocation44_spill] sm:$0xff] %v14361_v36 }
  0xd9   : > { %v2167_v60 = vmul.f32 %v2059_v47, %v14341_v2  ;;  %v2168_v62 = vmul.f32 %v2063_v42, %v14347_v57  ;;  %v14375_v40 = vsel %vm1939_vm3, %v1957_v55, %v1959_v39  ;;  %v1963_v57 = vrot.slane %v14254_v50, 1 }
  0xda   : > { %12077 = vmatmul.mubr.msk.f32.gmra.mrb[4].mxu0 %vm1288_vm2, %v2166_v18  ;;  %v14369_v18 = vsel %vm1939_vm3, %v1955_v58, %v1957_v55  ;;  %17281 = vst [vmem:[#allocation46_spill] sm:$0xff] %v14375_v40  ;;  %v1965_v55 = vrot.slane %v14266_v38, 1 }
  0xdb   : > { %3091 = vperm.xlu1 %13463, %v13924_v6   ;;  %12079 = vmatprep.mubr.msk.f32.mxu0 %vm1288_vm2, %v2167_v60  ;;  %17280 = vst [vmem:[#allocation45_spill] sm:$0xff] %v14369_v18  ;;  %v1961_v60 = vrot.slane %v14246_v48, 1 }
  0xdc   : > { %v2067_v47 = vpop.permute.xlu1 %2066  ;;  %v2071_v2 = vpop.permute.xlu0 %2070  ;;  %3111 = vperm.xlu0 %13462, %v13948_v10  }
  0xdd   : > { %v2169_v42 = vmul.f32 %v2067_v47, %v14355_v61  ;;  %v2170_v43 = vmul.f32 %v2071_v2, %v14361_v36  ;;  %v14380_v2 = vld [vmem:[%s14136_s27 + $0x70] sm:$0xff]  ;;  %v14392_v36 = vsel %vm1939_vm3, %v1961_v60, %v1963_v57 }
  0xde   : > { %12080 = vmatmul.mubr.msk.f32.gmra.mrb[6].mxu0 %vm1288_vm2, %v2168_v62  ;;  %17283 = vst [vmem:[#allocation48_spill] sm:$0xff] %v14392_v36  ;;  %v1967_v52 = vrot.slane %v14380_v2, 1 }
  0xdf   : > { %3099 = vperm.xlu1 %13463, %v13936_v8   ;;  %12082 = vmatprep.mubr.msk.f32.mxu0 %vm1288_vm2, %v2169_v42  ;;  %v14386_v42 = vsel %vm1939_vm3, %v1959_v39, %v1961_v60  ;;  %v14400_v39 = vld [vmem:[%s14136_s27 + $0x80] sm:$0xff]  ;;  %v14406_v60 = vsel %vm1939_vm3, %v1963_v57, %v1965_v55  ;;  %v14420_v57 = vld [vmem:[%s14136_s27 + $0x90] sm:$0xff] }
  0xe0   : > { %v2075_v47 = vpop.permute.xlu1 %2074  ;;  %v2079_v61 = vpop.permute.xlu0 %2078  ;;  %3119 = vperm.xlu0 %13462, %v13960_v12   ;;  %17282 = vst [vmem:[#allocation47_spill] sm:$0xff] %v14386_v42  ;;  %17284 = vst [vmem:[#allocation49_spill] sm:$0xff] %v14406_v60  ;;  %v14412_v50 = vsel %vm1939_vm3, %v1965_v55, %v1967_v52  ;;  %v1971_v19 = vrot.slane %v14400_v39, 1  ;;  %v1975_v49 = vrot.slane %v14420_v57, 1 }
  0xe1   : > { %v2171_v58 = vmul.f32 %v2075_v47, %v14369_v18  ;;  %v2172_v62 = vmul.f32 %v2079_v61, %v14375_v40  ;;  %v14396_v47 = vld [vmem:[%s14136_s27 + $0x78] sm:$0xff]  ;;  %17285 = vst [vmem:[#allocation50_spill] sm:$0xff] %v14412_v50 }
  0xe2   : > { %12083 = vmatmul.mubr.msk.f32.gmra.mrb[8].mxu0 %vm1288_vm2, %v2170_v43  ;;  %v1969_v40 = vrot.slane %v14396_v47, 1 }
  0xe3   : > { %3107 = vperm.xlu1 %13463, %v13953_v11   ;;  %12085 = vmatprep.mubr.msk.f32.mxu0 %vm1288_vm2, %v2171_v58 }
  0xe4   : > { %v2083_v43 = vpop.permute.xlu1 %2082  ;;  %v2087_v18 = vpop.permute.xlu0 %2086  ;;  %3127 = vperm.xlu0 %13462, %v13972_v14   ;;  %v14426_v55 = vsel %vm1939_vm3, %v1967_v52, %v1969_v40  ;;  %v14432_v48 = vsel %vm1939_vm3, %v1969_v40, %v1971_v19  ;;  %v14440_v52 = vld [vmem:[%s14136_s27 + $0xa0] sm:$0xff] }
  0xe5   : > { %v2173_v61 = vmul.f32 %v2083_v43, %v14386_v42  ;;  %v2174_v58 = vmul.f32 %v2087_v18, %v14392_v36  ;;  %v14416_v43 = vld [vmem:[%s14136_s27 + $0x88] sm:$0xff]  ;;  %17286 = vst [vmem:[#allocation51_spill] sm:$0xff] %v14426_v55  ;;  %17287 = vst [vmem:[#allocation52_spill] sm:$0xff] %v14432_v48  ;;  %v1979_v63 = vrot.slane %v14440_v52, 1 }
  0xe6   : > { %12086 = vmatmul.mubr.msk.f32.gmra.mrb[10].mxu0 %vm1288_vm2, %v2172_v62  ;;  %v1973_v36 = vrot.slane %v14416_v43, 1 }
  0xe7   : > { %3115 = vperm.xlu1 %13463, %v13965_v13   ;;  %12088 = vmatprep.mubr.msk.f32.mxu0 %vm1288_vm2, %v2173_v61 }
  0xe8   : > { %v2091_v62 = vpop.permute.xlu1 %2090  ;;  %v2095_v42 = vpop.permute.xlu0 %2094  ;;  %3135 = vperm.xlu0 %13462, %v13984_v16   ;;  %v14446_v40 = vsel %vm1939_vm3, %v1971_v19, %v1973_v36  ;;  %v14452_v59 = vsel %vm1939_vm3, %v1973_v36, %v1975_v49  ;;  %v14460_v19 = vld [vmem:[%s14136_s27 + $0xb0] sm:$0xff] }
  0xe9   : > { %v2175_v18 = vmul.f32 %v2091_v62, %v14406_v60  ;;  %v2176_v61 = vmul.f32 %v2095_v42, %v14412_v50  ;;  %v14436_v62 = vld [vmem:[%s14136_s27 + $0x98] sm:$0xff]  ;;  %17288 = vst [vmem:[#allocation53_spill] sm:$0xff] %v14446_v40  ;;  %17289 = vst [vmem:[#allocation54_spill] sm:$0xff] %v14452_v59  ;;  %v1983_v51 = vrot.slane %v14460_v19, 1 }
  0xea   : > { %12089 = vmatmul.mubr.msk.f32.gmra.mrb[12].mxu0 %vm1288_vm2, %v2174_v58  ;;  %v1977_v50 = vrot.slane %v14436_v62, 1 }
  0xeb   : > { %3123 = vperm.xlu1 %13463, %v13977_v15   ;;  %12091 = vmatprep.mubr.msk.f32.mxu0 %vm1288_vm2, %v2175_v18 }
  0xec   : > { %v2099_v58 = vpop.permute.xlu1 %2098  ;;  %v2103_v60 = vpop.permute.xlu0 %2102  ;;  %3143 = vperm.xlu0 %13462, %v14026_v21   ;;  %v14466_v36 = vsel %vm1939_vm3, %v1975_v49, %v1977_v50  ;;  %v14472_v41 = vsel %vm1939_vm3, %v1977_v50, %v1979_v63  ;;  %v14480_v49 = vld [vmem:[%s14136_s27 + $0xc0] sm:$0xff] }
  0xed   : > { %v2177_v42 = vmul.f32 %v2099_v58, %v14426_v55  ;;  %v2178_v18 = vmul.f32 %v2103_v60, %v14432_v48  ;;  %v14456_v58 = vld [vmem:[%s14136_s27 + $0xa8] sm:$0xff]  ;;  %17290 = vst [vmem:[#allocation55_spill] sm:$0xff] %v14466_v36  ;;  %17291 = vst [vmem:[#allocation56_spill] sm:$0xff] %v14472_v41  ;;  %v1987_v46 = vrot.slane %v14480_v49, 1 }
  0xee   : > { %12092 = vmatmul.mubr.msk.f32.gmra.mrb[14].mxu0 %vm1288_vm2, %v2176_v61  ;;  %v1981_v48 = vrot.slane %v14456_v58, 1 }
  0xef   : > { %3131 = vperm.xlu1 %13463, %v13989_v17   ;;  %12094 = vmatprep.mubr.msk.f32.mxu0 %vm1288_vm2, %v2177_v42 }
  0xf0   : > { %v2107_v61 = vpop.permute.xlu1 %2106  ;;  %v2111_v55 = vpop.permute.xlu0 %2110  ;;  %3151 = vperm.xlu0 %13462, %v14038_v23   ;;  %v14486_v50 = vsel %vm1939_vm3, %v1979_v63, %v1981_v48  ;;  %v14492_v56 = vsel %vm1939_vm3, %v1981_v48, %v1983_v51  ;;  %v14500_v63 = vld [vmem:[%s14136_s27 + $0xd0] sm:$0xff] }
  0xf1   : > { %v2179_v60 = vmul.f32 %v2107_v61, %v14446_v40  ;;  %v2180_v42 = vmul.f32 %v2111_v55, %v14452_v59  ;;  %v14476_v61 = vld [vmem:[%s14136_s27 + $0xb8] sm:$0xff]  ;;  %17292 = vst [vmem:[#allocation57_spill] sm:$0xff] %v14486_v50  ;;  %17293 = vst [vmem:[#allocation58_spill] sm:$0xff] %v14492_v56 }
  0xf2   : > { %12095 = vmatmul.mubr.msk.f32.gmra.mrb[16].mxu0 %vm1288_vm2, %v2178_v18  ;;  %v1985_v59 = vrot.slane %v14476_v61, 1 }
  0xf3   : > { %3139 = vperm.xlu1 %13463, %v14021_v20   ;;  %12097 = vmatprep.mubr.msk.f32.mxu0 %vm1288_vm2, %v2179_v60 }
  0xf4   : > { %v2115_v18 = vpop.permute.xlu1 %2114  ;;  %v2119_v40 = vpop.permute.xlu0 %2118  ;;  %3159 = vperm.xlu0 %13462, %v14050_v25   ;;  %v14506_v48 = vsel %vm1939_vm3, %v1983_v51, %v1985_v59  ;;  %v14512_v25 = vsel %vm1939_vm3, %v1985_v59, %v1987_v46  ;;  %v14520_v51 = vld [vmem:[%s14136_s27 + $0xe0] sm:$0xff] }
  0xf5   : > { %v2181_v55 = vmul.f32 %v2115_v18, %v14466_v36  ;;  %v2182_v60 = vmul.f32 %v2119_v40, %v14472_v41  ;;  %v14496_v18 = vld [vmem:[%s14136_s27 + $0xc8] sm:$0xff]  ;;  %17295 = vst [vmem:[#allocation60_spill] sm:$0xff] %v14506_v48  ;;  %17296 = vst [vmem:[#allocation61_spill] sm:$0xff] %v14512_v25 }
  0xf6   : > { %12098 = vmatmul.mubr.msk.f32.gmra.mrb[18].mxu0 %vm1288_vm2, %v2180_v42  ;;  %17294 = vst [vmem:[#allocation59_spill] sm:$0xff] %v14496_v18  ;;  %v1989_v41 = vrot.slane %v14496_v18, 1  ;;  %v14536_v18 = vld [vmem:[%s14136_s27 + $0xe8] sm:$0xff] }
  0xf7   : > { %3147 = vperm.xlu1 %13463, %v14033_v22   ;;  %12100 = vmatprep.mubr.msk.f32.mxu0 %vm1288_vm2, %v2181_v55 }
  0xf8   : > { %v2123_v42 = vpop.permute.xlu1 %2122  ;;  %v2127_v36 = vpop.permute.xlu0 %2126  ;;  %3167 = vperm.xlu0 %13462, %v14062_v27   ;;  %v1991_v27 = vrot.slane %v14500_v63, 1  ;;  %v14526_v59 = vsel %vm1939_vm3, %v1987_v46, %v1989_v41 }
  0xf9   : > { %v2183_v40 = vmul.f32 %v2123_v42, %v14486_v50  ;;  %v2184_v55 = vmul.f32 %v2127_v36, %v14492_v56  ;;  %v14516_v42 = vld [vmem:[%s14136_s27 + $0xd8] sm:$0xff]  ;;  %17298 = vst [vmem:[#allocation63_spill] sm:$0xff] %v14526_v59 }
  0xfa   : > { %12101 = vmatmul.mubr.msk.f32.gmra.mrb[20].mxu0 %vm1288_vm2, %v2182_v60  ;;  %17297 = vst [vmem:[#allocation62_spill] sm:$0xff] %v14516_v42  ;;  %v1993_v56 = vrot.slane %v14516_v42, 1  ;;  %v14532_v23 = vsel %vm1939_vm3, %v1989_v41, %v1991_v27  ;;  %v1997_v41 = vrot.slane %v14536_v18, 1 }
  0xfb   : > { %3155 = vperm.xlu1 %13463, %v14045_v24   ;;  %12103 = vmatprep.mubr.msk.f32.mxu0 %vm1288_vm2, %v2183_v40 }
  0xfc   : > { %v2131_v60 = vpop.permute.xlu1 %2130  ;;  %v2135_v50 = vpop.permute.xlu0 %2134  ;;  %3175 = vperm.xlu0 %13462, %v14074_v29   ;;  %v1995_v29 = vrot.slane %v14520_v51, 1 }
  0xfd   : > { %v2185_v36 = vmul.f32 %v2131_v60, %v14506_v48  ;;  %v2186_v40 = vmul.f32 %v2135_v50, %v14512_v25  ;;  %v14540_v50 = vld [vmem:[%s14136_s27 + $0xf0] sm:$0xff] }
  0xfe   : > { %12104 = vmatmul.mubr.msk.f32.gmra.mrb[22].mxu0 %vm1288_vm2, %v2184_v55  ;;  %v14552_v48 = vsel %vm1939_vm3, %v1993_v56, %v1995_v29 }
  0xff   : > { %3163 = vperm.xlu1 %13463, %v14057_v26   ;;  %12106 = vmatprep.mubr.msk.f32.mxu0 %vm1288_vm2, %v2185_v36  ;;  %v14546_v36 = vsel %vm1939_vm3, %v1991_v27, %v1993_v56 }
 0x100   : > { %v2139_v60 = vpop.permute.xlu1 %2138  ;;  %v2143_v55 = vpop.permute.xlu0 %2142  ;;  %3183 = vperm.xlu0 %13462, %v14086_v31   ;;  %17299 = vst [vmem:[#allocation64_spill] sm:$0xff] %v14546_v36  ;;  %v17165_v31 = vrot.slane %v14540_v50, 1 }
 0x101   : > { %v2187_v46 = vmul.f32 %v2139_v60, %v14526_v59  ;;  %v2188_v25 = vmul.f32 %v2143_v55, %v14532_v23  ;;  %v14560_v55 = vsel %vm1939_vm3, %v1995_v29, %v1997_v41  ;;  %v17163_v29 = vmov 5  }
 0x102   : > { %12107 = vmatmul.mubr.msk.f32.gmra.mrb[24].mxu0 %vm1288_vm2, %v2186_v40  ;;  %v14567_v56 = vsel %vm1939_vm3, %v1997_v41, %v17165_v31 }
 0x103   : > { %3171 = vperm.xlu1 %13463, %v14069_v28   ;;  %12109 = vmatprep.mubr.msk.f32.mxu0 %vm1288_vm2, %v2187_v46 }
 0x104   : > { %v2147_v42 = vpop.permute.xlu1 %2146  ;;  %v2151_v60 = vpop.permute.xlu0 %2150  ;;  %3191 = vperm.xlu0 %13462, %v14098_v33  }
 0x105   : > { %v2189_v40 = vmul.f32 %v2147_v42, %v14546_v36  ;;  %v2190_v27 = vmul.f32 %v2151_v60, %v14552_v48 }
 0x106   : > { %12110 = vmatmul.mubr.msk.f32.gmra.mrb[26].mxu0 %vm1288_vm2, %v2188_v25 }
 0x107   : > { %3179 = vperm.xlu1 %13463, %v14081_v30   ;;  %12112 = vmatprep.mubr.msk.f32.mxu0 %vm1288_vm2, %v2189_v40 }
 0x108   : > { %v2155_v46 = vpop.permute.xlu1 %2154  ;;  %v2159_v33 = vpop.permute.xlu0 %2158  ;;  %3199 = vperm.xlu0 %13462, %v14110_v35  }
 0x109   : > { %v2191_v25 = vmul.f32 %v2155_v46, %v14560_v55  ;;  %v2192_v42 = vmul.f32 %v2159_v33, %v14567_v56  ;;  %v17300_v33 = vld [vmem:[#allocation19_spill] sm:$0xff] }
 0x10a   : > { %12113 = vmatmul.mubr.msk.f32.gmra.mrb[28].mxu0 %vm1288_vm2, %v2190_v27 }
 0x10b   : > { %3187 = vperm.xlu1 %13463, %v14093_v32   ;;  %12115 = vmatprep.mubr.msk.f32.mxu0 %vm1288_vm2, %v2191_v25 }
 0x10c   : > { %13465 = vset.pattern.permute.xlu0 %v17163_v29 }
 0x10d   : > { %v2559_v60 = vpop.permute.xlu1 %2558  ;;  %v2563_v41 = vpop.permute.xlu0 %2562  ;;  %3601 = vperm.xlu0 %13465, %v13912_v4  }
 0x10e   : > { %v2685_v40 = vmul.f32 %v2559_v60, %v14154_v45  ;;  %12116 = vmatmul.mubr.msk.f32.gmra.mrb[30].mxu0 %vm1288_vm2, %v2192_v42  ;;  %v2686_v35 = vmul.f32 %v2563_v41, %v14168_v53  ;;  %v17301_v45 = vld [vmem:[#allocation23_spill] sm:$0xff]  ;;  %v17302_v42 = vld [vmem:[#allocation22_spill] sm:$0xff]  ;;  %v14596_v41 = vld [vmem:[%s17243_s29 + $0x14] sm:$0xf] }
 0x10f   : > { %3195 = vperm.xlu1 %13463, %v14105_v34  }
 0x110   : > { %12120 = vmatprep.mubr.msk.f32.mxu0 %vm1288_vm2, %v2685_v40 }
 0x111   : > { %v2567_v27 = vpop.permute.xlu1 %2566  ;;  %3613 = vperm.xlu0 %13465, %v13924_v6   ;;  %v2575_v46 = vpop.permute.xlu0 %2574 }
 0x112   : > { %v2687_v25 = vmul.f32 %v2567_v27, %v17300_v33  ;;  %12121 = vmatmul.mubr.msk.f32.vlgmr.msra.gmra.mrb[0].mxu0 %vm1288_vm2, %v2686_v35  ;;  %v2689_v53 = vmul.f32 %v2575_v46, %v17301_v45  ;;  %v17304_v35 = vld [vmem:[#allocation26_spill] sm:$0xff] }
 0x113   : > { %13464 = vset.pattern.permute.xlu1 %v17163_v29  ;;  %12169 = vmatpush3.msk.msra.mxu0 %vm1385_vm0, %v14324_v37  ;;  %v17303_v37 = vld [vmem:[#allocation27_spill] sm:$0xff] }
 0x114   : > { %3597 = vperm.xlu1 %13464, %v13898_v1   ;;  %12123 = vmatprep.mubr.msk.f32.mxu0 %vm1288_vm2, %v2687_v25  ;;  %v17322_v29 = vld [vmem:[#allocation11_spill] sm:$0xff] }
 0x115   : > { %v2571_v4 = vpop.permute.xlu1 %2570  ;;  %3621 = vperm.xlu0 %13465, %v13936_v8   ;;  %v2583_v6 = vpop.permute.xlu0 %2582  ;;  %12218 = vmatprep.subr.msk.mxu0 %vm1385_vm0, %v14596_v41 }
 0x116   : > { %v2688_v60 = vmul.f32 %v2571_v4, %v17302_v42  ;;  %v2691_v8 = vmul.f32 %v2583_v6, %v17303_v37 }
 0x118   : > { %3605 = vperm.xlu1 %13464, %v13893_v0   ;;  %12124 = vmatmul.mubr.msk.f32.gmra.mrb[2].mxu0 %vm1288_vm2, %v2688_v60  ;;  %v17305_v0 = vld [vmem:[#allocation31_spill] sm:$0xff] }
 0x119   : > { %v2579_v1 = vpop.permute.xlu1 %2578  ;;  %12126 = vmatprep.mubr.msk.f32.mxu0 %vm1288_vm2, %v2689_v53  ;;  %3629 = vperm.xlu0 %13465, %v13953_v11   ;;  %v2591_v40 = vpop.permute.xlu0 %2590  ;;  %v17306_v53 = vld [vmem:[#allocation30_spill] sm:$0xff] }
 0x11a   : > { %v2690_v27 = vmul.f32 %v2579_v1, %v17304_v35  ;;  %v2693_v25 = vmul.f32 %v2591_v40, %v17305_v0 }
 0x11c   : > { %3609 = vperm.xlu1 %13464, %v13907_v3   ;;  %12127 = vmatmul.mubr.msk.f32.gmra.mrb[4].mxu0 %vm1288_vm2, %v2690_v27  ;;  %v17307_v27 = vld [vmem:[#allocation34_spill] sm:$0xff] }
 0x11d   : > { %v2587_v46 = vpop.permute.xlu1 %2586  ;;  %12129 = vmatprep.mubr.msk.f32.mxu0 %vm1288_vm2, %v2691_v8  ;;  %3637 = vperm.xlu0 %13465, %v13965_v13   ;;  %v2599_v4 = vpop.permute.xlu0 %2598  ;;  %v871_v8 = vrot.slane %v14380_v2, 7 }
 0x11e   : > { %v2692_v60 = vmul.f32 %v2587_v46, %v17306_v53  ;;  %v2695_v3 = vmul.f32 %v2599_v4, %v14261_v9  ;;  %v875_v4 = vrot.slane %v14400_v39, 7 }
 0x120   : > { %3617 = vperm.xlu1 %13464, %v13919_v5   ;;  %12130 = vmatmul.mubr.msk.f32.gmra.mrb[6].mxu0 %vm1288_vm2, %v2692_v60 }
 0x121   : > { %v2595_v11 = vpop.permute.xlu1 %2594  ;;  %12132 = vmatprep.mubr.msk.f32.mxu0 %vm1288_vm2, %v2693_v25  ;;  %3645 = vperm.xlu0 %13465, %v13977_v15   ;;  %v2607_v6 = vpop.permute.xlu0 %2606  ;;  %v17308_v15 = vrot.slane %v14266_v38, 7 }
 0x122   : > { %v2694_v1 = vmul.f32 %v2595_v11, %v14257_v54  ;;  %v2697_v5 = vmul.f32 %v2607_v6, %v14278_v44  ;;  %v14891_v44 = vld [vmem:[%s17241_s1 + $0x40] sm:$0xff] }
 0x123   : > { %v14628_v25 = vsel %vm843_vm1, %v17308_v15, %v871_v8 }
 0x124   : > { %3625 = vperm.xlu1 %13464, %v13931_v7   ;;  %12133 = vmatmul.mubr.msk.f32.gmra.mrb[8].mxu0 %vm1288_vm2, %v2694_v1  ;;  %17309 = vst [vmem:[#allocation19_spill] sm:$0xff] %v14628_v25  ;;  %v873_v7 = vrot.slane %v14396_v47, 7 }
 0x125   : > { %v2603_v13 = vpop.permute.xlu1 %2602  ;;  %12135 = vmatprep.mubr.msk.f32.mxu0 %vm1288_vm2, %v2695_v3  ;;  %3653 = vperm.xlu0 %13465, %v13989_v17   ;;  %v2615_v40 = vpop.permute.xlu0 %2614  ;;  %v17310_v3 = vld [vmem:[#allocation36_spill] sm:$0xff] }
 0x126   : > { %v2696_v46 = vmul.f32 %v2603_v13, %v17307_v27  ;;  %v2699_v17 = vmul.f32 %v2615_v40, %v14628_v25  ;;  %v14639_v1 = vsel %vm843_vm1, %v873_v7, %v875_v4  ;;  %v879_v13 = vrot.slane %v14420_v57, 7  ;;  %v14875_v25 = vld [vmem:[%s17241_s1 + $0x30] sm:$0xff] }
 0x127   : > { %17311 = vst [vmem:[#allocation23_spill] sm:$0xff] %v14639_v1  ;;  %v14643_v15 = vsel %vm843_vm1, %v871_v8, %v873_v7  ;;  %v883_v8 = vrot.slane %v14440_v52, 7 }
 0x128   : > { %3633 = vperm.xlu1 %13464, %v13948_v10   ;;  %12136 = vmatmul.mubr.msk.f32.gmra.mrb[10].mxu0 %vm1288_vm2, %v2696_v46  ;;  %17312 = vst [vmem:[#allocation22_spill] sm:$0xff] %v14643_v15  ;;  %v877_v10 = vrot.slane %v14416_v43, 7 }
 0x129   : > { %v2611_v60 = vpop.permute.xlu1 %2610  ;;  %12138 = vmatprep.mubr.msk.f32.mxu0 %vm1288_vm2, %v2697_v5  ;;  %3661 = vperm.xlu0 %13465, %v14021_v20   ;;  %v2623_v11 = vpop.permute.xlu0 %2622 }
 0x12a   : > { %v2698_v6 = vmul.f32 %v2611_v60, %v17310_v3  ;;  %v2701_v20 = vmul.f32 %v2623_v11, %v14639_v1  ;;  %v14653_v60 = vsel %vm843_vm1, %v877_v10, %v879_v13  ;;  %v14657_v7 = vsel %vm843_vm1, %v875_v4, %v877_v10  ;;  %v14859_v1 = vld [vmem:[%s17241_s1 + $0x20] sm:$0xff]  ;;  %v14907_v3 = vld [vmem:[%s17241_s1 + $0x50] sm:$0xff] }
 0x12b   : > { %17313 = vst [vmem:[#allocation27_spill] sm:$0xff] %v14653_v60  ;;  %17314 = vst [vmem:[#allocation26_spill] sm:$0xff] %v14657_v7  ;;  %v887_v4 = vrot.slane %v14460_v19, 7 }
 0x12c   : > { %3641 = vperm.xlu1 %13464, %v13960_v12   ;;  %12139 = vmatmul.mubr.msk.f32.gmra.mrb[12].mxu0 %vm1288_vm2, %v2698_v6  ;;  %v881_v12 = vrot.slane %v14436_v62, 7 }
 0x12d   : > { %v2619_v5 = vpop.permute.xlu1 %2618  ;;  %12141 = vmatprep.mubr.msk.f32.mxu0 %vm1288_vm2, %v2699_v17  ;;  %3669 = vperm.xlu0 %13465, %v14033_v22  }
 0x12e   : > { %v2700_v40 = vmul.f32 %v2619_v5, %v14643_v15  ;;  %v2631_v46 = vpop.permute.xlu0 %2630  ;;  %v14667_v5 = vsel %vm843_vm1, %v881_v12, %v883_v8  ;;  %v14671_v10 = vsel %vm843_vm1, %v879_v13, %v881_v12  ;;  %v891_v13 = vrot.slane %v14480_v49, 7 }
 0x12f   : > { %v2703_v22 = vmul.f32 %v2631_v46, %v14653_v60  ;;  %17315 = vst [vmem:[#allocation31_spill] sm:$0xff] %v14667_v5  ;;  %17316 = vst [vmem:[#allocation30_spill] sm:$0xff] %v14671_v10 }
 0x130   : > { %3649 = vperm.xlu1 %13464, %v13972_v14   ;;  %12142 = vmatmul.mubr.msk.f32.gmra.mrb[14].mxu0 %vm1288_vm2, %v2700_v40  ;;  %v885_v14 = vrot.slane %v14456_v58, 7 }
 0x131   : > { %v2627_v17 = vpop.permute.xlu1 %2626  ;;  %12144 = vmatprep.mubr.msk.f32.mxu0 %vm1288_vm2, %v2701_v20  ;;  %3677 = vperm.xlu0 %13465, %v14045_v24  }
 0x132   : > { %v2702_v11 = vmul.f32 %v2627_v17, %v14657_v7  ;;  %v2639_v6 = vpop.permute.xlu0 %2638  ;;  %v14681_v17 = vsel %vm843_vm1, %v885_v14, %v887_v4  ;;  %v14685_v12 = vsel %vm843_vm1, %v883_v8, %v885_v14  ;;  %v895_v8 = vrot.slane %v14500_v63, 7 }
 0x133   : > { %v2705_v24 = vmul.f32 %v2639_v6, %v14667_v5  ;;  %17317 = vst [vmem:[#allocation34_spill] sm:$0xff] %v14681_v17  ;;  %17318 = vst [vmem:[#allocation65_spill] sm:$0xff] %v14685_v12 }
 0x134   : > { %3657 = vperm.xlu1 %13464, %v13984_v16   ;;  %12145 = vmatmul.mubr.msk.f32.gmra.mrb[16].mxu0 %vm1288_vm2, %v2702_v11  ;;  %v889_v16 = vrot.slane %v14476_v61, 7 }
 0x135   : > { %v2635_v20 = vpop.permute.xlu1 %2634  ;;  %12147 = vmatprep.mubr.msk.f32.mxu0 %vm1288_vm2, %v2703_v22  ;;  %3685 = vperm.xlu0 %13465, %v14057_v26  }
 0x136   : > { %v2704_v40 = vmul.f32 %v2635_v20, %v14671_v10  ;;  %v2647_v46 = vpop.permute.xlu0 %2646  ;;  %v14695_v20 = vsel %vm843_vm1, %v889_v16, %v891_v13  ;;  %v14699_v14 = vsel %vm843_vm1, %v887_v4, %v889_v16  ;;  %v899_v4 = vrot.slane %v14520_v51, 7 }
 0x137   : > { %v2707_v26 = vmul.f32 %v2647_v46, %v14681_v17  ;;  %17319 = vst [vmem:[#allocation66_spill] sm:$0xff] %v14695_v20  ;;  %17320 = vst [vmem:[#allocation67_spill] sm:$0xff] %v14699_v14  ;;  %v17326_v17 = vld [vmem:[#allocation12_spill] sm:$0xff] }
 0x138   : > { %3665 = vperm.xlu1 %13464, %v14026_v21   ;;  %12148 = vmatmul.mubr.msk.f32.gmra.mrb[18].mxu0 %vm1288_vm2, %v2704_v40  ;;  %v17321_v21 = vld [vmem:[#allocation59_spill] sm:$0xff] }
 0x139   : > { %v2643_v22 = vpop.permute.xlu1 %2642  ;;  %12150 = vmatprep.mubr.msk.f32.mxu0 %vm1288_vm2, %v2705_v24  ;;  %3693 = vperm.xlu0 %13465, %v14069_v28   ;;  %v893_v40 = vrot.slane %v17321_v21, 7 }
 0x13a   : > { %v2706_v11 = vmul.f32 %v2643_v22, %v14685_v12  ;;  %v2655_v6 = vpop.permute.xlu0 %2654 }
 0x13b   : > { %v2709_v28 = vmul.f32 %v2655_v6, %v14695_v20  ;;  %v14709_v31 = vsel %vm843_vm1, %v893_v40, %v895_v8  ;;  %v14713_v16 = vsel %vm843_vm1, %v891_v13, %v893_v40  ;;  %v2551_v40 = vrot.slane %v14540_v50, 7 }
 0x13c   : > { %3673 = vperm.xlu1 %13464, %v17322_v29   ;;  %12151 = vmatmul.mubr.msk.f32.gmra.mrb[20].mxu0 %vm1288_vm2, %v2706_v11  ;;  %17323 = vst [vmem:[#allocation59_spill] sm:$0xff] %v14709_v31  ;;  %17324 = vst [vmem:[#allocation11_spill] sm:$0xff] %v14713_v16  ;;  %v17325_v29 = vld [vmem:[#allocation62_spill] sm:$0xff] }
 0x13d   : > { %v2651_v24 = vpop.permute.xlu1 %2650  ;;  %12153 = vmatprep.mubr.msk.f32.mxu0 %vm1288_vm2, %v2707_v26  ;;  %3701 = vperm.xlu0 %13465, %v14081_v30   ;;  %v897_v11 = vrot.slane %v17325_v29, 7 }
 0x13e   : > { %v2708_v46 = vmul.f32 %v2651_v24, %v14699_v14  ;;  %v2663_v22 = vpop.permute.xlu0 %2662  ;;  %v17338_v14 = vmov 6  }
 0x13f   : > { %v2711_v30 = vmul.f32 %v2663_v22, %v14709_v31  ;;  %v14723_v13 = vsel %vm843_vm1, %v897_v11, %v899_v4  ;;  %v14727_v20 = vsel %vm843_vm1, %v895_v8, %v897_v11 }
 0x140   : > { %3681 = vperm.xlu1 %13464, %v17326_v17   ;;  %12154 = vmatmul.mubr.msk.f32.gmra.mrb[22].mxu0 %vm1288_vm2, %v2708_v46  ;;  %17327 = vst [vmem:[#allocation62_spill] sm:$0xff] %v14723_v13  ;;  %17328 = vst [vmem:[#allocation12_spill] sm:$0xff] %v14727_v20  ;;  %v901_v17 = vrot.slane %v14536_v18, 7  ;;  %v17329_v46 = vld [vmem:[#allocation13_spill] sm:$0xff] }
 0x141   : > { %v2659_v26 = vpop.permute.xlu1 %2658  ;;  %12156 = vmatprep.mubr.msk.f32.mxu0 %vm1288_vm2, %v2709_v28  ;;  %3709 = vperm.xlu0 %13465, %v14093_v32   ;;  %v14733_v28 = vld [vmem:[%s14136_s27 + $0xf8] sm:$0xff] }
 0x142   : > { %v2710_v6 = vmul.f32 %v2659_v26, %v14713_v16  ;;  %v2671_v24 = vpop.permute.xlu0 %2670  ;;  %v14740_v8 = vsel %vm843_vm1, %v901_v17, %v2551_v40  ;;  %v14743_v11 = vsel %vm843_vm1, %v899_v4, %v901_v17  ;;  %v14760_v17 = vld [vmem:[%s17241_s1] sm:$0xff] }
 0x143   : > { %v2713_v22 = vmul.f32 %v2671_v24, %v14723_v13  ;;  %17330 = vst [vmem:[#allocation13_spill] sm:$0xff] %v14740_v8  ;;  %17331 = vst [vmem:[#allocation68_spill] sm:$0xff] %v14743_v11  ;;  %v17172_v24 = vmov 6   ;;  %v14787_v13 = vld [vmem:[%s17241_s1 + $0xe8] sm:$0xff] }
 0x144   : > { %3689 = vperm.xlu1 %13464, %v17329_v46   ;;  %12157 = vmatmul.mubr.msk.f32.gmra.mrb[24].mxu0 %vm1288_vm2, %v2710_v6  ;;  %v17175_v6 = vrot.slane %v14733_v28, 7  ;;  %v14749_v46 = vld [vmem:[%s17241_s1 + $0xc8] sm:$0xff] }
 0x145   : > { %v2667_v32 = vpop.permute.xlu1 %2666  ;;  %12159 = vmatprep.mubr.msk.f32.mxu0 %vm1288_vm2, %v2711_v30  ;;  %3717 = vperm.xlu0 %13465, %v14105_v34  }
 0x146   : > { %v2712_v26 = vmul.f32 %v2667_v32, %v14727_v20  ;;  %v2679_v31 = vpop.permute.xlu0 %2678  ;;  %v14766_v32 = vsel %vm843_vm1, %v2551_v40, %v17175_v6  ;;  %v14781_v40 = vld [vmem:[%s17241_s1 + $0x18] sm:$0xff] }
 0x147   : > { %v2715_v30 = vmul.f32 %v2679_v31, %v14740_v8  ;;  %17332 = vst [vmem:[#allocation69_spill] sm:$0xff] %v14766_v32  ;;  %v14771_v31 = vld [vmem:[%s17241_s1 + $0xd8] sm:$0xff] }
 0x148   : > { %3697 = vperm.xlu1 %13464, %v14749_v46   ;;  %12160 = vmatmul.mubr.msk.f32.gmra.mrb[26].mxu0 %vm1288_vm2, %v2712_v26  ;;  %v14810_v20 = vld [vmem:[%s17241_s1 + $0x38] sm:$0xff] }
 0x149   : > { %v2675_v34 = vpop.permute.xlu1 %2674  ;;  %12162 = vmatprep.mubr.msk.f32.mxu0 %vm1288_vm2, %v2713_v22  ;;  %13466 = vset.pattern.permute.xlu0 %v17172_v24 }
 0x14a   : > { %v2714_v4 = vmul.f32 %v2675_v34, %v14743_v11  ;;  %4116 = vperm.xlu0 %13466, %v14760_v17   ;;  %v17333_v34 = vld [vmem:[#allocation14_spill] sm:$0xff] }
 0x14b   : > { %v3076_v22 = vpop.permute.xlu0 %3075 }
 0x14c   : > { %3705 = vperm.xlu1 %13464, %v14771_v31   ;;  %12163 = vmatmul.mubr.msk.f32.gmra.mrb[28].mxu0 %vm1288_vm2, %v2714_v4  ;;  %v3202_v24 = vmul.f32 %v3076_v22, %v17333_v34  ;;  %v14795_v4 = vld [vmem:[%s17241_s1 + $0x28] sm:$0xff] }
 0x14d   : > { %v2683_v26 = vpop.permute.xlu1 %2682  ;;  %12165 = vmatprep.mubr.msk.f32.mxu0 %vm1288_vm2, %v2715_v30  ;;  %v17334_v22 = vld [vmem:[#allocation15_spill] sm:$0xff] }
 0x14e   : > { %v2716_v8 = vmul.f32 %v2683_v26, %v14766_v32  ;;  %4128 = vperm.xlu0 %13466, %v14781_v40   ;;  %v14802_v32 = vld [vmem:[%s17241_s1 + $0xf8] sm:$0xff] }
 0x14f   : > { %v3088_v6 = vpop.permute.xlu0 %3087  ;;  %17335 = vst [vmem:[#allocation14_spill] sm:$0xff] %v14802_v32 }
 0x150   : > { %3713 = vperm.xlu1 %13464, %v14787_v13   ;;  %12166 = vmatmul.mubr.msk.f32.gmra.mrb[30].mxu0 %vm1288_vm2, %v2716_v8 }
 0x151   : > { %12170 = vmatprep.mubr.msk.f32.mxu0 %vm1288_vm2, %v3202_v24  ;;  %v17336_v24 = vld [vmem:[#allocation17_spill] sm:$0xff] }
 0x152   : > { %v3080_v30 = vpop.permute.xlu1 %3079  ;;  %4136 = vperm.xlu0 %13466, %v14795_v4   ;;  %v3205_v11 = vmul.f32 %v3088_v6, %v17336_v24  ;;  %v14825_v6 = vld [vmem:[%s17241_s1 + $0x8] sm:$0xff] }
 0x153   : > { %v3203_v26 = vmul.f32 %v3080_v30, %v17334_v22  ;;  %v3096_v34 = vpop.permute.xlu0 %3095  ;;  %v17337_v30 = vld [vmem:[#allocation16_spill] sm:$0xff] }
 0x154   : > { %3721 = vperm.xlu1 %13464, %v14802_v32  }
 0x155   : > { %12171 = vmatmul.mubr.msk.f32.vlgmr.msra.gmra.mrb[0].mxu0 %vm1288_vm2, %v3203_v26  ;;  %v14820_v26 = vld [vmem:[%s17243_s29 + $0x18] sm:$0xf] }
 0x156   : > { %v3084_v8 = vpop.permute.xlu1 %3083  ;;  %4144 = vperm.xlu0 %13466, %v14810_v20   ;;  %12219 = vmatpush3.msk.msra.mxu0 %vm1385_vm0, %v14596_v41 }
 0x157   : > { %v3204_v22 = vmul.f32 %v3084_v8, %v17337_v30  ;;  %v3104_v16 = vpop.permute.xlu0 %3103  ;;  %v17339_v8 = vld [vmem:[#allocation20_spill] sm:$0xff]  ;;  %12268 = vmatprep.subr.msk.mxu0 %vm1385_vm0, %v14820_v26 }
 0x158   : > { %13467 = vset.pattern.permute.xlu1 %v17338_v14  ;;  %v3207_v24 = vmul.f32 %v3096_v34, %v17339_v8  ;;  %v14834_v30 = vld [vmem:[%s17241_s1 + $0x48] sm:$0xff]  ;;  %v17340_v14 = vld [vmem:[#allocation18_spill] sm:$0xff] }
 0x159   : > { %4120 = vperm.xlu1 %13467, %v14825_v6   ;;  %12173 = vmatprep.mubr.msk.f32.mxu0 %vm1288_vm2, %v3204_v22  ;;  %v14843_v22 = vld [vmem:[%s17241_s1 + $0x10] sm:$0xff] }
 0x15a   : > { %v3092_v41 = vpop.permute.xlu1 %3091  ;;  %12174 = vmatmul.mubr.msk.f32.gmra.mrb[2].mxu0 %vm1288_vm2, %v3205_v11  ;;  %4152 = vperm.xlu0 %13466, %v14834_v30   ;;  %v17341_v34 = vld [vmem:[#allocation24_spill] sm:$0xff] }
 0x15b   : > { %v3206_v5 = vmul.f32 %v3092_v41, %v17340_v14  ;;  %v3112_v12 = vpop.permute.xlu0 %3111  ;;  %v3209_v8 = vmul.f32 %v3104_v16, %v17341_v34  ;;  %v14852_v14 = vld [vmem:[%s17241_s1 + $0x58] sm:$0xff]  ;;  %v17343_v16 = vld [vmem:[#allocation28_spill] sm:$0xff] }
 0x15c   : > { %v17342_v41 = vld [vmem:[#allocation21_spill] sm:$0xff]  ;;  %v14868_v34 = vld [vmem:[%s17241_s1 + $0x68] sm:$0xff] }
 0x15d   : > { %4124 = vperm.xlu1 %13467, %v14843_v22   ;;  %12176 = vmatprep.mubr.msk.f32.mxu0 %vm1288_vm2, %v3206_v5 }
 0x15e   : > { %v3100_v11 = vpop.permute.xlu1 %3099  ;;  %12177 = vmatmul.mubr.msk.f32.gmra.mrb[4].mxu0 %vm1288_vm2, %v3207_v24  ;;  %4160 = vperm.xlu0 %13466, %v14852_v14   ;;  %v3211_v24 = vmul.f32 %v3112_v12, %v17343_v16  ;;  %v17345_v12 = vld [vmem:[#allocation32_spill] sm:$0xff]  ;;  %v14884_v16 = vld [vmem:[%s17241_s1 + $0x78] sm:$0xff] }
 0x15f   : > { %v3208_v60 = vmul.f32 %v3100_v11, %v17342_v41  ;;  %v3120_v10 = vpop.permute.xlu0 %3119  ;;  %v17344_v11 = vld [vmem:[#allocation25_spill] sm:$0xff] }
 0x161   : > { %4132 = vperm.xlu1 %13467, %v14859_v1   ;;  %12179 = vmatprep.mubr.msk.f32.mxu0 %vm1288_vm2, %v3208_v60 }
 0x162   : > { %v3108_v5 = vpop.permute.xlu1 %3107  ;;  %12180 = vmatmul.mubr.msk.f32.gmra.mrb[6].mxu0 %vm1288_vm2, %v3209_v8  ;;  %4168 = vperm.xlu0 %13466, %v14868_v34   ;;  %v3213_v8 = vmul.f32 %v3120_v10, %v17345_v12 }
 0x163   : > { %v3210_v41 = vmul.f32 %v3108_v5, %v17344_v11  ;;  %v3128_v7 = vpop.permute.xlu0 %3127  ;;  %v17346_v5 = vld [vmem:[#allocation29_spill] sm:$0xff] }
 0x165   : > { %4140 = vperm.xlu1 %13467, %v14875_v25   ;;  %12182 = vmatprep.mubr.msk.f32.mxu0 %vm1288_vm2, %v3210_v41  ;;  %v14900_v41 = vld [vmem:[%s17241_s1 + $0x88] sm:$0xff] }
 0x166   : > { %v3116_v60 = vpop.permute.xlu1 %3115  ;;  %12183 = vmatmul.mubr.msk.f32.gmra.mrb[8].mxu0 %vm1288_vm2, %v3211_v24  ;;  %4176 = vperm.xlu0 %13466, %v14884_v16   ;;  %v3215_v24 = vmul.f32 %v3128_v7, %v14266_v38 }
 0x167   : > { %v3212_v11 = vmul.f32 %v3116_v60, %v17346_v5  ;;  %v3136_v15 = vpop.permute.xlu0 %3135  ;;  %v17347_v60 = vld [vmem:[#allocation33_spill] sm:$0xff] }
 0x168   : > { %v3217_v7 = vmul.f32 %v3136_v15, %v14396_v47 }
 0x169   : > { %4148 = vperm.xlu1 %13467, %v14891_v44   ;;  %12185 = vmatprep.mubr.msk.f32.mxu0 %vm1288_vm2, %v3212_v11 }
 0x16a   : > { %v3124_v10 = vpop.permute.xlu1 %3123  ;;  %12186 = vmatmul.mubr.msk.f32.gmra.mrb[10].mxu0 %vm1288_vm2, %v3213_v8  ;;  %4184 = vperm.xlu0 %13466, %v14900_v41   ;;  %v14916_v8 = vld [vmem:[%s17241_s1 + $0x98] sm:$0xff] }
 0x16b   : > { %v3214_v12 = vmul.f32 %v3124_v10, %v17347_v60  ;;  %v3144_v5 = vpop.permute.xlu0 %3143  ;;  %v14923_v60 = vld [vmem:[%s17241_s1 + $0x60] sm:$0xff] }
 0x16c   : > { %v3219_v15 = vmul.f32 %v3144_v5, %v14416_v43 }
 0x16d   : > { %4156 = vperm.xlu1 %13467, %v14907_v3   ;;  %12188 = vmatprep.mubr.msk.f32.mxu0 %vm1288_vm2, %v3214_v12 }
 0x16e   : > { %v3132_v38 = vpop.permute.xlu1 %3131  ;;  %12189 = vmatmul.mubr.msk.f32.gmra.mrb[12].mxu0 %vm1288_vm2, %v3215_v24  ;;  %4192 = vperm.xlu0 %13466, %v14916_v8   ;;  %v14932_v24 = vld [vmem:[%s17241_s1 + $0xa8] sm:$0xff] }
 0x16f   : > { %v3216_v11 = vmul.f32 %v3132_v38, %v14380_v2  ;;  %v3152_v10 = vpop.permute.xlu0 %3151  ;;  %v14939_v38 = vld [vmem:[%s17241_s1 + $0x70] sm:$0xff] }
 0x170   : > { %v3221_v5 = vmul.f32 %v3152_v10, %v14436_v62 }
 0x171   : > { %4164 = vperm.xlu1 %13467, %v14923_v60   ;;  %12191 = vmatprep.mubr.msk.f32.mxu0 %vm1288_vm2, %v3216_v11 }
 0x172   : > { %v3140_v47 = vpop.permute.xlu1 %3139  ;;  %12192 = vmatmul.mubr.msk.f32.gmra.mrb[14].mxu0 %vm1288_vm2, %v3217_v7  ;;  %4200 = vperm.xlu0 %13466, %v14932_v24   ;;  %v14948_v7 = vld [vmem:[%s17241_s1 + $0xb8] sm:$0xff] }
 0x173   : > { %v3218_v2 = vmul.f32 %v3140_v47, %v14400_v39  ;;  %v3160_v12 = vpop.permute.xlu0 %3159  ;;  %v14955_v47 = vld [vmem:[%s17241_s1 + $0x80] sm:$0xff] }
 0x174   : > { %v3223_v10 = vmul.f32 %v3160_v12, %v14456_v58  ;;  %v14977_v12 = vld [vmem:[%s17241_s1 + $0xa0] sm:$0xff] }
 0x175   : > { %4172 = vperm.xlu1 %13467, %v14939_v38   ;;  %12194 = vmatprep.mubr.msk.f32.mxu0 %vm1288_vm2, %v3218_v2  ;;  %v14966_v2 = vld [vmem:[%s17241_s1 + $0x90] sm:$0xff] }
 0x176   : > { %v3148_v43 = vpop.permute.xlu1 %3147  ;;  %12195 = vmatmul.mubr.msk.f32.gmra.mrb[16].mxu0 %vm1288_vm2, %v3219_v15  ;;  %4208 = vperm.xlu0 %13466, %v14948_v7  }
 0x177   : > { %v3220_v39 = vmul.f32 %v3148_v43, %v14420_v57  ;;  %v3168_v11 = vpop.permute.xlu0 %3167 }
 0x179   : > { %4180 = vperm.xlu1 %13467, %v14955_v47   ;;  %12197 = vmatprep.mubr.msk.f32.mxu0 %vm1288_vm2, %v3220_v39 }
 0x17a   : > { %v3156_v62 = vpop.permute.xlu1 %3155  ;;  %12198 = vmatmul.mubr.msk.f32.gmra.mrb[18].mxu0 %vm1288_vm2, %v3221_v5  ;;  %4216 = vperm.xlu0 %13466, %v14749_v46   ;;  %v3225_v5 = vmul.f32 %v3168_v11, %v14476_v61  ;;  %v14988_v11 = vld [vmem:[%s17241_s1 + $0xb0] sm:$0xff] }
 0x17b   : > { %v3222_v15 = vmul.f32 %v3156_v62, %v14440_v52  ;;  %v3176_v57 = vpop.permute.xlu0 %3175 }
 0x17c   : > { %v3227_v62 = vmul.f32 %v3176_v57, %v17321_v21  ;;  %v14999_v57 = vld [vmem:[%s17241_s1 + $0xc0] sm:$0xff] }
 0x17d   : > { %4188 = vperm.xlu1 %13467, %v14966_v2   ;;  %12200 = vmatprep.mubr.msk.f32.mxu0 %vm1288_vm2, %v3222_v15 }
 0x17e   : > { %v3164_v43 = vpop.permute.xlu1 %3163  ;;  %12201 = vmatmul.mubr.msk.f32.gmra.mrb[20].mxu0 %vm1288_vm2, %v3223_v10  ;;  %4224 = vperm.xlu0 %13466, %v14771_v31  }
 0x17f   : > { %v3224_v58 = vmul.f32 %v3164_v43, %v14460_v19  ;;  %v3184_v52 = vpop.permute.xlu0 %3183 }
 0x180   : > { %v3229_v15 = vmul.f32 %v3184_v52, %v17325_v29  ;;  %v17204_v29 = vmov 7   ;;  %v15011_v52 = vld [vmem:[%s17241_s1 + $0xd0] sm:$0xff] }
 0x181   : > { %4196 = vperm.xlu1 %13467, %v14977_v12   ;;  %12203 = vmatprep.mubr.msk.f32.mxu0 %vm1288_vm2, %v3224_v58 }
 0x182   : > { %v3172_v39 = vpop.permute.xlu1 %3171  ;;  %12204 = vmatmul.mubr.msk.f32.gmra.mrb[22].mxu0 %vm1288_vm2, %v3225_v5  ;;  %4232 = vperm.xlu0 %13466, %v14787_v13  }
 0x183   : > { %v3226_v61 = vmul.f32 %v3172_v39, %v14480_v49  ;;  %v3192_v19 = vpop.permute.xlu0 %3191 }
 0x184   : > { %v3231_v5 = vmul.f32 %v3192_v19, %v14536_v18 }
 0x185   : > { %4204 = vperm.xlu1 %13467, %v14988_v11   ;;  %12206 = vmatprep.mubr.msk.f32.mxu0 %vm1288_vm2, %v3226_v61  ;;  %v15022_v61 = vld [vmem:[%s17241_s1 + $0xe0] sm:$0xff] }
 0x186   : > { %v3180_v10 = vpop.permute.xlu1 %3179  ;;  %12207 = vmatmul.mubr.msk.f32.gmra.mrb[24].mxu0 %vm1288_vm2, %v3227_v62  ;;  %4240 = vperm.xlu0 %13466, %v14802_v32  }
 0x187   : > { %v3228_v21 = vmul.f32 %v3180_v10, %v14500_v63  ;;  %v3200_v49 = vpop.permute.xlu0 %3199  ;;  %v17348_v10 = vld [vmem:[#allocation38_spill] sm:$0xff] }
 0x188   : > { %v3233_v18 = vmul.f32 %v3200_v49, %v14733_v28 }
 0x189   : > { %4212 = vperm.xlu1 %13467, %v14999_v57   ;;  %12209 = vmatprep.mubr.msk.f32.mxu0 %vm1288_vm2, %v3228_v21  ;;  %v17349_v21 = vld [vmem:[#allocation37_spill] sm:$0xff] }
 0x18a   : > { %v3188_v43 = vpop.permute.xlu1 %3187  ;;  %12210 = vmatmul.mubr.msk.f32.gmra.mrb[26].mxu0 %vm1288_vm2, %v3229_v15  ;;  %13469 = vset.pattern.permute.xlu0 %v17204_v29 }
 0x18b   : > { %v3230_v63 = vmul.f32 %v3188_v43, %v14520_v51  ;;  %4637 = vperm.xlu0 %13469, %v14825_v6  }
 0x18c   : > { %v3602_v58 = vpop.permute.xlu0 %3601 }
 0x18d   : > { %4220 = vperm.xlu1 %13467, %v15011_v52   ;;  %12212 = vmatprep.mubr.msk.f32.mxu0 %vm1288_vm2, %v3230_v63  ;;  %v3725_v15 = vmul.f32 %v3602_v58, %v17348_v10  ;;  %v17350_v58 = vld [vmem:[#allocation39_spill] sm:$0xff] }
 0x18e   : > { %v3196_v39 = vpop.permute.xlu1 %3195  ;;  %12213 = vmatmul.mubr.msk.f32.gmra.mrb[28].mxu0 %vm1288_vm2, %v3231_v5  ;;  %v15033_v5 = vld [vmem:[%s17241_s1 + $0xf0] sm:$0xff] }
 0x18f   : > { %v3232_v62 = vmul.f32 %v3196_v39, %v14540_v50  ;;  %4649 = vperm.xlu0 %13469, %v14859_v1  }
 0x190   : > { %v3614_v51 = vpop.permute.xlu0 %3613 }
 0x191   : > { %4228 = vperm.xlu1 %13467, %v15022_v61   ;;  %12215 = vmatprep.mubr.msk.f32.mxu0 %vm1288_vm2, %v3232_v62  ;;  %v17351_v62 = vld [vmem:[#allocation41_spill] sm:$0xff] }
 0x192   : > { %12216 = vmatmul.mubr.msk.f32.gmra.mrb[30].mxu0 %vm1288_vm2, %v3233_v18 }
 0x193   : > { %v3598_v19 = vpop.permute.xlu1 %3597  ;;  %4657 = vperm.xlu0 %13469, %v14875_v25  }
 0x194   : > { %v3724_v49 = vmul.f32 %v3598_v19, %v17349_v21  ;;  %v3622_v43 = vpop.permute.xlu0 %3621  ;;  %v3728_v19 = vmul.f32 %v3614_v51, %v17351_v62 }
 0x195   : > { %4236 = vperm.xlu1 %13467, %v15033_v5  }
 0x196   : > { %12220 = vmatprep.mubr.msk.f32.mxu0 %vm1288_vm2, %v3724_v49 }
 0x197   : > { %v3606_v63 = vpop.permute.xlu1 %3605  ;;  %12221 = vmatmul.mubr.msk.f32.vlgmr.msra.gmra.mrb[0].mxu0 %vm1288_vm2, %v3725_v15  ;;  %4665 = vperm.xlu0 %13469, %v14891_v44   ;;  %v17352_v15 = vld [vmem:[#allocation40_spill] sm:$0xff] }
 0x198   : > { %v3726_v39 = vmul.f32 %v3606_v63, %v17350_v58  ;;  %v3630_v18 = vpop.permute.xlu0 %3629  ;;  %12269 = vmatpush3.msk.msra.mxu0 %vm1385_vm0, %v14820_v26  ;;  %v15051_v63 = vld [vmem:[%s17243_s29 + $0x1c] sm:$0xf]  ;;  %v17353_v26 = vld [vmem:[#allocation43_spill] sm:$0xff] }
 0x199   : > { %13468 = vset.pattern.permute.xlu1 %v17204_v29  ;;  %12318 = vmatprep.subr.msk.mxu0 %vm1385_vm0, %v15051_v63  ;;  %v3730_v51 = vmul.f32 %v3622_v43, %v17353_v26  ;;  %v17356_v43 = vld [vmem:[#allocation44_spill] sm:$0xff] }
 0x19a   : > { %4633 = vperm.xlu1 %13468, %v14760_v17   ;;  %12223 = vmatprep.mubr.msk.f32.mxu0 %vm1288_vm2, %v3726_v39 }
 0x19b   : > { %v3610_v10 = vpop.permute.xlu1 %3609  ;;  %4673 = vperm.xlu0 %13469, %v14907_v3  }
 0x19c   : > { %v3727_v21 = vmul.f32 %v3610_v10, %v17352_v15  ;;  %v3638_v49 = vpop.permute.xlu0 %3637  ;;  %v17354_v10 = vld [vmem:[#allocation42_spill] sm:$0xff]  ;;  %v17355_v15 = vld [vmem:[#allocation45_spill] sm:$0xff] }
 0x19d   : > { %v3732_v58 = vmul.f32 %v3630_v18, %v17355_v15 }
 0x19e   : > { %4641 = vperm.xlu1 %13468, %v14843_v22   ;;  %12224 = vmatmul.mubr.msk.f32.gmra.mrb[2].mxu0 %vm1288_vm2, %v3727_v21 }
 0x19f   : > { %v3618_v39 = vpop.permute.xlu1 %3617  ;;  %12226 = vmatprep.mubr.msk.f32.mxu0 %vm1288_vm2, %v3728_v19  ;;  %4681 = vperm.xlu0 %13469, %v14923_v60   ;;  %v17357_v19 = vld [vmem:[#allocation47_spill] sm:$0xff] }
 0x1a0   : > { %v3729_v29 = vmul.f32 %v3618_v39, %v17354_v10  ;;  %v3646_v62 = vpop.permute.xlu0 %3645  ;;  %v3734_v39 = vmul.f32 %v3638_v49, %v17357_v19  ;;  %v17360_v49 = vld [vmem:[#allocation48_spill] sm:$0xff] }
 0x1a2   : > { %4645 = vperm.xlu1 %13468, %v14781_v40   ;;  %12227 = vmatmul.mubr.msk.f32.gmra.mrb[4].mxu0 %vm1288_vm2, %v3729_v29  ;;  %v17358_v29 = vld [vmem:[#allocation46_spill] sm:$0xff] }
 0x1a3   : > { %v3626_v32 = vpop.permute.xlu1 %3625  ;;  %12229 = vmatprep.mubr.msk.f32.mxu0 %vm1288_vm2, %v3730_v51  ;;  %4689 = vperm.xlu0 %13469, %v14939_v38  }
 0x1a4   : > { %v3731_v21 = vmul.f32 %v3626_v32, %v17356_v43  ;;  %v3654_v26 = vpop.permute.xlu0 %3653  ;;  %v17359_v32 = vld [vmem:[#allocation49_spill] sm:$0xff] }
 0x1a5   : > { %v3736_v51 = vmul.f32 %v3646_v62, %v17359_v32  ;;  %v17362_v62 = vld [vmem:[#allocation50_spill] sm:$0xff] }
 0x1a6   : > { %4653 = vperm.xlu1 %13468, %v14795_v4   ;;  %12230 = vmatmul.mubr.msk.f32.gmra.mrb[6].mxu0 %vm1288_vm2, %v3731_v21 }
 0x1a7   : > { %v3634_v10 = vpop.permute.xlu1 %3633  ;;  %12232 = vmatprep.mubr.msk.f32.mxu0 %vm1288_vm2, %v3732_v58  ;;  %4701 = vperm.xlu0 %13469, %v14900_v41   ;;  %v17361_v58 = vld [vmem:[#allocation51_spill] sm:$0xff] }
 0x1a8   : > { %v3733_v18 = vmul.f32 %v3634_v10, %v17358_v29  ;;  %v3662_v15 = vpop.permute.xlu0 %3661  ;;  %v3738_v10 = vmul.f32 %v3654_v26, %v17361_v58  ;;  %v17364_v26 = vld [vmem:[#allocation52_spill] sm:$0xff] }
 0x1aa   : > { %4661 = vperm.xlu1 %13468, %v14810_v20   ;;  %12233 = vmatmul.mubr.msk.f32.gmra.mrb[8].mxu0 %vm1288_vm2, %v3733_v18 }
 0x1ab   : > { %v3642_v43 = vpop.permute.xlu1 %3641  ;;  %12235 = vmatprep.mubr.msk.f32.mxu0 %vm1288_vm2, %v3734_v39  ;;  %4713 = vperm.xlu0 %13469, %v14977_v12  }
 0x1ac   : > { %v3735_v21 = vmul.f32 %v3642_v43, %v17360_v49  ;;  %v3670_v19 = vpop.permute.xlu0 %3669  ;;  %v17363_v43 = vld [vmem:[#allocation53_spill] sm:$0xff] }
 0x1ad   : > { %v3740_v39 = vmul.f32 %v3662_v15, %v17363_v43  ;;  %v17366_v15 = vld [vmem:[#allocation54_spill] sm:$0xff] }
 0x1ae   : > { %4669 = vperm.xlu1 %13468, %v14834_v30   ;;  %12236 = vmatmul.mubr.msk.f32.gmra.mrb[10].mxu0 %vm1288_vm2, %v3735_v21 }
 0x1af   : > { %v3650_v29 = vpop.permute.xlu1 %3649  ;;  %12238 = vmatprep.mubr.msk.f32.mxu0 %vm1288_vm2, %v3736_v51  ;;  %4725 = vperm.xlu0 %13469, %v14948_v7  }
 0x1b0   : > { %v3737_v18 = vmul.f32 %v3650_v29, %v17362_v62  ;;  %v3678_v32 = vpop.permute.xlu0 %3677  ;;  %v17365_v29 = vld [vmem:[#allocation55_spill] sm:$0xff] }
 0x1b1   : > { %v3742_v51 = vmul.f32 %v3670_v19, %v17365_v29  ;;  %v17368_v19 = vld [vmem:[#allocation56_spill] sm:$0xff] }
 0x1b2   : > { %4677 = vperm.xlu1 %13468, %v14852_v14   ;;  %12239 = vmatmul.mubr.msk.f32.gmra.mrb[12].mxu0 %vm1288_vm2, %v3737_v18 }
 0x1b3   : > { %v3658_v49 = vpop.permute.xlu1 %3657  ;;  %12241 = vmatprep.mubr.msk.f32.mxu0 %vm1288_vm2, %v3738_v10  ;;  %4737 = vperm.xlu0 %13469, %v15011_v52  }
 0x1b4   : > { %v3739_v21 = vmul.f32 %v3658_v49, %v17364_v26  ;;  %v3686_v58 = vpop.permute.xlu0 %3685  ;;  %v17367_v49 = vld [vmem:[#allocation57_spill] sm:$0xff] }
 0x1b5   : > { %v3744_v10 = vmul.f32 %v3678_v32, %v17367_v49  ;;  %v17370_v32 = vld [vmem:[#allocation58_spill] sm:$0xff] }
 0x1b6   : > { %4685 = vperm.xlu1 %13468, %v14868_v34   ;;  %12242 = vmatmul.mubr.msk.f32.gmra.mrb[14].mxu0 %vm1288_vm2, %v3739_v21  ;;  %v17207_v21 = vmov 1  }
 0x1b7   : > { %v3666_v62 = vpop.permute.xlu1 %3665  ;;  %12244 = vmatprep.mubr.msk.f32.mxu0 %vm1288_vm2, %v3740_v39  ;;  %4749 = vperm.xlu0 %13469, %v14787_v13  }
 0x1b8   : > { %v3741_v18 = vmul.f32 %v3666_v62, %v17366_v15  ;;  %v3694_v43 = vpop.permute.xlu0 %3693  ;;  %v17369_v62 = vld [vmem:[#allocation60_spill] sm:$0xff] }
 0x1b9   : > { %v3746_v15 = vmul.f32 %v3686_v58, %v17369_v62 }
 0x1ba   : > { %4693 = vperm.xlu1 %13468, %v14884_v16   ;;  %12245 = vmatmul.mubr.msk.f32.gmra.mrb[16].mxu0 %vm1288_vm2, %v3741_v18 }
 0x1bb   : > { %v3674_v26 = vpop.permute.xlu1 %3673  ;;  %12247 = vmatprep.mubr.msk.f32.mxu0 %vm1288_vm2, %v3742_v51  ;;  %13479 = vset.pattern.permute.xlu0 %v17207_v21 }
 0x1bc   : > { %v3743_v29 = vmul.f32 %v3674_v26, %v17368_v19  ;;  %1128 = vperm.xlu0 %13479, %v14760_v17   ;;  %v3702_v39 = vpop.permute.xlu0 %3701  ;;  %v1287_v26 = vld [vmem:[%s17243_s29 + $0x4] sm:$0xf] }
 0x1bd   : > { %11968 = vmatprep.subr.msk.mxu1 %vm1385_vm0, %v1287_v26 }
 0x1be   : > { %4697 = vperm.xlu1 %13468, %v14955_v47   ;;  %12248 = vmatmul.mubr.msk.f32.gmra.mrb[18].mxu0 %vm1288_vm2, %v3743_v29  ;;  %v3748_v29 = vmul.f32 %v3694_v43, %v14526_v59  ;;  %v15126_v43 = vld [vmem:[%s17243_s29] sm:$0xf]  ;;  %v17372_v59 = vmov 7  }
 0x1bf   : > { %v3682_v18 = vpop.permute.xlu1 %3681  ;;  %12250 = vmatprep.mubr.msk.f32.mxu0 %vm1288_vm2, %v3744_v10  ;;  %v17371_v10 = vld [vmem:[#allocation61_spill] sm:$0xff]  ;;  %11969 = vmatpush3.msk.msra.mxu1 %vm1385_vm0, %v1287_v26  ;;  %v3591_v26 = vrot.slane %v14733_v28, 1 }
 0x1c0   : > { %v3745_v49 = vmul.f32 %v3682_v18, %v17370_v32  ;;  %v3710_v51 = vpop.permute.xlu0 %3709  ;;  %1140 = vperm.xlu0 %13479, %v14781_v40   ;;  %13067 = vmatprep.subr.msk.mxu1 %vm1385_vm0, %v15126_v43 }
 0x1c2   : > { %13470 = vset.pattern.permute.xlu1 %v17207_v21  ;;  %12251 = vmatmul.mubr.msk.f32.gmra.mrb[20].mxu0 %vm1288_vm2, %v3745_v49  ;;  %v3752_v21 = vmul.f32 %v3710_v51, %v14560_v55 }
 0x1c3   : > { %1132 = vperm.xlu1 %13470, %v14825_v6   ;;  %v3690_v58 = vpop.permute.xlu1 %3689  ;;  %12253 = vmatprep.mubr.msk.f32.mxu0 %vm1288_vm2, %v3746_v15  ;;  %v3750_v15 = vmul.f32 %v3702_v39, %v14546_v36 }
 0x1c4   : > { %v3747_v18 = vmul.f32 %v3690_v58, %v17371_v10  ;;  %v3718_v62 = vpop.permute.xlu0 %3717  ;;  %1152 = vperm.xlu0 %13479, %v14875_v25  }
 0x1c6   : > { %12254 = vmatmul.mubr.msk.f32.gmra.mrb[22].mxu0 %vm1288_vm2, %v3747_v18 }
 0x1c7   : > { %1136 = vperm.xlu1 %13470, %v14843_v22   ;;  %v3698_v49 = vpop.permute.xlu1 %3697  ;;  %12256 = vmatprep.mubr.msk.f32.mxu0 %vm1288_vm2, %v3748_v29  ;;  %v17373_v29 = vrot.slane %v14540_v50, 1  ;;  %v15155_v50 = vsel %vm1939_vm3, %v3591_v26, 0.0 }
 0x1c8   : > { %v3749_v58 = vmul.f32 %v3698_v49, %v14532_v23  ;;  %1164 = vperm.xlu0 %13479, %v14834_v30   ;;  %17375 = vst [vmem:[#allocation17_spill] sm:$0xff] %v15155_v50 }
 0x1c9   : > { %v4117_v18 = vpop.permute.xlu0 %4116  ;;  %v15145_v49 = vsel %vm1939_vm3, %v17373_v29, %v3591_v26 }
 0x1ca   : > { %12257 = vmatmul.mubr.msk.f32.gmra.mrb[24].mxu0 %vm1288_vm2, %v3749_v58  ;;  %17374 = vst [vmem:[#allocation15_spill] sm:$0xff] %v15145_v49  ;;  %v3754_v51 = vmul.f32 %v3718_v62, %v15145_v49  ;;  %v4243_v29 = vmul.f32 %v4117_v18, %v17300_v33 }
 0x1cb   : > { %13471 = vset.pattern.permute.xlu1 %v17372_v59  ;;  %v3706_v10 = vpop.permute.xlu1 %3705  ;;  %12259 = vmatprep.mubr.msk.f32.mxu0 %vm1288_vm2, %v3750_v15 }
 0x1cc   : > { %v3751_v39 = vmul.f32 %v3706_v10, %v14552_v48  ;;  %4705 = vperm.xlu1 %13471, %v14966_v2   ;;  %1176 = vperm.xlu0 %13479, %v14923_v60  }
 0x1cd   : > { %v4129_v36 = vpop.permute.xlu0 %4128 }
 0x1ce   : > { %12260 = vmatmul.mubr.msk.f32.gmra.mrb[26].mxu0 %vm1288_vm2, %v3751_v39 }
 0x1cf   : > { %v3714_v58 = vpop.permute.xlu1 %3713  ;;  %12262 = vmatprep.mubr.msk.f32.mxu0 %vm1288_vm2, %v3752_v21  ;;  %v17376_v21 = vmov 1  }
 0x1d0   : > { %v3753_v15 = vmul.f32 %v3714_v58, %v14567_v56  ;;  %4709 = vperm.xlu1 %13471, %v14916_v8   ;;  %1188 = vperm.xlu0 %13479, %v14884_v16  }
 0x1d1   : > { %v4137_v10 = vpop.permute.xlu0 %4136 }
 0x1d2   : > { %12263 = vmatmul.mubr.msk.f32.gmra.mrb[28].mxu0 %vm1288_vm2, %v3753_v15 }
 0x1d3   : > { %v3722_v39 = vpop.permute.xlu1 %3721  ;;  %12265 = vmatprep.mubr.msk.f32.mxu0 %vm1288_vm2, %v3754_v51  ;;  %v4246_v51 = vmul.f32 %v4129_v36, %v17304_v35 }
 0x1d4   : > { %v3755_v62 = vmul.f32 %v3722_v39, %v15155_v50  ;;  %13472 = vset.pattern.permute.xlu1 %v17376_v21  ;;  %1200 = vperm.xlu0 %13479, %v14966_v2  }
 0x1d5   : > { %1144 = vperm.xlu1 %13472, %v14859_v1   ;;  %v4145_v58 = vpop.permute.xlu0 %4144 }
 0x1d6   : > { %12266 = vmatmul.mubr.msk.f32.gmra.mrb[30].mxu0 %vm1288_vm2, %v3755_v62 }
 0x1d7   : > { %12270 = vmatprep.mubr.msk.f32.mxu0 %vm1288_vm2, %v4243_v29 }
 0x1d8   : > { %v4121_v26 = vpop.permute.xlu1 %4120  ;;  %1212 = vperm.xlu0 %13479, %v14932_v24  }
 0x1d9   : > { %v4244_v33 = vmul.f32 %v4121_v26, %v17302_v42  ;;  %1148 = vperm.xlu1 %13472, %v14795_v4   ;;  %v4153_v18 = vpop.permute.xlu0 %4152  ;;  %v4248_v42 = vmul.f32 %v4137_v10, %v17306_v53 }
 0x1db   : > { %12271 = vmatmul.mubr.msk.f32.vlgmr.msra.gmra.mrb[0].mxu0 %vm1288_vm2, %v4244_v33 }
 0x1dc   : > { %v4125_v15 = vpop.permute.xlu1 %4124  ;;  %1224 = vperm.xlu0 %13479, %v14999_v57   ;;  %12319 = vmatpush3.msk.msra.mxu0 %vm1385_vm0, %v15051_v63 }
 0x1dd   : > { %v4245_v29 = vmul.f32 %v4125_v15, %v17301_v45  ;;  %13473 = vset.pattern.permute.xlu1 %v17372_v59  ;;  %v4161_v39 = vpop.permute.xlu0 %4160  ;;  %v4250_v45 = vmul.f32 %v4145_v58, %v14257_v54  ;;  %v17377_v54 = vmov 0  }
 0x1de   : > { %4717 = vperm.xlu1 %13473, %v14932_v24  }
 0x1df   : > { %12273 = vmatprep.mubr.msk.f32.mxu0 %vm1288_vm2, %v4245_v29 }
 0x1e0   : > { %v4133_v62 = vpop.permute.xlu1 %4132  ;;  %12274 = vmatmul.mubr.msk.f32.gmra.mrb[2].mxu0 %vm1288_vm2, %v4246_v51  ;;  %1236 = vperm.xlu0 %13479, %v14771_v31  }
 0x1e1   : > { %v4247_v36 = vmul.f32 %v4133_v62, %v17303_v37  ;;  %v4169_v35 = vpop.permute.xlu0 %4168  ;;  %v4252_v37 = vmul.f32 %v4153_v18, %v17307_v27  ;;  %v17379_v27 = vld [vmem:[#allocation35_spill] sm:$0xff] }
 0x1e2   : > { %4721 = vperm.xlu1 %13473, %v14988_v11  }
 0x1e3   : > { %12276 = vmatprep.mubr.msk.f32.mxu0 %vm1288_vm2, %v4247_v36  ;;  %v17381_v36 = vld [vmem:[#allocation19_spill] sm:$0xff] }
 0x1e4   : > { %v4141_v63 = vpop.permute.xlu1 %4140  ;;  %12277 = vmatmul.mubr.msk.f32.gmra.mrb[4].mxu0 %vm1288_vm2, %v4248_v42  ;;  %1248 = vperm.xlu0 %13479, %v15033_v5   ;;  %v17211_v42 = vmov 8  }
 0x1e5   : > { %v4249_v53 = vmul.f32 %v4141_v63, %v17305_v0  ;;  %v4177_v10 = vpop.permute.xlu0 %4176  ;;  %v17378_v0 = vld [vmem:[#allocation36_spill] sm:$0xff] }
 0x1e6   : > { %13474 = vset.pattern.permute.xlu1 %v17376_v21  ;;  %v4254_v51 = vmul.f32 %v4161_v39, %v17378_v0  ;;  %v17384_v0 = vld [vmem:[#allocation30_spill] sm:$0xff] }
 0x1e7   : > { %1156 = vperm.xlu1 %13474, %v14810_v20   ;;  %12279 = vmatprep.mubr.msk.f32.mxu0 %vm1288_vm2, %v4249_v53  ;;  %v17382_v53 = vld [vmem:[#allocation26_spill] sm:$0xff] }
 0x1e8   : > { %v4149_v26 = vpop.permute.xlu1 %4148  ;;  %12280 = vmatmul.mubr.msk.f32.gmra.mrb[6].mxu0 %vm1288_vm2, %v4250_v45  ;;  %13494 = vset.pattern.permute.xlu0 %v17377_v54 }
 0x1e9   : > { %v4251_v58 = vmul.f32 %v4149_v26, %v14261_v9  ;;  %v4185_v33 = vpop.permute.xlu0 %4184  ;;  %1021 = vperm.xlu0 %13494, %v14900_v41   ;;  %v17380_v9 = vld [vmem:[#allocation22_spill] sm:$0xff] }
 0x1ea   : > { %v4256_v62 = vmul.f32 %v4169_v35, %v17380_v9  ;;  %v17383_v35 = vld [vmem:[#allocation23_spill] sm:$0xff] }
 0x1eb   : > { %1160 = vperm.xlu1 %13474, %v14891_v44   ;;  %12282 = vmatprep.mubr.msk.f32.mxu0 %vm1288_vm2, %v4251_v58 }
 0x1ec   : > { %v4157_v15 = vpop.permute.xlu1 %4156  ;;  %12283 = vmatmul.mubr.msk.f32.gmra.mrb[8].mxu0 %vm1288_vm2, %v4252_v37 }
 0x1ed   : > { %v4253_v18 = vmul.f32 %v4157_v15, %v17379_v27  ;;  %v4193_v29 = vpop.permute.xlu0 %4192  ;;  %13495 = vset.pattern.permute.xlu0 %v17211_v42  ;;  %v17386_v27 = vld [vmem:[#allocation65_spill] sm:$0xff] }
 0x1ee   : > { %5150 = vperm.xlu0 %13495, %v14760_v17   ;;  %v4258_v17 = vmul.f32 %v4177_v10, %v17382_v53  ;;  %v17385_v10 = vld [vmem:[#allocation27_spill] sm:$0xff] }
 0x1ef   : > { %13475 = vset.pattern.permute.xlu1 %v17372_v59  ;;  %12285 = vmatprep.mubr.msk.f32.mxu0 %vm1288_vm2, %v4253_v18 }
 0x1f0   : > { %4729 = vperm.xlu1 %13475, %v14999_v57   ;;  %v4165_v39 = vpop.permute.xlu1 %4164  ;;  %12286 = vmatmul.mubr.msk.f32.gmra.mrb[10].mxu0 %vm1288_vm2, %v4254_v51  ;;  %v4260_v51 = vmul.f32 %v4185_v33, %v17384_v0  ;;  %v17387_v33 = vld [vmem:[#allocation31_spill] sm:$0xff] }
 0x1f1   : > { %v4255_v45 = vmul.f32 %v4165_v39, %v17381_v36  ;;  %v4201_v63 = vpop.permute.xlu0 %4200 }
 0x1f2   : > { %5162 = vperm.xlu0 %13495, %v14781_v40  }
 0x1f3   : > { %12288 = vmatprep.mubr.msk.f32.mxu0 %vm1288_vm2, %v4255_v45  ;;  %v17388_v45 = vld [vmem:[#allocation67_spill] sm:$0xff] }
 0x1f4   : > { %4733 = vperm.xlu1 %13475, %v14749_v46   ;;  %v4173_v37 = vpop.permute.xlu1 %4172  ;;  %12289 = vmatmul.mubr.msk.f32.gmra.mrb[12].mxu0 %vm1288_vm2, %v4256_v62 }
 0x1f5   : > { %v4257_v26 = vmul.f32 %v4173_v37, %v17383_v35  ;;  %v4209_v58 = vpop.permute.xlu0 %4208 }
 0x1f6   : > { %5174 = vperm.xlu0 %13495, %v14875_v25   ;;  %v4262_v25 = vmul.f32 %v4193_v29, %v17386_v27 }
 0x1f7   : > { %12291 = vmatprep.mubr.msk.f32.mxu0 %vm1288_vm2, %v4257_v26 }
 0x1f8   : > { %13476 = vset.pattern.permute.xlu1 %v17376_v21  ;;  %v4181_v40 = vpop.permute.xlu1 %4180  ;;  %12292 = vmatmul.mubr.msk.f32.gmra.mrb[14].mxu0 %vm1288_vm2, %v4258_v17  ;;  %v4264_v17 = vmul.f32 %v4201_v63, %v17388_v45  ;;  %v17391_v63 = vld [vmem:[#allocation66_spill] sm:$0xff] }
 0x1f9   : > { %v4259_v15 = vmul.f32 %v4181_v40, %v17385_v10  ;;  %1168 = vperm.xlu1 %13476, %v14907_v3   ;;  %v4217_v46 = vpop.permute.xlu0 %4216 }
 0x1fa   : > { %5186 = vperm.xlu0 %13495, %v14834_v30   ;;  %v17389_v30 = vld [vmem:[#allocation34_spill] sm:$0xff] }
 0x1fb   : > { %12294 = vmatprep.mubr.msk.f32.mxu0 %vm1288_vm2, %v4259_v15 }
 0x1fc   : > { %v4189_v18 = vpop.permute.xlu1 %4188  ;;  %12295 = vmatmul.mubr.msk.f32.gmra.mrb[16].mxu0 %vm1288_vm2, %v4260_v51  ;;  %v17390_v51 = vld [vmem:[#allocation11_spill] sm:$0xff] }
 0x1fd   : > { %v4261_v62 = vmul.f32 %v4189_v18, %v17387_v33  ;;  %1172 = vperm.xlu1 %13476, %v14852_v14   ;;  %v4225_v39 = vpop.permute.xlu0 %4224 }
 0x1fe   : > { %5198 = vperm.xlu0 %13495, %v14923_v60   ;;  %v4266_v60 = vmul.f32 %v4209_v58, %v17390_v51 }
 0x1ff   : > { %12297 = vmatprep.mubr.msk.f32.mxu0 %vm1288_vm2, %v4261_v62 }
 0x200   : > { %v4197_v37 = vpop.permute.xlu1 %4196  ;;  %12298 = vmatmul.mubr.msk.f32.gmra.mrb[18].mxu0 %vm1288_vm2, %v4262_v25  ;;  %v17392_v25 = vld [vmem:[#allocation12_spill] sm:$0xff] }
 0x201   : > { %v4263_v26 = vmul.f32 %v4197_v37, %v17389_v30  ;;  %13477 = vset.pattern.permute.xlu1 %v17372_v59  ;;  %v4233_v29 = vpop.permute.xlu0 %4232  ;;  %v4268_v62 = vmul.f32 %v4217_v46, %v17392_v25  ;;  %v17395_v46 = vld [vmem:[#allocation62_spill] sm:$0xff] }
 0x202   : > { %4741 = vperm.xlu1 %13477, %v14771_v31   ;;  %5210 = vperm.xlu0 %13495, %v14884_v16   ;;  %v17393_v16 = vld [vmem:[#allocation59_spill] sm:$0xff] }
 0x203   : > { %12300 = vmatprep.mubr.msk.f32.mxu0 %vm1288_vm2, %v4263_v26 }
 0x204   : > { %v4205_v40 = vpop.permute.xlu1 %4204  ;;  %12301 = vmatmul.mubr.msk.f32.gmra.mrb[20].mxu0 %vm1288_vm2, %v4264_v17  ;;  %v17394_v17 = vld [vmem:[#allocation68_spill] sm:$0xff] }
 0x205   : > { %v4265_v15 = vmul.f32 %v4205_v40, %v17391_v63  ;;  %v4241_v18 = vpop.permute.xlu0 %4240  ;;  %v4270_v40 = vmul.f32 %v4225_v39, %v17394_v17  ;;  %v17398_v39 = vrot.slane %v14733_v28, 7  ;;  %v17399_v28 = vld [vmem:[#allocation14_spill] sm:$0xff] }
 0x206   : > { %4745 = vperm.xlu1 %13477, %v15022_v61   ;;  %5222 = vperm.xlu0 %13495, %v14966_v2  }
 0x207   : > { %12303 = vmatprep.mubr.msk.f32.mxu0 %vm1288_vm2, %v4265_v15 }
 0x208   : > { %v4213_v37 = vpop.permute.xlu1 %4212  ;;  %12304 = vmatmul.mubr.msk.f32.gmra.mrb[22].mxu0 %vm1288_vm2, %v4266_v60  ;;  %v17396_v60 = vld [vmem:[#allocation69_spill] sm:$0xff] }
 0x209   : > { %v4267_v26 = vmul.f32 %v4213_v37, %v17393_v16  ;;  %v15384_v16 = vld [vmem:[%s14136_s27 + $0x98] sm:$0xff] }
 0x20a   : > { %13478 = vset.pattern.permute.xlu1 %v17376_v21  ;;  %v4638_v58 = vpop.permute.xlu0 %4637  ;;  %5234 = vperm.xlu0 %13495, %v14932_v24   ;;  %v4272_v24 = vmul.f32 %v4233_v29, %v17396_v60 }
 0x20b   : > { %1180 = vperm.xlu1 %13478, %v14868_v34   ;;  %12306 = vmatprep.mubr.msk.f32.mxu0 %vm1288_vm2, %v4267_v26  ;;  %v17397_v34 = vld [vmem:[#allocation13_spill] sm:$0xff] }
 0x20c   : > { %v4221_v42 = vpop.permute.xlu1 %4220  ;;  %12307 = vmatmul.mubr.msk.f32.gmra.mrb[24].mxu0 %vm1288_vm2, %v4268_v62  ;;  %v4114_v62 = vsel %vm843_vm1, %v17398_v39, 0.0 }
 0x20d   : > { %v4269_v15 = vmul.f32 %v4221_v42, %v17395_v46 }
 0x20e   : > { %v4650_v50 = vpop.permute.xlu0 %4649  ;;  %5246 = vperm.xlu0 %13495, %v14999_v57   ;;  %v4274_v57 = vmul.f32 0.0, %v4241_v18 }
 0x20f   : > { %1184 = vperm.xlu1 %13478, %v14939_v38   ;;  %12309 = vmatprep.mubr.msk.f32.mxu0 %vm1288_vm2, %v4269_v15 }
 0x210   : > { %v4229_v37 = vpop.permute.xlu1 %4228  ;;  %12310 = vmatmul.mubr.msk.f32.gmra.mrb[26].mxu0 %vm1288_vm2, %v4270_v40 }
 0x211   : > { %v4271_v26 = vmul.f32 %v4229_v37, %v17397_v34 }
 0x212   : > { %v4658_v42 = vpop.permute.xlu0 %4657  ;;  %5258 = vperm.xlu0 %13495, %v14771_v31   ;;  %v15273_v31 = vld [vmem:[%s14136_s27 + $0x18] sm:$0xff] }
 0x213   : > { %13480 = vset.pattern.permute.xlu1 %v17372_v59  ;;  %12312 = vmatprep.mubr.msk.f32.mxu0 %vm1288_vm2, %v4271_v26  ;;  %v4761_v18 = vmul.f32 %v15273_v31, %v4638_v58  ;;  %v15286_v58 = vld [vmem:[%s14136_s27 + $0x20] sm:$0xff] }
 0x214   : > { %4753 = vperm.xlu1 %13480, %v15033_v5   ;;  %v4237_v29 = vpop.permute.xlu1 %4236  ;;  %12313 = vmatmul.mubr.msk.f32.gmra.mrb[28].mxu0 %vm1288_vm2, %v4272_v24  ;;  %v15277_v24 = vld [vmem:[%s14136_s27 + $0x10] sm:$0xff] }
 0x215   : > { %v4273_v40 = vmul.f32 %v4237_v29, %v4114_v62 }
 0x216   : > { %v4666_v15 = vpop.permute.xlu0 %4665  ;;  %13503 = vset.pattern.permute.xlu0 %v17377_v54 }
 0x217   : > { %12315 = vmatprep.mubr.msk.f32.mxu0 %vm1288_vm2, %v4273_v40  ;;  %1036 = vperm.xlu0 %13503, %v14977_v12  }
 0x218   : > { %4757 = vperm.xlu1 %13480, %v17399_v28   ;;  %12316 = vmatmul.mubr.msk.f32.gmra.mrb[30].mxu0 %vm1288_vm2, %v4274_v57  ;;  %v15292_v57 = vld [vmem:[%s14136_s27 + $0x30] sm:$0xff]  ;;  %v15297_v28 = vld [vmem:[%s14136_s27 + $0x28] sm:$0xff] }
 0x219   : > { %v4634_v60 = vpop.permute.xlu1 %4633  ;;  %v4764_v29 = vmul.f32 %v15292_v57, %v4650_v50 }
 0x21a   : > { %v4760_v37 = vmul.f32 %v15277_v24, %v4634_v60  ;;  %v4674_v34 = vpop.permute.xlu0 %4673 }
 0x21b   : > { %1051 = vperm.xlu0 %13503, %v14948_v7  }
 0x21c   : > { %13481 = vset.pattern.permute.xlu1 %v17376_v21  ;;  %12320 = vmatprep.mubr.msk.f32.mxu0 %vm1288_vm2, %v4760_v37  ;;  %v15303_v37 = vld [vmem:[%s14136_s27 + $0x40] sm:$0xff] }
 0x21d   : > { %1192 = vperm.xlu1 %13481, %v14955_v47   ;;  %v4642_v26 = vpop.permute.xlu1 %4641  ;;  %12321 = vmatmul.mubr.msk.f32.vlgmr.msra.gmra.mrb[0].mxu0 %vm1288_vm2, %v4761_v18 }
 0x21e   : > { %v4762_v39 = vmul.f32 %v15286_v58, %v4642_v26  ;;  %v4682_v62 = vpop.permute.xlu0 %4681  ;;  %v4766_v26 = vmul.f32 %v15303_v37, %v4658_v42  ;;  %v15322_v42 = vld [vmem:[%s14136_s27 + $0x50] sm:$0xff] }
 0x21f   : > { %1066 = vperm.xlu0 %13503, %v15011_v52  }
 0x220   : > { %12323 = vmatprep.mubr.msk.f32.mxu0 %vm1288_vm2, %v4762_v39  ;;  %v17400_v39 = vmov 8  }
 0x221   : > { %1196 = vperm.xlu1 %13481, %v14900_v41   ;;  %v4646_v40 = vpop.permute.xlu1 %4645  ;;  %v5309_v41 = vld [vmem:[%s17243_s29 + $0x20] sm:$0xf] }
 0x222   : > { %v4763_v18 = vmul.f32 %v15297_v28, %v4646_v40  ;;  %v4690_v60 = vpop.permute.xlu0 %4689  ;;  %v15312_v40 = vld [vmem:[%s14136_s27 + $0x38] sm:$0xff]  ;;  %12368 = vmatprep.subr.msk.mxu0 %vm1385_vm0, %v5309_v41 }
 0x223   : > { %1081 = vperm.xlu0 %13503, %v14787_v13   ;;  %12369 = vmatpush3.msk.msra.mxu0 %vm1385_vm0, %v5309_v41 }
 0x224   : > { %12324 = vmatmul.mubr.msk.f32.gmra.mrb[2].mxu0 %vm1288_vm2, %v4763_v18 }
 0x225   : > { %13482 = vset.pattern.permute.xlu1 %v17400_v39  ;;  %v4654_v50 = vpop.permute.xlu1 %4653  ;;  %12326 = vmatprep.mubr.msk.f32.mxu0 %vm1288_vm2, %v4764_v29  ;;  %v4768_v29 = vmul.f32 %v15322_v42, %v4666_v15 }
 0x226   : > { %v4765_v13 = vmul.f32 %v15312_v40, %v4654_v50  ;;  %5154 = vperm.xlu1 %13482, %v14825_v6   ;;  %v4702_v18 = vpop.permute.xlu0 %4701  ;;  %v15327_v6 = vld [vmem:[%s14136_s27 + $0x48] sm:$0xff] }
 0x227   : > { %13506 = vset.pattern.permute.xlu0 %v17400_v39 }
 0x228   : > { %12327 = vmatmul.mubr.msk.f32.gmra.mrb[4].mxu0 %vm1288_vm2, %v4765_v13  ;;  %5270 = vperm.xlu0 %13506, %v15033_v5   ;;  %v15336_v5 = vld [vmem:[%s14136_s27 + $0x60] sm:$0xff] }
 0x229   : > { %v4662_v50 = vpop.permute.xlu1 %4661  ;;  %12329 = vmatprep.mubr.msk.f32.mxu0 %vm1288_vm2, %v4766_v26  ;;  %v4770_v15 = vmul.f32 %v15336_v5, %v4674_v34  ;;  %v15341_v26 = vld [vmem:[%s14136_s27 + $0x58] sm:$0xff] }
 0x22a   : > { %v4767_v59 = vmul.f32 %v15327_v6, %v4662_v50  ;;  %5158 = vperm.xlu1 %13482, %v14843_v22   ;;  %v15331_v41 = vpop.permute.xlu0 %4713 }
 0x22c   : > { %12330 = vmatmul.mubr.msk.f32.gmra.mrb[6].mxu0 %vm1288_vm2, %v4767_v59  ;;  %13508 = vset.pattern.permute.xlu0 %v17376_v21  ;;  %v15350_v59 = vld [vmem:[%s14136_s27 + $0x70] sm:$0xff] }
 0x22d   : > { %v4670_v13 = vpop.permute.xlu1 %4669  ;;  %12332 = vmatprep.mubr.msk.f32.mxu0 %vm1288_vm2, %v4768_v29  ;;  %v4772_v34 = vmul.f32 %v15350_v59, %v4682_v62  ;;  %v15355_v29 = vld [vmem:[%s14136_s27 + $0x68] sm:$0xff]  ;;  %v15368_v62 = vld [vmem:[%s14136_s27 + $0x78] sm:$0xff] }
 0x22e   : > { %v4769_v50 = vmul.f32 %v15341_v26, %v4670_v13  ;;  %13483 = vset.pattern.permute.xlu1 %v17376_v21  ;;  %v15345_v22 = vpop.permute.xlu0 %4725 }
 0x22f   : > { %1204 = vperm.xlu1 %13483, %v14916_v8   ;;  %v15363_v8 = vld [vmem:[%s14136_s27 + $0x80] sm:$0xff] }
 0x230   : > { %12333 = vmatmul.mubr.msk.f32.gmra.mrb[8].mxu0 %vm1288_vm2, %v4769_v50  ;;  %v4774_v50 = vmul.f32 %v15363_v8, %v4690_v60  ;;  %v15378_v60 = vld [vmem:[%s14136_s27 + $0x88] sm:$0xff] }
 0x231   : > { %v4678_v17 = vpop.permute.xlu1 %4677  ;;  %12335 = vmatprep.mubr.msk.f32.mxu0 %vm1288_vm2, %v4770_v15 }
 0x232   : > { %v4771_v13 = vmul.f32 %v15355_v29, %v4678_v17  ;;  %v15358_v46 = vpop.permute.xlu0 %4737 }
 0x233   : > { %1208 = vperm.xlu1 %13483, %v14977_v12  }
 0x234   : > { %12336 = vmatmul.mubr.msk.f32.gmra.mrb[10].mxu0 %vm1288_vm2, %v4771_v13 }
 0x235   : > { %v4686_v49 = vpop.permute.xlu1 %4685  ;;  %12338 = vmatprep.mubr.msk.f32.mxu0 %vm1288_vm2, %v4772_v34 }
 0x236   : > { %v4773_v15 = vmul.f32 %v15368_v62, %v4686_v49  ;;  %v15371_v17 = vpop.permute.xlu0 %4749 }
 0x237   : > { %13484 = vset.pattern.permute.xlu1 %v17400_v39 }
 0x238   : > { %5166 = vperm.xlu1 %13484, %v14859_v1   ;;  %12339 = vmatmul.mubr.msk.f32.gmra.mrb[12].mxu0 %vm1288_vm2, %v4773_v15  ;;  %v4777_v1 = vmul.f32 %v15384_v16, %v4702_v18  ;;  %v15388_v15 = vld [vmem:[%s14136_s27 + $0x90] sm:$0xff] }
 0x239   : > { %v4694_v12 = vpop.permute.xlu1 %4693  ;;  %12341 = vmatprep.mubr.msk.f32.mxu0 %vm1288_vm2, %v4774_v50 }
 0x23a   : > { %v4775_v34 = vmul.f32 %v15378_v60, %v4694_v12 }
 0x23b   : > { %v1129_v13 = vpop.permute.xlu0 %1128 }
 0x23c   : > { %5170 = vperm.xlu1 %13484, %v14795_v4   ;;  %12342 = vmatmul.mubr.msk.f32.gmra.mrb[14].mxu0 %vm1288_vm2, %v4775_v34  ;;  %v1255_v49 = vmul.f32 0.0, %v1129_v13  ;;  %v13611_v34 = vld [vmem:[%s14136_s27 + $0x8] sm:$0xff] }
 0x23d   : > { %v4698_v25 = vpop.permute.xlu1 %4697 }
 0x23e   : > { %v4776_v50 = vmul.f32 %v15388_v15, %v4698_v25  ;;  %11970 = vmatprep.mubr.msk.f32.mxu1 %vm1288_vm2, %v1255_v49  ;;  %v13612_v49 = vld [vmem:[%s14136_s27] sm:$0xff] }
 0x23f   : > { %v1141_v18 = vpop.permute.xlu0 %1140 }
 0x240   : > { %13485 = vset.pattern.permute.xlu1 %v17376_v21  ;;  %12344 = vmatprep.mubr.msk.f32.mxu0 %vm1288_vm2, %v4776_v50  ;;  %v1258_v13 = vmul.f32 %v13611_v34, %v1141_v18  ;;  %v15418_v18 = vld [vmem:[%s14136_s27 + $0xa8] sm:$0xff] }
 0x241   : > { %1216 = vperm.xlu1 %13485, %v14988_v11   ;;  %12345 = vmatmul.mubr.msk.f32.gmra.mrb[16].mxu0 %vm1288_vm2, %v4777_v1  ;;  %v15407_v1 = vld [vmem:[%s14136_s27 + $0xa0] sm:$0xff] }
 0x242   : > { %v1133_v4 = vpop.permute.xlu1 %1132 }
 0x243   : > { %v1256_v12 = vmul.f32 0.0, %v1133_v4  ;;  %v1153_v34 = vpop.permute.xlu0 %1152 }
 0x245   : > { %1220 = vperm.xlu1 %13485, %v14948_v7   ;;  %11971 = vmatmul.mubr.msk.f32.vlgmr.msra.gmra.mrb[0].mxu1 %vm1288_vm2, %v1256_v12 }
 0x246   : > { %v1137_v25 = vpop.permute.xlu1 %1136  ;;  %13068 = vmatpush3.msk.msra.mxu1 %vm1385_vm0, %v15126_v43  ;;  %v15413_v43 = vld [vmem:[%s14136_s27 + $0xb0] sm:$0xff] }
 0x247   : > { %v1257_v11 = vmul.f32 %v13612_v49, %v1137_v25  ;;  %v4780_v4 = vmul.f32 %v15413_v43, %v15331_v41  ;;  %v1261_v49 = vmul.f32 %v15286_v58, %v1153_v34  ;;  %v1165_v58 = vpop.permute.xlu0 %1164 }
 0x248   : > { %v1264_v34 = vmul.f32 %v15312_v40, %v1165_v58 }
 0x249   : > { %13486 = vset.pattern.permute.xlu1 %v17400_v39  ;;  %11973 = vmatprep.mubr.msk.f32.mxu1 %vm1288_vm2, %v1257_v11 }
 0x24a   : > { %5178 = vperm.xlu1 %13486, %v14810_v20   ;;  %11974 = vmatmul.mubr.msk.f32.gmra.mrb[2].mxu1 %vm1288_vm2, %v1258_v13 }
 0x24b   : > { %v4706_v7 = vpop.permute.xlu1 %4705 }
 0x24c   : > { %v4778_v50 = vmul.f32 %v15407_v1, %v4706_v7  ;;  %v15440_v7 = vld [vmem:[%s14136_s27 + $0xb8] sm:$0xff] }
 0x24e   : > { %5182 = vperm.xlu1 %13486, %v14891_v44   ;;  %12347 = vmatprep.mubr.msk.f32.mxu0 %vm1288_vm2, %v4778_v50  ;;  %v15426_v44 = vld [vmem:[%s17241_s1 + $0xc8] sm:$0xff] }
 0x24f   : > { %v4710_v12 = vpop.permute.xlu1 %4709  ;;  %v15446_v50 = vld [vmem:[%s14136_s27 + $0xc8] sm:$0xff] }
 0x250   : > { %v4779_v20 = vmul.f32 %v15418_v18, %v4710_v12  ;;  %v15451_v12 = vld [vmem:[%s14136_s27 + $0xc0] sm:$0xff] }
 0x252   : > { %13487 = vset.pattern.permute.xlu1 %v17376_v21  ;;  %12348 = vmatmul.mubr.msk.f32.gmra.mrb[18].mxu0 %vm1288_vm2, %v4779_v20  ;;  %v1177_v20 = vpop.permute.xlu0 %1176 }
 0x253   : > { %1228 = vperm.xlu1 %13487, %v15426_v44   ;;  %12350 = vmatprep.mubr.msk.f32.mxu0 %vm1288_vm2, %v4780_v4 }
 0x254   : > { %v1145_v41 = vpop.permute.xlu1 %1144 }
 0x255   : > { %v1259_v25 = vmul.f32 %v15277_v24, %v1145_v41 }
 0x257   : > { %1232 = vperm.xlu1 %13487, %v15011_v52   ;;  %11976 = vmatprep.mubr.msk.f32.mxu1 %vm1288_vm2, %v1259_v25 }
 0x258   : > { %v1149_v13 = vpop.permute.xlu1 %1148 }
 0x259   : > { %v1260_v11 = vmul.f32 %v15273_v31, %v1149_v13  ;;  %v4783_v31 = vmul.f32 %v15446_v50, %v15345_v22  ;;  %v15462_v22 = vld [vmem:[%s17241_s1 + $0xe8] sm:$0xff] }
 0x25b   : > { %13488 = vset.pattern.permute.xlu1 %v17400_v39  ;;  %11977 = vmatmul.mubr.msk.f32.gmra.mrb[4].mxu1 %vm1288_vm2, %v1260_v11  ;;  %v15475_v11 = vld [vmem:[%s14136_s27 + $0xd0] sm:$0xff] }
 0x25c   : > { %5190 = vperm.xlu1 %13488, %v14907_v3   ;;  %11979 = vmatprep.mubr.msk.f32.mxu1 %vm1288_vm2, %v1261_v49 }
 0x25d   : > { %v4718_v24 = vpop.permute.xlu1 %4717 }
 0x25e   : > { %v4781_v52 = vmul.f32 %v15440_v7, %v4718_v24 }
 0x260   : > { %5194 = vperm.xlu1 %13488, %v14852_v14   ;;  %12351 = vmatmul.mubr.msk.f32.gmra.mrb[20].mxu0 %vm1288_vm2, %v4781_v52 }
 0x261   : > { %v4722_v4 = vpop.permute.xlu1 %4721 }
 0x262   : > { %v4782_v3 = vmul.f32 %v15451_v12, %v4722_v4 }
 0x264   : > { %13489 = vset.pattern.permute.xlu1 %v17376_v21  ;;  %12353 = vmatprep.mubr.msk.f32.mxu0 %vm1288_vm2, %v4782_v3 }
 0x265   : > { %1240 = vperm.xlu1 %13489, %v15022_v61   ;;  %12354 = vmatmul.mubr.msk.f32.gmra.mrb[22].mxu0 %vm1288_vm2, %v4783_v31  ;;  %v1189_v61 = vpop.permute.xlu0 %1188  ;;  %v15488_v31 = vld [vmem:[%s14136_s27 + $0xd8] sm:$0xff] }
 0x266   : > { %v1157_v14 = vpop.permute.xlu1 %1156 }
 0x267   : > { %v1262_v41 = vmul.f32 %v15297_v28, %v1157_v14  ;;  %v13621_v28 = vld [vmem:[%s17241_s1 + $0x68] sm:$0xff] }
 0x269   : > { %1244 = vperm.xlu1 %13489, %v15462_v22   ;;  %11980 = vmatmul.mubr.msk.f32.gmra.mrb[6].mxu1 %vm1288_vm2, %v1262_v41  ;;  %v15478_v24 = vpop.permute.xlu0 %1200 }
 0x26a   : > { %v1161_v25 = vpop.permute.xlu1 %1160 }
 0x26b   : > { %v1263_v13 = vmul.f32 %v15292_v57, %v1161_v25  ;;  %v15483_v57 = vld [vmem:[%s14136_s27 + $0xe0] sm:$0xff]  ;;  %v1267_v25 = vmul.f32 %v15322_v42, %v1177_v20  ;;  %v13627_v42 = vld [vmem:[%s14136_s27 + $0xf8] sm:$0xff]  ;;  %v13628_v20 = vld [vmem:[%s17241_s1 + $0x88] sm:$0xff] }
 0x26c   : > { %v4786_v52 = vmul.f32 %v15483_v57, %v15358_v46 }
 0x26d   : > { %13490 = vset.pattern.permute.xlu1 %v17400_v39  ;;  %11982 = vmatprep.mubr.msk.f32.mxu1 %vm1288_vm2, %v1263_v13  ;;  %v15493_v3 = vpop.permute.xlu0 %1212 }
 0x26e   : > { %5202 = vperm.xlu1 %13490, %v13621_v28   ;;  %11983 = vmatmul.mubr.msk.f32.gmra.mrb[8].mxu1 %vm1288_vm2, %v1264_v34  ;;  %v15515_v28 = vld [vmem:[%s14136_s27 + $0xe8] sm:$0xff] }
 0x26f   : > { %v4730_v49 = vpop.permute.xlu1 %4729 }
 0x270   : > { %v4784_v40 = vmul.f32 %v15475_v11, %v4730_v49 }
 0x271   : > { %v15507_v34 = vpop.permute.xlu0 %1224 }
 0x272   : > { %5206 = vperm.xlu1 %13490, %v14939_v38   ;;  %12356 = vmatprep.mubr.msk.f32.mxu0 %vm1288_vm2, %v4784_v40  ;;  %v15498_v38 = vld [vmem:[%s17241_s1 + $0xf8] sm:$0xff] }
 0x273   : > { %v4734_v58 = vpop.permute.xlu1 %4733 }
 0x274   : > { %v4785_v4 = vmul.f32 %v15488_v31, %v4734_v58  ;;  %v13629_v58 = vld [vmem:[%s14136_s27 + $0xf0] sm:$0xff]  ;;  %s17429_s27 = sld [smem:[#allocation73_spill]] }
 0x275   : > { %v15518_v40 = vpop.permute.xlu0 %1236 }
 0x276   : > { %13491 = vset.pattern.permute.xlu1 %v17376_v21  ;;  %12357 = vmatmul.mubr.msk.f32.gmra.mrb[24].mxu0 %vm1288_vm2, %v4785_v4 }
 0x277   : > { %1252 = vperm.xlu1 %13491, %v15498_v38   ;;  %12359 = vmatprep.mubr.msk.f32.mxu0 %vm1288_vm2, %v4786_v52 }
 0x278   : > { %v1169_v46 = vpop.permute.xlu1 %1168 }
 0x279   : > { %v1265_v14 = vmul.f32 %v15303_v37, %v1169_v46  ;;  %v15528_v4 = vpop.permute.xlu0 %1248 }
 0x27b   : > { %13492 = vset.pattern.permute.xlu1 %v17377_v54  ;;  %11985 = vmatprep.mubr.msk.f32.mxu1 %vm1288_vm2, %v1265_v14  ;;  %v1270_v14 = vmul.f32 %v15355_v29, %v1189_v61  ;;  %v13631_v61 = vld [vmem:[%s17241_s1 + $0xa0] sm:$0xff] }
 0x27c   : > { %1016 = vperm.xlu1 %13492, %v14955_v47   ;;  %v1173_v41 = vpop.permute.xlu1 %1172 }
 0x27d   : > { %v1266_v13 = vmul.f32 %v15327_v6, %v1173_v41  ;;  %v4789_v6 = vmul.f32 %v13627_v42, %v15371_v17  ;;  %v13630_v41 = vld [vmem:[%s17241_s1 + $0x98] sm:$0xff]  ;;  %v17401_v42 = vld [vmem:[#allocation39_spill] sm:$0xff] }
 0x27f   : > { %11986 = vmatmul.mubr.msk.f32.gmra.mrb[10].mxu1 %vm1288_vm2, %v1266_v13  ;;  %v15539_v13 = vpop.permute.xlu0 %1021 }
 0x280   : > { %13493 = vset.pattern.permute.xlu1 %v17400_v39  ;;  %11988 = vmatprep.mubr.msk.f32.mxu1 %vm1288_vm2, %v1267_v25 }
 0x281   : > { %5214 = vperm.xlu1 %13493, %v14955_v47   ;;  %v4742_v37 = vpop.permute.xlu1 %4741 }
 0x282   : > { %v4787_v49 = vmul.f32 %v15515_v28, %v4742_v37 }
 0x283   : > { %v5151_v29 = vpop.permute.xlu0 %5150 }
 0x284   : > { %12360 = vmatmul.mubr.msk.f32.gmra.mrb[26].mxu0 %vm1288_vm2, %v4787_v49 }
 0x285   : > { %5218 = vperm.xlu1 %13493, %v13628_v20   ;;  %v4746_v52 = vpop.permute.xlu1 %4745  ;;  %v13632_v20 = vld [vmem:[%s17241_s1 + $0xa8] sm:$0xff] }
 0x286   : > { %v4788_v47 = vmul.f32 %v13629_v58, %v4746_v52 }
 0x288   : > { %12362 = vmatprep.mubr.msk.f32.mxu0 %vm1288_vm2, %v4788_v47  ;;  %v1273_v47 = vmul.f32 %v15363_v8, %v15478_v24  ;;  %v13634_v8 = vld [vmem:[%s17241_s1 + $0xb8] sm:$0xff] }
 0x289   : > { %13496 = vset.pattern.permute.xlu1 %v17377_v54  ;;  %12363 = vmatmul.mubr.msk.f32.gmra.mrb[28].mxu0 %vm1288_vm2, %v4789_v6 }
 0x28a   : > { %1026 = vperm.xlu1 %13496, %v14966_v2   ;;  %v1181_v46 = vpop.permute.xlu1 %1180 }
 0x28b   : > { %v1268_v17 = vmul.f32 %v15341_v26, %v1181_v46  ;;  %v13633_v46 = vld [vmem:[%s17241_s1 + $0xb0] sm:$0xff] }
 0x28d   : > { %11989 = vmatmul.mubr.msk.f32.gmra.mrb[12].mxu1 %vm1288_vm2, %v1268_v17 }
 0x28e   : > { %1031 = vperm.xlu1 %13496, %v13630_v41   ;;  %v1185_v25 = vpop.permute.xlu1 %1184 }
 0x28f   : > { %v1269_v37 = vmul.f32 %v15336_v5, %v1185_v25  ;;  %v5277_v5 = vmul.f32 %v5151_v29, %v17401_v42 }
 0x291   : > { %11991 = vmatprep.mubr.msk.f32.mxu1 %vm1288_vm2, %v1269_v37  ;;  %v5163_v37 = vpop.permute.xlu0 %5162 }
 0x292   : > { %13497 = vset.pattern.permute.xlu1 %v17400_v39  ;;  %11992 = vmatmul.mubr.msk.f32.gmra.mrb[14].mxu1 %vm1288_vm2, %v1270_v14 }
 0x293   : > { %5226 = vperm.xlu1 %13497, %v13630_v41   ;;  %v4754_v2 = vpop.permute.xlu1 %4753  ;;  %v17402_v41 = vld [vmem:[#allocation40_spill] sm:$0xff] }
 0x294   : > { %v4790_v26 = vmul.f32 0.0, %v4754_v2 }
 0x296   : > { %12365 = vmatprep.mubr.msk.f32.mxu0 %vm1288_vm2, %v4790_v26  ;;  %v17404_v26 = vld [vmem:[#allocation41_spill] sm:$0xff] }
 0x297   : > { %5230 = vperm.xlu1 %13497, %v13631_v61   ;;  %v4758_v49 = vpop.permute.xlu1 %4757  ;;  %v13635_v61 = vld [vmem:[%s17241_s1 + $0xc0] sm:$0xff] }
 0x298   : > { %v4791_v6 = vmul.f32 0.0, %v4758_v49 }
 0x29a   : > { %12366 = vmatmul.mubr.msk.f32.gmra.mrb[30].mxu0 %vm1288_vm2, %v4791_v6 }
 0x29b   : > { %13498 = vset.pattern.permute.xlu1 %v17377_v54  ;;  %12370 = vmatprep.mubr.msk.f32.mxu0 %vm1288_vm2, %v5277_v5  ;;  %v1276_v5 = vmul.f32 %v15384_v16, %v15493_v3  ;;  %v13636_v16 = vld [vmem:[%s17241_s1 + $0xd0] sm:$0xff] }
 0x29c   : > { %1041 = vperm.xlu1 %13498, %v13632_v20   ;;  %v1193_v52 = vpop.permute.xlu1 %1192  ;;  %v17406_v3 = vld [vmem:[#allocation45_spill] sm:$0xff] }
 0x29d   : > { %v1271_v58 = vmul.f32 %v15350_v59, %v1193_v52 }
 0x29f   : > { %11994 = vmatprep.mubr.msk.f32.mxu1 %vm1288_vm2, %v1271_v58 }
 0x2a0   : > { %1046 = vperm.xlu1 %13498, %v13633_v46   ;;  %v1197_v17 = vpop.permute.xlu1 %1196 }
 0x2a1   : > { %v1272_v14 = vmul.f32 %v15368_v62, %v1197_v17  ;;  %v17403_v62 = vld [vmem:[#allocation42_spill] sm:$0xff]  ;;  %v17407_v17 = vld [vmem:[#allocation44_spill] sm:$0xff] }
 0x2a2   : > { %v5280_v2 = vmul.f32 %v5163_v37, %v17403_v62  ;;  %v13638_v37 = vld [vmem:[%s17241_s1 + $0xe0] sm:$0xff] }
 0x2a3   : > { %11995 = vmatmul.mubr.msk.f32.gmra.mrb[16].mxu1 %vm1288_vm2, %v1272_v14  ;;  %v17408_v62 = vld [vmem:[#allocation46_spill] sm:$0xff] }
 0x2a4   : > { %13499 = vset.pattern.permute.xlu1 %v17400_v39  ;;  %11997 = vmatprep.mubr.msk.f32.mxu1 %vm1288_vm2, %v1273_v47  ;;  %v5175_v47 = vpop.permute.xlu0 %5174 }
 0x2a5   : > { %5238 = vperm.xlu1 %13499, %v13633_v46   ;;  %v5155_v59 = vpop.permute.xlu1 %5154  ;;  %v5283_v46 = vmul.f32 %v5175_v47, %v17406_v3  ;;  %v1285_v3 = vmul.f32 %v15483_v57, %v15528_v4 }
 0x2a6   : > { %v5278_v25 = vmul.f32 %v5155_v59, %v17402_v41 }
 0x2a8   : > { %12371 = vmatmul.mubr.msk.f32.vlgmr.msra.gmra.mrb[0].mxu0 %vm1288_vm2, %v5278_v25  ;;  %v1279_v25 = vmul.f32 %v15413_v43, %v15507_v34  ;;  %v17409_v34 = vld [vmem:[#allocation48_spill] sm:$0xff] }
 0x2a9   : > { %5242 = vperm.xlu1 %13499, %v13634_v8   ;;  %v5159_v24 = vpop.permute.xlu1 %5158 }
 0x2aa   : > { %v5279_v29 = vmul.f32 %v5159_v24, %v17404_v26  ;;  %v5187_v26 = vpop.permute.xlu0 %5186 }
 0x2ac   : > { %12373 = vmatprep.mubr.msk.f32.mxu0 %vm1288_vm2, %v5279_v29  ;;  %v5286_v29 = vmul.f32 %v5187_v26, %v17409_v34 }
 0x2ad   : > { %13500 = vset.pattern.permute.xlu1 %v17377_v54  ;;  %12374 = vmatmul.mubr.msk.f32.gmra.mrb[2].mxu0 %vm1288_vm2, %v5280_v2 }
 0x2ae   : > { %1056 = vperm.xlu1 %13500, %v13635_v61   ;;  %v1205_v49 = vpop.permute.xlu1 %1204  ;;  %v17410_v61 = vld [vmem:[#allocation47_spill] sm:$0xff] }
 0x2af   : > { %v1274_v42 = vmul.f32 %v15378_v60, %v1205_v49  ;;  %v17405_v60 = vld [vmem:[#allocation43_spill] sm:$0xff]  ;;  %v13639_v49 = vld [vmem:[%s17241_s1 + $0xf0] sm:$0xff] }
 0x2b1   : > { %11998 = vmatmul.mubr.msk.f32.gmra.mrb[18].mxu1 %vm1288_vm2, %v1274_v42 }
 0x2b2   : > { %1061 = vperm.xlu1 %13500, %v15426_v44   ;;  %v1209_v6 = vpop.permute.xlu1 %1208 }
 0x2b3   : > { %v1275_v20 = vmul.f32 %v15388_v15, %v1209_v6 }
 0x2b5   : > { %12000 = vmatprep.mubr.msk.f32.mxu1 %vm1288_vm2, %v1275_v20 }
 0x2b6   : > { %13501 = vset.pattern.permute.xlu1 %v17400_v39  ;;  %12001 = vmatmul.mubr.msk.f32.gmra.mrb[20].mxu1 %vm1288_vm2, %v1276_v5 }
 0x2b7   : > { %5250 = vperm.xlu1 %13501, %v15426_v44   ;;  %v5167_v52 = vpop.permute.xlu1 %5166  ;;  %v13637_v44 = vld [vmem:[%s17241_s1 + $0xd8] sm:$0xff] }
 0x2b8   : > { %v5281_v58 = vmul.f32 %v5167_v52, %v17405_v60 }
 0x2ba   : > { %12376 = vmatprep.mubr.msk.f32.mxu0 %vm1288_vm2, %v5281_v58  ;;  %v5199_v58 = vpop.permute.xlu0 %5198 }
 0x2bb   : > { %5254 = vperm.xlu1 %13501, %v13636_v16   ;;  %v5171_v15 = vpop.permute.xlu1 %5170 }
 0x2bc   : > { %v5282_v14 = vmul.f32 %v5171_v15, %v17407_v17 }
 0x2be   : > { %12377 = vmatmul.mubr.msk.f32.gmra.mrb[4].mxu0 %vm1288_vm2, %v5282_v14 }
 0x2bf   : > { %13502 = vset.pattern.permute.xlu1 %v17377_v54  ;;  %12379 = vmatprep.mubr.msk.f32.mxu0 %vm1288_vm2, %v5283_v46 }
 0x2c0   : > { %1071 = vperm.xlu1 %13502, %v13637_v44   ;;  %v1217_v59 = vpop.permute.xlu1 %1216  ;;  %v17414_v44 = vld [vmem:[#allocation52_spill] sm:$0xff] }
 0x2c1   : > { %v1277_v41 = vmul.f32 %v15407_v1, %v1217_v59 }
 0x2c3   : > { %12003 = vmatprep.mubr.msk.f32.mxu1 %vm1288_vm2, %v1277_v41  ;;  %v5211_v41 = vpop.permute.xlu0 %5210 }
 0x2c4   : > { %1076 = vperm.xlu1 %13502, %v13638_v37   ;;  %v1221_v8 = vpop.permute.xlu1 %1220 }
 0x2c5   : > { %v1278_v24 = vmul.f32 %v15418_v18, %v1221_v8  ;;  %v17416_v8 = vld [vmem:[#allocation53_spill] sm:$0xff] }
 0x2c7   : > { %12004 = vmatmul.mubr.msk.f32.gmra.mrb[22].mxu1 %vm1288_vm2, %v1278_v24 }
 0x2c8   : > { %13504 = vset.pattern.permute.xlu1 %v17400_v39  ;;  %12006 = vmatprep.mubr.msk.f32.mxu1 %vm1288_vm2, %v1279_v25 }
 0x2c9   : > { %5262 = vperm.xlu1 %13504, %v13638_v37   ;;  %v5179_v1 = vpop.permute.xlu1 %5178 }
 0x2ca   : > { %v5284_v2 = vmul.f32 %v5179_v1, %v17408_v62  ;;  %v5223_v1 = vpop.permute.xlu0 %5222  ;;  %v1111_v62 = vmul.f32 %v15539_v13, %v17380_v9 }
 0x2cc   : > { %12380 = vmatmul.mubr.msk.f32.gmra.mrb[6].mxu0 %vm1288_vm2, %v5284_v2 }
 0x2cd   : > { %5266 = vperm.xlu1 %13504, %v15462_v22   ;;  %v5183_v43 = vpop.permute.xlu1 %5182  ;;  %v1282_v22 = vmul.f32 %v15446_v50, %v15518_v40  ;;  %v17412_v40 = vld [vmem:[#allocation51_spill] sm:$0xff] }
 0x2ce   : > { %v5285_v18 = vmul.f32 %v5183_v43, %v17410_v61  ;;  %v5289_v47 = vmul.f32 %v5199_v58, %v17412_v40  ;;  %v5235_v4 = vpop.permute.xlu0 %5234  ;;  %v17420_v58 = vld [vmem:[#allocation60_spill] sm:$0xff] }
 0x2d0   : > { %12382 = vmatprep.mubr.msk.f32.mxu0 %vm1288_vm2, %v5285_v18  ;;  %v17418_v18 = vld [vmem:[#allocation57_spill] sm:$0xff] }
 0x2d1   : > { %13505 = vset.pattern.permute.xlu1 %v17377_v54  ;;  %12383 = vmatmul.mubr.msk.f32.gmra.mrb[8].mxu0 %vm1288_vm2, %v5286_v29  ;;  %v17417_v29 = vld [vmem:[#allocation55_spill] sm:$0xff] }
 0x2d2   : > { %1086 = vperm.xlu1 %13505, %v13639_v49   ;;  %v1229_v42 = vpop.permute.xlu1 %1228  ;;  %v5247_v43 = vpop.permute.xlu0 %5246  ;;  %v5295_v49 = vmul.f32 %v5223_v1, %v17418_v18  ;;  %v17425_v18 = vld [vmem:[#allocation15_spill] sm:$0xff] }
 0x2d3   : > { %v1280_v5 = vmul.f32 %v15440_v7, %v1229_v42  ;;  %v17411_v7 = vld [vmem:[#allocation49_spill] sm:$0xff] }
 0x2d5   : > { %12007 = vmatmul.mubr.msk.f32.gmra.mrb[24].mxu1 %vm1288_vm2, %v1280_v5 }
 0x2d6   : > { %1091 = vperm.xlu1 %13505, %v15498_v38   ;;  %v1233_v6 = vpop.permute.xlu1 %1232  ;;  %v5259_v42 = vpop.permute.xlu0 %5258 }
 0x2d7   : > { %v1281_v20 = vmul.f32 %v15451_v12, %v1233_v6  ;;  %v17413_v12 = vld [vmem:[#allocation50_spill] sm:$0xff] }
 0x2d9   : > { %12009 = vmatprep.mubr.msk.f32.mxu1 %vm1288_vm2, %v1281_v20 }
 0x2da   : > { %13507 = vset.pattern.permute.xlu1 %v17400_v39  ;;  %12010 = vmatmul.mubr.msk.f32.gmra.mrb[26].mxu1 %vm1288_vm2, %v1282_v22  ;;  %v1037_v13 = vpop.permute.xlu0 %1036 }
 0x2db   : > { %5274 = vperm.xlu1 %13507, %v15498_v38   ;;  %v5191_v52 = vpop.permute.xlu1 %5190  ;;  %v1114_v6 = vmul.f32 %v1037_v13, %v17385_v10 }
 0x2dc   : > { %v5287_v60 = vmul.f32 %v5191_v52, %v17411_v7  ;;  %v17419_v7 = vld [vmem:[#allocation61_spill] sm:$0xff] }
 0x2de   : > { %12385 = vmatprep.mubr.msk.f32.mxu0 %vm1288_vm2, %v5287_v60  ;;  %v5298_v60 = vmul.f32 %v5235_v4, %v17419_v7  ;;  %v5304_v4 = vmul.f32 %v5259_v42, %v14567_v56  ;;  %v17423_v56 = vld [vmem:[#allocation12_spill] sm:$0xff] }
 0x2df   : > { %v5195_v50 = vpop.permute.xlu1 %5194  ;;  %13509 = vset.pattern.permute.xlu1 %v17376_v21  ;;  %v17428_v7 = vld [vmem:[#allocation68_spill] sm:$0xff] }
 0x2e0   : > { %v5288_v16 = vmul.f32 %v5195_v50, %v17413_v12  ;;  %v1052_v12 = vpop.permute.xlu0 %1051 }
 0x2e2   : > { %12386 = vmatmul.mubr.msk.f32.gmra.mrb[10].mxu0 %vm1288_vm2, %v5288_v16 }
 0x2e3   : > { %12388 = vmatprep.mubr.msk.f32.mxu0 %vm1288_vm2, %v5289_v47 }
 0x2e4   : > { %v1241_v15 = vpop.permute.xlu1 %1240 }
 0x2e5   : > { %v1283_v38 = vmul.f32 %v15475_v11, %v1241_v15  ;;  %v17415_v11 = vld [vmem:[#allocation54_spill] sm:$0xff] }
 0x2e6   : > { %v5292_v37 = vmul.f32 %v5211_v41, %v17415_v11  ;;  %v1067_v11 = vpop.permute.xlu0 %1066 }
 0x2e7   : > { %12012 = vmatprep.mubr.msk.f32.mxu1 %vm1288_vm2, %v1283_v38  ;;  %v1117_v38 = vmul.f32 %v1052_v12, %v17386_v27 }
 0x2e8   : > { %v1245_v46 = vpop.permute.xlu1 %1244 }
 0x2e9   : > { %v1284_v17 = vmul.f32 %v15488_v31, %v1245_v46 }
 0x2eb   : > { %12013 = vmatmul.mubr.msk.f32.gmra.mrb[28].mxu1 %vm1288_vm2, %v1284_v17  ;;  %v17421_v17 = vld [vmem:[#allocation63_spill] sm:$0xff] }
 0x2ec   : > { %12015 = vmatprep.mubr.msk.f32.mxu1 %vm1288_vm2, %v1285_v3 }
 0x2ed   : > { %v5203_v14 = vpop.permute.xlu1 %5202 }
 0x2ee   : > { %v5290_v59 = vmul.f32 %v5203_v14, %v17414_v44 }
 0x2f0   : > { %12389 = vmatmul.mubr.msk.f32.gmra.mrb[12].mxu0 %vm1288_vm2, %v5290_v59  ;;  %v17422_v59 = vld [vmem:[#allocation64_spill] sm:$0xff] }
 0x2f1   : > { %v5207_v25 = vpop.permute.xlu1 %5206  ;;  %v5301_v41 = vmul.f32 %v5247_v43, %v17422_v59 }
 0x2f2   : > { %v5291_v24 = vmul.f32 %v5207_v25, %v17416_v8 }
 0x2f4   : > { %12391 = vmatprep.mubr.msk.f32.mxu0 %vm1288_vm2, %v5291_v24  ;;  %v1120_v24 = vmul.f32 %v1067_v11, %v17391_v63 }
 0x2f5   : > { %12392 = vmatmul.mubr.msk.f32.gmra.mrb[14].mxu0 %vm1288_vm2, %v5292_v37 }
 0x2f6   : > { %v1253_v57 = vpop.permute.xlu1 %1252 }
 0x2f7   : > { %v1286_v31 = vmul.f32 %v15515_v28, %v1253_v57 }
 0x2f9   : > { %12016 = vmatmul.mubr.msk.f32.gmra.mrb[30].mxu1 %vm1288_vm2, %v1286_v31 }
 0x2fb   : > { %v1017_v2 = vpop.permute.xlu1 %1016 }
 0x2fc   : > { %v1110_v26 = vmul.f32 %v1017_v2, %v17381_v36 }
 0x2fe   : > { %12044 = vmatprep.mubr.msk.f32.mxu1 %vm1288_vm2, %v1110_v26  ;;  %v1082_v26 = vpop.permute.xlu0 %1081 }
 0x2ff   : > { %12045 = vmatmul.mubr.msk.f32.vlgmr.msra.gmra.mrb[16].mxu1 %vm1288_vm2, %v1111_v62 }
 0x300   : > { %v5215_v34 = vpop.permute.xlu1 %5214 }
 0x301   : > { %v5293_v61 = vmul.f32 %v5215_v34, %v17417_v29  ;;  %v1123_v34 = vmul.f32 %v1082_v26, %v17423_v56  ;;  %v17424_v29 = vld [vmem:[#allocation59_spill] sm:$0xff] }
 0x303   : > { %12394 = vmatprep.mubr.msk.f32.mxu0 %vm1288_vm2, %v5293_v61 }
 0x304   : > { %v5219_v28 = vpop.permute.xlu1 %5218 }
 0x305   : > { %v5294_v5 = vmul.f32 %v5219_v28, %v17368_v19 }
 0x307   : > { %12395 = vmatmul.mubr.msk.f32.gmra.mrb[16].mxu0 %vm1288_vm2, %v5294_v5 }
 0x308   : > { %12397 = vmatprep.mubr.msk.f32.mxu0 %vm1288_vm2, %v5295_v49 }
 0x309   : > { %v1027_v9 = vpop.permute.xlu1 %1026 }
 0x30a   : > { %v1112_v36 = vmul.f32 %v1027_v9, %v17383_v35  ;;  %v17426_v9 = vld [vmem:[#allocation17_spill] sm:$0xff] }
 0x30c   : > { %12047 = vmatprep.mubr.msk.f32.mxu1 %vm1288_vm2, %v1112_v36 }
 0x30d   : > { %v1032_v22 = vpop.permute.xlu1 %1031 }
 0x30e   : > { %v1113_v20 = vmul.f32 %v1032_v22, %v17382_v53  ;;  %v17427_v22 = vld [vmem:[#allocation62_spill] sm:$0xff] }
 0x310   : > { %12048 = vmatmul.mubr.msk.f32.gmra.mrb[18].mxu1 %vm1288_vm2, %v1113_v20 }
 0x311   : > { %12050 = vmatprep.mubr.msk.f32.mxu1 %vm1288_vm2, %v1114_v6 }
 0x312   : > { %v5227_v19 = vpop.permute.xlu1 %5226 }
 0x313   : > { %v5296_v52 = vmul.f32 %v5227_v19, %v17370_v32 }
 0x315   : > { %12398 = vmatmul.mubr.msk.f32.gmra.mrb[18].mxu0 %vm1288_vm2, %v5296_v52 }
 0x316   : > { %v5231_v35 = vpop.permute.xlu1 %5230 }
 0x317   : > { %v5297_v50 = vmul.f32 %v5231_v35, %v17420_v58 }
 0x318   : > { %v15678_v40 = vpop.f32.mrb[0].mxu1 }
 0x319   : > { %v15680_v47 = vpop.f32.mrb[1].mxu1  ;;  %12400 = vmatprep.mubr.msk.f32.mxu0 %vm1288_vm2, %v5297_v50 }
 0x31a   : > { %12401 = vmatmul.mubr.msk.f32.gmra.mrb[20].mxu0 %vm1288_vm2, %v5298_v60 }
 0x31b   : > { %v1042_v53 = vpop.permute.xlu1 %1041 }
 0x31c   : > { %v1115_v10 = vmul.f32 %v1042_v53, %v17384_v0 }
 0x31d   : > { %v15685_v32 = vpop.f32.mrb[2].mxu1 }
 0x31e   : > { %12051 = vmatmul.mubr.msk.f32.gmra.mrb[20].mxu1 %vm1288_vm2, %v1115_v10  ;;  %v15688_v16 = vpop.f32.mrb[3].mxu1 }
 0x31f   : > { %v1047_v15 = vpop.permute.xlu1 %1046 }
 0x320   : > { %v1116_v3 = vmul.f32 %v1047_v15, %v17387_v33 }
 0x322   : > { %12053 = vmatprep.mubr.msk.f32.mxu1 %vm1288_vm2, %v1116_v3 }
 0x323   : > { %12054 = vmatmul.mubr.msk.f32.gmra.mrb[22].mxu1 %vm1288_vm2, %v1117_v38  ;;  %v15755_v38 = vld [vmem:[%s17429_s27] ss:$0 sm:$0xff] }
 0x324   : > { %v5239_v46 = vpop.permute.xlu1 %5238 }
 0x325   : > { %v5299_v14 = vmul.f32 %v5239_v46, %v17421_v17 }
 0x327   : > { %12403 = vmatprep.mubr.msk.f32.mxu0 %vm1288_vm2, %v5299_v14 }
 0x328   : > { %v5243_v0 = vpop.permute.xlu1 %5242 }
 0x329   : > { %v5300_v44 = vmul.f32 %v5243_v0, %v14532_v23 }
 0x32b   : > { %12404 = vmatmul.mubr.msk.f32.gmra.mrb[22].mxu0 %vm1288_vm2, %v5300_v44 }
 0x32c   : > { %12406 = vmatprep.mubr.msk.f32.mxu0 %vm1288_vm2, %v5301_v41 }
 0x32d   : > { %v1057_v27 = vpop.permute.xlu1 %1056 }
 0x32e   : > { %v1118_v33 = vmul.f32 %v1057_v27, %v17389_v30  ;;  %v15701_v25 = vpop.f32.mrb[4].mxu1 }
 0x32f   : > { %v15703_v37 = vpop.f32.mrb[5].mxu1 }
 0x330   : > { %12056 = vmatprep.mubr.msk.f32.mxu1 %vm1288_vm2, %v1118_v33 }
 0x331   : > { %v1062_v8 = vpop.permute.xlu1 %1061 }
 0x332   : > { %v1119_v23 = vmul.f32 %v1062_v8, %v17388_v45 }
 0x334   : > { %12057 = vmatmul.mubr.msk.f32.gmra.mrb[24].mxu1 %vm1288_vm2, %v1119_v23 }
 0x335   : > { %12059 = vmatprep.mubr.msk.f32.mxu1 %vm1288_vm2, %v1120_v24 }
 0x336   : > { %v5251_v1 = vpop.permute.xlu1 %5250 }
 0x337   : > { %v5302_v57 = vmul.f32 %v5251_v1, %v14552_v48 }
 0x339   : > { %12407 = vmatmul.mubr.msk.f32.gmra.mrb[24].mxu0 %vm1288_vm2, %v5302_v57 }
 0x33a   : > { %v5255_v30 = vpop.permute.xlu1 %5254 }
 0x33b   : > { %v5303_v31 = vmul.f32 %v5255_v30, %v14560_v55 }
 0x33c   : > { %v15714_v62 = vpop.f32.mrb[6].mxu1 }
 0x33d   : > { %v15716_v2 = vpop.f32.mrb[7].mxu1  ;;  %12409 = vmatprep.mubr.msk.f32.mxu0 %vm1288_vm2, %v5303_v31 }
 0x33e   : > { %12410 = vmatmul.mubr.msk.f32.gmra.mrb[26].mxu0 %vm1288_vm2, %v5304_v4 }
 0x33f   : > { %v1072_v45 = vpop.permute.xlu1 %1071 }
 0x340   : > { %v1121_v63 = vmul.f32 %v1072_v45, %v17390_v51  ;;  %v5271_v51 = vpop.permute.xlu0 %5270 }
 0x341   : > { %v15721_v48 = vpop.f32.mrb[8].mxu1  ;;  %v5307_v5 = vmul.f32 0.0, %v5271_v51 }
 0x342   : > { %12060 = vmatmul.mubr.msk.f32.gmra.mrb[26].mxu1 %vm1288_vm2, %v1121_v63  ;;  %v15724_v43 = vpop.f32.mrb[9].mxu1 }
 0x343   : > { %v1077_v55 = vpop.permute.xlu1 %1076 }
 0x344   : > { %v1122_v61 = vmul.f32 %v1077_v55, %v17424_v29 }
 0x346   : > { %12062 = vmatprep.mubr.msk.f32.mxu1 %vm1288_vm2, %v1122_v61 }
 0x347   : > { %12063 = vmatmul.mubr.msk.f32.gmra.mrb[28].mxu1 %vm1288_vm2, %v1123_v34 }
 0x348   : > { %v5263_v28 = vpop.permute.xlu1 %5262 }
 0x349   : > { %v5305_v49 = vmul.f32 %v5263_v28, %v17425_v18 }
 0x34b   : > { %12412 = vmatprep.mubr.msk.f32.mxu0 %vm1288_vm2, %v5305_v49 }
 0x34c   : > { %v5267_v42 = vpop.permute.xlu1 %5266 }
 0x34d   : > { %v5306_v36 = vmul.f32 %v5267_v42, %v17426_v9 }
 0x34f   : > { %12413 = vmatmul.mubr.msk.f32.gmra.mrb[28].mxu0 %vm1288_vm2, %v5306_v36 }
 0x350   : > { %12415 = vmatprep.mubr.msk.f32.mxu0 %vm1288_vm2, %v5307_v5  ;;  %v15775_v5 = vld [vmem:[%s17430_s25 + $0x8] sm:$0xff] }
 0x351   : > { %v1087_v13 = vpop.permute.xlu1 %1086  ;;  %6140 = vperm.xlu1 %13509, %v15775_v5  }
 0x352   : > { %v1124_v6 = vmul.f32 %v1087_v13, %v17427_v22  ;;  %v15736_v20 = vpop.f32.mrb[10].mxu1 }
 0x353   : > { %v15738_v19 = vpop.f32.mrb[11].mxu1 }
 0x354   : > { %12065 = vmatprep.mubr.msk.f32.mxu1 %vm1288_vm2, %v1124_v6  ;;  %v15783_v6 = vld [vmem:[%s17430_s25 + $0x10] sm:$0xff] }
 0x355   : > { %v1092_v52 = vpop.permute.xlu1 %1091  ;;  %6144 = vperm.xlu1 %13509, %v15783_v6  }
 0x356   : > { %v1125_v60 = vmul.f32 %v1092_v52, %v17428_v7 }
 0x358   : > { %12066 = vmatmul.mubr.msk.f32.gmra.mrb[30].mxu1 %vm1288_vm2, %v1125_v60 }
 0x35a   : > { %v5275_v35 = vpop.permute.xlu1 %5274 }
 0x35b   : > { %v5308_v58 = vmul.f32 0.0, %v5275_v35 }
 0x35d   : > { %12416 = vmatmul.mubr.msk.f32.gmra.mrb[30].mxu0 %vm1288_vm2, %v5308_v58 }
 0x360   : > { %v15744_v50 = vpop.f32.mrb[12].mxu1 }
 0x361   : > { %v15746_v53 = vpop.f32.mrb[13].mxu1 }
 0x365   : > { %v15748_v10 = vpop.f32.mrb[14].mxu1 }
 0x366   : > { %v15750_v12 = vpop.f32.mrb[15].mxu1 }
 0x37b   : > { %v12372_v15 = vpop.f32.mrb[0].mxu0 }
 0x37c   : > { %v13069_v3 = vadd.f32 %v12372_v15, %v15678_v40  ;;  %v5475_v46 = vpop.f32.mrb[1].mxu0 }
 0x37d   : > { %v13070_v17 = vadd.f32 %v5475_v46, %v15680_v47 }
 0x37e   : > { %v5674_v14 = vadd.f32 %v13069_v3, %v15755_v38  ;;  %v15794_v3 = vld [vmem:[%s17430_s25 + $0x20] sm:$0xff] }
 0x37f   : > { %v5673_v0 = vadd.f32 %v13070_v17, %v15755_v38  ;;  %6152 = vperm.xlu1 %13509, %v15794_v3  }
 0x380   : > { %v5706_v44 = vmax.f32 %v5674_v14, 0.0  ;;  %v12375_v59 = vpop.f32.mrb[2].mxu0 }
 0x381   : > { %v5705_v41 = vmax.f32 %v5673_v0, 0.0  ;;  %v13071_v27 = vadd.f32 %v12375_v59, %v15685_v32  ;;  %v5485_v33 = vpop.f32.mrb[3].mxu0 }
 0x382   : > { %v5770_v11 = vrot.slane %v5706_v44, 1  ;;  %v13072_v8 = vadd.f32 %v5485_v33, %v15688_v16 }
 0x383   : > { %v5769_v24 = vrot.slane %v5705_v41, 1  ;;  %v5676_v23 = vadd.f32 %v13071_v27, %v15755_v38 }
 0x384   : > { %v5675_v40 = vadd.f32 %v13072_v8, %v15755_v38 }
 0x385   : > { %v5771_v47 = vsel %vm1939_vm3, %v5769_v24, %v5770_v11  ;;  %v5708_v1 = vmax.f32 %v5676_v23, 0.0 }
 0x386   : > { %v5865_v57 = vmax.f32 %v5705_v41, %v5771_v47  ;;  %v5707_v30 = vmax.f32 %v5675_v40, 0.0  ;;  %v15803_v41 = vld [vmem:[%s17430_s25 + $0x30] sm:$0xff] }
 0x387   : > { %v5774_v31 = vrot.slane %v5708_v1, 1  ;;  %6160 = vperm.xlu1 %13509, %v15803_v41  }
 0x388   : > { %v5772_v4 = vrot.slane %v5707_v30, 1 }
 0x38a   : > { %v5773_v45 = vsel %vm1939_vm3, %v5770_v11, %v5772_v4  ;;  %v5775_v32 = vsel %vm1939_vm3, %v5772_v4, %v5774_v31 }
 0x38b   : > { %v5866_v63 = vmax.f32 %v5706_v44, %v5773_v45  ;;  %v5867_v26 = vmax.f32 %v5707_v30, %v5775_v32  ;;  %13510 = vset.pattern.permute.xlu1 %v17377_v54 }
 0x38d   : > { %v5897_v55 = vmax.f32 %v5865_v57, %v5867_v26 }
 0x391   : > { %v12378_v16 = vpop.f32.mrb[4].mxu0 }
 0x392   : > { %v13073_v56 = vadd.f32 %v12378_v16, %v15701_v25  ;;  %v5495_v34 = vpop.f32.mrb[5].mxu0 }
 0x393   : > { %v13074_v29 = vadd.f32 %v5495_v34, %v15703_v37  ;;  %v15831_v34 = vld [vmem:[%s17430_s25 + $0x18] sm:$0xff] }
 0x394   : > { %v5678_v61 = vadd.f32 %v13073_v56, %v15755_v38 }
 0x395   : > { %v5677_v28 = vadd.f32 %v13074_v29, %v15755_v38 }
 0x396   : > { %v5710_v18 = vmax.f32 %v5678_v61, 0.0 }
 0x397   : > { %v5709_v49 = vmax.f32 %v5677_v28, 0.0 }
 0x398   : > { %v5778_v51 = vrot.slane %v5710_v18, 1 }
 0x399   : > { %v5776_v42 = vrot.slane %v5709_v49, 1 }
 0x39b   : > { %v5777_v9 = vsel %vm1939_vm3, %v5774_v31, %v5776_v42  ;;  %v5779_v25 = vsel %vm1939_vm3, %v5776_v42, %v5778_v51 }
 0x39c   : > { %v5868_v37 = vmax.f32 %v5708_v1, %v5777_v9  ;;  %v5869_v36 = vmax.f32 %v5709_v49, %v5779_v25  ;;  %v15814_v1 = vld [vmem:[%s17430_s25] sm:$0xff]  ;;  %v15840_v49 = vld [vmem:[%s17430_s25 + $0x28] sm:$0xff] }
 0x39d   : > { %6088 = vperm.xlu1 %13510, %v15814_v1   ;;  %6136 = vperm.xlu0 %13508, %v15814_v1  }
 0x39e   : > { %v5899_v13 = vmax.f32 %v5867_v26, %v5869_v36  ;;  %v5898_v22 = vmax.f32 %v5866_v63, %v5868_v37 }
 0x39f   : > { %v12381_v52 = vpop.f32.mrb[6].mxu0 }
 0x3a0   : > { %v13075_v7 = vadd.f32 %v12381_v52, %v15714_v62  ;;  %v5505_v60 = vpop.f32.mrb[7].mxu0  ;;  %v15787_v35 = vpack.c.bf16 %v5898_v22, %v5897_v55 }
 0x3a1   : > { %v13076_v58 = vadd.f32 %v5505_v60, %v15716_v2  ;;  %6098 = vperm.xlu1 %13510, %v15783_v6   ;;  %6148 = vperm.xlu0 %13508, %v15831_v34  }
 0x3a2   : > { %v5680_v15 = vadd.f32 %v13075_v7, %v15755_v38  ;;  %v17431_v7 = vmov 2  }
 0x3a3   : > { %v5679_v46 = vadd.f32 %v13076_v58, %v15755_v38 }
 0x3a4   : > { %v5712_v17 = vmax.f32 %v5680_v15, 0.0  ;;  %v12384_v14 = vpop.f32.mrb[8].mxu0 }
 0x3a5   : > { %v5711_v0 = vmax.f32 %v5679_v46, 0.0  ;;  %v13077_v62 = vadd.f32 %v12384_v14, %v15721_v48  ;;  %v5515_v44 = vpop.f32.mrb[9].mxu0  ;;  %6103 = vperm.xlu1 %13510, %v15831_v34   ;;  %6156 = vperm.xlu0 %13508, %v15840_v49  }
 0x3a6   : > { %v5782_v59 = vrot.slane %v5712_v17, 1  ;;  %v13078_v2 = vadd.f32 %v5515_v44, %v15724_v43 }
 0x3a7   : > { %v5780_v27 = vrot.slane %v5711_v0, 1  ;;  %v5682_v33 = vadd.f32 %v13077_v62, %v15755_v38 }
 0x3a8   : > { %v5681_v11 = vadd.f32 %v13078_v2, %v15755_v38 }
 0x3a9   : > { %v5781_v8 = vsel %vm1939_vm3, %v5778_v51, %v5780_v27  ;;  %v5783_v48 = vsel %vm1939_vm3, %v5780_v27, %v5782_v59  ;;  %v5714_v24 = vmax.f32 %v5682_v33, 0.0  ;;  %6113 = vperm.xlu1 %13510, %v15840_v49  }
 0x3aa   : > { %v5870_v23 = vmax.f32 %v5710_v18, %v5781_v8  ;;  %v5871_v40 = vmax.f32 %v5711_v0, %v5783_v48  ;;  %v5713_v43 = vmax.f32 %v5681_v11, 0.0  ;;  %v5930_v8 = vld [vmem:[%s17053_s17 + $0x8] sm:$0xff] }
 0x3ab   : > { %v5786_v47 = vrot.slane %v5714_v24, 1  ;;  %6009 = vmatprep.mubr.f32.mxu1 %v5930_v8 }
 0x3ac   : > { %v5901_v57 = vmax.f32 %v5869_v36, %v5871_v40  ;;  %v5784_v30 = vrot.slane %v5713_v43, 1  ;;  %v5900_v31 = vmax.f32 %v5868_v37, %v5870_v23 }
 0x3ae   : > { %v5785_v4 = vsel %vm1939_vm3, %v5782_v59, %v5784_v30  ;;  %v5787_v45 = vsel %vm1939_vm3, %v5784_v30, %v5786_v47  ;;  %v15820_v32 = vpack.c.bf16 %v5900_v31, %v5899_v13 }
 0x3af   : > { %v5872_v63 = vmax.f32 %v5712_v17, %v5785_v4  ;;  %v15822_v26 = vmax.f32 %v5713_v43, %v5787_v45 }
 0x3b1   : > { %v5903_v55 = vmax.f32 %v5871_v40, %v15822_v26  ;;  %v5902_v16 = vmax.f32 %v5870_v23, %v5872_v63 }
 0x3b3   : > { %v15826_v56 = vpack.c.bf16 %v5902_v16, %v5901_v57 }
 0x3b5   : > { %v12387_v29 = vpop.f32.mrb[10].mxu0 }
 0x3b6   : > { %v13079_v61 = vadd.f32 %v12387_v29, %v15736_v20  ;;  %v5525_v28 = vpop.f32.mrb[11].mxu0  ;;  %v15849_v20 = vld [vmem:[%s17430_s25 + $0x38] sm:$0xff] }
 0x3b7   : > { %v13080_v18 = vadd.f32 %v5525_v28, %v15738_v19  ;;  %6123 = vperm.xlu1 %13510, %v15849_v20   ;;  %6164 = vperm.xlu0 %13508, %v15849_v20  }
 0x3b8   : > { %v5684_v51 = vadd.f32 %v13079_v61, %v15755_v38 }
 0x3b9   : > { %v5683_v42 = vadd.f32 %v13080_v18, %v15755_v38 }
 0x3ba   : > { %v5716_v9 = vmax.f32 %v5684_v51, 0.0 }
 0x3bb   : > { %v5715_v25 = vmax.f32 %v5683_v42, 0.0  ;;  %13513 = vset.pattern.permute.xlu1 %v17431_v7  ;;  %13511 = vset.pattern.permute.xlu0 %v17377_v54 }
 0x3bc   : > { %v5790_v19 = vrot.slane %v5716_v9, 1  ;;  %6465 = vperm.xlu1 %13513, %v15775_v5   ;;  %6093 = vperm.xlu0 %13511, %v15775_v5  }
 0x3bd   : > { %v5788_v37 = vrot.slane %v5715_v25, 1 }
 0x3bf   : > { %v5789_v36 = vsel %vm1939_vm3, %v5786_v47, %v5788_v37  ;;  %v5791_v13 = vsel %vm1939_vm3, %v5788_v37, %v5790_v19 }
 0x3c0   : > { %v5874_v22 = vmax.f32 %v5714_v24, %v5789_v36  ;;  %v5875_v52 = vmax.f32 %v5715_v25, %v5791_v13  ;;  %6469 = vperm.xlu1 %13513, %v15783_v6   ;;  %6108 = vperm.xlu0 %13511, %v15794_v3  }
 0x3c2   : > { %v5905_v60 = vmax.f32 %v15822_v26, %v5875_v52  ;;  %v5904_v58 = vmax.f32 %v5872_v63, %v5874_v22  ;;  %v17432_v63 = vmov 3  }
 0x3c3   : > { %v12390_v15 = vpop.f32.mrb[12].mxu0 }
 0x3c4   : > { %v13081_v46 = vadd.f32 %v12390_v15, %v15744_v50  ;;  %v5535_v17 = vpop.f32.mrb[13].mxu0  ;;  %v15861_v14 = vpack.c.bf16 %v5904_v58, %v5903_v55  ;;  %6477 = vperm.xlu1 %13513, %v15794_v3   ;;  %6118 = vperm.xlu0 %13511, %v15803_v41  }
 0x3c5   : > { %v13082_v0 = vadd.f32 %v5535_v17, %v15746_v53 }
 0x3c6   : > { %v5686_v62 = vadd.f32 %v13081_v46, %v15755_v38 }
 0x3c7   : > { %v5685_v44 = vadd.f32 %v13082_v0, %v15755_v38 }
 0x3c8   : > { %v5718_v59 = vmax.f32 %v5686_v62, 0.0  ;;  %v12393_v2 = vpop.f32.mrb[14].mxu0  ;;  %6485 = vperm.xlu1 %13513, %v15803_v41   ;;  %13512 = vset.pattern.permute.xlu0 %v17431_v7 }
 0x3c9   : > { %v5717_v27 = vmax.f32 %v5685_v44, 0.0  ;;  %v13083_v33 = vadd.f32 %v12393_v2, %v15748_v10  ;;  %v5545_v11 = vpop.f32.mrb[15].mxu0  ;;  %6461 = vperm.xlu0 %13512, %v15814_v1   ;;  %v17433_v2 = vmov 4  }
 0x3ca   : > { %v5794_v50 = vrot.slane %v5718_v59, 1  ;;  %v13084_v53 = vadd.f32 %v5545_v11, %v15750_v12 }
 0x3cb   : > { %v5792_v48 = vrot.slane %v5717_v27, 1  ;;  %v5688_v24 = vadd.f32 %v13083_v33, %v15755_v38 }
 0x3cc   : > { %v5687_v23 = vadd.f32 %v13084_v53, %v15755_v38  ;;  %13514 = vset.pattern.permute.xlu1 %v17432_v63 }
 0x3cd   : > { %v5793_v10 = vsel %vm1939_vm3, %v5790_v19, %v5792_v48  ;;  %v5795_v40 = vsel %vm1939_vm3, %v5792_v48, %v5794_v50  ;;  %v5720_v43 = vmax.f32 %v5688_v24, 0.0  ;;  %6642 = vperm.xlu1 %13514, %v15814_v1   ;;  %6473 = vperm.xlu0 %13512, %v15831_v34  }
 0x3ce   : > { %v5876_v12 = vmax.f32 %v5716_v9, %v5793_v10  ;;  %v5877_v47 = vmax.f32 %v5717_v27, %v5795_v40  ;;  %v5719_v57 = vmax.f32 %v5687_v23, 0.0 }
 0x3cf   : > { %v5798_v30 = vrot.slane %v5720_v43, 1 }
 0x3d0   : > { %v5907_v31 = vmax.f32 %v5875_v52, %v5877_v47  ;;  %v5796_v4 = vrot.slane %v5719_v57, 1  ;;  %v5906_v45 = vmax.f32 %v5874_v22, %v5876_v12 }
 0x3d1   : > { %6650 = vperm.xlu1 %13514, %v15783_v6   ;;  %6481 = vperm.xlu0 %13512, %v15840_v49  }
 0x3d2   : > { %v5797_v26 = vsel %vm1939_vm3, %v5794_v50, %v5796_v4  ;;  %v5799_v55 = vsel %vm1939_vm3, %v5796_v4, %v5798_v30  ;;  %v12046_v16 = vpop.f32.mrb[16].mxu1  ;;  %v15885_v29 = vpack.c.bf16 %v5906_v45, %v5905_v60 }
 0x3d3   : > { %v5878_v61 = vmax.f32 %v5718_v59, %v5797_v26  ;;  %v15889_v28 = vmax.f32 %v5719_v57, %v5799_v55  ;;  %v1859_v18 = vpop.f32.mrb[17].mxu1 }
 0x3d5   : > { %v5909_v51 = vmax.f32 %v5877_v47, %v15889_v28  ;;  %v5908_v42 = vmax.f32 %v5876_v12, %v5878_v61  ;;  %6654 = vperm.xlu1 %13514, %v15831_v34   ;;  %6489 = vperm.xlu0 %13512, %v15849_v20  }
 0x3d7   : > { %v15894_v9 = vpack.c.bf16 %v5908_v42, %v5907_v31 }
 0x3d9   : > { %6662 = vperm.xlu1 %13514, %v15840_v49   ;;  %13515 = vset.pattern.permute.xlu0 %v17432_v63 }
 0x3da   : > { %v12396_v25 = vpop.f32.mrb[16].mxu0  ;;  %6646 = vperm.xlu0 %13515, %v15775_v5  }
 0x3db   : > { %v13085_v19 = vadd.f32 %v12396_v25, %v12046_v16  ;;  %v5555_v37 = vpop.f32.mrb[17].mxu0 }
 0x3dc   : > { %v13086_v36 = vadd.f32 %v5555_v37, %v1859_v18 }
 0x3dd   : > { %v5690_v13 = vadd.f32 %v13085_v19, %v15755_v38  ;;  %6670 = vperm.xlu1 %13514, %v15849_v20  }
 0x3de   : > { %v5689_v22 = vadd.f32 %v13086_v36, %v15755_v38  ;;  %6658 = vperm.xlu0 %13515, %v15794_v3  }
 0x3df   : > { %v5722_v52 = vmax.f32 %v5690_v13, 0.0 }
 0x3e0   : > { %v5721_v60 = vmax.f32 %v5689_v22, 0.0  ;;  %v17434_v22 = vmov 5  }
 0x3e1   : > { %v5802_v58 = vrot.slane %v5722_v52, 1  ;;  %13517 = vset.pattern.permute.xlu1 %v17433_v2 }
 0x3e2   : > { %v5800_v15 = vrot.slane %v5721_v60, 1  ;;  %6824 = vperm.xlu1 %13517, %v15775_v5   ;;  %6666 = vperm.xlu0 %13515, %v15803_v41  }
 0x3e3   : > { %v12049_v46 = vpop.f32.mrb[18].mxu1 }
 0x3e4   : > { %v5801_v17 = vsel %vm1939_vm3, %v5798_v30, %v5800_v15  ;;  %v5803_v0 = vsel %vm1939_vm3, %v5800_v15, %v5802_v58  ;;  %v1869_v62 = vpop.f32.mrb[19].mxu1 }
 0x3e5   : > { %v5880_v44 = vmax.f32 %v5720_v43, %v5801_v17  ;;  %v5881_v59 = vmax.f32 %v5721_v60, %v5803_v0 }
 0x3e6   : > { %6828 = vperm.xlu1 %13517, %v15783_v6   ;;  %13516 = vset.pattern.permute.xlu0 %v17433_v2 }
 0x3e7   : > { %v5911_v27 = vmax.f32 %v15889_v28, %v5881_v59  ;;  %v5910_v33 = vmax.f32 %v5878_v61, %v5880_v44  ;;  %6820 = vperm.xlu0 %13516, %v15814_v1  }
 0x3e8   : > { %v12399_v11 = vpop.f32.mrb[18].mxu0 }
 0x3e9   : > { %v13087_v50 = vadd.f32 %v12399_v11, %v12049_v46  ;;  %v5565_v53 = vpop.f32.mrb[19].mxu0  ;;  %v15911_v8 = vpack.c.bf16 %v5910_v33, %v5909_v51 }
 0x3ea   : > { %v13088_v48 = vadd.f32 %v5565_v53, %v1869_v62  ;;  %6836 = vperm.xlu1 %13517, %v15794_v3  }
 0x3eb   : > { %v5692_v24 = vadd.f32 %v13087_v50, %v15755_v38  ;;  %6832 = vperm.xlu0 %13516, %v15831_v34  }
 0x3ec   : > { %v5691_v23 = vadd.f32 %v13088_v48, %v15755_v38 }
 0x3ed   : > { %v5724_v10 = vmax.f32 %v5692_v24, 0.0  ;;  %v12402_v40 = vpop.f32.mrb[20].mxu0 }
 0x3ee   : > { %v5723_v43 = vmax.f32 %v5691_v23, 0.0  ;;  %v5575_v12 = vpop.f32.mrb[21].mxu0  ;;  %6844 = vperm.xlu1 %13517, %v15803_v41  }
 0x3ef   : > { %v5806_v47 = vrot.slane %v5724_v10, 1  ;;  %6840 = vperm.xlu0 %13516, %v15840_v49  }
 0x3f0   : > { %v5804_v57 = vrot.slane %v5723_v43, 1 }
 0x3f1   : > { %v12052_v30 = vpop.f32.mrb[20].mxu1 }
 0x3f2   : > { %v5807_v31 = vsel %vm1939_vm3, %v5804_v57, %v5806_v47  ;;  %v13089_v4 = vadd.f32 %v12402_v40, %v12052_v30  ;;  %v1879_v45 = vpop.f32.mrb[21].mxu1  ;;  %v5805_v26 = vsel %vm1939_vm3, %v5802_v58, %v5804_v57  ;;  %13518 = vset.pattern.permute.xlu1 %v17434_v22 }
 0x3f3   : > { %v5883_v55 = vmax.f32 %v5723_v43, %v5807_v31  ;;  %v13090_v16 = vadd.f32 %v5575_v12, %v1879_v45  ;;  %v5882_v61 = vmax.f32 %v5722_v52, %v5805_v26  ;;  %7000 = vperm.xlu1 %13518, %v15814_v1   ;;  %6848 = vperm.xlu0 %13516, %v15849_v20   ;;  %v17435_v31 = vmov 6  }
 0x3f4   : > { %v5694_v28 = vadd.f32 %v13089_v4, %v15755_v38 }
 0x3f5   : > { %v5693_v18 = vadd.f32 %v13090_v16, %v15755_v38  ;;  %v5913_v51 = vmax.f32 %v5881_v59, %v5883_v55  ;;  %v5912_v42 = vmax.f32 %v5880_v44, %v5882_v61 }
 0x3f6   : > { %v5726_v25 = vmax.f32 %v5694_v28, 0.0  ;;  %v12055_v19 = vpop.f32.mrb[22].mxu1 }
 0x3f7   : > { %v5725_v37 = vmax.f32 %v5693_v18, 0.0  ;;  %v1889_v36 = vpop.f32.mrb[23].mxu1  ;;  %v15926_v13 = vpack.c.bf16 %v5912_v42, %v5911_v27  ;;  %7008 = vperm.xlu1 %13518, %v15783_v6   ;;  %13519 = vset.pattern.permute.xlu0 %v17434_v22 }
 0x3f8   : > { %v5810_v60 = vrot.slane %v5726_v25, 1  ;;  %7004 = vperm.xlu0 %13519, %v15775_v5  }
 0x3f9   : > { %v5808_v52 = vrot.slane %v5725_v37, 1 }
 0x3fb   : > { %v5811_v58 = vsel %vm1939_vm3, %v5808_v52, %v5810_v60  ;;  %v5809_v15 = vsel %vm1939_vm3, %v5806_v47, %v5808_v52  ;;  %7012 = vperm.xlu1 %13518, %v15831_v34  }
 0x3fc   : > { %v15933_v46 = vmax.f32 %v5725_v37, %v5811_v58  ;;  %v5884_v17 = vmax.f32 %v5724_v10, %v5809_v15  ;;  %7016 = vperm.xlu0 %13519, %v15794_v3  }
 0x3fe   : > { %v12405_v0 = vpop.f32.mrb[22].mxu0  ;;  %v5914_v62 = vmax.f32 %v5882_v61, %v5884_v17  ;;  %v5915_v44 = vmax.f32 %v5883_v55, %v15933_v46 }
 0x3ff   : > { %v13091_v59 = vadd.f32 %v12405_v0, %v12055_v19  ;;  %v5585_v27 = vpop.f32.mrb[23].mxu0  ;;  %7020 = vperm.xlu1 %13518, %v15840_v49  }
 0x400   : > { %v13092_v33 = vadd.f32 %v5585_v27, %v1889_v36  ;;  %v12863_v11 = vpack.c.bf16 %v5914_v62, %v5913_v51  ;;  %7024 = vperm.xlu0 %13519, %v15803_v41  }
 0x401   : > { %v5696_v50 = vadd.f32 %v13091_v59, %v15755_v38 }
 0x402   : > { %v5695_v53 = vadd.f32 %v13092_v33, %v15755_v38  ;;  %12864 = vmatprep.subr.bf16.mxu1 %v12863_v11 }
 0x403   : > { %v5728_v48 = vmax.f32 %v5696_v50, 0.0  ;;  %12866 = vmatpush3.bf16.msra.mxu1 %v15787_v35  ;;  %7028 = vperm.xlu1 %13518, %v15849_v20   ;;  %v17436_v50 = vmov 7  }
 0x404   : > { %v5727_v24 = vmax.f32 %v5695_v53, 0.0  ;;  %13520 = vset.pattern.permute.xlu0 %v17435_v31 }
 0x405   : > { %v5814_v23 = vrot.slane %v5728_v48, 1  ;;  %7180 = vperm.xlu0 %13520, %v15814_v1  }
 0x406   : > { %v5812_v10 = vrot.slane %v5727_v24, 1 }
 0x407   : > { %v12058_v40 = vpop.f32.mrb[24].mxu1  ;;  %13521 = vset.pattern.permute.xlu1 %v17435_v31 }
 0x408   : > { %v5815_v43 = vsel %vm1939_vm3, %v5812_v10, %v5814_v23  ;;  %v1899_v12 = vpop.f32.mrb[25].mxu1  ;;  %v5813_v47 = vsel %vm1939_vm3, %v5810_v60, %v5812_v10  ;;  %7184 = vperm.xlu1 %13521, %v15775_v5  }
 0x409   : > { %v15949_v57 = vmax.f32 %v5727_v24, %v5815_v43  ;;  %v5886_v30 = vmax.f32 %v5726_v25, %v5813_v47  ;;  %7192 = vperm.xlu0 %13520, %v15831_v34  }
 0x40b   : > { %v5916_v35 = vmax.f32 %v5884_v17, %v5886_v30  ;;  %v5917_v4 = vmax.f32 %v15933_v46, %v15949_v57 }
 0x40c   : > { %v12408_v45 = vpop.f32.mrb[24].mxu0  ;;  %7188 = vperm.xlu1 %13521, %v15783_v6  }
 0x40d   : > { %v13093_v26 = vadd.f32 %v12408_v45, %v12058_v40  ;;  %v5595_v55 = vpop.f32.mrb[25].mxu0  ;;  %v12867_v16 = vpack.c.bf16 %v5916_v35, %v5915_v44  ;;  %7200 = vperm.xlu0 %13520, %v15840_v49  }
 0x40e   : > { %v13094_v61 = vadd.f32 %v5595_v55, %v1899_v12 }
 0x40f   : > { %v5698_v28 = vadd.f32 %v13093_v26, %v15755_v38  ;;  %12868 = vmatprep.subr.bf16.mxu1 %v12867_v16 }
 0x410   : > { %v5697_v18 = vadd.f32 %v13094_v61, %v15755_v38  ;;  %12870 = vmatpush3.bf16.msra.mxu1 %v15820_v32  ;;  %7196 = vperm.xlu1 %13521, %v15794_v3  }
 0x411   : > { %v5730_v51 = vmax.f32 %v5698_v28, 0.0  ;;  %v12411_v42 = vpop.f32.mrb[26].mxu0  ;;  %7208 = vperm.xlu0 %13520, %v15849_v20  }
 0x412   : > { %v5729_v25 = vmax.f32 %v5697_v18, 0.0  ;;  %v5605_v19 = vpop.f32.mrb[27].mxu0 }
 0x413   : > { %v5818_v37 = vrot.slane %v5730_v51, 1 }
 0x414   : > { %v5816_v36 = vrot.slane %v5729_v25, 1  ;;  %7204 = vperm.xlu1 %13521, %v15803_v41  }
 0x415   : > { %v12061_v60 = vpop.f32.mrb[26].mxu1  ;;  %13523 = vset.pattern.permute.xlu0 %v17436_v50 }
 0x416   : > { %v5819_v52 = vsel %vm1939_vm3, %v5816_v36, %v5818_v37  ;;  %v13095_v58 = vadd.f32 %v12411_v42, %v12061_v60  ;;  %v1909_v15 = vpop.f32.mrb[27].mxu1  ;;  %v5817_v46 = vsel %vm1939_vm3, %v5814_v23, %v5816_v36  ;;  %7362 = vperm.xlu0 %13523, %v15775_v5  }
 0x417   : > { %v5889_v32 = vmax.f32 %v5729_v25, %v5819_v52  ;;  %v13096_v17 = vadd.f32 %v5605_v19, %v1909_v15  ;;  %v5888_v0 = vmax.f32 %v5728_v48, %v5817_v46 }
 0x418   : > { %v5700_v62 = vadd.f32 %v13095_v58, %v15755_v38  ;;  %13522 = vset.pattern.permute.xlu1 %v17436_v50 }
 0x419   : > { %v5699_v44 = vadd.f32 %v13096_v17, %v15755_v38  ;;  %v5918_v59 = vmax.f32 %v5886_v30, %v5888_v0  ;;  %v5919_v27 = vmax.f32 %v15949_v57, %v5889_v32  ;;  %7358 = vperm.xlu1 %13522, %v15814_v1  }
 0x41a   : > { %v5732_v33 = vmax.f32 %v5700_v62, 0.0  ;;  %v12064_v11 = vpop.f32.mrb[28].mxu1  ;;  %7374 = vperm.xlu0 %13523, %v15794_v3  }
 0x41b   : > { %v5731_v53 = vmax.f32 %v5699_v44, 0.0  ;;  %v1919_v24 = vpop.f32.mrb[29].mxu1  ;;  %v12871_v23 = vpack.c.bf16 %v5918_v59, %v5917_v4 }
 0x41c   : > { %v5822_v10 = vrot.slane %v5732_v33, 1 }
 0x41d   : > { %v5820_v48 = vrot.slane %v5731_v53, 1  ;;  %12872 = vmatprep.subr.bf16.mxu1 %v12871_v23  ;;  %7366 = vperm.xlu1 %13522, %v15783_v6  }
 0x41e   : > { %12874 = vmatpush3.bf16.msra.mxu1 %v15826_v56  ;;  %7382 = vperm.xlu0 %13523, %v15803_v41  }
 0x41f   : > { %v5823_v40 = vsel %vm1939_vm3, %v5820_v48, %v5822_v10  ;;  %v5821_v43 = vsel %vm1939_vm3, %v5818_v37, %v5820_v48 }
 0x420   : > { %v15979_v12 = vmax.f32 %v5731_v53, %v5823_v40  ;;  %v5890_v47 = vmax.f32 %v5730_v51, %v5821_v43  ;;  %v5929_v40 = vld [vmem:[%s17053_s17] sm:$0xff]  ;;  %v5936_v43 = vld [vmem:[%s17053_s17 + $0x38] sm:$0xff] }
 0x421   : > { %7370 = vperm.xlu1 %13522, %v15831_v34  }
 0x422   : > { %v12414_v57 = vpop.f32.mrb[28].mxu0  ;;  %v5920_v30 = vmax.f32 %v5888_v0, %v5890_v47  ;;  %v5921_v35 = vmax.f32 %v5889_v32, %v15979_v12  ;;  %13524 = vset.pattern.permute.xlu0 %v17400_v39 }
 0x423   : > { %v13097_v4 = vadd.f32 %v12414_v57, %v12064_v11  ;;  %v5615_v45 = vpop.f32.mrb[29].mxu0  ;;  %7536 = vperm.xlu0 %13524, %v15814_v1   ;;  %v5937_v57 = vld [vmem:[%s17053_s17 + $0x40] sm:$0xff] }
 0x424   : > { %v13098_v56 = vadd.f32 %v5615_v45, %v1919_v24  ;;  %v12875_v26 = vpack.c.bf16 %v5920_v30, %v5919_v27  ;;  %v5940_v30 = vld [vmem:[%s17053_s17 + $0x58] sm:$0xff]  ;;  %v5941_v45 = vld [vmem:[%s17053_s17 + $0x60] sm:$0xff] }
 0x425   : > { %v5702_v55 = vadd.f32 %v13097_v4, %v15755_v38  ;;  %7378 = vperm.xlu1 %13522, %v15840_v49   ;;  %v5942_v4 = vld [vmem:[%s17053_s17 + $0x68] sm:$0xff] }
 0x426   : > { %v5701_v16 = vadd.f32 %v13098_v56, %v15755_v38  ;;  %12876 = vmatprep.subr.bf16.mxu1 %v12875_v26  ;;  %v5944_v56 = vld [vmem:[%s17053_s17 + $0x78] sm:$0xff]  ;;  %v5943_v26 = vld [vmem:[%s17053_s17 + $0x70] sm:$0xff] }
 0x427   : > { %v5734_v61 = vmax.f32 %v5702_v55, 0.0  ;;  %12878 = vmatpush3.bf16.msra.mxu1 %v15861_v14  ;;  %7548 = vperm.xlu0 %13524, %v15831_v34   ;;  %v6137_v55 = vpop.permute.xlu0 %6136 }
 0x428   : > { %v5733_v28 = vmax.f32 %v5701_v16, 0.0  ;;  %v6167_v16 = vmul.f32 0.0, %v6137_v55 }
 0x429   : > { %v5826_v18 = vrot.slane %v5734_v61, 1  ;;  %7386 = vperm.xlu1 %13522, %v15849_v20  }
 0x42a   : > { %v5824_v51 = vrot.slane %v5733_v28, 1 }
 0x42b   : > { %v12067_v42 = vpop.f32.mrb[30].mxu1  ;;  %7556 = vperm.xlu0 %13524, %v15840_v49  }
 0x42c   : > { %v5827_v25 = vsel %vm1939_vm3, %v5824_v51, %v5826_v18  ;;  %v1929_v19 = vpop.f32.mrb[31].mxu1  ;;  %v5825_v37 = vsel %vm1939_vm3, %v5822_v10, %v5824_v51 }
 0x42d   : > { %v5893_v36 = vmax.f32 %v5733_v28, %v5827_v25  ;;  %v5892_v60 = vmax.f32 %v5732_v33, %v5825_v37  ;;  %13525 = vset.pattern.permute.xlu1 %v17400_v39  ;;  %v6141_v28 = vpop.permute.xlu1 %6140 }
 0x42e   : > { %7540 = vperm.xlu1 %13525, %v15775_v5  }
 0x42f   : > { %v5922_v14 = vmax.f32 %v5890_v47, %v5892_v60  ;;  %v5923_v52 = vmax.f32 %v15979_v12, %v5893_v36  ;;  %7564 = vperm.xlu0 %13524, %v15849_v20   ;;  %v5935_v12 = vld [vmem:[%s17053_s17 + $0x30] sm:$0xff]  ;;  %v5938_v47 = vld [vmem:[%s17053_s17 + $0x48] sm:$0xff] }
 0x430   : > { %v12417_v1 = vpop.f32.mrb[30].mxu0 }
 0x431   : > { %v13099_v58 = vadd.f32 %v12417_v1, %v12067_v42  ;;  %v5625_v15 = vpop.f32.mrb[31].mxu0  ;;  %v12879_v46 = vpack.c.bf16 %v5922_v14, %v5921_v35  ;;  %v5939_v35 = vld [vmem:[%s17053_s17 + $0x50] sm:$0xff] }
 0x432   : > { %v13100_v32 = vadd.f32 %v5625_v15, %v1929_v19  ;;  %7544 = vperm.xlu1 %13525, %v15783_v6  }
 0x433   : > { %v5704_v17 = vadd.f32 %v13099_v58, %v15755_v38  ;;  %12880 = vmatprep.subr.bf16.mxu1 %v12879_v46  ;;  %13527 = vset.pattern.permute.xlu0 %v17376_v21 }
 0x434   : > { %v5703_v34 = vadd.f32 %v13100_v32, %v15755_v38  ;;  %12882 = vmatpush3.bf16.msra.mxu1 %v15885_v29 }
 0x435   : > { %v5736_v0 = vmax.f32 %v5704_v17, 0.0 }
 0x436   : > { %v5735_v62 = vmax.f32 %v5703_v34, 0.0  ;;  %7552 = vperm.xlu1 %13525, %v15794_v3   ;;  %v6175_v3 = vld [vmem:[%s17437_s2 + $0x8] sm:$0xff] }
 0x437   : > { %v5830_v49 = vrot.slane %v5736_v0, 1 }
 0x438   : > { %v5828_v44 = vrot.slane %v5735_v62, 1 }
 0x439   : > { %v5864_v59 = vsel %vm1939_vm3, %v5830_v49, 0.0 }
 0x43a   : > { %v5896_v27 = vmax.f32 %v5736_v0, %v5864_v59  ;;  %v5831_v33 = vsel %vm1939_vm3, %v5828_v44, %v5830_v49  ;;  %v5829_v5 = vsel %vm1939_vm3, %v5826_v18, %v5828_v44  ;;  %7560 = vperm.xlu1 %13525, %v15803_v41   ;;  %v5932_v41 = vld [vmem:[%s17053_s17 + $0x18] sm:$0xff]  ;;  %v6145_v18 = vpop.permute.xlu1 %6144 }
 0x43b   : > { %v5895_v38 = vmax.f32 %v5735_v62, %v5831_v33  ;;  %v5894_v11 = vmax.f32 %v5734_v61, %v5829_v5  ;;  %v6134_v61 = vld [vmem:[%s17437_s2] sm:$0xff] }
 0x43c   : > { %v5928_v20 = vmax.f32 %v5896_v27, 0.0 }
 0x43d   : > { %v5924_v29 = vmax.f32 %v5892_v60, %v5894_v11  ;;  %v5925_v53 = vmax.f32 %v5893_v36, %v5895_v38  ;;  %v5926_v24 = vmax.f32 %v5894_v11, %v5896_v27  ;;  %v5927_v23 = vmax.f32 %v5895_v38, 0.0  ;;  %v16102_v38 = vld [vmem:[%s17437_s2 + $0x10] sm:$0xff] }
 0x43e   : > { %13526 = vset.pattern.permute.xlu1 %v17376_v21  ;;  %v6153_v51 = vpop.permute.xlu1 %6152 }
 0x43f   : > { %v12883_v6 = vpack.c.bf16 %v5924_v29, %v5923_v52  ;;  %v12887_v10 = vpack.c.bf16 %v5926_v24, %v5925_v53  ;;  %v12891_v48 = vpack.c.bf16 %v5928_v20, %v5927_v23  ;;  %v6149_v52 = vpop.permute.xlu0 %6148 }
 0x441   : > { %12884 = vmatprep.subr.bf16.mxu1 %v12883_v6 }
 0x442   : > { %12886 = vmatpush3.bf16.msra.mxu1 %v15894_v9  ;;  %v5931_v9 = vld [vmem:[%s17053_s17 + $0x10] sm:$0xff]  ;;  %v16066_v42 = vpop.permute.xlu1 %6160 }
 0x443   : > { %12888 = vmatprep.subr.bf16.mxu1 %v12887_v10  ;;  %v6157_v58 = vpop.permute.xlu0 %6156 }
 0x446   : > { %12890 = vmatpush3.bf16.msra.mxu1 %v15911_v8  ;;  %v5934_v8 = vld [vmem:[%s17053_s17 + $0x28] sm:$0xff]  ;;  %v16068_v25 = vpop.permute.xlu1 %6088 }
 0x447   : > { %12892 = vmatprep.subr.bf16.mxu1 %v12891_v48  ;;  %v16084_v46 = vpop.permute.xlu0 %6164 }
 0x44a   : > { %12894 = vmatpush3.bf16.msra.mxu1 %v15926_v13  ;;  %v5933_v13 = vld [vmem:[%s17053_s17 + $0x20] sm:$0xff]  ;;  %v16070_v19 = vpop.permute.xlu1 %6098 }
 0x44b   : > { %12418 = vmatprep.subr.mxu1 %v6175_v3  ;;  %v16088_v17 = vpop.permute.xlu0 %6093 }
 0x44d   : > { %6010 = vmatmul.mubr.f32.vlgmr.msra.gmra.mrb[32].mxu1 %v5929_v40 }
 0x44e   : > { %6014 = vmatprep.mubr.f32.mxu1 %v5932_v41  ;;  %12419 = vmatpush3.msra.mxu1 %v6175_v3  ;;  %v16072_v37 = vpop.permute.xlu1 %6103 }
 0x44f   : > { %12432 = vmatprep.subr.mxu1 %v6134_v61  ;;  %v16092_v0 = vpop.permute.xlu0 %6108 }
 0x451   : > { %6015 = vmatmul.mubr.f32.gmra.mrb[34].mxu1 %v5931_v9 }
 0x452   : > { %6019 = vmatprep.mubr.f32.mxu1 %v5934_v8  ;;  %v16074_v36 = vpop.permute.xlu1 %6113 }
 0x453   : > { %v16104_v11 = vpop.permute.xlu0 %6118 }
 0x455   : > { %6020 = vmatmul.mubr.f32.gmra.mrb[36].mxu1 %v5933_v13 }
 0x456   : > { %6024 = vmatprep.mubr.f32.mxu1 %v5936_v43  ;;  %v16076_v60 = vpop.permute.xlu1 %6123 }
 0x457   : > { %v16128_v8 = vpop.permute.xlu0 %6461 }
 0x459   : > { %6025 = vmatmul.mubr.f32.gmra.mrb[38].mxu1 %v5935_v12 }
 0x45a   : > { %6029 = vmatprep.mubr.f32.mxu1 %v5938_v47  ;;  %v16078_v14 = vpop.permute.xlu1 %6465 }
 0x45d   : > { %6030 = vmatmul.mubr.f32.gmra.mrb[40].mxu1 %v5937_v57 }
 0x45e   : > { %6034 = vmatprep.mubr.f32.mxu1 %v5940_v30  ;;  %v16080_v1 = vpop.permute.xlu1 %6469 }
 0x461   : > { %6035 = vmatmul.mubr.f32.gmra.mrb[42].mxu1 %v5939_v35 }
 0x462   : > { %6039 = vmatprep.mubr.f32.mxu1 %v5942_v4  ;;  %v16082_v15 = vpop.permute.xlu1 %6477 }
 0x465   : > { %6040 = vmatmul.mubr.f32.gmra.mrb[44].mxu1 %v5941_v45 }
 0x466   : > { %6044 = vmatprep.mubr.f32.mxu1 %v5944_v56  ;;  %v16086_v32 = vpop.permute.xlu1 %6485 }
 0x469   : > { %6045 = vmatmul.mubr.f32.gmra.mrb[46].mxu1 %v5943_v26 }
 0x46a   : > { %12420 = vmatprep.mubr.msk.f32.mxu1 %vm6176_vm4, %v6167_v16  ;;  %v16090_v34 = vpop.permute.xlu1 %6642 }
 0x46e   : > { %v16096_v59 = vpop.permute.xlu1 %6650 }
 0x472   : > { %v16115_v3 = vpop.permute.xlu1 %6654 }
 0x476   : > { %v16142_v45 = vpop.permute.xlu1 %6662 }
 0x520   : > { %v11711_v62 = vpop.f32.mrb[32].mxu1 }
 0x521   : > { %v11712_v49 = vpop.f32.mrb[33].mxu1 }
 0x522   : > { %v16094_v44 = vadd.f32 %v11712_v49, %v11711_v62 }
 0x524   : > { %v6168_v27 = vmul.f32 %v16094_v44, %v6141_v28  ;;  %v11714_v33 = vpop.f32.mrb[34].mxu1  ;;  %v6065_v29 = vrot.slane %v16094_v44, 7  ;;  %v6436_v53 = vrot.slane %v16094_v44, 1  ;;  %v16147_v28 = vpop.permute.xlu0 %6473 }
 0x525   : > { %v11715_v5 = vpop.f32.mrb[35].mxu1 }
 0x526   : > { %v16106_v20 = vadd.f32 %v11715_v5, %v11714_v33  ;;  %12421 = vmatmul.mubr.msk.f32.vlgmr.msra.gmra.mrb[48].mxu1 %vm6176_vm4, %v6168_v27 }
 0x527   : > { %12433 = vmatpush3.msra.mxu1 %v6134_v61 }
 0x528   : > { %v6066_v24 = vrot.slane %v16106_v20, 7  ;;  %v11717_v23 = vpop.f32.mrb[36].mxu1  ;;  %v6169_v6 = vmul.f32 %v16106_v20, %v6145_v18  ;;  %v6437_v10 = vrot.slane %v16106_v20, 1  ;;  %12446 = vmatprep.subr.mxu1 %v16102_v38 }
 0x529   : > { %v11718_v48 = vpop.f32.mrb[37].mxu1 }
 0x52a   : > { %v16117_v40 = vadd.f32 %v11718_v48, %v11717_v23  ;;  %12423 = vmatprep.mubr.msk.f32.mxu1 %vm6176_vm4, %v6169_v6  ;;  %v16123_v41 = vsel %vm1939_vm3, %v6436_v53, %v6437_v10  ;;  %v16126_v9 = vsel %vm843_vm1, %v6065_v29, %v6066_v24  ;;  %v16172_v48 = vpop.permute.xlu0 %6481 }
 0x52c   : > { %v6068_v13 = vrot.slane %v16117_v40, 7  ;;  %v11720_v43 = vpop.f32.mrb[38].mxu1  ;;  %v6439_v12 = vrot.slane %v16117_v40, 1  ;;  %v6170_v47 = vmul.f32 %v16117_v40, %v6149_v52 }
 0x52d   : > { %v11721_v57 = vpop.f32.mrb[39].mxu1 }
 0x52e   : > { %v16133_v30 = vadd.f32 %v11721_v57, %v11720_v43  ;;  %v16136_v35 = vsel %vm1939_vm3, %v6437_v10, %v6439_v12  ;;  %12424 = vmatmul.mubr.msk.f32.gmra.mrb[50].mxu1 %vm6176_vm4, %v6170_v47  ;;  %v16140_v4 = vsel %vm843_vm1, %v6066_v24, %v6068_v13  ;;  %v16161_v24 = vpop.permute.xlu1 %6670 }
 0x530   : > { %v6070_v56 = vrot.slane %v16133_v30, 7  ;;  %v11723_v26 = vpop.f32.mrb[40].mxu1  ;;  %v6441_v55 = vrot.slane %v16133_v30, 1  ;;  %v6171_v16 = vmul.f32 %v16133_v30, %v6153_v51 }
 0x531   : > { %v11724_v61 = vpop.f32.mrb[41].mxu1 }
 0x532   : > { %v16149_v18 = vadd.f32 %v11724_v61, %v11723_v26  ;;  %v16152_v52 = vsel %vm1939_vm3, %v6439_v12, %v6441_v55  ;;  %12426 = vmatprep.mubr.msk.f32.mxu1 %vm6176_vm4, %v6171_v16  ;;  %v16156_v62 = vsel %vm843_vm1, %v6068_v13, %v6070_v56 }
 0x534   : > { %v6072_v49 = vrot.slane %v16149_v18, 7  ;;  %v11726_v27 = vpop.f32.mrb[42].mxu1  ;;  %v6443_v33 = vrot.slane %v16149_v18, 1  ;;  %v6172_v51 = vmul.f32 %v16149_v18, %v6157_v58 }
 0x535   : > { %v11727_v5 = vpop.f32.mrb[43].mxu1 }
 0x536   : > { %v16163_v23 = vadd.f32 %v11727_v5, %v11726_v27  ;;  %v16166_v6 = vsel %vm1939_vm3, %v6441_v55, %v6443_v33  ;;  %12427 = vmatmul.mubr.msk.f32.gmra.mrb[52].mxu1 %vm6176_vm4, %v6172_v51  ;;  %v16170_v10 = vsel %vm843_vm1, %v6070_v56, %v6072_v49  ;;  %v16187_v55 = vpop.permute.xlu1 %6824  ;;  %v6126_v51 = vmul.f32 0.0, %v16068_v25 }
 0x538   : > { %v6074_v13 = vrot.slane %v16163_v23, 7  ;;  %v11729_v43 = vpop.f32.mrb[44].mxu1  ;;  %v6445_v58 = vrot.slane %v16163_v23, 1  ;;  %v6173_v12 = vmul.f32 %v16163_v23, %v16066_v42 }
 0x539   : > { %v11730_v47 = vpop.f32.mrb[45].mxu1 }
 0x53a   : > { %v16178_v57 = vadd.f32 %v11730_v47, %v11729_v43  ;;  %v16181_v26 = vsel %vm1939_vm3, %v6443_v33, %v6445_v58  ;;  %12429 = vmatprep.mubr.msk.f32.mxu1 %vm6176_vm4, %v6173_v12  ;;  %v16185_v56 = vsel %vm843_vm1, %v6072_v49, %v6074_v13  ;;  %v6085_v33 = vsel %vm843_vm1, 0.0, %v6065_v29  ;;  %v6490_v43 = vpop.permute.xlu0 %6489 }
 0x53c   : > { %v6076_v16 = vrot.slane %v16178_v57, 7  ;;  %v11732_v61 = vpop.f32.mrb[46].mxu1  ;;  %v6447_v27 = vrot.slane %v16178_v57, 1  ;;  %v6174_v42 = vmul.f32 %v16178_v57, %v16084_v46  ;;  %v6127_v46 = vmul.f32 %v16088_v17, %v6085_v33 }
 0x53d   : > { %v11733_v5 = vpop.f32.mrb[47].mxu1 }
 0x53e   : > { %v16195_v12 = vadd.f32 %v11733_v5, %v11732_v61  ;;  %v16198_v49 = vsel %vm1939_vm3, %v6445_v58, %v6447_v27  ;;  %12430 = vmatmul.mubr.msk.f32.gmra.mrb[54].mxu1 %vm6176_vm4, %v6174_v42  ;;  %v16202_v47 = vsel %vm843_vm1, %v6074_v13, %v6076_v16  ;;  %v6128_v61 = vmul.f32 %v16070_v19, %v16126_v9  ;;  %v6681_v58 = vld [vmem:[%s17437_s2 + $0x18] sm:$0xff]  ;;  %v16213_v5 = vpop.permute.xlu1 %6828  ;;  %v6647_v19 = vpop.permute.xlu0 %6646 }
 0x53f   : > { %12434 = vmatprep.mubr.msk.f32.mxu1 %vm6176_vm4, %v6126_v51  ;;  %v6129_v42 = vmul.f32 %v16072_v37, %v16140_v4  ;;  %v6459_v37 = vsel %vm1939_vm3, 0.0, %v6436_v53  ;;  %v6494_v53 = vmul.f32 %v16080_v1, %v16136_v35  ;;  %v6497_v1 = vmul.f32 %v16172_v48, %v16181_v26 }
 0x540   : > { %v6638_v25 = vrot.slane %v16195_v12, 7  ;;  %v6449_v29 = vrot.slane %v16195_v12, 1  ;;  %v6674_v48 = vmul.f32 %v6647_v19, %v16126_v9  ;;  %v6678_v19 = vmul.f32 %v16142_v45, %v16185_v56 }
 0x541   : > { %v6852_v45 = vmul.f32 %v16106_v20, %v16187_v55 }
 0x542   : > { %v16218_v13 = vsel %vm1939_vm3, %v6447_v27, %v6449_v29  ;;  %12435 = vmatmul.mubr.msk.f32.vlgmr.msra.gmra.mrb[48].mxu1 %vm6176_vm4, %v6127_v46  ;;  %v16224_v17 = vsel %vm843_vm1, %v6076_v16, %v6638_v25  ;;  %v6130_v27 = vmul.f32 %v16092_v0, %v16156_v62  ;;  %v16234_v51 = vpop.permute.xlu1 %6836  ;;  %v6131_v16 = vmul.f32 %v16074_v36, %v16170_v10  ;;  %v6659_v46 = vpop.permute.xlu0 %6658 }
 0x543   : > { %12437 = vmatprep.mubr.msk.f32.mxu1 %vm6176_vm4, %v6128_v61  ;;  %12447 = vmatpush3.msra.mxu1 %v16102_v38  ;;  %v6132_v38 = vmul.f32 %v16104_v11, %v16185_v56  ;;  %v6133_v0 = vmul.f32 %v16076_v60, %v16202_v47  ;;  %v6492_v61 = vmul.f32 %v16128_v8, %v6459_v37 }
 0x544   : > { %12460 = vmatprep.subr.mxu1 %v6681_v58  ;;  %v6493_v11 = vmul.f32 %v16078_v14, %v16123_v41  ;;  %v6495_v8 = vmul.f32 %v16147_v28, %v16152_v52  ;;  %v6496_v14 = vmul.f32 %v16082_v15, %v16166_v6  ;;  %v6499_v37 = vmul.f32 %v6490_v43, %v16218_v13 }
 0x545   : > { %v6673_v15 = vmul.f32 %v16090_v34, %v6085_v33  ;;  %v6676_v34 = vmul.f32 %v16115_v3, %v16156_v62  ;;  %v6677_v33 = vmul.f32 %v6659_v46, %v16170_v10  ;;  %v6680_v3 = vmul.f32 %v16161_v24, %v16224_v17 }
 0x546   : > { %12438 = vmatmul.mubr.msk.f32.gmra.mrb[50].mxu1 %vm6176_vm4, %v6129_v42  ;;  %v16248_v42 = vpop.permute.xlu1 %6844  ;;  %v6667_v36 = vpop.permute.xlu0 %6666  ;;  %v6855_v55 = vmul.f32 %v16149_v18, %v16234_v51 }
 0x547   : > { %12440 = vmatprep.mubr.msk.f32.mxu1 %vm6176_vm4, %v6130_v27  ;;  %v6859_v27 = vld [vmem:[%s17437_s2 + $0x20] sm:$0xff] }
 0x54a   : > { %12441 = vmatmul.mubr.msk.f32.gmra.mrb[52].mxu1 %vm6176_vm4, %v6131_v16  ;;  %v7001_v60 = vpop.permute.xlu1 %7000  ;;  %v6821_v16 = vpop.permute.xlu0 %6820 }
 0x54b   : > { %12443 = vmatprep.mubr.msk.f32.mxu1 %vm6176_vm4, %v6132_v38  ;;  %v6498_v38 = vmul.f32 %v16086_v32, %v16198_v49  ;;  %v6675_v32 = vmul.f32 %v16096_v59, %v16140_v4  ;;  %v6851_v46 = vmul.f32 %v16094_v44, %v6821_v16 }
 0x54e   : > { %12444 = vmatmul.mubr.msk.f32.gmra.mrb[54].mxu1 %vm6176_vm4, %v6133_v0  ;;  %v6833_v28 = vpop.permute.xlu0 %6832 }
 0x54f   : > { %12448 = vmatprep.mubr.msk.f32.mxu1 %vm6176_vm4, %v6492_v61  ;;  %v7039_v61 = vld [vmem:[%s17437_s2 + $0x28] sm:$0xff]  ;;  %v6854_v24 = vmul.f32 %v16133_v30, %v6833_v28 }
 0x552   : > { %12449 = vmatmul.mubr.msk.f32.vlgmr.msra.gmra.mrb[48].mxu1 %vm6176_vm4, %v6493_v11  ;;  %v6841_v11 = vpop.permute.xlu0 %6840 }
 0x553   : > { %12451 = vmatprep.mubr.msk.f32.mxu1 %vm6176_vm4, %v6494_v53  ;;  %12461 = vmatpush3.msra.mxu1 %v6681_v58  ;;  %v7009_v58 = vpop.permute.xlu1 %7008  ;;  %v6679_v53 = vmul.f32 %v6667_v36, %v16202_v47  ;;  %v6853_v36 = vmul.f32 %v16117_v40, %v16213_v5  ;;  %v6856_v16 = vmul.f32 %v16163_v23, %v6841_v11 }
 0x554   : > { %12474 = vmatprep.subr.mxu1 %v6859_v27 }
 0x556   : > { %12452 = vmatmul.mubr.msk.f32.gmra.mrb[50].mxu1 %vm6176_vm4, %v6495_v8  ;;  %v6849_v59 = vpop.permute.xlu0 %6848 }
 0x557   : > { %12454 = vmatprep.mubr.msk.f32.mxu1 %vm6176_vm4, %v6496_v14  ;;  %v7013_v0 = vpop.permute.xlu1 %7012  ;;  %v7219_v14 = vld [vmem:[%s17437_s2 + $0x30] sm:$0xff]  ;;  %v6858_v28 = vmul.f32 %v16195_v12, %v6849_v59  ;;  %v16339_v59 = vsel %vm1939_vm3, %v6449_v29, 0.0 }
 0x55a   : > { %12455 = vmatmul.mubr.msk.f32.gmra.mrb[52].mxu1 %vm6176_vm4, %v6497_v1  ;;  %v7005_v8 = vpop.permute.xlu0 %7004 }
 0x55b   : > { %12457 = vmatprep.mubr.msk.f32.mxu1 %vm6176_vm4, %v6498_v38  ;;  %v7021_v43 = vpop.permute.xlu1 %7020  ;;  %v6857_v38 = vmul.f32 %v16178_v57, %v16248_v42  ;;  %v7397_v42 = vld [vmem:[%s17437_s2 + $0x38] sm:$0xff] }
 0x55e   : > { %12458 = vmatmul.mubr.msk.f32.gmra.mrb[54].mxu1 %vm6176_vm4, %v6499_v37  ;;  %v7017_v44 = vpop.permute.xlu0 %7016 }
 0x55f   : > { %12462 = vmatprep.mubr.msk.f32.mxu1 %vm6176_vm4, %v6673_v15  ;;  %v7031_v15 = vmul.f32 %v7001_v60, %v16123_v41  ;;  %v7034_v60 = vmul.f32 %v7013_v0, %v16166_v6  ;;  %v7035_v11 = vmul.f32 %v7017_v44, %v16181_v26 }
 0x562   : > { %12463 = vmatmul.mubr.msk.f32.vlgmr.msra.gmra.mrb[48].mxu1 %vm6176_vm4, %v6674_v48  ;;  %v7025_v37 = vpop.permute.xlu0 %7024 }
 0x563   : > { %12465 = vmatprep.mubr.msk.f32.mxu1 %vm6176_vm4, %v6675_v32  ;;  %12475 = vmatpush3.msra.mxu1 %v6859_v27  ;;  %v7029_v27 = vpop.permute.xlu1 %7028  ;;  %v7032_v32 = vmul.f32 %v7005_v8, %v16136_v35  ;;  %v7575_v8 = vld [vmem:[%s17437_s2 + $0x40] sm:$0xff]  ;;  %s11378_s2 = sshll.u32 %s13863_s6, 4  ;;  %s13716_s6 = smov [#allocation2]  }
 0x564   : > { %12488 = vmatprep.subr.mxu1 %v7039_v61  ;;  %s16994_s27 = scalar_lea.hbm %s17060_s24, %s11378_s2 }
 0x566   : > { %12466 = vmatmul.mubr.msk.f32.gmra.mrb[50].mxu1 %vm6176_vm4, %v6676_v34  ;;  %v7181_v48 = vpop.permute.xlu0 %7180 }
 0x567   : > { %12468 = vmatprep.mubr.msk.f32.mxu1 %vm6176_vm4, %v6677_v33  ;;  %v7185_v1 = vpop.permute.xlu1 %7184  ;;  %v7037_v33 = vmul.f32 %v7025_v37, %v16218_v13 }
 0x56a   : > { %12469 = vmatmul.mubr.msk.f32.gmra.mrb[52].mxu1 %vm6176_vm4, %v6678_v19  ;;  %v7193_v34 = vpop.permute.xlu0 %7192 }
 0x56b   : > { %12471 = vmatprep.mubr.msk.f32.mxu1 %vm6176_vm4, %v6679_v53  ;;  %v7189_v5 = vpop.permute.xlu1 %7188  ;;  %v7038_v53 = vmul.f32 %v7029_v27, %v16339_v59 }
 0x56c   : > { %v7213_v29 = vmul.f32 %v7189_v5, %v16156_v62 }
 0x56e   : > { %12472 = vmatmul.mubr.msk.f32.gmra.mrb[54].mxu1 %vm6176_vm4, %v6680_v3  ;;  %v7201_v0 = vpop.permute.xlu0 %7200  ;;  %v7211_v3 = vmul.f32 %v7181_v48, %v16126_v9  ;;  %v7214_v9 = vmul.f32 %v7193_v34, %v16170_v10 }
 0x56f   : > { %12476 = vmatprep.mubr.msk.f32.mxu1 %vm6176_vm4, %v6851_v46  ;;  %v7197_v51 = vpop.permute.xlu1 %7196  ;;  %v7212_v46 = vmul.f32 %v7185_v1, %v16140_v4  ;;  %v7216_v62 = vmul.f32 %v7201_v0, %v16202_v47  ;;  %v7178_v1 = vsel %vm843_vm1, %v6638_v25, 0.0 }
 0x570   : > { %v7215_v27 = vmul.f32 %v7197_v51, %v16185_v56 }
 0x572   : > { %12477 = vmatmul.mubr.msk.f32.vlgmr.msra.gmra.mrb[48].mxu1 %vm6176_vm4, %v6852_v45  ;;  %v7209_v45 = vpop.permute.xlu0 %7208 }
 0x573   : > { %12479 = vmatprep.mubr.msk.f32.mxu1 %vm6176_vm4, %v6853_v36  ;;  %12489 = vmatpush3.msra.mxu1 %v7039_v61  ;;  %v7033_v61 = vmul.f32 %v7009_v58, %v16152_v52  ;;  %v7205_v41 = vpop.permute.xlu1 %7204  ;;  %v7036_v58 = vmul.f32 %v7021_v43, %v16198_v49  ;;  %v7218_v56 = vmul.f32 %v7209_v45, %v7178_v1 }
 0x574   : > { %12502 = vmatprep.subr.mxu1 %v7219_v14 }
 0x576   : > { %12480 = vmatmul.mubr.msk.f32.gmra.mrb[50].mxu1 %vm6176_vm4, %v6854_v24  ;;  %v7363_v4 = vpop.permute.xlu0 %7362 }
 0x577   : > { %12482 = vmatprep.mubr.msk.f32.mxu1 %vm6176_vm4, %v6855_v55  ;;  %v7359_v19 = vpop.permute.xlu1 %7358  ;;  %v7390_v47 = vmul.f32 %v16117_v40, %v7363_v4 }
 0x578   : > { %v7389_v44 = vmul.f32 %v16106_v20, %v7359_v19 }
 0x57a   : > { %12483 = vmatmul.mubr.msk.f32.gmra.mrb[52].mxu1 %vm6176_vm4, %v6856_v16  ;;  %v7375_v24 = vpop.permute.xlu0 %7374 }
 0x57b   : > { %12485 = vmatprep.mubr.msk.f32.mxu1 %vm6176_vm4, %v6857_v38  ;;  %v7367_v43 = vpop.permute.xlu1 %7366  ;;  %v7393_v20 = vmul.f32 %v16163_v23, %v7375_v24 }
 0x57e   : > { %12486 = vmatmul.mubr.msk.f32.gmra.mrb[54].mxu1 %vm6176_vm4, %v6858_v28  ;;  %v7383_v25 = vpop.permute.xlu0 %7382 }
 0x57f   : > { %12490 = vmatprep.mubr.msk.f32.mxu1 %vm6176_vm4, %v7031_v15  ;;  %v7371_v36 = vpop.permute.xlu1 %7370 }
 0x580   : > { %v7392_v5 = vmul.f32 %v16149_v18, %v7371_v36 }
 0x582   : > { %12491 = vmatmul.mubr.msk.f32.vlgmr.msra.gmra.mrb[48].mxu1 %vm6176_vm4, %v7032_v32  ;;  %v7537_v38 = vpop.permute.xlu0 %7536 }
 0x583   : > { %12493 = vmatprep.mubr.msk.f32.mxu1 %vm6176_vm4, %v7033_v61  ;;  %12503 = vmatpush3.msra.mxu1 %v7219_v14  ;;  %v7217_v14 = vmul.f32 %v7205_v41, %v16224_v17  ;;  %v7379_v10 = vpop.permute.xlu1 %7378  ;;  %v7391_v17 = vmul.f32 %v16133_v30, %v7367_v43  ;;  %v7395_v30 = vmul.f32 %v16195_v12, %v7383_v25  ;;  %v11329_v41 = vld [vmem:[%s17439_s28] ss:$0 sm:$0xff]  ;;  %s17442_s28 = sld [smem:[#allocation71_spill]] }
 0x584   : > { %12516 = vmatprep.subr.mxu1 %v7397_v42  ;;  %v7394_v40 = vmul.f32 %v16178_v57, %v7379_v10  ;;  %v7567_v28 = vmul.f32 %v7537_v38, %v16136_v35 }
 0x586   : > { %12494 = vmatmul.mubr.msk.f32.gmra.mrb[50].mxu1 %vm6176_vm4, %v7034_v60  ;;  %v7549_v57 = vpop.permute.xlu0 %7548 }
 0x587   : > { %12496 = vmatprep.mubr.msk.f32.mxu1 %vm6176_vm4, %v7035_v11  ;;  %v7387_v55 = vpop.permute.xlu1 %7386  ;;  %v7570_v12 = vmul.f32 %v7549_v57, %v16181_v26  ;;  %v7784_v26 = vld [vmem:[%s17054_s18] sm:$0xff] }
 0x588   : > { %v7396_v37 = vmul.f32 0.0, %v7387_v55 }
 0x589   : > { %s748_s25 = scalar_lea.vmem %s17442_s28, %s14126_s8  ;;  %s13644_s28 = sshll.u32 %s13716_s6, 4  ;;  %s13645_s28 = int_to_ptr.vmem [resolvable:$false] %s13644_s28 }
 0x58a   : > { %12497 = vmatmul.mubr.msk.f32.gmra.mrb[52].mxu1 %vm6176_vm4, %v7036_v58  ;;  %v7557_v35 = vpop.permute.xlu0 %7556 }
 0x58b   : > { %12499 = vmatprep.mubr.msk.f32.mxu1 %vm6176_vm4, %v7037_v33  ;;  %v7541_v16 = vpop.permute.xlu1 %7540 }
 0x58c   : > { %v7568_v23 = vmul.f32 %v7541_v16, %v16152_v52  ;;  %v7572_v52 = vmul.f32 %v7557_v35, %v16218_v13  ;;  %v7869_v13 = vld [vmem:[%s17438_s10 + $0x8] sm:$0xff] }
 0x58d   : > { %7904 = vperm.xlu0 %13527, %v7869_v13  }
 0x58e   : > { %12500 = vmatmul.mubr.msk.f32.gmra.mrb[54].mxu1 %vm6176_vm4, %v7038_v53  ;;  %v7565_v61 = vpop.permute.xlu0 %7564 }
 0x58f   : > { %12504 = vmatprep.mubr.msk.f32.mxu1 %vm6176_vm4, %v7211_v3  ;;  %v7545_v18 = vpop.permute.xlu1 %7544 }
 0x590   : > { %v7569_v15 = vmul.f32 %v7545_v18, %v16166_v6 }
 0x591   : > { %13529 = vset.pattern.permute.xlu0 %v17431_v7 }
 0x592   : > { %12505 = vmatmul.mubr.msk.f32.vlgmr.msra.gmra.mrb[48].mxu1 %vm6176_vm4, %v7212_v46 }
 0x593   : > { %12507 = vmatprep.mubr.msk.f32.mxu1 %vm6176_vm4, %v7213_v29  ;;  %12517 = vmatpush3.msra.mxu1 %v7397_v42  ;;  %v7553_v51 = vpop.permute.xlu1 %7552  ;;  %v7574_v42 = vmul.f32 0.0, %v7565_v61 }
 0x594   : > { %12530 = vmatprep.subr.mxu1 %v7575_v8  ;;  %v7571_v48 = vmul.f32 %v7553_v51, %v16198_v49  ;;  %v7868_v49 = vld [vmem:[%s17438_s10] sm:$0xff] }
 0x595   : > { %7900 = vperm.xlu1 %13526, %v7868_v49   ;;  %8082 = vperm.xlu0 %13529, %v7868_v49  }
 0x596   : > { %12508 = vmatmul.mubr.msk.f32.gmra.mrb[50].mxu1 %vm6176_vm4, %v7214_v9 }
 0x597   : > { %12510 = vmatprep.mubr.msk.f32.mxu1 %vm6176_vm4, %v7215_v27  ;;  %v7561_v32 = vpop.permute.xlu1 %7560 }
 0x598   : > { %v7573_v6 = vmul.f32 %v7561_v32, %v16339_v59 }
 0x599   : > { %13528 = vset.pattern.permute.xlu1 %v17377_v54  ;;  %13532 = vset.pattern.permute.xlu0 %v17432_v63 }
 0x59a   : > { %12511 = vmatmul.mubr.msk.f32.gmra.mrb[52].mxu1 %vm6176_vm4, %v7216_v62  ;;  %7881 = vperm.xlu1 %13528, %v7868_v49  }
 0x59b   : > { %12513 = vmatprep.mubr.msk.f32.mxu1 %vm6176_vm4, %v7217_v14  ;;  %8187 = vperm.xlu0 %13532, %v7869_v13  }
 0x59e   : > { %12514 = vmatmul.mubr.msk.f32.gmra.mrb[54].mxu1 %vm6176_vm4, %v7218_v56  ;;  %7886 = vperm.xlu1 %13528, %v7869_v13  }
 0x59f   : > { %12518 = vmatprep.mubr.msk.f32.mxu1 %vm6176_vm4, %v7389_v44  ;;  %13534 = vset.pattern.permute.xlu0 %v17434_v22 }
 0x5a0   : > { %8379 = vperm.xlu0 %13534, %v7868_v49  }
 0x5a2   : > { %12519 = vmatmul.mubr.msk.f32.vlgmr.msra.gmra.mrb[48].mxu1 %vm6176_vm4, %v7390_v47  ;;  %13530 = vset.pattern.permute.xlu1 %v17431_v7 }
 0x5a3   : > { %12521 = vmatprep.mubr.msk.f32.mxu1 %vm6176_vm4, %v7391_v17  ;;  %12531 = vmatpush3.msra.mxu1 %v7575_v8 }
 0x5a4   : > { %8086 = vperm.xlu1 %13530, %v7869_v13   ;;  %13537 = vset.pattern.permute.xlu0 %v17435_v31 }
 0x5a5   : > { %8480 = vperm.xlu0 %13537, %v7869_v13  }
 0x5a6   : > { %12522 = vmatmul.mubr.msk.f32.gmra.mrb[50].mxu1 %vm6176_vm4, %v7392_v5 }
 0x5a7   : > { %12524 = vmatprep.mubr.msk.f32.mxu1 %vm6176_vm4, %v7393_v20 }
 0x5a8   : > { %13531 = vset.pattern.permute.xlu1 %v17432_v63 }
 0x5a9   : > { %8183 = vperm.xlu1 %13531, %v7868_v49   ;;  %13539 = vset.pattern.permute.xlu0 %v17400_v39 }
 0x5aa   : > { %12525 = vmatmul.mubr.msk.f32.gmra.mrb[52].mxu1 %vm6176_vm4, %v7394_v40  ;;  %8670 = vperm.xlu0 %13539, %v7868_v49  }
 0x5ab   : > { %12527 = vmatprep.mubr.msk.f32.mxu1 %vm6176_vm4, %v7395_v30 }
 0x5ad   : > { %13533 = vset.pattern.permute.xlu1 %v17433_v2 }
 0x5ae   : > { %12528 = vmatmul.mubr.msk.f32.gmra.mrb[54].mxu1 %vm6176_vm4, %v7396_v37  ;;  %8278 = vperm.xlu1 %13533, %v7868_v49  }
 0x5af   : > { %12532 = vmatprep.mubr.msk.f32.mxu1 %vm6176_vm4, %v7567_v28  ;;  %13542 = vset.pattern.permute.xlu0 %v17377_v54 }
 0x5b2   : > { %12533 = vmatmul.mubr.msk.f32.vlgmr.msra.gmra.mrb[48].mxu1 %vm6176_vm4, %v7568_v23  ;;  %8282 = vperm.xlu1 %13533, %v7869_v13  }
 0x5b3   : > { %12535 = vmatprep.mubr.msk.f32.mxu1 %vm6176_vm4, %v7569_v15 }
 0x5b6   : > { %12536 = vmatmul.mubr.msk.f32.gmra.mrb[50].mxu1 %vm6176_vm4, %v7570_v12  ;;  %13535 = vset.pattern.permute.xlu1 %v17434_v22 }
 0x5b7   : > { %12538 = vmatprep.mubr.msk.f32.mxu1 %vm6176_vm4, %v7571_v48  ;;  %8383 = vperm.xlu1 %13535, %v7869_v13  }
 0x5ba   : > { %12539 = vmatmul.mubr.msk.f32.gmra.mrb[52].mxu1 %vm6176_vm4, %v7572_v52 }
 0x5bb   : > { %12541 = vmatprep.mubr.msk.f32.mxu1 %vm6176_vm4, %v7573_v6  ;;  %13536 = vset.pattern.permute.xlu1 %v17435_v31 }
 0x5bc   : > { %8476 = vperm.xlu1 %13536, %v7868_v49  }
 0x5be   : > { %12542 = vmatmul.mubr.msk.f32.gmra.mrb[54].mxu1 %vm6176_vm4, %v7574_v42 }
 0x5bf   : > { %12560 = vmatprep.mubr.msk.f32.mxu1 %vm7786_vm5, %v7784_v26 }
 0x5c0   : > { %13538 = vset.pattern.permute.xlu1 %v17436_v50 }
 0x5c1   : > { %8573 = vperm.xlu1 %13538, %v7868_v49  }
 0x5c5   : > { %8577 = vperm.xlu1 %13538, %v7869_v13  }
 0x5c9   : > { %13540 = vset.pattern.permute.xlu1 %v17400_v39 }
 0x5ca   : > { %8674 = vperm.xlu1 %13540, %v7869_v13  }
 0x5ce   : > { %13541 = vset.pattern.permute.xlu1 %v17376_v21 }
 0x685   : > { %v12534_v60 = vpop.f32.mrb[48].mxu1 }
 0x686   : > { %v7721_v11 = vadd.f32 %v12534_v60, %v11329_v41  ;;  %v7666_v34 = vpop.f32.mrb[49].mxu1 }
 0x687   : > { %v7720_v58 = vadd.f32 %v11329_v41, %v7666_v34 }
 0x688   : > { %v7729_v33 = vmax.f32 %v7721_v11, 0.0 }
 0x689   : > { %v7728_v59 = vmax.f32 %v7720_v58, 0.0  ;;  %v12537_v19 = vpop.f32.mrb[50].mxu1 }
 0x68a   : > { %v7745_v0 = vrot.slane %v7729_v33, 1  ;;  %v7723_v53 = vadd.f32 %v12537_v19, %v11329_v41  ;;  %v7676_v3 = vpop.f32.mrb[51].mxu1  ;;  %v7909_v19 = vld [vmem:[%s17440_s30 + $0x10] sm:$0xff] }
 0x68b   : > { %v7744_v43 = vrot.slane %v7728_v59, 1  ;;  %v7722_v46 = vadd.f32 %v11329_v41, %v7676_v3  ;;  %v7891_v3 = vld [vmem:[%s17440_s30] sm:$0xff] }
 0x68c   : > { %v7731_v29 = vmax.f32 %v7723_v53, 0.0 }
 0x68d   : > { %v7746_v8 = vsel %vm1939_vm3, %v7744_v43, %v7745_v0  ;;  %v7730_v45 = vmax.f32 %v7722_v46, 0.0  ;;  %v12540_v9 = vpop.f32.mrb[52].mxu1  ;;  %v7892_v43 = vld [vmem:[%s17440_s30 + $0x8] sm:$0xff] }
 0x68e   : > { %v7768_v27 = vmax.f32 %v7728_v59, %v7746_v8  ;;  %v7749_v36 = vrot.slane %v7731_v29, 1  ;;  %v7725_v4 = vadd.f32 %v12540_v9, %v11329_v41  ;;  %v7686_v62 = vpop.f32.mrb[53].mxu1  ;;  %v7785_v59 = vld [vmem:[%s17054_s18 + $0x8] sm:$0xff]  ;;  %v12915_v46 = vpack.c.bf16 %v7892_v43, %v7891_v3  ;;  %v8485_v3 = vld [vmem:[%s17440_s30 + $0x60] sm:$0xff] }
 0x68f   : > { %v7747_v14 = vrot.slane %v7730_v45, 1  ;;  %v7724_v1 = vadd.f32 %v11329_v41, %v7686_v62  ;;  %v8486_v43 = vld [vmem:[%s17440_s30 + $0x68] sm:$0xff] }
 0x690   : > { %v7733_v10 = vmax.f32 %v7725_v4, 0.0 }
 0x691   : > { %v7748_v56 = vsel %vm1939_vm3, %v7745_v0, %v7747_v14  ;;  %v7750_v44 = vsel %vm1939_vm3, %v7747_v14, %v7749_v36  ;;  %v7732_v24 = vmax.f32 %v7724_v1, 0.0  ;;  %v12543_v47 = vpop.f32.mrb[54].mxu1  ;;  %v7910_v0 = vld [vmem:[%s17440_s30 + $0x18] sm:$0xff] }
 0x692   : > { %v7769_v17 = vmax.f32 %v7729_v33, %v7748_v56  ;;  %v7770_v55 = vmax.f32 %v7730_v45, %v7750_v44  ;;  %v7753_v25 = vrot.slane %v7733_v10, 1  ;;  %v7727_v5 = vadd.f32 %v12543_v47, %v11329_v41  ;;  %v7696_v20 = vpop.f32.mrb[55].mxu1  ;;  %v8092_v47 = vld [vmem:[%s17440_s30 + $0x28] sm:$0xff] }
 0x693   : > { %v7751_v16 = vrot.slane %v7732_v24, 1  ;;  %v7726_v40 = vadd.f32 %v11329_v41, %v7696_v20  ;;  %v12911_v53 = vpack.c.bf16 %v7910_v0, %v7909_v19  ;;  %v7905_v20 = vpop.permute.xlu0 %7904 }
 0x694   : > { %v7777_v30 = vmax.f32 %v7769_v17, %v7770_v55  ;;  %v7735_v38 = vmax.f32 %v7727_v5, 0.0  ;;  %v7776_v37 = vmax.f32 %v7768_v27, %v7769_v17 }
 0x695   : > { %v7752_v28 = vsel %vm1939_vm3, %v7749_v36, %v7751_v16  ;;  %v7754_v18 = vsel %vm1939_vm3, %v7751_v16, %v7753_v25  ;;  %v7734_v23 = vmax.f32 %v7726_v40, 0.0 }
 0x696   : > { %v7771_v15 = vmax.f32 %v7731_v29, %v7752_v28  ;;  %v7772_v57 = vmax.f32 %v7732_v24, %v7754_v18  ;;  %v7757_v51 = vrot.slane %v7735_v38, 1  ;;  %v12895_v12 = vpack.c.bf16 %v7777_v30, %v7776_v37  ;;  %v7901_v29 = vpop.permute.xlu1 %7900  ;;  %v8091_v24 = vld [vmem:[%s17440_s30 + $0x20] sm:$0xff] }
 0x697   : > { %v7755_v48 = vrot.slane %v7734_v23, 1  ;;  %v12919_v28 = vpack.c.bf16 %v8092_v47, %v8091_v24 }
 0x698   : > { %v7779_v35 = vmax.f32 %v7771_v15, %v7772_v57  ;;  %v7767_v32 = vsel %vm1939_vm3, %v7757_v51, 0.0  ;;  %12896 = vmatprep.subr.bf16.mxu1 %v12895_v12  ;;  %v7778_v52 = vmax.f32 %v7770_v55, %v7771_v15 }
 0x699   : > { %v7775_v6 = vmax.f32 %v7735_v38, %v7767_v32  ;;  %v7756_v61 = vsel %vm1939_vm3, %v7753_v25, %v7755_v48  ;;  %v7758_v42 = vsel %vm1939_vm3, %v7755_v48, %v7757_v51  ;;  %12898 = vmatpush3.bf16.msra.mxu1 %v12895_v12  ;;  %v8193_v51 = vld [vmem:[%s17440_s30 + $0x38] sm:$0xff]  ;;  %v8083_v48 = vpop.permute.xlu0 %8082 }
 0x69a   : > { %v7773_v26 = vmax.f32 %v7733_v10, %v7756_v61  ;;  %v7774_v49 = vmax.f32 %v7734_v23, %v7758_v42  ;;  %v12899_v13 = vpack.c.bf16 %v7779_v35, %v7778_v52  ;;  %v7882_v25 = vpop.permute.xlu1 %7881  ;;  %v8287_v61 = vld [vmem:[%s17440_s30 + $0x40] sm:$0xff]  ;;  %v8288_v42 = vld [vmem:[%s17440_s30 + $0x48] sm:$0xff] }
 0x69b   : > { %v7783_v41 = vmax.f32 %v7775_v6, 0.0 }
 0x69c   : > { %v7781_v60 = vmax.f32 %v7773_v26, %v7774_v49  ;;  %v7782_v11 = vmax.f32 %v7774_v49, %v7775_v6  ;;  %12900 = vmatprep.subr.bf16.mxu1 %v12899_v13  ;;  %v7780_v34 = vmax.f32 %v7772_v57, %v7773_v26  ;;  %v8192_v57 = vld [vmem:[%s17440_s30 + $0x30] sm:$0xff] }
 0x69d   : > { %12902 = vmatpush3.bf16.msra.mxu1 %v12899_v13  ;;  %v12923_v32 = vpack.c.bf16 %v8193_v51, %v8192_v57 }
 0x69e   : > { %v12903_v58 = vpack.c.bf16 %v7781_v60, %v7780_v34  ;;  %v12907_v33 = vpack.c.bf16 %v7783_v41, %v7782_v11  ;;  %v7887_v15 = vpop.permute.xlu1 %7886  ;;  %v12927_v41 = vpack.c.bf16 %v8288_v42, %v8287_v61  ;;  %v8388_v11 = vld [vmem:[%s17440_s30 + $0x50] sm:$0xff]  ;;  %v8389_v34 = vld [vmem:[%s17440_s30 + $0x58] sm:$0xff] }
 0x69f   : > { %v12931_v19 = vpack.c.bf16 %v8389_v34, %v8388_v11 }
 0x6a0   : > { %12904 = vmatprep.subr.bf16.mxu1 %v12903_v58 }
 0x6a1   : > { %12906 = vmatpush3.bf16.msra.mxu1 %v12903_v58 }
 0x6a2   : > { %12908 = vmatprep.subr.bf16.mxu1 %v12907_v33  ;;  %v8087_v6 = vpop.permute.xlu1 %8086 }
 0x6a5   : > { %12910 = vmatpush3.bf16.msra.mxu1 %v12907_v33  ;;  %v8188_v33 = vpop.permute.xlu0 %8187 }
 0x6a6   : > { %12912 = vmatprep.subr.bf16.mxu1 %v12911_v53  ;;  %v8184_v49 = vpop.permute.xlu1 %8183 }
 0x6a8   : > { %12561 = vmatmul.mubr.msk.f32.vlgmr.msra.gmra.mrb[56].mxu1 %vm7786_vm5, %v7785_v59 }
 0x6a9   : > { %12914 = vmatpush3.bf16.msra.mxu1 %v12911_v53 }
 0x6aa   : > { %12916 = vmatprep.subr.bf16.mxu1 %v12915_v46  ;;  %v8279_v58 = vpop.permute.xlu1 %8278 }
 0x6ae   : > { %v8283_v53 = vpop.permute.xlu1 %8282 }
 0x77b   : > { %v16448_v8 = vpop.f32.mrb[56].mxu1 }
 0x77c   : > { %v7874_v45 = vrot.slane %v16448_v8, 3  ;;  %v7894_v9 = vrot.slane %v16448_v8, 4  ;;  %v7859_v27 = vpop.f32.mrb[57].mxu1  ;;  %v8373_v36 = vrot.slane %v16448_v8, 1  ;;  %v8076_v62 = vrot.slane %v16448_v8, 5 }
 0x77d   : > { %v8372_v4 = vrot.slane %v7859_v27, 1  ;;  %v8075_v14 = vrot.slane %v7859_v27, 5  ;;  %v7893_v1 = vrot.slane %v7859_v27, 4  ;;  %v7873_v10 = vrot.slane %v7859_v27, 3 }
 0x77e   : > { %v8177_v56 = vrot.slane %v16448_v8, 7  ;;  %v8176_v17 = vrot.slane %v7859_v27, 7  ;;  %v8285_v0 = vmul.f32 %v8279_v58, %v7859_v27  ;;  %v8668_v57 = vsel %vm8074_vm6, %v8076_v62, 0.0 }
 0x77f   : > { %v16458_v44 = vsel %vm8074_vm6, %v8075_v14, %v8076_v62  ;;  %v8374_v55 = vsel %vm1939_vm3, %v8372_v4, %v8373_v36  ;;  %v7898_v5 = vsel %vm1385_vm0, 0.0, %v7893_v1  ;;  %v16473_v40 = vsel %vm1385_vm0, %v7893_v1, %v7894_v9 }
 0x780   : > { %v7907_v16 = vmul.f32 %v7901_v29, %v7898_v5  ;;  %v7878_v30 = vsel %vm7872_vm7, 0.0, %v7873_v10  ;;  %v16479_v38 = vsel %vm7872_vm7, %v7873_v10, %v7874_v45  ;;  %v7908_v37 = vmul.f32 %v7905_v20, %v16473_v40  ;;  %v8582_v10 = vld [vmem:[%s17440_s30 + $0x70] sm:$0xff]  ;;  %v8680_v5 = vld [vmem:[%s17440_s30 + $0x88] sm:$0xff] }
 0x781   : > { %v7889_v18 = vmul.f32 %v7882_v25, %v7878_v30  ;;  %v8178_v23 = vsel %vm843_vm1, %v8176_v17, %v8177_v56  ;;  %v8080_v12 = vsel %vm8074_vm6, 0.0, %v8075_v14  ;;  %v7890_v35 = vmul.f32 %v7887_v15, %v16479_v38  ;;  %v8384_v14 = vpop.permute.xlu1 %8383  ;;  %v8583_v56 = vld [vmem:[%s17440_s30 + $0x78] sm:$0xff]  ;;  %v8679_v25 = vld [vmem:[%s17440_s30 + $0x80] sm:$0xff] }
 0x782   : > { %12567 = vmatprep.mubr.msk.f32.mxu1 %vm7911_vm8, %v7907_v16  ;;  %v8089_v52 = vmul.f32 %v8083_v48, %v8080_v12  ;;  %v8181_v26 = vsel %vm843_vm1, 0.0, %v8176_v17  ;;  %v8090_v13 = vmul.f32 %v8087_v6, %v16458_v44  ;;  %v8191_v59 = vmul.f32 %v8188_v33, %v8178_v23 }
 0x783   : > { %12568 = vmatmul.mubr.msk.f32.vlgmr.msra.gmra.mrb[58].mxu1 %vm7911_vm8, %v7908_v37  ;;  %v8190_v60 = vmul.f32 %v8184_v49, %v8181_v26  ;;  %v8286_v29 = vmul.f32 %v16448_v8, %v8283_v53  ;;  %v12935_v4 = vpack.c.bf16 %v8486_v43, %v8485_v3  ;;  %v8377_v1 = vsel %vm1939_vm3, %v8373_v36, 0.0  ;;  %v11350_v8 = vld [vmem:[%s17441_s9] ss:$0 sm:$0xff]  ;;  %s10889_s9 = sshll.u32 %s740_s0, 4  ;;  %s16996_s9 = int_to_ptr.vmem [resolvable:$true] %s10889_s9 }
 0x784   : > { %12918 = vmatpush3.bf16.msra.mxu1 %v12915_v46  ;;  %12574 = vmatprep.mubr.msk.f32.mxu1 %vm7911_vm8, %v7889_v18  ;;  %v8380_v46 = vpop.permute.xlu0 %8379  ;;  %v8387_v47 = vmul.f32 %v8384_v14, %v8377_v1  ;;  %v12939_v17 = vpack.c.bf16 %v8583_v56, %v8582_v10  ;;  %v8474_v36 = vsel %vm7872_vm7, %v7874_v45, 0.0  ;;  %v8571_v45 = vsel %vm1385_vm0, %v7894_v9, 0.0  ;;  %v9627_v3 = vld [vmem:[%s17052_s16] sm:$0xf]  ;;  %s13640_s29 = scalar_lea.vmem %s16996_s9, 16  ;;  %p13647_p0 = scmp.lt.s32.totalorder %s16996_s9, %s13645_s28 }
 0x785   : > { %12920 = vmatprep.subr.bf16.mxu1 %v12919_v28  ;;  %v8386_v27 = vmul.f32 %v8380_v46, %v8374_v55  ;;  %v8477_v24 = vpop.permute.xlu1 %8476  ;;  %v13713_v12 = vmov 0.0|0.0   ;;  %v13715_v9 = vmov 0.0   ;;  %p13641_p11 = scmp.ne.s32.totalorder %s16996_s9, %s13640_s29 }
 0x786   : > { %v8483_v55 = vmul.f32 %v8477_v24, %v16479_v38  ;;  %v12943_v38 = vpack.c.bf16 %v8680_v5, %v8679_v25 }
 0x787   : > { %p13642_p12 = pnand %p13641_p11, %p13880_p5 }
 0x788   : > { %v8481_v20 = vpop.permute.xlu0 %8480 }
 0x789   : > { %v8574_v16 = vpop.permute.xlu1 %8573  ;;  %v8484_v30 = vmul.f32 %v8481_v20, %v8474_v36  ;;  %v9209_v20 = vld [vmem:[%s17047_s11 + $0x40] sm:$0xff]  ;;  %p13643_p13 = pneg %p13642_p12 }
 0x78a   : > { %v8580_v37 = vmul.f32 %v8574_v16, %v16473_v40  ;;  %v9210_v16 = vld [vmem:[%s17047_s11 + $0x48] sm:$0xff] }
 0x78b   : > { %12575 = vmatmul.mubr.msk.f32.vlgmr.msra.gmra.mrb[58].mxu1 %vm7911_vm8, %v7890_v35 }
 0x78c   : > { %12922 = vmatpush3.bf16.msra.mxu1 %v12919_v28  ;;  %12581 = vmatprep.mubr.msk.f32.mxu1 %vm7911_vm8, %v8089_v52  ;;  %v8671_v28 = vpop.permute.xlu0 %8670 }
 0x78d   : > { %12924 = vmatprep.subr.bf16.mxu1 %v12923_v32  ;;  %v8578_v18 = vpop.permute.xlu1 %8577  ;;  %v8677_v15 = vmul.f32 %v8671_v28, %v16458_v44  ;;  %v8869_v44 = vld [vmem:[%s17049_s13] sm:$0xf]  ;;  %v9294_v28 = vld [vmem:[%s17047_s11 + $0x58] sm:$0xff] }
 0x78e   : > { %v8581_v23 = vmul.f32 %v8578_v18, %v8571_v45  ;;  %8887 = vperm.xlu1 %13541, %v8869_v44   ;;  %8876 = vperm.xlu0 %13542, %v8869_v44   ;;  %v9293_v45 = vld [vmem:[%s17047_s11 + $0x50] sm:$0xff] }
 0x791   : > { %v8675_v40 = vpop.permute.xlu1 %8674 }
 0x792   : > { %v8678_v51 = vmul.f32 %v8675_v40, %v8668_v57  ;;  %13543 = vset.pattern.permute.xlu1 %v17431_v7  ;;  %13545 = vset.pattern.permute.xlu0 %v17433_v2  ;;  %v9374_v57 = vld [vmem:[%s17047_s11 + $0x60] sm:$0xff] }
 0x793   : > { %12582 = vmatmul.mubr.msk.f32.vlgmr.msra.gmra.mrb[58].mxu1 %vm7911_vm8, %v8090_v13  ;;  %9043 = vperm.xlu1 %13543, %v8869_v44  }
 0x794   : > { %12926 = vmatpush3.bf16.msra.mxu1 %v12923_v32  ;;  %12588 = vmatprep.mubr.msk.f32.mxu1 %vm7911_vm8, %v8190_v60 }
 0x795   : > { %12928 = vmatprep.subr.bf16.mxu1 %v12927_v41  ;;  %9205 = vperm.xlu0 %13545, %v8869_v44  }
 0x797   : > { %13544 = vset.pattern.permute.xlu1 %v17432_v63 }
 0x798   : > { %9124 = vperm.xlu1 %13544, %v8869_v44  }
 0x799   : > { %13548 = vset.pattern.permute.xlu0 %v17436_v50 }
 0x79a   : > { %9454 = vperm.xlu0 %13548, %v8869_v44  }
 0x79b   : > { %12589 = vmatmul.mubr.msk.f32.vlgmr.msra.gmra.mrb[58].mxu1 %vm7911_vm8, %v8191_v59  ;;  %v8795_v59 = vld [vmem:[%s17055_s19] sm:$0xf] }
 0x79c   : > { %12930 = vmatpush3.bf16.msra.mxu1 %v12927_v41  ;;  %12595 = vmatprep.mubr.msk.f32.mxu1 %vm7911_vm8, %v8285_v0  ;;  %v8892_v0 = vld [vmem:[%s17047_s11 + $0x18] sm:$0xff] }
 0x79d   : > { %12932 = vmatprep.subr.bf16.mxu1 %v12931_v19  ;;  %13546 = vset.pattern.permute.xlu1 %v17434_v22 }
 0x79e   : > { %13551 = vset.pattern.permute.xlu0 %v17377_v54  ;;  %9289 = vperm.xlu1 %13546, %v8869_v44  }
 0x79f   : > { %9634 = vperm.xlu0 %13551, %v9627_v3  }
 0x7a2   : > { %13547 = vset.pattern.permute.xlu1 %v17435_v31 }
 0x7a3   : > { %12596 = vmatmul.mubr.msk.f32.vlgmr.msra.gmra.mrb[58].mxu1 %vm7911_vm8, %v8286_v29  ;;  %9370 = vperm.xlu1 %13547, %v8869_v44  }
 0x7a4   : > { %12934 = vmatpush3.bf16.msra.mxu1 %v12931_v19  ;;  %12602 = vmatprep.mubr.msk.f32.mxu1 %vm7911_vm8, %v8386_v27  ;;  %v8891_v19 = vld [vmem:[%s17047_s11 + $0x10] sm:$0xff]  ;;  %v9048_v27 = vld [vmem:[%s17047_s11 + $0x28] sm:$0xff] }
 0x7a5   : > { %12936 = vmatprep.subr.bf16.mxu1 %v12935_v4  ;;  %v12951_v53 = vpack.c.bf16 %v8892_v0, %v8891_v19  ;;  %13554 = vset.pattern.permute.xlu0 %v17433_v2  ;;  %v8881_v2 = vld [vmem:[%s17047_s11 + $0x8] sm:$0xff]  ;;  %v9652_v0 = vld [vmem:[%s17050_s14 + $0x30] sm:$0xff] }
 0x7a6   : > { %9971 = vperm.xlu0 %13554, %v9627_v3  }
 0x7a7   : > { %13549 = vset.pattern.permute.xlu1 %v17400_v39 }
 0x7a8   : > { %9538 = vperm.xlu1 %13549, %v8869_v44  }
 0x7aa   : > { %13557 = vset.pattern.permute.xlu0 %v17436_v50 }
 0x7ab   : > { %12603 = vmatmul.mubr.msk.f32.vlgmr.msra.gmra.mrb[58].mxu1 %vm7911_vm8, %v8387_v47  ;;  %10226 = vperm.xlu0 %13557, %v9627_v3   ;;  %v9128_v47 = vld [vmem:[%s17047_s11 + $0x30] sm:$0xff] }
 0x7ac   : > { %12938 = vmatpush3.bf16.msra.mxu1 %v12935_v4  ;;  %12609 = vmatprep.mubr.msk.f32.mxu1 %vm7911_vm8, %v8483_v55  ;;  %v9047_v4 = vld [vmem:[%s17047_s11 + $0x20] sm:$0xff] }
 0x7ad   : > { %12940 = vmatprep.subr.bf16.mxu1 %v12939_v17  ;;  %13550 = vset.pattern.permute.xlu1 %v17376_v21  ;;  %v12957_v56 = vpack.c.bf16 %v9048_v27, %v9047_v4 }
 0x7ae   : > { %9646 = vperm.xlu1 %13550, %v9627_v3  }
 0x7af   : > { %13559 = vset.pattern.permute.xlu0 %v17400_v39 }
 0x7b2   : > { %13552 = vset.pattern.permute.xlu1 %v17431_v7 }
 0x7b3   : > { %12610 = vmatmul.mubr.msk.f32.vlgmr.msra.gmra.mrb[58].mxu1 %vm7911_vm8, %v8484_v30  ;;  %9805 = vperm.xlu1 %13552, %v9627_v3  }
 0x7b4   : > { %12942 = vmatpush3.bf16.msra.mxu1 %v12939_v17  ;;  %12616 = vmatprep.mubr.msk.f32.mxu1 %vm7911_vm8, %v8580_v37  ;;  %v9129_v17 = vld [vmem:[%s17047_s11 + $0x38] sm:$0xff] }
 0x7b5   : > { %12944 = vmatprep.subr.bf16.mxu1 %v12943_v38  ;;  %v12960_v25 = vpack.c.bf16 %v9129_v17, %v9128_v47 }
 0x7b7   : > { %13553 = vset.pattern.permute.xlu1 %v17432_v63  ;;  %v8880_v63 = vld [vmem:[%s17047_s11] sm:$0xff] }
 0x7b8   : > { %9888 = vperm.xlu1 %13553, %v9627_v3   ;;  %v12954_v46 = vpack.c.bf16 %v8881_v2, %v8880_v63 }
 0x7bb   : > { %12617 = vmatmul.mubr.msk.f32.vlgmr.msra.gmra.mrb[58].mxu1 %vm7911_vm8, %v8581_v23 }
 0x7bc   : > { %12946 = vmatpush3.bf16.msra.mxu1 %v12943_v38  ;;  %12623 = vmatprep.mubr.msk.f32.mxu1 %vm7911_vm8, %v8677_v15  ;;  %v12963_v38 = vpack.c.bf16 %v9210_v16, %v9209_v20  ;;  %v12966_v15 = vpack.c.bf16 %v9294_v28, %v9293_v45  ;;  %v11361_v16 = vld [vmem:[%s17048_s12] ss:$0 sm:$0xff] }
 0x7bd   : > { %12947 = vmatprep.subr.bf16.mxu1 %v13713_v12  ;;  %13555 = vset.pattern.permute.xlu1 %v17434_v22 }
 0x7be   : > { %10057 = vperm.xlu1 %13555, %v9627_v3  }
 0x7c2   : > { %13556 = vset.pattern.permute.xlu1 %v17435_v31 }
 0x7c3   : > { %12624 = vmatmul.mubr.msk.f32.vlgmr.msra.gmra.mrb[58].mxu1 %vm7911_vm8, %v8678_v51  ;;  %10140 = vperm.xlu1 %13556, %v9627_v3   ;;  %v9375_v51 = vld [vmem:[%s17047_s11 + $0x68] sm:$0xff] }
 0x7c4   : > { %12630 = vmatprep.mubr.msk.f32.mxu1 %vm13714_vm9, %v13715_v9 }
 0x7c7   : > { %13558 = vset.pattern.permute.xlu1 %v17400_v39 }
 0x7c8   : > { %10312 = vperm.xlu1 %13558, %v9627_v3  }
 0x80d   : > { %v8888_v43 = vpop.permute.xlu1 %8887  ;;  %v8877_v10 = vpop.permute.xlu0 %8876 }
 0x812   : > { %v9044_v55 = vpop.permute.xlu1 %9043 }
 0x814   : > { %v9206_v18 = vpop.permute.xlu0 %9205 }
 0x817   : > { %v9125_v30 = vpop.permute.xlu1 %9124 }
 0x81d   : > { %v9290_v44 = vpop.permute.xlu1 %9289 }
 0x896   : > { %v12625_v62 = vpop.f32.mrb[58].mxu1 }
 0x897   : > { %v8772_v48 = vadd.f32 %v12625_v62, %v11350_v8  ;;  %v8753_v35 = vpop.f32.mrb[59].mxu1  ;;  %v12969_v62 = vpack.c.bf16 %v9375_v51, %v9374_v57 }
 0x898   : > { %v8771_v32 = vadd.f32 %v11350_v8, %v8753_v35  ;;  %v9458_v35 = vld [vmem:[%s17047_s11 + $0x70] sm:$0xff] }
 0x899   : > { %v8774_v52 = vmax.f32 %v8772_v48, 0.0 }
 0x89a   : > { %v8773_v6 = vmax.f32 %v8771_v32, 0.0  ;;  %v9459_v32 = vld [vmem:[%s17047_s11 + $0x78] sm:$0xff] }
 0x89b   : > { %v8778_v54 = vrot.slane %v8774_v52, 1 }
 0x89c   : > { %v8777_v61 = vrot.slane %v8773_v6, 1 }
 0x89d   : > { %v8782_v42 = vsel %vm1939_vm3, %v8778_v54, 0.0 }
 0x89e   : > { %v8784_v26 = vmax.f32 %v8774_v52, %v8782_v42  ;;  %v8779_v49 = vsel %vm1939_vm3, %v8777_v61, %v8778_v54  ;;  %v12972_v54 = vpack.c.bf16 %v9459_v32, %v9458_v35  ;;  %v9542_v42 = vld [vmem:[%s17047_s11 + $0x80] sm:$0xff]  ;;  %v9810_v32 = vld [vmem:[%s17050_s14 + $0x48] sm:$0xff] }
 0x89f   : > { %v8783_v13 = vmax.f32 %v8773_v6, %v8779_v49  ;;  %v9371_v6 = vpop.permute.xlu1 %9370  ;;  %v9809_v35 = vld [vmem:[%s17050_s14 + $0x40] sm:$0xff] }
 0x8a0   : > { %v8788_v41 = vrot.slane %v8784_v26, 4 }
 0x8a1   : > { %v8787_v21 = vrot.slane %v8783_v13, 4 }
 0x8a2   : > { %v8792_v60 = vsel %vm1385_vm0, %v8788_v41, 0.0 }
 0x8a3   : > { %v8794_v11 = vmax.f32 %v8784_v26, %v8792_v60  ;;  %v8789_v34 = vsel %vm1385_vm0, %v8787_v21, %v8788_v41  ;;  %v9543_v26 = vld [vmem:[%s17047_s11 + $0x88] sm:$0xff] }
 0x8a4   : > { %v8793_v58 = vmax.f32 %v8783_v13, %v8789_v34  ;;  %v9455_v13 = vpop.permute.xlu0 %9454  ;;  %v12975_v21 = vpack.c.bf16 %v9543_v26, %v9542_v42  ;;  %v9811_v42 = vld [vmem:[%s17050_s14 + $0x50] sm:$0xff]  ;;  %v9812_v26 = vld [vmem:[%s17050_s14 + $0x58] sm:$0xff] }
 0x8a6   : > { %v12948_v33 = vpack.c.bf16 %v8794_v11, %v8793_v58  ;;  %v9539_v11 = vpop.permute.xlu1 %9538 }
 0x8a8   : > { %12949 = vmatpush3.bf16.msra.mxu1 %v12948_v33  ;;  %v9650_v33 = vld [vmem:[%s17050_s14 + $0x20] sm:$0xff] }
 0x8a9   : > { %12950 = vmatprep.subr.bf16.mxu1 %v13713_v12 }
 0x8ab   : > { %12631 = vmatmul.mubr.msk.f32.vlgmr.msra.gmra.mrb[60].mxu1 %vm7911_vm8, %v8795_v59  ;;  %v9651_v59 = vld [vmem:[%s17050_s14 + $0x28] sm:$0xff] }
 0x8ac   : > { %12637 = vmatprep.mubr.msk.f32.mxu1 %vm13714_vm9, %v13715_v9  ;;  %12952 = vmatpush3.bf16.msra.mxu1 %v12951_v53  ;;  %v12978_v19 = vpack.c.bf16 %v9651_v59, %v9650_v33  ;;  %v9653_v53 = vld [vmem:[%s17050_s14 + $0x38] sm:$0xff]  ;;  %v9894_v33 = vld [vmem:[%s17050_s14 + $0x70] sm:$0xff] }
 0x8ad   : > { %12953 = vmatprep.subr.bf16.mxu1 %v13713_v12  ;;  %v12981_v3 = vpack.c.bf16 %v9653_v53, %v9652_v0  ;;  %v9895_v59 = vld [vmem:[%s17050_s14 + $0x78] sm:$0xff]  ;;  %v9975_v0 = vld [vmem:[%s17050_s14 + $0x80] sm:$0xff]  ;;  %v9976_v53 = vld [vmem:[%s17050_s14 + $0x88] sm:$0xff] }
 0x97e   : > { %v16604_v7 = vpop.f32.mrb[60].mxu1 }
 0x97f   : > { %v12632_v22 = vpop.f32.mrb[61].mxu1  ;;  %v8882_v50 = vrot.slane %v16604_v7, 6  ;;  %v8871_v31 = vrot.slane %v16604_v7, 5  ;;  %v9039_v1 = vrot.slane %v16604_v7, 7  ;;  %v9285_v23 = vrot.slane %v16604_v7, 1 }
 0x980   : > { %v9208_v40 = vmul.f32 %v9206_v18, %v16604_v7  ;;  %v9450_v52 = vrot.slane %v16604_v7, 2  ;;  %v9534_v49 = vrot.slane %v16604_v7, 3  ;;  %v9638_v18 = vld [vmem:[%s17050_s14] sm:$0xff] }
 0x981   : > { %v8885_v39 = vsel %vm8884_vm10, 0.0, %v8882_v50  ;;  %v8873_v14 = vsel %vm8074_vm6, 0.0, %v8871_v31  ;;  %v9041_v36 = vsel %vm843_vm1, 0.0, %v9039_v1  ;;  %v9287_v8 = vsel %vm8074_vm6, %v9285_v23, 0.0  ;;  %v9639_v23 = vld [vmem:[%s17050_s14 + $0x8] sm:$0xff] }
 0x982   : > { %v8890_v29 = vmul.f32 %v8888_v43, %v8885_v39  ;;  %v8879_v24 = vmul.f32 %v8877_v10, %v8873_v14  ;;  %v9046_v5 = vmul.f32 %v9044_v55, %v9041_v36  ;;  %v9127_v37 = vmul.f32 %v9125_v30, %v9041_v36 }
 0x983   : > { %v9292_v48 = vmul.f32 %v9290_v44, %v9287_v8  ;;  %v9373_v61 = vmul.f32 %v9371_v6, %v9287_v8  ;;  %v9452_v41 = vsel %vm8884_vm10, %v9450_v52, 0.0  ;;  %v9536_v34 = vsel %vm843_vm1, %v9534_v49, 0.0  ;;  %v9640_v44 = vld [vmem:[%s17050_s14 + $0x10] sm:$0xff]  ;;  %v9641_v8 = vld [vmem:[%s17050_s14 + $0x18] sm:$0xff]  ;;  %v9635_v6 = vpop.permute.xlu0 %9634 }
 0x984   : > { %12638 = vmatmul.mubr.msk.f32.vlgmr.msra.gmra.mrb[62].mxu1 %vm7911_vm8, %v8890_v29  ;;  %v9457_v60 = vmul.f32 %v9455_v13, %v9452_v41  ;;  %v9541_v58 = vmul.f32 %v9539_v11, %v9536_v34  ;;  %v12984_v57 = vpack.c.bf16 %v9639_v23, %v9638_v18  ;;  %v12993_v13 = vpack.c.bf16 %v9812_v26, %v9811_v42  ;;  %v9892_v41 = vld [vmem:[%s17050_s14 + $0x60] sm:$0xff]  ;;  %v10233_v18 = vld [vmem:[%s17050_s14 + $0xf8] sm:$0xff]  ;;  %v10406_v42 = vld [vmem:[%s17056_s20 + $0x8] sm:$0xff] }
 0x985   : > { %12955 = vmatpush3.bf16.msra.mxu1 %v12954_v46  ;;  %12644 = vmatprep.mubr.msk.f32.mxu1 %vm13714_vm9, %v13715_v9 }
 0x986   : > { %12956 = vmatprep.subr.bf16.mxu1 %v13713_v12 }
 0x988   : > { %12645 = vmatmul.mubr.msk.f32.vlgmr.msra.gmra.mrb[64].mxu1 %vm7911_vm8, %v8879_v24 }
 0x989   : > { %12958 = vmatpush3.bf16.msra.mxu1 %v12957_v56  ;;  %12651 = vmatprep.mubr.msk.f32.mxu1 %vm13714_vm9, %v13715_v9 }
 0x98a   : > { %12959 = vmatprep.subr.bf16.mxu1 %v13713_v12 }
 0x98c   : > { %12652 = vmatmul.mubr.msk.f32.vlgmr.msra.gmra.mrb[66].mxu1 %vm7911_vm8, %v9046_v5 }
 0x98d   : > { %12961 = vmatpush3.bf16.msra.mxu1 %v12960_v25  ;;  %12658 = vmatprep.mubr.msk.f32.mxu1 %vm13714_vm9, %v13715_v9 }
 0x98e   : > { %12962 = vmatprep.subr.bf16.mxu1 %v13713_v12 }
 0x990   : > { %12659 = vmatmul.mubr.msk.f32.vlgmr.msra.gmra.mrb[68].mxu1 %vm7911_vm8, %v9127_v37 }
 0x991   : > { %12964 = vmatpush3.bf16.msra.mxu1 %v12963_v38  ;;  %12665 = vmatprep.mubr.msk.f32.mxu1 %vm13714_vm9, %v13715_v9 }
 0x992   : > { %12965 = vmatprep.subr.bf16.mxu1 %v13713_v12 }
 0x994   : > { %12666 = vmatmul.mubr.msk.f32.vlgmr.msra.gmra.mrb[70].mxu1 %vm7911_vm8, %v9208_v40 }
 0x995   : > { %12967 = vmatpush3.bf16.msra.mxu1 %v12966_v15  ;;  %12672 = vmatprep.mubr.msk.f32.mxu1 %vm13714_vm9, %v13715_v9  ;;  %v9647_v15 = vpop.permute.xlu1 %9646 }
 0x996   : > { %12968 = vmatprep.subr.bf16.mxu1 %v13713_v12 }
 0x998   : > { %12673 = vmatmul.mubr.msk.f32.vlgmr.msra.gmra.mrb[72].mxu1 %vm7911_vm8, %v9292_v48  ;;  %v12987_v48 = vpack.c.bf16 %v9641_v8, %v9640_v44 }
 0x999   : > { %12970 = vmatpush3.bf16.msra.mxu1 %v12969_v62  ;;  %12679 = vmatprep.mubr.msk.f32.mxu1 %vm13714_vm9, %v13715_v9  ;;  %v9806_v11 = vpop.permute.xlu1 %9805 }
 0x99a   : > { %12971 = vmatprep.subr.bf16.mxu1 %v13713_v12 }
 0x99c   : > { %12680 = vmatmul.mubr.msk.f32.vlgmr.msra.gmra.mrb[74].mxu1 %vm7911_vm8, %v9373_v61 }
 0x99d   : > { %12973 = vmatpush3.bf16.msra.mxu1 %v12972_v54  ;;  %12686 = vmatprep.mubr.msk.f32.mxu1 %vm13714_vm9, %v13715_v9  ;;  %v12990_v54 = vpack.c.bf16 %v9810_v32, %v9809_v35  ;;  %v10319_v35 = vld [vmem:[%s17050_s14 + $0x118] sm:$0xff] }
 0x99e   : > { %12974 = vmatprep.subr.bf16.mxu1 %v13713_v12 }
 0x9a0   : > { %12687 = vmatmul.mubr.msk.f32.vlgmr.msra.gmra.mrb[76].mxu1 %vm7911_vm8, %v9457_v60 }
 0x9a1   : > { %12976 = vmatpush3.bf16.msra.mxu1 %v12975_v21  ;;  %12693 = vmatprep.mubr.msk.f32.mxu1 %vm13714_vm9, %v13715_v9  ;;  %v9893_v21 = vld [vmem:[%s17050_s14 + $0x68] sm:$0xff] }
 0x9a2   : > { %12977 = vmatprep.subr.bf16.mxu1 %v13713_v12  ;;  %v12996_v34 = vpack.c.bf16 %v9893_v21, %v9892_v41 }
 0x9a4   : > { %12694 = vmatmul.mubr.msk.f32.vlgmr.msra.gmra.mrb[78].mxu1 %vm7911_vm8, %v9541_v58 }
 0x9a5   : > { %12704 = vmatprep.mubr.msk.f32.mxu1 %vm13714_vm9, %v13715_v9  ;;  %12979 = vmatpush3.bf16.msra.mxu1 %v12978_v19  ;;  %v12999_v19 = vpack.c.bf16 %v9895_v59, %v9894_v33 }
 0x9a6   : > { %12980 = vmatprep.subr.bf16.mxu1 %v13713_v12 }
 0x9a9   : > { %12982 = vmatpush3.bf16.msra.mxu1 %v12981_v3  ;;  %v9889_v3 = vpop.permute.xlu1 %9888 }
 0x9aa   : > { %12983 = vmatprep.subr.bf16.mxu1 %v13713_v12 }
 0xa57   : > { %v8962_v7 = vpop.f32.mrb[62].mxu1 }
 0xa58   : > { %v12639_v63 = vpop.f32.mrb[63].mxu1 }
 0xa5b   : > { %v9035_v2 = vpop.f32.mrb[64].mxu1 }
 0xa5c   : > { %v9036_v22 = vadd.f32 %v9035_v2, %v8962_v7  ;;  %v12646_v50 = vpop.f32.mrb[65].mxu1  ;;  %v13002_v7 = vpack.c.bf16 %v9976_v53, %v9975_v0  ;;  %v9977_v2 = vld [vmem:[%s17050_s14 + $0x90] sm:$0xff] }
 0xa5f   : > { %v9118_v31 = vpop.f32.mrb[66].mxu1 }
 0xa60   : > { %v9122_v43 = vadd.f32 %v9118_v31, %v9036_v22  ;;  %v12653_v39 = vpop.f32.mrb[67].mxu1  ;;  %v9978_v22 = vld [vmem:[%s17050_s14 + $0x98] sm:$0xff]  ;;  %v10061_v31 = vld [vmem:[%s17050_s14 + $0xa0] sm:$0xff] }
 0xa61   : > { %v13005_v50 = vpack.c.bf16 %v9978_v22, %v9977_v2  ;;  %v9972_v39 = vpop.permute.xlu0 %9971 }
 0xa63   : > { %v9199_v46 = vpop.f32.mrb[68].mxu1 }
 0xa64   : > { %v9203_v29 = vadd.f32 %v9199_v46, %v9122_v43  ;;  %v12660_v4 = vpop.f32.mrb[69].mxu1  ;;  %v10062_v43 = vld [vmem:[%s17050_s14 + $0xa8] sm:$0xff] }
 0xa65   : > { %v13008_v46 = vpack.c.bf16 %v10062_v43, %v10061_v31  ;;  %v10063_v4 = vld [vmem:[%s17050_s14 + $0xb0] sm:$0xff] }
 0xa67   : > { %v9280_v27 = vpop.f32.mrb[70].mxu1 }
 0xa68   : > { %v9284_v14 = vadd.f32 %v9280_v27, %v9203_v29  ;;  %v12667_v1 = vpop.f32.mrb[71].mxu1  ;;  %v10064_v27 = vld [vmem:[%s17050_s14 + $0xb8] sm:$0xff] }
 0xa69   : > { %v13011_v1 = vpack.c.bf16 %v10064_v27, %v10063_v4 }
 0xa6b   : > { %v9364_v10 = vpop.f32.mrb[72].mxu1 }
 0xa6c   : > { %v9368_v56 = vadd.f32 %v9364_v10, %v9284_v14  ;;  %v12674_v24 = vpop.f32.mrb[73].mxu1  ;;  %v10144_v10 = vld [vmem:[%s17050_s14 + $0xc0] sm:$0xff] }
 0xa6f   : > { %v9445_v47 = vpop.f32.mrb[74].mxu1 }
 0xa70   : > { %v9449_v17 = vadd.f32 %v9445_v47, %v9368_v56  ;;  %v12681_v55 = vpop.f32.mrb[75].mxu1  ;;  %v10145_v56 = vld [vmem:[%s17050_s14 + $0xc8] sm:$0xff]  ;;  %v10058_v47 = vpop.permute.xlu1 %10057 }
 0xa73   : > { %v9529_v36 = vpop.f32.mrb[76].mxu1 }
 0xa74   : > { %v9533_v25 = vadd.f32 %v9529_v36, %v9449_v17  ;;  %v12688_v5 = vpop.f32.mrb[77].mxu1  ;;  %v13014_v17 = vpack.c.bf16 %v10145_v56, %v10144_v10  ;;  %v10146_v36 = vld [vmem:[%s17050_s14 + $0xd0] sm:$0xff] }
 0xa77   : > { %v9613_v20 = vpop.f32.mrb[78].mxu1 }
 0xa78   : > { %v9617_v30 = vadd.f32 %v9613_v20, %v9533_v25  ;;  %v12695_v38 = vpop.f32.mrb[79].mxu1  ;;  %v10147_v25 = vld [vmem:[%s17050_s14 + $0xd8] sm:$0xff]  ;;  %v10230_v20 = vld [vmem:[%s17050_s14 + $0xe0] sm:$0xff] }
 0xa79   : > { %v13017_v5 = vpack.c.bf16 %v10147_v25, %v10146_v36  ;;  %v10556_v36 = vld [vmem:[%s17056_s20 + $0x28] sm:$0xff]  ;;  %v10403_v25 = vld [vmem:[%s748_s25] sm:$0x1]  ;;  %s13646_s25 = scalar_lea.vmem %s13645_s28, 32 }
 0xa7a   : > { %v9625_v37 = vadd.f32 %v11361_v16, %v9617_v30  ;;  %v10231_v16 = vld [vmem:[%s17050_s14 + $0xe8] sm:$0xff]  ;;  %v10141_v30 = vpop.permute.xlu1 %10140  ;;  %p13648_p1 = scmp.lt.s32.totalorder %s13646_s25, %s13640_s29 }
 0xa7b   : > { %v13020_v38 = vpack.c.bf16 %v10231_v16, %v10230_v20  ;;  %v10557_v20 = vld [vmem:[%s17056_s20 + $0x30] sm:$0xff]  ;;  %v10558_v16 = vld [vmem:[%s17056_s20 + $0x38] sm:$0xff] }
 0xa7c   : > { %v16719_v45 = vmax.f32 %v9625_v37, 0.0  ;;  %p13649_p2 = por %p13648_p1, %p13647_p0 }
 0xa7e   : > { %v9642_v28 = vrot.slane %v16719_v45, 6  ;;  %v9629_v62 = vrot.slane %v16719_v45, 5  ;;  %v9801_v49 = vrot.slane %v16719_v45, 7  ;;  %v9974_v29 = vmul.f32 %v9972_v39, %v16719_v45  ;;  %p13650_p3 = pnand %p13649_p2, %p13643_p13 }
 0xa7f   : > { %v10053_v14 = vrot.slane %v16719_v45, 1  ;;  %v10222_v23 = vrot.slane %v16719_v45, 2  ;;  %v10308_v32 = vrot.slane %v16719_v45, 3  ;;  %v10405_v45 = vld [vmem:[%s17056_s20] sm:$0xff] }
 0xa80   : > { %v9644_v40 = vsel %vm8884_vm10, 0.0, %v9642_v28  ;;  %v9631_v52 = vsel %vm8074_vm6, 0.0, %v9629_v62  ;;  %v9803_v60 = vsel %vm843_vm1, 0.0, %v9801_v49  ;;  %v10232_v28 = vld [vmem:[%s17050_s14 + $0xf0] sm:$0xff]  ;;  %v13032_v26 = vpack.c.bf16 %v10406_v42, %v10405_v45  ;;  %v10795_v45 = vld [vmem:[%s17058_s22 + $0x18] sm:$0xff] }
 0xa81   : > { %v9649_v51 = vmul.f32 %v9647_v15, %v9644_v40  ;;  %v9637_v61 = vmul.f32 %v9635_v6, %v9631_v52  ;;  %v9808_v58 = vmul.f32 %v9806_v11, %v9803_v60  ;;  %v9891_v63 = vmul.f32 %v9889_v3, %v9803_v60  ;;  %v10316_v40 = vld [vmem:[%s17050_s14 + $0x100] sm:$0xff]  ;;  %v10313_v6 = vpop.permute.xlu1 %10312  ;;  %v10407_v49 = vld [vmem:[%s17056_s20 + $0x10] sm:$0xff] }
 0xa82   : > { %v10055_v24 = vsel %vm8074_vm6, %v10053_v14, 0.0  ;;  %v13023_v15 = vpack.c.bf16 %v10233_v18, %v10232_v28  ;;  %v10224_v44 = vsel %vm8884_vm10, %v10222_v23, 0.0  ;;  %v10635_v23 = vld [vmem:[%s17056_s20 + $0x50] sm:$0xff] }
 0xa83   : > { %12705 = vmatmul.mubr.msk.f32.vlgmr.msra.gmra.mrb[80].mxu1 %vm9654_vm11, %v9649_v51  ;;  %v10060_v55 = vmul.f32 %v10058_v47, %v10055_v24  ;;  %v10143_v37 = vmul.f32 %v10141_v30, %v10055_v24  ;;  %v10227_v51 = vpop.permute.xlu0 %10226  ;;  %v13041_v30 = vpack.c.bf16 %v10558_v16, %v10557_v20 }
 0xa84   : > { %12985 = vmatpush3.bf16.msra.mxu1 %v12984_v57  ;;  %12715 = vmatprep.mubr.msk.f32.mxu1 %vm13714_vm9, %v13715_v9  ;;  %v10317_v57 = vld [vmem:[%s17050_s14 + $0x108] sm:$0xff]  ;;  %v10229_v62 = vmul.f32 %v10227_v51, %v10224_v44 }
 0xa85   : > { %12986 = vmatprep.subr.bf16.mxu1 %v13713_v12  ;;  %v13026_v8 = vpack.c.bf16 %v10317_v57, %v10316_v40  ;;  %v10711_v57 = vld [vmem:[%s17056_s20 + $0x60] sm:$0xff]  ;;  %v10712_v51 = vld [vmem:[%s17056_s20 + $0x68] sm:$0xff] }
 0xa86   : > { %v13050_v44 = vpack.c.bf16 %v10712_v51, %v10711_v57 }
 0xa88   : > { %12988 = vmatpush3.bf16.msra.mxu1 %v12987_v48  ;;  %v10318_v48 = vld [vmem:[%s17050_s14 + $0x110] sm:$0xff] }
 0xa89   : > { %12989 = vmatprep.subr.bf16.mxu1 %v13713_v12  ;;  %v13029_v52 = vpack.c.bf16 %v10319_v35, %v10318_v48  ;;  %v10714_v48 = vld [vmem:[%s17056_s20 + $0x78] sm:$0xff] }
 0xa8b   : > { %12716 = vmatmul.mubr.msk.f32.vlgmr.msra.gmra.mrb[82].mxu1 %vm9654_vm11, %v9637_v61 }
 0xa8c   : > { %12991 = vmatpush3.bf16.msra.mxu1 %v12990_v54  ;;  %12726 = vmatprep.mubr.msk.f32.mxu1 %vm13714_vm9, %v13715_v9  ;;  %v10310_v54 = vsel %vm843_vm1, %v10308_v32, 0.0 }
 0xa8d   : > { %12992 = vmatprep.subr.bf16.mxu1 %v13713_v12  ;;  %v10315_v61 = vmul.f32 %v10313_v6, %v10310_v54  ;;  %v10793_v6 = vld [vmem:[%s17058_s22 + $0x8] sm:$0xff] }
 0xa90   : > { %12994 = vmatpush3.bf16.msra.mxu1 %v12993_v13  ;;  %v10408_v13 = vld [vmem:[%s17056_s20 + $0x18] sm:$0xff] }
 0xa91   : > { %12995 = vmatprep.subr.bf16.mxu1 %v13713_v12  ;;  %v13035_v41 = vpack.c.bf16 %v10408_v13, %v10407_v49  ;;  %v10798_v13 = vld [vmem:[%s17058_s22 + $0x30] sm:$0xff] }
 0xa93   : > { %12727 = vmatmul.mubr.msk.f32.vlgmr.msra.gmra.mrb[84].mxu1 %vm9654_vm11, %v9808_v58 }
 0xa94   : > { %12997 = vmatpush3.bf16.msra.mxu1 %v12996_v34  ;;  %12737 = vmatprep.mubr.msk.f32.mxu1 %vm13714_vm9, %v13715_v9 }
 0xa95   : > { %12998 = vmatprep.subr.bf16.mxu1 %v13713_v12 }
 0xa98   : > { %13000 = vmatpush3.bf16.msra.mxu1 %v12999_v19 }
 0xa99   : > { %13001 = vmatprep.subr.bf16.mxu1 %v13713_v12 }
 0xa9b   : > { %12738 = vmatmul.mubr.msk.f32.vlgmr.msra.gmra.mrb[86].mxu1 %vm9654_vm11, %v9891_v63 }
 0xa9c   : > { %13003 = vmatpush3.bf16.msra.mxu1 %v13002_v7  ;;  %12748 = vmatprep.mubr.msk.f32.mxu1 %vm13714_vm9, %v13715_v9 }
 0xa9d   : > { %13004 = vmatprep.subr.bf16.mxu1 %v13713_v12 }
 0xaa0   : > { %13006 = vmatpush3.bf16.msra.mxu1 %v13005_v50 }
 0xaa1   : > { %13007 = vmatprep.subr.bf16.mxu1 %v13713_v12 }
 0xaa3   : > { %12749 = vmatmul.mubr.msk.f32.vlgmr.msra.gmra.mrb[88].mxu1 %vm9654_vm11, %v9974_v29 }
 0xaa4   : > { %13009 = vmatpush3.bf16.msra.mxu1 %v13008_v46  ;;  %12759 = vmatprep.mubr.msk.f32.mxu1 %vm13714_vm9, %v13715_v9 }
 0xaa5   : > { %13010 = vmatprep.subr.bf16.mxu1 %v13713_v12 }
 0xaa8   : > { %13012 = vmatpush3.bf16.msra.mxu1 %v13011_v1  ;;  %v11371_v1 = vld [vmem:[%s17051_s15] ss:$0 sm:$0xff] }
 0xaa9   : > { %13013 = vmatprep.subr.bf16.mxu1 %v13713_v12 }
 0xaab   : > { %12760 = vmatmul.mubr.msk.f32.vlgmr.msra.gmra.mrb[90].mxu1 %vm9654_vm11, %v10060_v55  ;;  %v10555_v55 = vld [vmem:[%s17056_s20 + $0x20] sm:$0xff] }
 0xaac   : > { %13015 = vmatpush3.bf16.msra.mxu1 %v13014_v17  ;;  %12770 = vmatprep.mubr.msk.f32.mxu1 %vm13714_vm9, %v13715_v9  ;;  %v10404_v17 = vld [vmem:[%s17056_s20 + $0x80] sm:$0xff] }
 0xaad   : > { %13016 = vmatprep.subr.bf16.mxu1 %v13713_v12 }
 0xab0   : > { %13018 = vmatpush3.bf16.msra.mxu1 %v13017_v5  ;;  %v13038_v5 = vpack.c.bf16 %v10556_v36, %v10555_v55 }
 0xab1   : > { %13019 = vmatprep.subr.bf16.mxu1 %v13713_v12 }
 0xab3   : > { %12771 = vmatmul.mubr.msk.f32.vlgmr.msra.gmra.mrb[92].mxu1 %vm9654_vm11, %v10143_v37  ;;  %v10634_v37 = vld [vmem:[%s17056_s20 + $0x48] sm:$0xff] }
 0xab4   : > { %13021 = vmatpush3.bf16.msra.mxu1 %v13020_v38  ;;  %12781 = vmatprep.mubr.msk.f32.mxu1 %vm13714_vm9, %v13715_v9  ;;  %v10633_v38 = vld [vmem:[%s17056_s20 + $0x40] sm:$0xff] }
 0xab5   : > { %13022 = vmatprep.subr.bf16.mxu1 %v13713_v12  ;;  %v13044_v28 = vpack.c.bf16 %v10634_v37, %v10633_v38 }
 0xab8   : > { %13024 = vmatpush3.bf16.msra.mxu1 %v13023_v15  ;;  %v10636_v15 = vld [vmem:[%s17056_s20 + $0x58] sm:$0xff] }
 0xab9   : > { %13025 = vmatprep.subr.bf16.mxu1 %v13713_v12  ;;  %v13047_v40 = vpack.c.bf16 %v10636_v15, %v10635_v23 }
 0xabb   : > { %12782 = vmatmul.mubr.msk.f32.vlgmr.msra.gmra.mrb[94].mxu1 %vm9654_vm11, %v10229_v62  ;;  %v10713_v62 = vld [vmem:[%s17056_s20 + $0x70] sm:$0xff] }
 0xabc   : > { %13027 = vmatpush3.bf16.msra.mxu1 %v13026_v8  ;;  %12792 = vmatprep.mubr.msk.f32.mxu1 %vm13714_vm9, %v13715_v9  ;;  %v13053_v35 = vpack.c.bf16 %v10714_v48, %v10713_v62 }
 0xabd   : > { %13028 = vmatprep.subr.bf16.mxu1 %v13713_v12 }
 0xac0   : > { %13030 = vmatpush3.bf16.msra.mxu1 %v13029_v52  ;;  %v10792_v52 = vld [vmem:[%s17058_s22] sm:$0xff] }
 0xac1   : > { %13031 = vmatprep.subr.bf16.mxu1 %v13713_v12  ;;  %v13056_v54 = vpack.c.bf16 %v10793_v6, %v10792_v52 }
 0xac3   : > { %12793 = vmatmul.mubr.msk.f32.vlgmr.msra.gmra.mrb[96].mxu1 %vm9654_vm11, %v10315_v61  ;;  %v10794_v61 = vld [vmem:[%s17058_s22 + $0x10] sm:$0xff] }
 0xac4   : > { %12803 = vmatprep.mubr.msk.f32.mxu1 %vm13714_vm9, %v13715_v9  ;;  %13033 = vmatpush3.bf16.msra.mxu1 %v13032_v26  ;;  %v13059_v42 = vpack.c.bf16 %v10795_v45, %v10794_v61  ;;  %v10797_v26 = vld [vmem:[%s17058_s22 + $0x28] sm:$0xff] }
 0xac5   : > { %13034 = vmatprep.subr.bf16.mxu1 %v13713_v12 }
 0xac8   : > { %13036 = vmatpush3.bf16.msra.mxu1 %v13035_v41  ;;  %v10799_v41 = vld [vmem:[%s17058_s22 + $0x38] sm:$0xff] }
 0xac9   : > { %12806 = vmatprep.subr.mxu1 %v13715_v9 }
 0xb56   : > { %v9724_v21 = vpop.f32.mrb[80].mxu1 }
 0xb57   : > { %v12706_v60 = vpop.f32.mrb[81].mxu1 }
 0xb5e   : > { %v9797_v11 = vpop.f32.mrb[82].mxu1 }
 0xb5f   : > { %v9798_v34 = vadd.f32 %v9797_v11, %v9724_v21  ;;  %v12717_v58 = vpop.f32.mrb[83].mxu1  ;;  %v13065_v21 = vpack.c.bf16 %v10799_v41, %v10798_v13 }
 0xb66   : > { %v9882_v33 = vpop.f32.mrb[84].mxu1 }
 0xb67   : > { %v9886_v59 = vadd.f32 %v9882_v33, %v9798_v34  ;;  %v12728_v19 = vpop.f32.mrb[85].mxu1 }
 0xb6e   : > { %v9965_v0 = vpop.f32.mrb[86].mxu1 }
 0xb6f   : > { %v9969_v53 = vadd.f32 %v9965_v0, %v9886_v59  ;;  %v12739_v3 = vpop.f32.mrb[87].mxu1 }
 0xb76   : > { %v10048_v7 = vpop.f32.mrb[88].mxu1 }
 0xb77   : > { %v10052_v63 = vadd.f32 %v10048_v7, %v9969_v53  ;;  %v12750_v2 = vpop.f32.mrb[89].mxu1 }
 0xb7e   : > { %v10134_v22 = vpop.f32.mrb[90].mxu1 }
 0xb7f   : > { %v10138_v50 = vadd.f32 %v10134_v22, %v10052_v63  ;;  %v12761_v31 = vpop.f32.mrb[91].mxu1  ;;  %v10789_v63 = vld [vmem:[%s17057_s21] sm:$0x1] }
 0xb86   : > { %v10217_v43 = vpop.f32.mrb[92].mxu1 }
 0xb87   : > { %v10221_v39 = vadd.f32 %v10217_v43, %v10138_v50  ;;  %v12772_v46 = vpop.f32.mrb[93].mxu1  ;;  %v10800_v43 = vld [vmem:[%s17059_s23] sm:$0x1] }
 0xb8e   : > { %v10303_v29 = vpop.f32.mrb[94].mxu1 }
 0xb8f   : > { %v10307_v4 = vadd.f32 %v10303_v29, %v10221_v39  ;;  %v12783_v27 = vpop.f32.mrb[95].mxu1 }
 0xb96   : > { %v10389_v14 = vpop.f32.mrb[96].mxu1 }
 0xb97   : > { %v10393_v10 = vadd.f32 %v10389_v14, %v10307_v4  ;;  %v12794_v56 = vpop.f32.mrb[97].mxu1 }
 0xb99   : > { %v10401_v24 = vadd.f32 %v11371_v1, %v10393_v10 }
 0xb9b   : > { %v10402_v47 = vmax.f32 %v10401_v24, 0.0 }
 0xb9d   : > { %12804 = vmatmul.mubr.msk.f32.vlgmr.msra.gmra.mrb[98].mxu1 %vm9654_vm11, %v10402_v47  ;;  %v10559_v18 = vrot.slane %v10402_v47, 1  ;;  %v10637_v8 = vrot.slane %v10402_v47, 2  ;;  %v10715_v32 = vrot.slane %v10402_v47, 3 }
 0xb9e   : > { %12807 = vmatpush3.msra.mxu1 %v10404_v17  ;;  %12808 = vmatprep.mubr.msk.f32.mxu1 %vm13714_vm9, %v13715_v9 }
 0xb9f   : > { %13037 = vmatprep.subr.bf16.mxu1 %v13713_v12 }
 0xba1   : > { %12809 = vmatmul.mubr.msk.f32.vlgmr.msra.gmra.mrb[100].mxu1 %vm6176_vm4, %v10403_v25 }
 0xba2   : > { %13039 = vmatpush3.bf16.msra.mxu1 %v13038_v5  ;;  %12819 = vmatprep.mubr.msk.f32.mxu1 %vm13714_vm9, %v13715_v9 }
 0xba3   : > { %13040 = vmatprep.subr.bf16.mxu1 %v13713_v12 }
 0xba6   : > { %13042 = vmatpush3.bf16.msra.mxu1 %v13041_v30 }
 0xba7   : > { %13043 = vmatprep.subr.bf16.mxu1 %v13713_v12 }
 0xba9   : > { %12820 = vmatmul.mubr.msk.f32.vlgmr.msra.gmra.mrb[102].mxu1 %vm9654_vm11, %v10559_v18 }
 0xbaa   : > { %13045 = vmatpush3.bf16.msra.mxu1 %v13044_v28  ;;  %12830 = vmatprep.mubr.msk.f32.mxu1 %vm13714_vm9, %v13715_v9 }
 0xbab   : > { %13046 = vmatprep.subr.bf16.mxu1 %v13713_v12 }
 0xbae   : > { %13048 = vmatpush3.bf16.msra.mxu1 %v13047_v40 }
 0xbaf   : > { %13049 = vmatprep.subr.bf16.mxu1 %v13713_v12 }
 0xbb1   : > { %12831 = vmatmul.mubr.msk.f32.vlgmr.msra.gmra.mrb[104].mxu1 %vm9654_vm11, %v10637_v8 }
 0xbb2   : > { %13051 = vmatpush3.bf16.msra.mxu1 %v13050_v44  ;;  %12841 = vmatprep.mubr.msk.f32.mxu1 %vm13714_vm9, %v13715_v9 }
 0xbb3   : > { %13052 = vmatprep.subr.bf16.mxu1 %v13713_v12 }
 0xbb6   : > { %13054 = vmatpush3.bf16.msra.mxu1 %v13053_v35 }
 0xbb7   : > { %13055 = vmatprep.subr.bf16.mxu1 %v13713_v12 }
 0xbb9   : > { %12842 = vmatmul.mubr.msk.f32.vlgmr.msra.gmra.mrb[106].mxu1 %vm9654_vm11, %v10715_v32 }
 0xbba   : > { %12860 = vmatprep.mubr.msk.f32.mxu1 %vm13714_vm9, %v13715_v9  ;;  %13057 = vmatpush3.bf16.msra.mxu1 %v13056_v54  ;;  %v10796_v9 = vld [vmem:[%s17058_s22 + $0x20] sm:$0xff] }
 0xbbb   : > { %13058 = vmatprep.subr.bf16.mxu1 %v13713_v12  ;;  %v13062_v49 = vpack.c.bf16 %v10797_v26, %v10796_v9 }
 0xbbe   : > { %13060 = vmatpush3.bf16.msra.mxu1 %v13059_v42 }
 0xbbf   : > { %13061 = vmatprep.subr.bf16.mxu1 %v13713_v12 }
 0xbc2   : > { %13063 = vmatpush3.bf16.msra.mxu1 %v13062_v49 }
 0xbc3   : > { %13064 = vmatprep.subr.bf16.mxu1 %v13713_v12 }
 0xbc6   : > { %13066 = vmatpush3.bf16.msra.mxu1 %v13065_v21 }
 0xc70   : > { %v10478_v60 = vpop.f32.mrb[98].mxu1 }
 0xc71   : > { %v12805_v11 = vpop.f32.mrb[99].mxu1 }
 0xc74   : > { %v10551_v34 = vpop.f32.mrb[100].mxu1 }
 0xc75   : > { %v10552_v58 = vadd.f32 %v10551_v34, %v10478_v60  ;;  %v12810_v33 = vpop.f32.mrb[101].mxu1 }
 0xc7c   : > { %v10628_v59 = vpop.f32.mrb[102].mxu1 }
 0xc7d   : > { %v10632_v19 = vadd.f32 %v10628_v59, %v10552_v58  ;;  %v12821_v12 = vpop.f32.mrb[103].mxu1 }
 0xc84   : > { %v10706_v0 = vpop.f32.mrb[104].mxu1 }
 0xc85   : > { %v10710_v53 = vadd.f32 %v10706_v0, %v10632_v19  ;;  %v12832_v3 = vpop.f32.mrb[105].mxu1 }
 0xc8c   : > { %v10784_v7 = vpop.f32.mrb[106].mxu1 }
 0xc8d   : > { %v10788_v2 = vadd.f32 %v10784_v7, %v10710_v53  ;;  %v12843_v22 = vpop.f32.mrb[107].mxu1 }
 0xc8f   : > { %v10790_v50 = vadd.f32 %v10789_v63, %v10788_v2 }
 0xc91   : > { %v10791_v31 = vmax.f32 %v10790_v50, 0.0 }
 0xc93   : > { %12861 = vmatmul.mubr.msk.f32.vlgmr.msra.gmra.mrb[108].mxu1 %vm7786_vm5, %v10791_v31 }
 0xd66   : > { %v10870_v39 = vpop.f32.mrb[108].mxu1 }
 0xd67   : > { %v10871_v46 = vadd.f32 %v10870_v39, %v10800_v43  ;;  %v12862_v29 = vpop.f32.mrb[109].mxu1 }
 0xd69   : > { %10875 = vst.msk [vmem:[%s740_s0] sm:$0x1] %vm10874_vm12, %v10871_v46 }
 0xd6a   : > { %13653 = shalt.err (!%p13650_p3)
}
 0xd6b   : > { %s13654_s7 = scalar_lea.hbm %s16994_s27, 16  ;;  %s13658_s2 = scalar_lea.hbm %s17060_s24, 32 }
 0xd6c   : > { %p13655_p4 = scmp.ne.s32.totalorder %s16994_s27, %s13654_s7  ;;  %p13659_p9 = scmp.lt.u32.totalorder %s16994_s27, %s17060_s24 }
 0xd6d   : > { %p13660_p10 = scmp.lt.u32.totalorder %s13658_s2, %s13654_s7  ;;  %p13662_p12 = scmp.lt.u32.totalorder %s13654_s7, %s16994_s27 }
 0xd6e   : > { %p13656_p7 = pnand %p13655_p4, %p13880_p5 }
 0xd6f   : > { %p13661_p11 = por %p13660_p10, %p13659_p9 }
 0xd70   : > { %p13657_p8 = pneg %p13656_p7 }
 0xd71   : > { %p13663_p13 = por %p13662_p12, %p13661_p11 }
 0xd73   : > { %p13664_p0 = pnand %p13663_p13, %p13657_p8 }
 0xd75   : > { %13667 = shalt.err (!%p13664_p0)
}
 0xd76   : > { %13405 = dma.vmem_to_hbm [thread:$0]  (%p13880_p5), %s16996_s9, 16, %s16994_s27, %s10877_s5  }
 0xd77 PF: > { %s17443_s1 = sld [smem:[#allocation7_spill]]  ;;  %s17444_s29 = sld [smem:[#allocation5_spill]] }
 0xd7d   : > { %p13411_p1 = scmp.ge.s32.totalorder %s17443_s1, 2  ;;  %s10901_s28 = sand.u32 1, %s17444_s29  }
 0xd7e   : > { %s10902_s25 = scalar_lea.sflag [#allocation3], %s10901_s28 }
 0xd7f   : > { %p13408_p2 = pnand %p13411_p1, %p13884_p6 }
 0xd81   : > { %13685 = dma.done.wait (!%p13408_p2), %s10902_s25, 16  }
 0xd82   : > { %13687 = vsyncadd (!%p13408_p2), %s10902_s25, 4294967280  ;;  %s17446_s28 = sld [smem:[#allocation8_spill]]  ;;  %s17447_s7 = sld [smem:[#allocation6_spill]] }
 0xd83   : > { %s17448_s27 = sld [smem:[#allocation9_spill]]  ;;  %s17449_s5 = smov %s13694_s26 }
 0xd88   : > { %p34_p3 = scmp.ge.s32.totalorder %s17446_s28, 4   ;;  %s17450_s26 = smov %s17447_s7 }
 0xd8a   :  { %36 = sbr.rel (!%p34_p3) target bundleno = 15 (0xf), region = 154 }
 0xd91   :  { %10906 = vsyncpa [#allocation3], 1 }
 0xd92   :  { %10908 = vsyncpa [#allocation3 + $0x1], 1 }

</bundles_post_ra>
